<compile_context>
chip_gen: v7x
topology: tpu7x:2x2x1
jax: 0.10.0
libtpu: 0.0.40
codegen_flags: <defaults>
</compile_context>

<pallas_src>
import functools
import math

import jax
import jax.numpy as jnp
import numpy as np
from jax.experimental import pallas as pl
from jax.experimental.pallas import tpu as pltpu


# ----------------------------- fused Pallas kernel -----------------------------

def _chatbot_kernel(src_ref, tgt_ref, w_ref, out_ref, *, off, dims):
    """src_ref: (S_src, E), tgt_ref: (S_tgt, E), w_ref: packed weight slab,
    out_ref: (S_tgt, vocab).  One grid step == one batch row."""
    H = dims["num_heads"]
    E = dims["E"]
    dff = dims["dff"]
    vocab = dims["vocab"]
    Dh = E // H
    scale = 1.0 / math.sqrt(Dh)

    # ---- static, aligned carve-outs from the packed slab (no extra DMAs) ----
    def row(o, width):                      # (1, width) at lane offset 0
        return w_ref[o:o + 1, 0:width]

    def mat(o, r, c):                       # (r, c) at lane offset 0, 8-row aligned
        return w_ref[o:o + r, 0:c]

    def layernorm(y, o):
        g = row(o, E)
        b = row(o + 1, E)
        mu = jnp.mean(y, axis=-1, keepdims=True)
        var = jnp.mean(jnp.square(y - mu), axis=-1, keepdims=True)
        return (y - mu) * jax.lax.rsqrt(var + 1e-5) * g + b

    def attention(xq, xkv, a, causal):
        Sq, Sk = xq.shape[0], xkv.shape[0]
        if causal:
            # Built once per attention call (hoisted out of the head loop).
            r = jax.lax.broadcasted_iota(jnp.int32, (Sq, Sk), 0)
            c = jax.lax.broadcasted_iota(jnp.int32, (Sq, Sk), 1)
            neg = jnp.where(c > r, -1e30, 0.0).astype(jnp.float32)
        b_qkv = a["b_qkv"]
        acc = row(a["bo"], E)               # start the accumulator from the out-proj bias
        for h in range(H):
            # Per-head projections: every operand/result sits at lane offset 0.
            q = jnp.dot(xq, mat(a["wq"][h], E, Dh),
                        preferred_element_type=jnp.float32) + row(b_qkv + h, Dh)
            k = jnp.dot(xkv, mat(a["wk"][h], E, Dh),
                        preferred_element_type=jnp.float32) + row(b_qkv + H + h, Dh)
            v = jnp.dot(xkv, mat(a["wv"][h], E, Dh),
                        preferred_element_type=jnp.float32) + row(b_qkv + 2 * H + h, Dh)
            # scores = q @ k^T (no materialized transpose)
            s = jax.lax.dot_general(q, k, (((1,), (1,)), ((), ())),
                                    preferred_element_type=jnp.float32) * scale
            if causal:
                s = s + neg
            s = s - jnp.max(s, axis=-1, keepdims=True)
            p = jnp.exp(s)
            p = p * pl.reciprocal(jnp.sum(p, axis=-1, keepdims=True), approx=True)
            o = jnp.dot(p, v, preferred_element_type=jnp.float32)        # (Sq, Dh)
            # Fold the head straight into the output projection: no lane-axis
            # concatenation and no scratch round-trip.
            acc = acc + jnp.dot(o, mat(a["wo"][h], Dh, E),
                                preferred_element_type=jnp.float32)      # (Sq, E)
        return acc

    def ffn(x, lw):
        h1 = jnp.dot(x, mat(lw["w1"], E, dff),
                     preferred_element_type=jnp.float32) + row(lw["b1"], dff)
        h1 = jnp.maximum(h1, 0.0)
        return jnp.dot(h1, mat(lw["w2"], dff, E),
                       preferred_element_type=jnp.float32) + row(lw["b2"], E)

    # ---------------- encoder stack ----------------
    x = src_ref[...]                                    # (S_src, E)
    for lw in off["enc"]:
        x = layernorm(attention(x, x, lw["self"], False) + x, lw["norm"])
        x = layernorm(ffn(x, lw) + x, lw["norm"])
    memory = x

    # ---------------- decoder stack ----------------
    y = tgt_ref[...]                                    # (S_tgt, E)
    for lw in off["dec"]:
        tgt_in = y
        x = layernorm(attention(tgt_in, tgt_in, lw["self"], True) + tgt_in, lw["norm"])
        # Reference uses query = tgt (layer input) for cross-attention.
        x = layernorm(attention(tgt_in, memory, lw["cross"], False) + x, lw["norm"])
        y = layernorm(ffn(x, lw) + x, lw["norm"])

    # ---------------- fc_out: lane-dense (S_tgt, vocab) store ----------------
    out_ref[...] = (jnp.dot(y, mat(off["fc_w"], E, vocab),
                            preferred_element_type=jnp.float32)
                    + row(off["fc_b"], vocab))


# ----------------------------- host-side weight packing -----------------------------

_LANES = 128
_SUBLANES = 8


class _Packer:
    """Packs parameters into one lane-dense (rows, 128) f32 slab.
    Every parameter starts on an 8-row boundary and at lane 0."""

    def __init__(self):
        self._blocks = []
        self._rows = 0

    def add(self, arr):
        arr = np.asarray(arr, np.float32)
        if arr.ndim == 1:
            arr = arr[None, :]
        r, c = arr.shape
        assert c <= _LANES, (r, c)
        rp = ((r + _SUBLANES - 1) // _SUBLANES) * _SUBLANES
        blk = np.zeros((rp, _LANES), np.float32)
        blk[:r, :c] = arr
        offset = self._rows
        self._blocks.append(blk)
        self._rows += rp
        return offset

    def finish(self):
        return jnp.asarray(np.concatenate(self._blocks, axis=0))


def _pack_mha(pk, p, num_heads):
    w_in = np.asarray(p["in_proj_weight"], np.float32)    # (3E, E)  (out, in)
    b_in = np.asarray(p["in_proj_bias"], np.float32)      # (3E,)
    w_out = np.asarray(p["out_proj_weight"], np.float32)  # (E, E)   (out, in)
    b_out = np.asarray(p["out_proj_bias"], np.float32)    # (E,)
    E = w_out.shape[0]
    Dh = E // num_heads
    wq, wk, wv = w_in[:E].T, w_in[E:2 * E].T, w_in[2 * E:].T   # (in=E, out=E)
    bq, bk, bv = b_in[:E], b_in[E:2 * E], b_in[2 * E:]
    bias_rows = np.stack(
        [bq[h * Dh:(h + 1) * Dh] for h in range(num_heads)]
        + [bk[h * Dh:(h + 1) * Dh] for h in range(num_heads)]
        + [bv[h * Dh:(h + 1) * Dh] for h in range(num_heads)], axis=0)   # (3H, Dh)
    return {
        "wq": [pk.add(wq[:, h * Dh:(h + 1) * Dh]) for h in range(num_heads)],  # (E, Dh)
        "wk": [pk.add(wk[:, h * Dh:(h + 1) * Dh]) for h in range(num_heads)],
        "wv": [pk.add(wv[:, h * Dh:(h + 1) * Dh]) for h in range(num_heads)],
        "b_qkv": pk.add(bias_rows),
        "wo": [pk.add(w_out.T[h * Dh:(h + 1) * Dh, :]) for h in range(num_heads)],  # (Dh, E)
        "bo": pk.add(b_out),
    }


def _pack_layer(pk, lp, num_heads, decoder):
    d = {"self": _pack_mha(pk, lp["self_attn"], num_heads)}
    if decoder:
        d["cross"] = _pack_mha(pk, lp["cross_attn"], num_heads)
    # One shared LayerNorm per layer, exactly as in the reference module.
    d["norm"] = pk.add(np.stack([np.asarray(lp["norm_w"], np.float32),
                                 np.asarray(lp["norm_b"], np.float32)], axis=0))
    d["w1"] = pk.add(np.asarray(lp["ffn_w1"], np.float32).T)   # (E, dff)
    d["b1"] = pk.add(np.asarray(lp["ffn_b1"], np.float32))
    d["w2"] = pk.add(np.asarray(lp["ffn_w2"], np.float32).T)   # (dff, E)
    d["b2"] = pk.add(np.asarray(lp["ffn_b2"], np.float32))
    return d


def pack_params(params, num_heads):
    pk = _Packer()
    off = {
        "enc": [_pack_layer(pk, lp, num_heads, False) for lp in params["encoder_layers"]],
        "dec": [_pack_layer(pk, lp, num_heads, True) for lp in params["decoder_layers"]],
    }
    off["fc_w"] = pk.add(np.asarray(params["fc_out_w"], np.float32).T)  # (E, vocab)
    off["fc_b"] = pk.add(np.asarray(params["fc_out_b"], np.float32))
    slab = pk.finish()
    dims = {
        "num_heads": num_heads,
        "E": params["embedding"].shape[1],
        "dff": params["encoder_layers"][0]["ffn_b1"].shape[0],
        "vocab": params["fc_out_w"].shape[0],
    }
    return slab, off, dims


# ----------------------------- wrapper (glue) -----------------------------

def positional_encoding(S, E):
    pos = np.arange(S, dtype=np.float32)[:, None]
    div = np.exp(np.arange(0, E, 2, dtype=np.float32) * (-np.log(10000.0) / E))
    pe = np.zeros((S, E), np.float32)
    pe[:, 0::2] = np.sin(pos * div)
    pe[:, 1::2] = np.cos(pos * div)
    return jnp.asarray(pe)


def chatbot_forward(slab, embedding, src_ids, tgt_ids, *, off, dims):
    # TODO(synk): SentenceTransformer('bge-small-zh') embed_fn cannot be loaded;
    # replaced by a deterministic in-script embedding-table lookup with the same
    # (ids -> (B, S, E) float) signature.
    src = embedding[src_ids]                 # (B, S_src, E)
    tgt = embedding[tgt_ids]                 # (B, S_tgt, E)
    B, S_src, E = src.shape
    S_tgt = tgt.shape[1]
    vocab = dims["vocab"]

    src = src + positional_encoding(S_src, E)[None]
    tgt = tgt + positional_encoding(S_tgt, E)[None]

    kernel = functools.partial(_chatbot_kernel, off=off, dims=dims)
    logits = pl.pallas_call(
        kernel,
        grid=(B,),
        in_specs=[
            pl.BlockSpec((S_src, E), lambda b: (b, 0)),       # per-batch src rows
            pl.BlockSpec((S_tgt, E), lambda b: (b, 0)),       # per-batch tgt rows
            pl.BlockSpec(slab.shape, lambda b: (0, 0)),       # weight slab, fetched once
        ],
        out_specs=pl.BlockSpec((S_tgt, vocab), lambda b: (b, 0)),
        out_shape=jax.ShapeDtypeStruct((B * S_tgt, vocab), jnp.float32),
        compiler_params=pltpu.CompilerParams(
            dimension_semantics=("parallel",)),               # 2 TCs on v7x
    )(src.reshape(B * S_src, E), tgt.reshape(B * S_tgt, E), slab)

    return logits.reshape(B, S_tgt, vocab)


# ----------------------------- parameter init -----------------------------

def _init_linear(key, out_f, in_f):
    k1, k2 = jax.random.split(key)
    bound = 1.0 / (in_f ** 0.5)
    w = jax.random.uniform(k1, (out_f, in_f), jnp.float32, -bound, bound)
    b = jax.random.uniform(k2, (out_f,), jnp.float32, -bound, bound)
    return w, b


def _init_mha(key, E):
    k1, k2 = jax.random.split(key)
    bound = 1.0 / (E ** 0.5)
    w_in = jax.random.uniform(k1, (3 * E, E), jnp.float32, -bound, bound)
    b_in = jnp.zeros((3 * E,), jnp.float32)
    w_out, b_out = _init_linear(k2, E, E)
    return {"in_proj_weight": w_in, "in_proj_bias": b_in,
            "out_proj_weight": w_out, "out_proj_bias": b_out}


def _init_layer(key, E, dff, is_decoder):
    ks = jax.random.split(key, 5)
    p = {"self_attn": _init_mha(ks[0], E),
         "norm_w": jnp.ones((E,), jnp.float32),
         "norm_b": jnp.zeros((E,), jnp.float32)}
    p["ffn_w1"], p["ffn_b1"] = _init_linear(ks[1], dff, E)
    p["ffn_w2"], p["ffn_b2"] = _init_linear(ks[2], E, dff)
    if is_decoder:
        p["cross_attn"] = _init_mha(ks[3], E)
    return p


def init_params(key, vocab, E, dff, num_layers):
    keys = jax.random.split(key, 2 * num_layers + 2)
    params = {
        "embedding": 0.1 * jax.random.normal(keys[0], (vocab, E), jnp.float32),
        "encoder_layers": [_init_layer(keys[1 + i], E, dff, False)
                           for i in range(num_layers)],
        "decoder_layers": [_init_layer(keys[1 + num_layers + i], E, dff, True)
                           for i in range(num_layers)],
    }
    params["fc_out_w"], params["fc_out_b"] = _init_linear(keys[-1], vocab, E)
    return params


# ----------------------------- main -----------------------------

if __name__ == "__main__":
    # Small shapes consistent with ChatBot: embed_dim->32, num_heads=4,
    # num_layers=2, dim_feedforward->64, vocab->128, batch=2, seq=8.
    EMBED_DIM = 32
    NUM_HEADS = 4
    NUM_LAYERS = 2
    DIM_FF = 64
    VOCAB = 128
    B, S = 2, 8

    key = jax.random.PRNGKey(0)
    k_params, k_src, k_tgt = jax.random.split(key, 3)

    params = init_params(k_params, VOCAB, EMBED_DIM, DIM_FF, NUM_LAYERS)
    src_ids = jax.random.randint(k_src, (B, S), 0, VOCAB)
    tgt_ids = jax.random.randint(k_tgt, (B, S), 0, VOCAB)

    # Host-side (numpy, once): pack every weight/bias into one lane-dense slab.
    slab, off, dims = pack_params(params, NUM_HEADS)

    fwd = jax.jit(functools.partial(chatbot_forward, off=off, dims=dims))
    logits = fwd(slab, params["embedding"], src_ids, tgt_ids)
    jax.block_until_ready(logits)

    assert logits.shape == (B, S, VOCAB), logits.shape
    assert bool(jnp.all(jnp.isfinite(logits)))
    print("KERNEL_OK")
</pallas_src>

<mosaic_0001>
module attributes {stable_mosaic.version = 11 : i64} {
  func.func @_chatbot_kernel(%arg0: i32, %arg1: memref<8x32xf32, #tpu.memory_space<vmem>>, %arg2: memref<8x32xf32, #tpu.memory_space<vmem>>, %arg3: memref<3160x128xf32, #tpu.memory_space<vmem>>, %arg4: memref<8x128xf32, #tpu.memory_space<vmem>>) attributes {dimension_semantics = [#tpu.dimension_semantics<parallel>], iteration_bounds = array<i64: 2>, scalar_prefetch = 0 : i64, scratch_operands = 0 : i64, tpu.core_type = #tpu.core_type<tc>, window_params = [{transform_indices = @transform_0, window_bounds = array<i64: 8, 32>}, {transform_indices = @transform_1, window_bounds = array<i64: 8, 32>}, {pipeline_mode = #tpu.pipeline_mode<synchronous>, transform_indices = @transform_2, window_bounds = array<i64: 3160, 128>}, {transform_indices = @transform_3, window_bounds = array<i64: 8, 128>}]} {
    %c0 = arith.constant 0 : index
    %c0_0 = arith.constant 0 : index
    %0 = vector.load %arg1[%c0, %c0_0] : memref<8x32xf32, #tpu.memory_space<vmem>>, vector<8x32xf32>
    %c432 = arith.constant 432 : index
    %c0_1 = arith.constant 0 : index
    %1 = vector.load %arg3[%c432, %c0_1] : memref<3160x128xf32, #tpu.memory_space<vmem>>, vector<1x32xf32>
    %c0_2 = arith.constant 0 : index
    %c0_3 = arith.constant 0 : index
    %2 = vector.load %arg3[%c0_2, %c0_3] : memref<3160x128xf32, #tpu.memory_space<vmem>>, vector<32x8xf32>
    %cst = arith.constant dense<0.000000e+00> : vector<8x8xf32>
    %3 = tpu.matmul %0, %2, %cst {dimension_numbers = #tpu.dot_dimension_numbers<[1], [0], [0], [1], [0, 0, 1, 1], [], []>} : vector<8x32xf32>, vector<32x8xf32>, vector<8x8xf32> -> vector<8x8xf32>
    %c384 = arith.constant 384 : index
    %c0_4 = arith.constant 0 : index
    %4 = vector.load %arg3[%c384, %c0_4] : memref<3160x128xf32, #tpu.memory_space<vmem>>, vector<1x8xf32>
    %5 = vector.broadcast %4 : vector<1x8xf32> to vector<8x8xf32>
    %6 = arith.addf %3, %5 : vector<8x8xf32>
    %c128 = arith.constant 128 : index
    %c0_5 = arith.constant 0 : index
    %7 = vector.load %arg3[%c128, %c0_5] : memref<3160x128xf32, #tpu.memory_space<vmem>>, vector<32x8xf32>
    %cst_6 = arith.constant dense<0.000000e+00> : vector<8x8xf32>
    %8 = tpu.matmul %0, %7, %cst_6 {dimension_numbers = #tpu.dot_dimension_numbers<[1], [0], [0], [1], [0, 0, 1, 1], [], []>} : vector<8x32xf32>, vector<32x8xf32>, vector<8x8xf32> -> vector<8x8xf32>
    %c388 = arith.constant 388 : index
    %c0_7 = arith.constant 0 : index
    %9 = vector.load %arg3[%c388, %c0_7] : memref<3160x128xf32, #tpu.memory_space<vmem>>, vector<1x8xf32>
    %10 = vector.broadcast %9 : vector<1x8xf32> to vector<8x8xf32>
    %11 = arith.addf %8, %10 : vector<8x8xf32>
    %c256 = arith.constant 256 : index
    %c0_8 = arith.constant 0 : index
    %12 = vector.load %arg3[%c256, %c0_8] : memref<3160x128xf32, #tpu.memory_space<vmem>>, vector<32x8xf32>
    %cst_9 = arith.constant dense<0.000000e+00> : vector<8x8xf32>
    %13 = tpu.matmul %0, %12, %cst_9 {dimension_numbers = #tpu.dot_dimension_numbers<[1], [0], [0], [1], [0, 0, 1, 1], [], []>} : vector<8x32xf32>, vector<32x8xf32>, vector<8x8xf32> -> vector<8x8xf32>
    %c392 = arith.constant 392 : index
    %c0_10 = arith.constant 0 : index
    %14 = vector.load %arg3[%c392, %c0_10] : memref<3160x128xf32, #tpu.memory_space<vmem>>, vector<1x8xf32>
    %15 = vector.broadcast %14 : vector<1x8xf32> to vector<8x8xf32>
    %16 = arith.addf %13, %15 : vector<8x8xf32>
    %cst_11 = arith.constant dense<0.000000e+00> : vector<8x8xf32>
    %17 = tpu.matmul %6, %11, %cst_11 {dimension_numbers = #tpu.dot_dimension_numbers<[1], [1], [0], [0], [0, 0, 1, 0], [], []>} : vector<8x8xf32>, vector<8x8xf32>, vector<8x8xf32> -> vector<8x8xf32>
    %cst_12 = arith.constant 0.353553385 : f32
    %18 = vector.broadcast %cst_12 : f32 to vector<8x8xf32>
    %19 = arith.mulf %17, %18 : vector<8x8xf32>
    %cst_13 = arith.constant dense<0xFF800000> : vector<8xf32>
    %20 = vector.multi_reduction <maximumf>, %19, %cst_13 [1] : vector<8x8xf32> to vector<8xf32>
    %21 = vector.shape_cast %20 : vector<8xf32> to vector<8x1xf32>
    %22 = vector.broadcast %21 : vector<8x1xf32> to vector<8x8xf32>
    %23 = arith.subf %19, %22 : vector<8x8xf32>
    %24 = math.exp %23 : vector<8x8xf32>
    %cst_14 = arith.constant dense<0.000000e+00> : vector<8xf32>
    %25 = vector.multi_reduction <add>, %24, %cst_14 [1] : vector<8x8xf32> to vector<8xf32>
    %26 = vector.shape_cast %25 : vector<8xf32> to vector<8x1xf32>
    %27 = tpu.reciprocal %26 {approx = true} : vector<8x1xf32> -> vector<8x1xf32>
    %28 = vector.broadcast %27 : vector<8x1xf32> to vector<8x8xf32>
    %29 = arith.mulf %24, %28 : vector<8x8xf32>
    %cst_15 = arith.constant dense<0.000000e+00> : vector<8x8xf32>
    %30 = tpu.matmul %29, %16, %cst_15 {dimension_numbers = #tpu.dot_dimension_numbers<[1], [0], [0], [1], [0, 0, 1, 1], [], []>} : vector<8x8xf32>, vector<8x8xf32>, vector<8x8xf32> -> vector<8x8xf32>
    %c400 = arith.constant 400 : index
    %c0_16 = arith.constant 0 : index
    %31 = vector.load %arg3[%c400, %c0_16] : memref<3160x128xf32, #tpu.memory_space<vmem>>, vector<8x32xf32>
    %cst_17 = arith.constant dense<0.000000e+00> : vector<8x32xf32>
    %32 = tpu.matmul %30, %31, %cst_17 {dimension_numbers = #tpu.dot_dimension_numbers<[1], [0], [0], [1], [0, 0, 1, 1], [], []>} : vector<8x8xf32>, vector<8x32xf32>, vector<8x32xf32> -> vector<8x32xf32>
    %33 = vector.broadcast %1 : vector<1x32xf32> to vector<8x32xf32>
    %34 = arith.addf %33, %32 : vector<8x32xf32>
    %c32 = arith.constant 32 : index
    %c0_18 = arith.constant 0 : index
    %35 = vector.load %arg3[%c32, %c0_18] : memref<3160x128xf32, #tpu.memory_space<vmem>>, vector<32x8xf32>
    %cst_19 = arith.constant dense<0.000000e+00> : vector<8x8xf32>
    %36 = tpu.matmul %0, %35, %cst_19 {dimension_numbers = #tpu.dot_dimension_numbers<[1], [0], [0], [1], [0, 0, 1, 1], [], []>} : vector<8x32xf32>, vector<32x8xf32>, vector<8x8xf32> -> vector<8x8xf32>
    %c385 = arith.constant 385 : index
    %c0_20 = arith.constant 0 : index
    %37 = vector.load %arg3[%c385, %c0_20] : memref<3160x128xf32, #tpu.memory_space<vmem>>, vector<1x8xf32>
    %38 = vector.broadcast %37 : vector<1x8xf32> to vector<8x8xf32>
    %39 = arith.addf %36, %38 : vector<8x8xf32>
    %c160 = arith.constant 160 : index
    %c0_21 = arith.constant 0 : index
    %40 = vector.load %arg3[%c160, %c0_21] : memref<3160x128xf32, #tpu.memory_space<vmem>>, vector<32x8xf32>
    %cst_22 = arith.constant dense<0.000000e+00> : vector<8x8xf32>
    %41 = tpu.matmul %0, %40, %cst_22 {dimension_numbers = #tpu.dot_dimension_numbers<[1], [0], [0], [1], [0, 0, 1, 1], [], []>} : vector<8x32xf32>, vector<32x8xf32>, vector<8x8xf32> -> vector<8x8xf32>
    %c389 = arith.constant 389 : index
    %c0_23 = arith.constant 0 : index
    %42 = vector.load %arg3[%c389, %c0_23] : memref<3160x128xf32, #tpu.memory_space<vmem>>, vector<1x8xf32>
    %43 = vector.broadcast %42 : vector<1x8xf32> to vector<8x8xf32>
    %44 = arith.addf %41, %43 : vector<8x8xf32>
    %c288 = arith.constant 288 : index
    %c0_24 = arith.constant 0 : index
    %45 = vector.load %arg3[%c288, %c0_24] : memref<3160x128xf32, #tpu.memory_space<vmem>>, vector<32x8xf32>
    %cst_25 = arith.constant dense<0.000000e+00> : vector<8x8xf32>
    %46 = tpu.matmul %0, %45, %cst_25 {dimension_numbers = #tpu.dot_dimension_numbers<[1], [0], [0], [1], [0, 0, 1, 1], [], []>} : vector<8x32xf32>, vector<32x8xf32>, vector<8x8xf32> -> vector<8x8xf32>
    %c393 = arith.constant 393 : index
    %c0_26 = arith.constant 0 : index
    %47 = vector.load %arg3[%c393, %c0_26] : memref<3160x128xf32, #tpu.memory_space<vmem>>, vector<1x8xf32>
    %48 = vector.broadcast %47 : vector<1x8xf32> to vector<8x8xf32>
    %49 = arith.addf %46, %48 : vector<8x8xf32>
    %cst_27 = arith.constant dense<0.000000e+00> : vector<8x8xf32>
    %50 = tpu.matmul %39, %44, %cst_27 {dimension_numbers = #tpu.dot_dimension_numbers<[1], [1], [0], [0], [0, 0, 1, 0], [], []>} : vector<8x8xf32>, vector<8x8xf32>, vector<8x8xf32> -> vector<8x8xf32>
    %cst_28 = arith.constant 0.353553385 : f32
    %51 = vector.broadcast %cst_28 : f32 to vector<8x8xf32>
    %52 = arith.mulf %50, %51 : vector<8x8xf32>
    %cst_29 = arith.constant dense<0xFF800000> : vector<8xf32>
    %53 = vector.multi_reduction <maximumf>, %52, %cst_29 [1] : vector<8x8xf32> to vector<8xf32>
    %54 = vector.shape_cast %53 : vector<8xf32> to vector<8x1xf32>
    %55 = vector.broadcast %54 : vector<8x1xf32> to vector<8x8xf32>
    %56 = arith.subf %52, %55 : vector<8x8xf32>
    %57 = math.exp %56 : vector<8x8xf32>
    %cst_30 = arith.constant dense<0.000000e+00> : vector<8xf32>
    %58 = vector.multi_reduction <add>, %57, %cst_30 [1] : vector<8x8xf32> to vector<8xf32>
    %59 = vector.shape_cast %58 : vector<8xf32> to vector<8x1xf32>
    %60 = tpu.reciprocal %59 {approx = true} : vector<8x1xf32> -> vector<8x1xf32>
    %61 = vector.broadcast %60 : vector<8x1xf32> to vector<8x8xf32>
    %62 = arith.mulf %57, %61 : vector<8x8xf32>
    %cst_31 = arith.constant dense<0.000000e+00> : vector<8x8xf32>
    %63 = tpu.matmul %62, %49, %cst_31 {dimension_numbers = #tpu.dot_dimension_numbers<[1], [0], [0], [1], [0, 0, 1, 1], [], []>} : vector<8x8xf32>, vector<8x8xf32>, vector<8x8xf32> -> vector<8x8xf32>
    %c408 = arith.constant 408 : index
    %c0_32 = arith.constant 0 : index
    %64 = vector.load %arg3[%c408, %c0_32] : memref<3160x128xf32, #tpu.memory_space<vmem>>, vector<8x32xf32>
    %cst_33 = arith.constant dense<0.000000e+00> : vector<8x32xf32>
    %65 = tpu.matmul %63, %64, %cst_33 {dimension_numbers = #tpu.dot_dimension_numbers<[1], [0], [0], [1], [0, 0, 1, 1], [], []>} : vector<8x8xf32>, vector<8x32xf32>, vector<8x32xf32> -> vector<8x32xf32>
    %66 = arith.addf %34, %65 : vector<8x32xf32>
    %c64 = arith.constant 64 : index
    %c0_34 = arith.constant 0 : index
    %67 = vector.load %arg3[%c64, %c0_34] : memref<3160x128xf32, #tpu.memory_space<vmem>>, vector<32x8xf32>
    %cst_35 = arith.constant dense<0.000000e+00> : vector<8x8xf32>
    %68 = tpu.matmul %0, %67, %cst_35 {dimension_numbers = #tpu.dot_dimension_numbers<[1], [0], [0], [1], [0, 0, 1, 1], [], []>} : vector<8x32xf32>, vector<32x8xf32>, vector<8x8xf32> -> vector<8x8xf32>
    %c386 = arith.constant 386 : index
    %c0_36 = arith.constant 0 : index
    %69 = vector.load %arg3[%c386, %c0_36] : memref<3160x128xf32, #tpu.memory_space<vmem>>, vector<1x8xf32>
    %70 = vector.broadcast %69 : vector<1x8xf32> to vector<8x8xf32>
    %71 = arith.addf %68, %70 : vector<8x8xf32>
    %c192 = arith.constant 192 : index
    %c0_37 = arith.constant 0 : index
    %72 = vector.load %arg3[%c192, %c0_37] : memref<3160x128xf32, #tpu.memory_space<vmem>>, vector<32x8xf32>
    %cst_38 = arith.constant dense<0.000000e+00> : vector<8x8xf32>
    %73 = tpu.matmul %0, %72, %cst_38 {dimension_numbers = #tpu.dot_dimension_numbers<[1], [0], [0], [1], [0, 0, 1, 1], [], []>} : vector<8x32xf32>, vector<32x8xf32>, vector<8x8xf32> -> vector<8x8xf32>
    %c390 = arith.constant 390 : index
    %c0_39 = arith.constant 0 : index
    %74 = vector.load %arg3[%c390, %c0_39] : memref<3160x128xf32, #tpu.memory_space<vmem>>, vector<1x8xf32>
    %75 = vector.broadcast %74 : vector<1x8xf32> to vector<8x8xf32>
    %76 = arith.addf %73, %75 : vector<8x8xf32>
    %c320 = arith.constant 320 : index
    %c0_40 = arith.constant 0 : index
    %77 = vector.load %arg3[%c320, %c0_40] : memref<3160x128xf32, #tpu.memory_space<vmem>>, vector<32x8xf32>
    %cst_41 = arith.constant dense<0.000000e+00> : vector<8x8xf32>
    %78 = tpu.matmul %0, %77, %cst_41 {dimension_numbers = #tpu.dot_dimension_numbers<[1], [0], [0], [1], [0, 0, 1, 1], [], []>} : vector<8x32xf32>, vector<32x8xf32>, vector<8x8xf32> -> vector<8x8xf32>
    %c394 = arith.constant 394 : index
    %c0_42 = arith.constant 0 : index
    %79 = vector.load %arg3[%c394, %c0_42] : memref<3160x128xf32, #tpu.memory_space<vmem>>, vector<1x8xf32>
    %80 = vector.broadcast %79 : vector<1x8xf32> to vector<8x8xf32>
    %81 = arith.addf %78, %80 : vector<8x8xf32>
    %cst_43 = arith.constant dense<0.000000e+00> : vector<8x8xf32>
    %82 = tpu.matmul %71, %76, %cst_43 {dimension_numbers = #tpu.dot_dimension_numbers<[1], [1], [0], [0], [0, 0, 1, 0], [], []>} : vector<8x8xf32>, vector<8x8xf32>, vector<8x8xf32> -> vector<8x8xf32>
    %cst_44 = arith.constant 0.353553385 : f32
    %83 = vector.broadcast %cst_44 : f32 to vector<8x8xf32>
    %84 = arith.mulf %82, %83 : vector<8x8xf32>
    %cst_45 = arith.constant dense<0xFF800000> : vector<8xf32>
    %85 = vector.multi_reduction <maximumf>, %84, %cst_45 [1] : vector<8x8xf32> to vector<8xf32>
    %86 = vector.shape_cast %85 : vector<8xf32> to vector<8x1xf32>
    %87 = vector.broadcast %86 : vector<8x1xf32> to vector<8x8xf32>
    %88 = arith.subf %84, %87 : vector<8x8xf32>
    %89 = math.exp %88 : vector<8x8xf32>
    %cst_46 = arith.constant dense<0.000000e+00> : vector<8xf32>
    %90 = vector.multi_reduction <add>, %89, %cst_46 [1] : vector<8x8xf32> to vector<8xf32>
    %91 = vector.shape_cast %90 : vector<8xf32> to vector<8x1xf32>
    %92 = tpu.reciprocal %91 {approx = true} : vector<8x1xf32> -> vector<8x1xf32>
    %93 = vector.broadcast %92 : vector<8x1xf32> to vector<8x8xf32>
    %94 = arith.mulf %89, %93 : vector<8x8xf32>
    %cst_47 = arith.constant dense<0.000000e+00> : vector<8x8xf32>
    %95 = tpu.matmul %94, %81, %cst_47 {dimension_numbers = #tpu.dot_dimension_numbers<[1], [0], [0], [1], [0, 0, 1, 1], [], []>} : vector<8x8xf32>, vector<8x8xf32>, vector<8x8xf32> -> vector<8x8xf32>
    %c416 = arith.constant 416 : index
    %c0_48 = arith.constant 0 : index
    %96 = vector.load %arg3[%c416, %c0_48] : memref<3160x128xf32, #tpu.memory_space<vmem>>, vector<8x32xf32>
    %cst_49 = arith.constant dense<0.000000e+00> : vector<8x32xf32>
    %97 = tpu.matmul %95, %96, %cst_49 {dimension_numbers = #tpu.dot_dimension_numbers<[1], [0], [0], [1], [0, 0, 1, 1], [], []>} : vector<8x8xf32>, vector<8x32xf32>, vector<8x32xf32> -> vector<8x32xf32>
    %98 = arith.addf %66, %97 : vector<8x32xf32>
    %c96 = arith.constant 96 : index
    %c0_50 = arith.constant 0 : index
    %99 = vector.load %arg3[%c96, %c0_50] : memref<3160x128xf32, #tpu.memory_space<vmem>>, vector<32x8xf32>
    %cst_51 = arith.constant dense<0.000000e+00> : vector<8x8xf32>
    %100 = tpu.matmul %0, %99, %cst_51 {dimension_numbers = #tpu.dot_dimension_numbers<[1], [0], [0], [1], [0, 0, 1, 1], [], []>} : vector<8x32xf32>, vector<32x8xf32>, vector<8x8xf32> -> vector<8x8xf32>
    %c387 = arith.constant 387 : index
    %c0_52 = arith.constant 0 : index
    %101 = vector.load %arg3[%c387, %c0_52] : memref<3160x128xf32, #tpu.memory_space<vmem>>, vector<1x8xf32>
    %102 = vector.broadcast %101 : vector<1x8xf32> to vector<8x8xf32>
    %103 = arith.addf %100, %102 : vector<8x8xf32>
    %c224 = arith.constant 224 : index
    %c0_53 = arith.constant 0 : index
    %104 = vector.load %arg3[%c224, %c0_53] : memref<3160x128xf32, #tpu.memory_space<vmem>>, vector<32x8xf32>
    %cst_54 = arith.constant dense<0.000000e+00> : vector<8x8xf32>
    %105 = tpu.matmul %0, %104, %cst_54 {dimension_numbers = #tpu.dot_dimension_numbers<[1], [0], [0], [1], [0, 0, 1, 1], [], []>} : vector<8x32xf32>, vector<32x8xf32>, vector<8x8xf32> -> vector<8x8xf32>
    %c391 = arith.constant 391 : index
    %c0_55 = arith.constant 0 : index
    %106 = vector.load %arg3[%c391, %c0_55] : memref<3160x128xf32, #tpu.memory_space<vmem>>, vector<1x8xf32>
    %107 = vector.broadcast %106 : vector<1x8xf32> to vector<8x8xf32>
    %108 = arith.addf %105, %107 : vector<8x8xf32>
    %c352 = arith.constant 352 : index
    %c0_56 = arith.constant 0 : index
    %109 = vector.load %arg3[%c352, %c0_56] : memref<3160x128xf32, #tpu.memory_space<vmem>>, vector<32x8xf32>
    %cst_57 = arith.constant dense<0.000000e+00> : vector<8x8xf32>
    %110 = tpu.matmul %0, %109, %cst_57 {dimension_numbers = #tpu.dot_dimension_numbers<[1], [0], [0], [1], [0, 0, 1, 1], [], []>} : vector<8x32xf32>, vector<32x8xf32>, vector<8x8xf32> -> vector<8x8xf32>
    %c395 = arith.constant 395 : index
    %c0_58 = arith.constant 0 : index
    %111 = vector.load %arg3[%c395, %c0_58] : memref<3160x128xf32, #tpu.memory_space<vmem>>, vector<1x8xf32>
    %112 = vector.broadcast %111 : vector<1x8xf32> to vector<8x8xf32>
    %113 = arith.addf %110, %112 : vector<8x8xf32>
    %cst_59 = arith.constant dense<0.000000e+00> : vector<8x8xf32>
    %114 = tpu.matmul %103, %108, %cst_59 {dimension_numbers = #tpu.dot_dimension_numbers<[1], [1], [0], [0], [0, 0, 1, 0], [], []>} : vector<8x8xf32>, vector<8x8xf32>, vector<8x8xf32> -> vector<8x8xf32>
    %cst_60 = arith.constant 0.353553385 : f32
    %115 = vector.broadcast %cst_60 : f32 to vector<8x8xf32>
    %116 = arith.mulf %114, %115 : vector<8x8xf32>
    %cst_61 = arith.constant dense<0xFF800000> : vector<8xf32>
    %117 = vector.multi_reduction <maximumf>, %116, %cst_61 [1] : vector<8x8xf32> to vector<8xf32>
    %118 = vector.shape_cast %117 : vector<8xf32> to vector<8x1xf32>
    %119 = vector.broadcast %118 : vector<8x1xf32> to vector<8x8xf32>
    %120 = arith.subf %116, %119 : vector<8x8xf32>
    %121 = math.exp %120 : vector<8x8xf32>
    %cst_62 = arith.constant dense<0.000000e+00> : vector<8xf32>
    %122 = vector.multi_reduction <add>, %121, %cst_62 [1] : vector<8x8xf32> to vector<8xf32>
    %123 = vector.shape_cast %122 : vector<8xf32> to vector<8x1xf32>
    %124 = tpu.reciprocal %123 {approx = true} : vector<8x1xf32> -> vector<8x1xf32>
    %125 = vector.broadcast %124 : vector<8x1xf32> to vector<8x8xf32>
    %126 = arith.mulf %121, %125 : vector<8x8xf32>
    %cst_63 = arith.constant dense<0.000000e+00> : vector<8x8xf32>
    %127 = tpu.matmul %126, %113, %cst_63 {dimension_numbers = #tpu.dot_dimension_numbers<[1], [0], [0], [1], [0, 0, 1, 1], [], []>} : vector<8x8xf32>, vector<8x8xf32>, vector<8x8xf32> -> vector<8x8xf32>
    %c424 = arith.constant 424 : index
    %c0_64 = arith.constant 0 : index
    %128 = vector.load %arg3[%c424, %c0_64] : memref<3160x128xf32, #tpu.memory_space<vmem>>, vector<8x32xf32>
    %cst_65 = arith.constant dense<0.000000e+00> : vector<8x32xf32>
    %129 = tpu.matmul %127, %128, %cst_65 {dimension_numbers = #tpu.dot_dimension_numbers<[1], [0], [0], [1], [0, 0, 1, 1], [], []>} : vector<8x8xf32>, vector<8x32xf32>, vector<8x32xf32> -> vector<8x32xf32>
    %130 = arith.addf %98, %129 : vector<8x32xf32>
    %131 = arith.addf %130, %0 : vector<8x32xf32>
    %c440 = arith.constant 440 : index
    %c0_66 = arith.constant 0 : index
    %132 = vector.load %arg3[%c440, %c0_66] : memref<3160x128xf32, #tpu.memory_space<vmem>>, vector<1x32xf32>
    %c441 = arith.constant 441 : index
    %c0_67 = arith.constant 0 : index
    %133 = vector.load %arg3[%c441, %c0_67] : memref<3160x128xf32, #tpu.memory_space<vmem>>, vector<1x32xf32>
    %cst_68 = arith.constant dense<0.000000e+00> : vector<8xf32>
    %134 = vector.multi_reduction <add>, %131, %cst_68 [1] : vector<8x32xf32> to vector<8xf32>
    %135 = vector.shape_cast %134 : vector<8xf32> to vector<8x1xf32>
    %cst_69 = arith.constant 3.200000e+01 : f32
    %136 = vector.broadcast %cst_69 : f32 to vector<8x1xf32>
    %137 = arith.divf %135, %136 : vector<8x1xf32>
    %138 = vector.broadcast %137 : vector<8x1xf32> to vector<8x32xf32>
    %139 = arith.subf %131, %138 : vector<8x32xf32>
    %140 = arith.mulf %139, %139 : vector<8x32xf32>
    %cst_70 = arith.constant dense<0.000000e+00> : vector<8xf32>
    %141 = vector.multi_reduction <add>, %140, %cst_70 [1] : vector<8x32xf32> to vector<8xf32>
    %142 = vector.shape_cast %141 : vector<8xf32> to vector<8x1xf32>
    %cst_71 = arith.constant 3.200000e+01 : f32
    %143 = vector.broadcast %cst_71 : f32 to vector<8x1xf32>
    %144 = arith.divf %142, %143 : vector<8x1xf32>
    %145 = vector.broadcast %137 : vector<8x1xf32> to vector<8x32xf32>
    %146 = arith.subf %131, %145 : vector<8x32xf32>
    %cst_72 = arith.constant 9.99999974E-6 : f32
    %147 = vector.broadcast %cst_72 : f32 to vector<8x1xf32>
    %148 = arith.addf %144, %147 : vector<8x1xf32>
    %149 = math.rsqrt %148 : vector<8x1xf32>
    %150 = vector.broadcast %149 : vector<8x1xf32> to vector<8x32xf32>
    %151 = arith.mulf %146, %150 : vector<8x32xf32>
    %152 = vector.broadcast %132 : vector<1x32xf32> to vector<8x32xf32>
    %153 = arith.mulf %151, %152 : vector<8x32xf32>
    %154 = vector.broadcast %133 : vector<1x32xf32> to vector<8x32xf32>
    %155 = arith.addf %153, %154 : vector<8x32xf32>
    %c448 = arith.constant 448 : index
    %c0_73 = arith.constant 0 : index
    %156 = vector.load %arg3[%c448, %c0_73] : memref<3160x128xf32, #tpu.memory_space<vmem>>, vector<32x64xf32>
    %cst_74 = arith.constant dense<0.000000e+00> : vector<8x64xf32>
    %157 = tpu.matmul %155, %156, %cst_74 {dimension_numbers = #tpu.dot_dimension_numbers<[1], [0], [0], [1], [0, 0, 1, 1], [], []>} : vector<8x32xf32>, vector<32x64xf32>, vector<8x64xf32> -> vector<8x64xf32>
    %c480 = arith.constant 480 : index
    %c0_75 = arith.constant 0 : index
    %158 = vector.load %arg3[%c480, %c0_75] : memref<3160x128xf32, #tpu.memory_space<vmem>>, vector<1x64xf32>
    %159 = vector.broadcast %158 : vector<1x64xf32> to vector<8x64xf32>
    %160 = arith.addf %157, %159 : vector<8x64xf32>
    %cst_76 = arith.constant 0.000000e+00 : f32
    %161 = vector.broadcast %cst_76 : f32 to vector<8x64xf32>
    %162 = arith.maximumf %160, %161 : vector<8x64xf32>
    %c488 = arith.constant 488 : index
    %c0_77 = arith.constant 0 : index
    %163 = vector.load %arg3[%c488, %c0_77] : memref<3160x128xf32, #tpu.memory_space<vmem>>, vector<64x32xf32>
    %cst_78 = arith.constant dense<0.000000e+00> : vector<8x32xf32>
    %164 = tpu.matmul %162, %163, %cst_78 {dimension_numbers = #tpu.dot_dimension_numbers<[1], [0], [0], [1], [0, 0, 1, 1], [], []>} : vector<8x64xf32>, vector<64x32xf32>, vector<8x32xf32> -> vector<8x32xf32>
    %c552 = arith.constant 552 : index
    %c0_79 = arith.constant 0 : index
    %165 = vector.load %arg3[%c552, %c0_79] : memref<3160x128xf32, #tpu.memory_space<vmem>>, vector<1x32xf32>
    %166 = vector.broadcast %165 : vector<1x32xf32> to vector<8x32xf32>
    %167 = arith.addf %164, %166 : vector<8x32xf32>
    %168 = arith.addf %167, %155 : vector<8x32xf32>
    %c440_80 = arith.constant 440 : index
    %c0_81 = arith.constant 0 : index
    %169 = vector.load %arg3[%c440_80, %c0_81] : memref<3160x128xf32, #tpu.memory_space<vmem>>, vector<1x32xf32>
    %c441_82 = arith.constant 441 : index
    %c0_83 = arith.constant 0 : index
    %170 = vector.load %arg3[%c441_82, %c0_83] : memref<3160x128xf32, #tpu.memory_space<vmem>>, vector<1x32xf32>
    %cst_84 = arith.constant dense<0.000000e+00> : vector<8xf32>
    %171 = vector.multi_reduction <add>, %168, %cst_84 [1] : vector<8x32xf32> to vector<8xf32>
    %172 = vector.shape_cast %171 : vector<8xf32> to vector<8x1xf32>
    %cst_85 = arith.constant 3.200000e+01 : f32
    %173 = vector.broadcast %cst_85 : f32 to vector<8x1xf32>
    %174 = arith.divf %172, %173 : vector<8x1xf32>
    %175 = vector.broadcast %174 : vector<8x1xf32> to vector<8x32xf32>
    %176 = arith.subf %168, %175 : vector<8x32xf32>
    %177 = arith.mulf %176, %176 : vector<8x32xf32>
    %cst_86 = arith.constant dense<0.000000e+00> : vector<8xf32>
    %178 = vector.multi_reduction <add>, %177, %cst_86 [1] : vector<8x32xf32> to vector<8xf32>
    %179 = vector.shape_cast %178 : vector<8xf32> to vector<8x1xf32>
    %cst_87 = arith.constant 3.200000e+01 : f32
    %180 = vector.broadcast %cst_87 : f32 to vector<8x1xf32>
    %181 = arith.divf %179, %180 : vector<8x1xf32>
    %182 = vector.broadcast %174 : vector<8x1xf32> to vector<8x32xf32>
    %183 = arith.subf %168, %182 : vector<8x32xf32>
    %cst_88 = arith.constant 9.99999974E-6 : f32
    %184 = vector.broadcast %cst_88 : f32 to vector<8x1xf32>
    %185 = arith.addf %181, %184 : vector<8x1xf32>
    %186 = math.rsqrt %185 : vector<8x1xf32>
    %187 = vector.broadcast %186 : vector<8x1xf32> to vector<8x32xf32>
    %188 = arith.mulf %183, %187 : vector<8x32xf32>
    %189 = vector.broadcast %169 : vector<1x32xf32> to vector<8x32xf32>
    %190 = arith.mulf %188, %189 : vector<8x32xf32>
    %191 = vector.broadcast %170 : vector<1x32xf32> to vector<8x32xf32>
    %192 = arith.addf %190, %191 : vector<8x32xf32>
    %c992 = arith.constant 992 : index
    %c0_89 = arith.constant 0 : index
    %193 = vector.load %arg3[%c992, %c0_89] : memref<3160x128xf32, #tpu.memory_space<vmem>>, vector<1x32xf32>
    %c560 = arith.constant 560 : index
    %c0_90 = arith.constant 0 : index
    %194 = vector.load %arg3[%c560, %c0_90] : memref<3160x128xf32, #tpu.memory_space<vmem>>, vector<32x8xf32>
    %cst_91 = arith.constant dense<0.000000e+00> : vector<8x8xf32>
    %195 = tpu.matmul %192, %194, %cst_91 {dimension_numbers = #tpu.dot_dimension_numbers<[1], [0], [0], [1], [0, 0, 1, 1], [], []>} : vector<8x32xf32>, vector<32x8xf32>, vector<8x8xf32> -> vector<8x8xf32>
    %c944 = arith.constant 944 : index
    %c0_92 = arith.constant 0 : index
    %196 = vector.load %arg3[%c944, %c0_92] : memref<3160x128xf32, #tpu.memory_space<vmem>>, vector<1x8xf32>
    %197 = vector.broadcast %196 : vector<1x8xf32> to vector<8x8xf32>
    %198 = arith.addf %195, %197 : vector<8x8xf32>
    %c688 = arith.constant 688 : index
    %c0_93 = arith.constant 0 : index
    %199 = vector.load %arg3[%c688, %c0_93] : memref<3160x128xf32, #tpu.memory_space<vmem>>, vector<32x8xf32>
    %cst_94 = arith.constant dense<0.000000e+00> : vector<8x8xf32>
    %200 = tpu.matmul %192, %199, %cst_94 {dimension_numbers = #tpu.dot_dimension_numbers<[1], [0], [0], [1], [0, 0, 1, 1], [], []>} : vector<8x32xf32>, vector<32x8xf32>, vector<8x8xf32> -> vector<8x8xf32>
    %c948 = arith.constant 948 : index
    %c0_95 = arith.constant 0 : index
    %201 = vector.load %arg3[%c948, %c0_95] : memref<3160x128xf32, #tpu.memory_space<vmem>>, vector<1x8xf32>
    %202 = vector.broadcast %201 : vector<1x8xf32> to vector<8x8xf32>
    %203 = arith.addf %200, %202 : vector<8x8xf32>
    %c816 = arith.constant 816 : index
    %c0_96 = arith.constant 0 : index
    %204 = vector.load %arg3[%c816, %c0_96] : memref<3160x128xf32, #tpu.memory_space<vmem>>, vector<32x8xf32>
    %cst_97 = arith.constant dense<0.000000e+00> : vector<8x8xf32>
    %205 = tpu.matmul %192, %204, %cst_97 {dimension_numbers = #tpu.dot_dimension_numbers<[1], [0], [0], [1], [0, 0, 1, 1], [], []>} : vector<8x32xf32>, vector<32x8xf32>, vector<8x8xf32> -> vector<8x8xf32>
    %c952 = arith.constant 952 : index
    %c0_98 = arith.constant 0 : index
    %206 = vector.load %arg3[%c952, %c0_98] : memref<3160x128xf32, #tpu.memory_space<vmem>>, vector<1x8xf32>
    %207 = vector.broadcast %206 : vector<1x8xf32> to vector<8x8xf32>
    %208 = arith.addf %205, %207 : vector<8x8xf32>
    %cst_99 = arith.constant dense<0.000000e+00> : vector<8x8xf32>
    %209 = tpu.matmul %198, %203, %cst_99 {dimension_numbers = #tpu.dot_dimension_numbers<[1], [1], [0], [0], [0, 0, 1, 0], [], []>} : vector<8x8xf32>, vector<8x8xf32>, vector<8x8xf32> -> vector<8x8xf32>
    %cst_100 = arith.constant 0.353553385 : f32
    %210 = vector.broadcast %cst_100 : f32 to vector<8x8xf32>
    %211 = arith.mulf %209, %210 : vector<8x8xf32>
    %cst_101 = arith.constant dense<0xFF800000> : vector<8xf32>
    %212 = vector.multi_reduction <maximumf>, %211, %cst_101 [1] : vector<8x8xf32> to vector<8xf32>
    %213 = vector.shape_cast %212 : vector<8xf32> to vector<8x1xf32>
    %214 = vector.broadcast %213 : vector<8x1xf32> to vector<8x8xf32>
    %215 = arith.subf %211, %214 : vector<8x8xf32>
    %216 = math.exp %215 : vector<8x8xf32>
    %cst_102 = arith.constant dense<0.000000e+00> : vector<8xf32>
    %217 = vector.multi_reduction <add>, %216, %cst_102 [1] : vector<8x8xf32> to vector<8xf32>
    %218 = vector.shape_cast %217 : vector<8xf32> to vector<8x1xf32>
    %219 = tpu.reciprocal %218 {approx = true} : vector<8x1xf32> -> vector<8x1xf32>
    %220 = vector.broadcast %219 : vector<8x1xf32> to vector<8x8xf32>
    %221 = arith.mulf %216, %220 : vector<8x8xf32>
    %cst_103 = arith.constant dense<0.000000e+00> : vector<8x8xf32>
    %222 = tpu.matmul %221, %208, %cst_103 {dimension_numbers = #tpu.dot_dimension_numbers<[1], [0], [0], [1], [0, 0, 1, 1], [], []>} : vector<8x8xf32>, vector<8x8xf32>, vector<8x8xf32> -> vector<8x8xf32>
    %c960 = arith.constant 960 : index
    %c0_104 = arith.constant 0 : index
    %223 = vector.load %arg3[%c960, %c0_104] : memref<3160x128xf32, #tpu.memory_space<vmem>>, vector<8x32xf32>
    %cst_105 = arith.constant dense<0.000000e+00> : vector<8x32xf32>
    %224 = tpu.matmul %222, %223, %cst_105 {dimension_numbers = #tpu.dot_dimension_numbers<[1], [0], [0], [1], [0, 0, 1, 1], [], []>} : vector<8x8xf32>, vector<8x32xf32>, vector<8x32xf32> -> vector<8x32xf32>
    %225 = vector.broadcast %193 : vector<1x32xf32> to vector<8x32xf32>
    %226 = arith.addf %225, %224 : vector<8x32xf32>
    %c592 = arith.constant 592 : index
    %c0_106 = arith.constant 0 : index
    %227 = vector.load %arg3[%c592, %c0_106] : memref<3160x128xf32, #tpu.memory_space<vmem>>, vector<32x8xf32>
    %cst_107 = arith.constant dense<0.000000e+00> : vector<8x8xf32>
    %228 = tpu.matmul %192, %227, %cst_107 {dimension_numbers = #tpu.dot_dimension_numbers<[1], [0], [0], [1], [0, 0, 1, 1], [], []>} : vector<8x32xf32>, vector<32x8xf32>, vector<8x8xf32> -> vector<8x8xf32>
    %c945 = arith.constant 945 : index
    %c0_108 = arith.constant 0 : index
    %229 = vector.load %arg3[%c945, %c0_108] : memref<3160x128xf32, #tpu.memory_space<vmem>>, vector<1x8xf32>
    %230 = vector.broadcast %229 : vector<1x8xf32> to vector<8x8xf32>
    %231 = arith.addf %228, %230 : vector<8x8xf32>
    %c720 = arith.constant 720 : index
    %c0_109 = arith.constant 0 : index
    %232 = vector.load %arg3[%c720, %c0_109] : memref<3160x128xf32, #tpu.memory_space<vmem>>, vector<32x8xf32>
    %cst_110 = arith.constant dense<0.000000e+00> : vector<8x8xf32>
    %233 = tpu.matmul %192, %232, %cst_110 {dimension_numbers = #tpu.dot_dimension_numbers<[1], [0], [0], [1], [0, 0, 1, 1], [], []>} : vector<8x32xf32>, vector<32x8xf32>, vector<8x8xf32> -> vector<8x8xf32>
    %c949 = arith.constant 949 : index
    %c0_111 = arith.constant 0 : index
    %234 = vector.load %arg3[%c949, %c0_111] : memref<3160x128xf32, #tpu.memory_space<vmem>>, vector<1x8xf32>
    %235 = vector.broadcast %234 : vector<1x8xf32> to vector<8x8xf32>
    %236 = arith.addf %233, %235 : vector<8x8xf32>
    %c848 = arith.constant 848 : index
    %c0_112 = arith.constant 0 : index
    %237 = vector.load %arg3[%c848, %c0_112] : memref<3160x128xf32, #tpu.memory_space<vmem>>, vector<32x8xf32>
    %cst_113 = arith.constant dense<0.000000e+00> : vector<8x8xf32>
    %238 = tpu.matmul %192, %237, %cst_113 {dimension_numbers = #tpu.dot_dimension_numbers<[1], [0], [0], [1], [0, 0, 1, 1], [], []>} : vector<8x32xf32>, vector<32x8xf32>, vector<8x8xf32> -> vector<8x8xf32>
    %c953 = arith.constant 953 : index
    %c0_114 = arith.constant 0 : index
    %239 = vector.load %arg3[%c953, %c0_114] : memref<3160x128xf32, #tpu.memory_space<vmem>>, vector<1x8xf32>
    %240 = vector.broadcast %239 : vector<1x8xf32> to vector<8x8xf32>
    %241 = arith.addf %238, %240 : vector<8x8xf32>
    %cst_115 = arith.constant dense<0.000000e+00> : vector<8x8xf32>
    %242 = tpu.matmul %231, %236, %cst_115 {dimension_numbers = #tpu.dot_dimension_numbers<[1], [1], [0], [0], [0, 0, 1, 0], [], []>} : vector<8x8xf32>, vector<8x8xf32>, vector<8x8xf32> -> vector<8x8xf32>
    %cst_116 = arith.constant 0.353553385 : f32
    %243 = vector.broadcast %cst_116 : f32 to vector<8x8xf32>
    %244 = arith.mulf %242, %243 : vector<8x8xf32>
    %cst_117 = arith.constant dense<0xFF800000> : vector<8xf32>
    %245 = vector.multi_reduction <maximumf>, %244, %cst_117 [1] : vector<8x8xf32> to vector<8xf32>
    %246 = vector.shape_cast %245 : vector<8xf32> to vector<8x1xf32>
    %247 = vector.broadcast %246 : vector<8x1xf32> to vector<8x8xf32>
    %248 = arith.subf %244, %247 : vector<8x8xf32>
    %249 = math.exp %248 : vector<8x8xf32>
    %cst_118 = arith.constant dense<0.000000e+00> : vector<8xf32>
    %250 = vector.multi_reduction <add>, %249, %cst_118 [1] : vector<8x8xf32> to vector<8xf32>
    %251 = vector.shape_cast %250 : vector<8xf32> to vector<8x1xf32>
    %252 = tpu.reciprocal %251 {approx = true} : vector<8x1xf32> -> vector<8x1xf32>
    %253 = vector.broadcast %252 : vector<8x1xf32> to vector<8x8xf32>
    %254 = arith.mulf %249, %253 : vector<8x8xf32>
    %cst_119 = arith.constant dense<0.000000e+00> : vector<8x8xf32>
    %255 = tpu.matmul %254, %241, %cst_119 {dimension_numbers = #tpu.dot_dimension_numbers<[1], [0], [0], [1], [0, 0, 1, 1], [], []>} : vector<8x8xf32>, vector<8x8xf32>, vector<8x8xf32> -> vector<8x8xf32>
    %c968 = arith.constant 968 : index
    %c0_120 = arith.constant 0 : index
    %256 = vector.load %arg3[%c968, %c0_120] : memref<3160x128xf32, #tpu.memory_space<vmem>>, vector<8x32xf32>
    %cst_121 = arith.constant dense<0.000000e+00> : vector<8x32xf32>
    %257 = tpu.matmul %255, %256, %cst_121 {dimension_numbers = #tpu.dot_dimension_numbers<[1], [0], [0], [1], [0, 0, 1, 1], [], []>} : vector<8x8xf32>, vector<8x32xf32>, vector<8x32xf32> -> vector<8x32xf32>
    %258 = arith.addf %226, %257 : vector<8x32xf32>
    %c624 = arith.constant 624 : index
    %c0_122 = arith.constant 0 : index
    %259 = vector.load %arg3[%c624, %c0_122] : memref<3160x128xf32, #tpu.memory_space<vmem>>, vector<32x8xf32>
    %cst_123 = arith.constant dense<0.000000e+00> : vector<8x8xf32>
    %260 = tpu.matmul %192, %259, %cst_123 {dimension_numbers = #tpu.dot_dimension_numbers<[1], [0], [0], [1], [0, 0, 1, 1], [], []>} : vector<8x32xf32>, vector<32x8xf32>, vector<8x8xf32> -> vector<8x8xf32>
    %c946 = arith.constant 946 : index
    %c0_124 = arith.constant 0 : index
    %261 = vector.load %arg3[%c946, %c0_124] : memref<3160x128xf32, #tpu.memory_space<vmem>>, vector<1x8xf32>
    %262 = vector.broadcast %261 : vector<1x8xf32> to vector<8x8xf32>
    %263 = arith.addf %260, %262 : vector<8x8xf32>
    %c752 = arith.constant 752 : index
    %c0_125 = arith.constant 0 : index
    %264 = vector.load %arg3[%c752, %c0_125] : memref<3160x128xf32, #tpu.memory_space<vmem>>, vector<32x8xf32>
    %cst_126 = arith.constant dense<0.000000e+00> : vector<8x8xf32>
    %265 = tpu.matmul %192, %264, %cst_126 {dimension_numbers = #tpu.dot_dimension_numbers<[1], [0], [0], [1], [0, 0, 1, 1], [], []>} : vector<8x32xf32>, vector<32x8xf32>, vector<8x8xf32> -> vector<8x8xf32>
    %c950 = arith.constant 950 : index
    %c0_127 = arith.constant 0 : index
    %266 = vector.load %arg3[%c950, %c0_127] : memref<3160x128xf32, #tpu.memory_space<vmem>>, vector<1x8xf32>
    %267 = vector.broadcast %266 : vector<1x8xf32> to vector<8x8xf32>
    %268 = arith.addf %265, %267 : vector<8x8xf32>
    %c880 = arith.constant 880 : index
    %c0_128 = arith.constant 0 : index
    %269 = vector.load %arg3[%c880, %c0_128] : memref<3160x128xf32, #tpu.memory_space<vmem>>, vector<32x8xf32>
    %cst_129 = arith.constant dense<0.000000e+00> : vector<8x8xf32>
    %270 = tpu.matmul %192, %269, %cst_129 {dimension_numbers = #tpu.dot_dimension_numbers<[1], [0], [0], [1], [0, 0, 1, 1], [], []>} : vector<8x32xf32>, vector<32x8xf32>, vector<8x8xf32> -> vector<8x8xf32>
    %c954 = arith.constant 954 : index
    %c0_130 = arith.constant 0 : index
    %271 = vector.load %arg3[%c954, %c0_130] : memref<3160x128xf32, #tpu.memory_space<vmem>>, vector<1x8xf32>
    %272 = vector.broadcast %271 : vector<1x8xf32> to vector<8x8xf32>
    %273 = arith.addf %270, %272 : vector<8x8xf32>
    %cst_131 = arith.constant dense<0.000000e+00> : vector<8x8xf32>
    %274 = tpu.matmul %263, %268, %cst_131 {dimension_numbers = #tpu.dot_dimension_numbers<[1], [1], [0], [0], [0, 0, 1, 0], [], []>} : vector<8x8xf32>, vector<8x8xf32>, vector<8x8xf32> -> vector<8x8xf32>
    %cst_132 = arith.constant 0.353553385 : f32
    %275 = vector.broadcast %cst_132 : f32 to vector<8x8xf32>
    %276 = arith.mulf %274, %275 : vector<8x8xf32>
    %cst_133 = arith.constant dense<0xFF800000> : vector<8xf32>
    %277 = vector.multi_reduction <maximumf>, %276, %cst_133 [1] : vector<8x8xf32> to vector<8xf32>
    %278 = vector.shape_cast %277 : vector<8xf32> to vector<8x1xf32>
    %279 = vector.broadcast %278 : vector<8x1xf32> to vector<8x8xf32>
    %280 = arith.subf %276, %279 : vector<8x8xf32>
    %281 = math.exp %280 : vector<8x8xf32>
    %cst_134 = arith.constant dense<0.000000e+00> : vector<8xf32>
    %282 = vector.multi_reduction <add>, %281, %cst_134 [1] : vector<8x8xf32> to vector<8xf32>
    %283 = vector.shape_cast %282 : vector<8xf32> to vector<8x1xf32>
    %284 = tpu.reciprocal %283 {approx = true} : vector<8x1xf32> -> vector<8x1xf32>
    %285 = vector.broadcast %284 : vector<8x1xf32> to vector<8x8xf32>
    %286 = arith.mulf %281, %285 : vector<8x8xf32>
    %cst_135 = arith.constant dense<0.000000e+00> : vector<8x8xf32>
    %287 = tpu.matmul %286, %273, %cst_135 {dimension_numbers = #tpu.dot_dimension_numbers<[1], [0], [0], [1], [0, 0, 1, 1], [], []>} : vector<8x8xf32>, vector<8x8xf32>, vector<8x8xf32> -> vector<8x8xf32>
    %c976 = arith.constant 976 : index
    %c0_136 = arith.constant 0 : index
    %288 = vector.load %arg3[%c976, %c0_136] : memref<3160x128xf32, #tpu.memory_space<vmem>>, vector<8x32xf32>
    %cst_137 = arith.constant dense<0.000000e+00> : vector<8x32xf32>
    %289 = tpu.matmul %287, %288, %cst_137 {dimension_numbers = #tpu.dot_dimension_numbers<[1], [0], [0], [1], [0, 0, 1, 1], [], []>} : vector<8x8xf32>, vector<8x32xf32>, vector<8x32xf32> -> vector<8x32xf32>
    %290 = arith.addf %258, %289 : vector<8x32xf32>
    %c656 = arith.constant 656 : index
    %c0_138 = arith.constant 0 : index
    %291 = vector.load %arg3[%c656, %c0_138] : memref<3160x128xf32, #tpu.memory_space<vmem>>, vector<32x8xf32>
    %cst_139 = arith.constant dense<0.000000e+00> : vector<8x8xf32>
    %292 = tpu.matmul %192, %291, %cst_139 {dimension_numbers = #tpu.dot_dimension_numbers<[1], [0], [0], [1], [0, 0, 1, 1], [], []>} : vector<8x32xf32>, vector<32x8xf32>, vector<8x8xf32> -> vector<8x8xf32>
    %c947 = arith.constant 947 : index
    %c0_140 = arith.constant 0 : index
    %293 = vector.load %arg3[%c947, %c0_140] : memref<3160x128xf32, #tpu.memory_space<vmem>>, vector<1x8xf32>
    %294 = vector.broadcast %293 : vector<1x8xf32> to vector<8x8xf32>
    %295 = arith.addf %292, %294 : vector<8x8xf32>
    %c784 = arith.constant 784 : index
    %c0_141 = arith.constant 0 : index
    %296 = vector.load %arg3[%c784, %c0_141] : memref<3160x128xf32, #tpu.memory_space<vmem>>, vector<32x8xf32>
    %cst_142 = arith.constant dense<0.000000e+00> : vector<8x8xf32>
    %297 = tpu.matmul %192, %296, %cst_142 {dimension_numbers = #tpu.dot_dimension_numbers<[1], [0], [0], [1], [0, 0, 1, 1], [], []>} : vector<8x32xf32>, vector<32x8xf32>, vector<8x8xf32> -> vector<8x8xf32>
    %c951 = arith.constant 951 : index
    %c0_143 = arith.constant 0 : index
    %298 = vector.load %arg3[%c951, %c0_143] : memref<3160x128xf32, #tpu.memory_space<vmem>>, vector<1x8xf32>
    %299 = vector.broadcast %298 : vector<1x8xf32> to vector<8x8xf32>
    %300 = arith.addf %297, %299 : vector<8x8xf32>
    %c912 = arith.constant 912 : index
    %c0_144 = arith.constant 0 : index
    %301 = vector.load %arg3[%c912, %c0_144] : memref<3160x128xf32, #tpu.memory_space<vmem>>, vector<32x8xf32>
    %cst_145 = arith.constant dense<0.000000e+00> : vector<8x8xf32>
    %302 = tpu.matmul %192, %301, %cst_145 {dimension_numbers = #tpu.dot_dimension_numbers<[1], [0], [0], [1], [0, 0, 1, 1], [], []>} : vector<8x32xf32>, vector<32x8xf32>, vector<8x8xf32> -> vector<8x8xf32>
    %c955 = arith.constant 955 : index
    %c0_146 = arith.constant 0 : index
    %303 = vector.load %arg3[%c955, %c0_146] : memref<3160x128xf32, #tpu.memory_space<vmem>>, vector<1x8xf32>
    %304 = vector.broadcast %303 : vector<1x8xf32> to vector<8x8xf32>
    %305 = arith.addf %302, %304 : vector<8x8xf32>
    %cst_147 = arith.constant dense<0.000000e+00> : vector<8x8xf32>
    %306 = tpu.matmul %295, %300, %cst_147 {dimension_numbers = #tpu.dot_dimension_numbers<[1], [1], [0], [0], [0, 0, 1, 0], [], []>} : vector<8x8xf32>, vector<8x8xf32>, vector<8x8xf32> -> vector<8x8xf32>
    %cst_148 = arith.constant 0.353553385 : f32
    %307 = vector.broadcast %cst_148 : f32 to vector<8x8xf32>
    %308 = arith.mulf %306, %307 : vector<8x8xf32>
    %cst_149 = arith.constant dense<0xFF800000> : vector<8xf32>
    %309 = vector.multi_reduction <maximumf>, %308, %cst_149 [1] : vector<8x8xf32> to vector<8xf32>
    %310 = vector.shape_cast %309 : vector<8xf32> to vector<8x1xf32>
    %311 = vector.broadcast %310 : vector<8x1xf32> to vector<8x8xf32>
    %312 = arith.subf %308, %311 : vector<8x8xf32>
    %313 = math.exp %312 : vector<8x8xf32>
    %cst_150 = arith.constant dense<0.000000e+00> : vector<8xf32>
    %314 = vector.multi_reduction <add>, %313, %cst_150 [1] : vector<8x8xf32> to vector<8xf32>
    %315 = vector.shape_cast %314 : vector<8xf32> to vector<8x1xf32>
    %316 = tpu.reciprocal %315 {approx = true} : vector<8x1xf32> -> vector<8x1xf32>
    %317 = vector.broadcast %316 : vector<8x1xf32> to vector<8x8xf32>
    %318 = arith.mulf %313, %317 : vector<8x8xf32>
    %cst_151 = arith.constant dense<0.000000e+00> : vector<8x8xf32>
    %319 = tpu.matmul %318, %305, %cst_151 {dimension_numbers = #tpu.dot_dimension_numbers<[1], [0], [0], [1], [0, 0, 1, 1], [], []>} : vector<8x8xf32>, vector<8x8xf32>, vector<8x8xf32> -> vector<8x8xf32>
    %c984 = arith.constant 984 : index
    %c0_152 = arith.constant 0 : index
    %320 = vector.load %arg3[%c984, %c0_152] : memref<3160x128xf32, #tpu.memory_space<vmem>>, vector<8x32xf32>
    %cst_153 = arith.constant dense<0.000000e+00> : vector<8x32xf32>
    %321 = tpu.matmul %319, %320, %cst_153 {dimension_numbers = #tpu.dot_dimension_numbers<[1], [0], [0], [1], [0, 0, 1, 1], [], []>} : vector<8x8xf32>, vector<8x32xf32>, vector<8x32xf32> -> vector<8x32xf32>
    %322 = arith.addf %290, %321 : vector<8x32xf32>
    %323 = arith.addf %322, %192 : vector<8x32xf32>
    %c1000 = arith.constant 1000 : index
    %c0_154 = arith.constant 0 : index
    %324 = vector.load %arg3[%c1000, %c0_154] : memref<3160x128xf32, #tpu.memory_space<vmem>>, vector<1x32xf32>
    %c1001 = arith.constant 1001 : index
    %c0_155 = arith.constant 0 : index
    %325 = vector.load %arg3[%c1001, %c0_155] : memref<3160x128xf32, #tpu.memory_space<vmem>>, vector<1x32xf32>
    %cst_156 = arith.constant dense<0.000000e+00> : vector<8xf32>
    %326 = vector.multi_reduction <add>, %323, %cst_156 [1] : vector<8x32xf32> to vector<8xf32>
    %327 = vector.shape_cast %326 : vector<8xf32> to vector<8x1xf32>
    %cst_157 = arith.constant 3.200000e+01 : f32
    %328 = vector.broadcast %cst_157 : f32 to vector<8x1xf32>
    %329 = arith.divf %327, %328 : vector<8x1xf32>
    %330 = vector.broadcast %329 : vector<8x1xf32> to vector<8x32xf32>
    %331 = arith.subf %323, %330 : vector<8x32xf32>
    %332 = arith.mulf %331, %331 : vector<8x32xf32>
    %cst_158 = arith.constant dense<0.000000e+00> : vector<8xf32>
    %333 = vector.multi_reduction <add>, %332, %cst_158 [1] : vector<8x32xf32> to vector<8xf32>
    %334 = vector.shape_cast %333 : vector<8xf32> to vector<8x1xf32>
    %cst_159 = arith.constant 3.200000e+01 : f32
    %335 = vector.broadcast %cst_159 : f32 to vector<8x1xf32>
    %336 = arith.divf %334, %335 : vector<8x1xf32>
    %337 = vector.broadcast %329 : vector<8x1xf32> to vector<8x32xf32>
    %338 = arith.subf %323, %337 : vector<8x32xf32>
    %cst_160 = arith.constant 9.99999974E-6 : f32
    %339 = vector.broadcast %cst_160 : f32 to vector<8x1xf32>
    %340 = arith.addf %336, %339 : vector<8x1xf32>
    %341 = math.rsqrt %340 : vector<8x1xf32>
    %342 = vector.broadcast %341 : vector<8x1xf32> to vector<8x32xf32>
    %343 = arith.mulf %338, %342 : vector<8x32xf32>
    %344 = vector.broadcast %324 : vector<1x32xf32> to vector<8x32xf32>
    %345 = arith.mulf %343, %344 : vector<8x32xf32>
    %346 = vector.broadcast %325 : vector<1x32xf32> to vector<8x32xf32>
    %347 = arith.addf %345, %346 : vector<8x32xf32>
    %c1008 = arith.constant 1008 : index
    %c0_161 = arith.constant 0 : index
    %348 = vector.load %arg3[%c1008, %c0_161] : memref<3160x128xf32, #tpu.memory_space<vmem>>, vector<32x64xf32>
    %cst_162 = arith.constant dense<0.000000e+00> : vector<8x64xf32>
    %349 = tpu.matmul %347, %348, %cst_162 {dimension_numbers = #tpu.dot_dimension_numbers<[1], [0], [0], [1], [0, 0, 1, 1], [], []>} : vector<8x32xf32>, vector<32x64xf32>, vector<8x64xf32> -> vector<8x64xf32>
    %c1040 = arith.constant 1040 : index
    %c0_163 = arith.constant 0 : index
    %350 = vector.load %arg3[%c1040, %c0_163] : memref<3160x128xf32, #tpu.memory_space<vmem>>, vector<1x64xf32>
    %351 = vector.broadcast %350 : vector<1x64xf32> to vector<8x64xf32>
    %352 = arith.addf %349, %351 : vector<8x64xf32>
    %cst_164 = arith.constant 0.000000e+00 : f32
    %353 = vector.broadcast %cst_164 : f32 to vector<8x64xf32>
    %354 = arith.maximumf %352, %353 : vector<8x64xf32>
    %c1048 = arith.constant 1048 : index
    %c0_165 = arith.constant 0 : index
    %355 = vector.load %arg3[%c1048, %c0_165] : memref<3160x128xf32, #tpu.memory_space<vmem>>, vector<64x32xf32>
    %cst_166 = arith.constant dense<0.000000e+00> : vector<8x32xf32>
    %356 = tpu.matmul %354, %355, %cst_166 {dimension_numbers = #tpu.dot_dimension_numbers<[1], [0], [0], [1], [0, 0, 1, 1], [], []>} : vector<8x64xf32>, vector<64x32xf32>, vector<8x32xf32> -> vector<8x32xf32>
    %c1112 = arith.constant 1112 : index
    %c0_167 = arith.constant 0 : index
    %357 = vector.load %arg3[%c1112, %c0_167] : memref<3160x128xf32, #tpu.memory_space<vmem>>, vector<1x32xf32>
    %358 = vector.broadcast %357 : vector<1x32xf32> to vector<8x32xf32>
    %359 = arith.addf %356, %358 : vector<8x32xf32>
    %360 = arith.addf %359, %347 : vector<8x32xf32>
    %c1000_168 = arith.constant 1000 : index
    %c0_169 = arith.constant 0 : index
    %361 = vector.load %arg3[%c1000_168, %c0_169] : memref<3160x128xf32, #tpu.memory_space<vmem>>, vector<1x32xf32>
    %c1001_170 = arith.constant 1001 : index
    %c0_171 = arith.constant 0 : index
    %362 = vector.load %arg3[%c1001_170, %c0_171] : memref<3160x128xf32, #tpu.memory_space<vmem>>, vector<1x32xf32>
    %cst_172 = arith.constant dense<0.000000e+00> : vector<8xf32>
    %363 = vector.multi_reduction <add>, %360, %cst_172 [1] : vector<8x32xf32> to vector<8xf32>
    %364 = vector.shape_cast %363 : vector<8xf32> to vector<8x1xf32>
    %cst_173 = arith.constant 3.200000e+01 : f32
    %365 = vector.broadcast %cst_173 : f32 to vector<8x1xf32>
    %366 = arith.divf %364, %365 : vector<8x1xf32>
    %367 = vector.broadcast %366 : vector<8x1xf32> to vector<8x32xf32>
    %368 = arith.subf %360, %367 : vector<8x32xf32>
    %369 = arith.mulf %368, %368 : vector<8x32xf32>
    %cst_174 = arith.constant dense<0.000000e+00> : vector<8xf32>
    %370 = vector.multi_reduction <add>, %369, %cst_174 [1] : vector<8x32xf32> to vector<8xf32>
    %371 = vector.shape_cast %370 : vector<8xf32> to vector<8x1xf32>
    %cst_175 = arith.constant 3.200000e+01 : f32
    %372 = vector.broadcast %cst_175 : f32 to vector<8x1xf32>
    %373 = arith.divf %371, %372 : vector<8x1xf32>
    %374 = vector.broadcast %366 : vector<8x1xf32> to vector<8x32xf32>
    %375 = arith.subf %360, %374 : vector<8x32xf32>
    %cst_176 = arith.constant 9.99999974E-6 : f32
    %376 = vector.broadcast %cst_176 : f32 to vector<8x1xf32>
    %377 = arith.addf %373, %376 : vector<8x1xf32>
    %378 = math.rsqrt %377 : vector<8x1xf32>
    %379 = vector.broadcast %378 : vector<8x1xf32> to vector<8x32xf32>
    %380 = arith.mulf %375, %379 : vector<8x32xf32>
    %381 = vector.broadcast %361 : vector<1x32xf32> to vector<8x32xf32>
    %382 = arith.mulf %380, %381 : vector<8x32xf32>
    %383 = vector.broadcast %362 : vector<1x32xf32> to vector<8x32xf32>
    %384 = arith.addf %382, %383 : vector<8x32xf32>
    %c0_177 = arith.constant 0 : index
    %c0_178 = arith.constant 0 : index
    %385 = vector.load %arg2[%c0_177, %c0_178] : memref<8x32xf32, #tpu.memory_space<vmem>>, vector<8x32xf32>
    %386 = tpu.iota {dimensions = array<i32: 0>} : vector<8x8xi32>
    %387 = tpu.iota {dimensions = array<i32: 1>} : vector<8x8xi32>
    %388 = arith.cmpi sgt, %387, %386 : vector<8x8xi32>
    %cst_179 = arith.constant -1.000000e+30 : f32
    %cst_180 = arith.constant 0.000000e+00 : f32
    %389 = vector.broadcast %cst_179 : f32 to vector<8x8xf32>
    %390 = vector.broadcast %cst_180 : f32 to vector<8x8xf32>
    %391 = arith.select %388, %389, %390 : vector<8x8xi1>, vector<8x8xf32>
    %c1552 = arith.constant 1552 : index
    %c0_181 = arith.constant 0 : index
    %392 = vector.load %arg3[%c1552, %c0_181] : memref<3160x128xf32, #tpu.memory_space<vmem>>, vector<1x32xf32>
    %c1120 = arith.constant 1120 : index
    %c0_182 = arith.constant 0 : index
    %393 = vector.load %arg3[%c1120, %c0_182] : memref<3160x128xf32, #tpu.memory_space<vmem>>, vector<32x8xf32>
    %cst_183 = arith.constant dense<0.000000e+00> : vector<8x8xf32>
    %394 = tpu.matmul %385, %393, %cst_183 {dimension_numbers = #tpu.dot_dimension_numbers<[1], [0], [0], [1], [0, 0, 1, 1], [], []>} : vector<8x32xf32>, vector<32x8xf32>, vector<8x8xf32> -> vector<8x8xf32>
    %c1504 = arith.constant 1504 : index
    %c0_184 = arith.constant 0 : index
    %395 = vector.load %arg3[%c1504, %c0_184] : memref<3160x128xf32, #tpu.memory_space<vmem>>, vector<1x8xf32>
    %396 = vector.broadcast %395 : vector<1x8xf32> to vector<8x8xf32>
    %397 = arith.addf %394, %396 : vector<8x8xf32>
    %c1248 = arith.constant 1248 : index
    %c0_185 = arith.constant 0 : index
    %398 = vector.load %arg3[%c1248, %c0_185] : memref<3160x128xf32, #tpu.memory_space<vmem>>, vector<32x8xf32>
    %cst_186 = arith.constant dense<0.000000e+00> : vector<8x8xf32>
    %399 = tpu.matmul %385, %398, %cst_186 {dimension_numbers = #tpu.dot_dimension_numbers<[1], [0], [0], [1], [0, 0, 1, 1], [], []>} : vector<8x32xf32>, vector<32x8xf32>, vector<8x8xf32> -> vector<8x8xf32>
    %c1508 = arith.constant 1508 : index
    %c0_187 = arith.constant 0 : index
    %400 = vector.load %arg3[%c1508, %c0_187] : memref<3160x128xf32, #tpu.memory_space<vmem>>, vector<1x8xf32>
    %401 = vector.broadcast %400 : vector<1x8xf32> to vector<8x8xf32>
    %402 = arith.addf %399, %401 : vector<8x8xf32>
    %c1376 = arith.constant 1376 : index
    %c0_188 = arith.constant 0 : index
    %403 = vector.load %arg3[%c1376, %c0_188] : memref<3160x128xf32, #tpu.memory_space<vmem>>, vector<32x8xf32>
    %cst_189 = arith.constant dense<0.000000e+00> : vector<8x8xf32>
    %404 = tpu.matmul %385, %403, %cst_189 {dimension_numbers = #tpu.dot_dimension_numbers<[1], [0], [0], [1], [0, 0, 1, 1], [], []>} : vector<8x32xf32>, vector<32x8xf32>, vector<8x8xf32> -> vector<8x8xf32>
    %c1512 = arith.constant 1512 : index
    %c0_190 = arith.constant 0 : index
    %405 = vector.load %arg3[%c1512, %c0_190] : memref<3160x128xf32, #tpu.memory_space<vmem>>, vector<1x8xf32>
    %406 = vector.broadcast %405 : vector<1x8xf32> to vector<8x8xf32>
    %407 = arith.addf %404, %406 : vector<8x8xf32>
    %cst_191 = arith.constant dense<0.000000e+00> : vector<8x8xf32>
    %408 = tpu.matmul %397, %402, %cst_191 {dimension_numbers = #tpu.dot_dimension_numbers<[1], [1], [0], [0], [0, 0, 1, 0], [], []>} : vector<8x8xf32>, vector<8x8xf32>, vector<8x8xf32> -> vector<8x8xf32>
    %cst_192 = arith.constant 0.353553385 : f32
    %409 = vector.broadcast %cst_192 : f32 to vector<8x8xf32>
    %410 = arith.mulf %408, %409 : vector<8x8xf32>
    %411 = arith.addf %410, %391 : vector<8x8xf32>
    %cst_193 = arith.constant dense<0xFF800000> : vector<8xf32>
    %412 = vector.multi_reduction <maximumf>, %411, %cst_193 [1] : vector<8x8xf32> to vector<8xf32>
    %413 = vector.shape_cast %412 : vector<8xf32> to vector<8x1xf32>
    %414 = vector.broadcast %413 : vector<8x1xf32> to vector<8x8xf32>
    %415 = arith.subf %411, %414 : vector<8x8xf32>
    %416 = math.exp %415 : vector<8x8xf32>
    %cst_194 = arith.constant dense<0.000000e+00> : vector<8xf32>
    %417 = vector.multi_reduction <add>, %416, %cst_194 [1] : vector<8x8xf32> to vector<8xf32>
    %418 = vector.shape_cast %417 : vector<8xf32> to vector<8x1xf32>
    %419 = tpu.reciprocal %418 {approx = true} : vector<8x1xf32> -> vector<8x1xf32>
    %420 = vector.broadcast %419 : vector<8x1xf32> to vector<8x8xf32>
    %421 = arith.mulf %416, %420 : vector<8x8xf32>
    %cst_195 = arith.constant dense<0.000000e+00> : vector<8x8xf32>
    %422 = tpu.matmul %421, %407, %cst_195 {dimension_numbers = #tpu.dot_dimension_numbers<[1], [0], [0], [1], [0, 0, 1, 1], [], []>} : vector<8x8xf32>, vector<8x8xf32>, vector<8x8xf32> -> vector<8x8xf32>
    %c1520 = arith.constant 1520 : index
    %c0_196 = arith.constant 0 : index
    %423 = vector.load %arg3[%c1520, %c0_196] : memref<3160x128xf32, #tpu.memory_space<vmem>>, vector<8x32xf32>
    %cst_197 = arith.constant dense<0.000000e+00> : vector<8x32xf32>
    %424 = tpu.matmul %422, %423, %cst_197 {dimension_numbers = #tpu.dot_dimension_numbers<[1], [0], [0], [1], [0, 0, 1, 1], [], []>} : vector<8x8xf32>, vector<8x32xf32>, vector<8x32xf32> -> vector<8x32xf32>
    %425 = vector.broadcast %392 : vector<1x32xf32> to vector<8x32xf32>
    %426 = arith.addf %425, %424 : vector<8x32xf32>
    %c1152 = arith.constant 1152 : index
    %c0_198 = arith.constant 0 : index
    %427 = vector.load %arg3[%c1152, %c0_198] : memref<3160x128xf32, #tpu.memory_space<vmem>>, vector<32x8xf32>
    %cst_199 = arith.constant dense<0.000000e+00> : vector<8x8xf32>
    %428 = tpu.matmul %385, %427, %cst_199 {dimension_numbers = #tpu.dot_dimension_numbers<[1], [0], [0], [1], [0, 0, 1, 1], [], []>} : vector<8x32xf32>, vector<32x8xf32>, vector<8x8xf32> -> vector<8x8xf32>
    %c1505 = arith.constant 1505 : index
    %c0_200 = arith.constant 0 : index
    %429 = vector.load %arg3[%c1505, %c0_200] : memref<3160x128xf32, #tpu.memory_space<vmem>>, vector<1x8xf32>
    %430 = vector.broadcast %429 : vector<1x8xf32> to vector<8x8xf32>
    %431 = arith.addf %428, %430 : vector<8x8xf32>
    %c1280 = arith.constant 1280 : index
    %c0_201 = arith.constant 0 : index
    %432 = vector.load %arg3[%c1280, %c0_201] : memref<3160x128xf32, #tpu.memory_space<vmem>>, vector<32x8xf32>
    %cst_202 = arith.constant dense<0.000000e+00> : vector<8x8xf32>
    %433 = tpu.matmul %385, %432, %cst_202 {dimension_numbers = #tpu.dot_dimension_numbers<[1], [0], [0], [1], [0, 0, 1, 1], [], []>} : vector<8x32xf32>, vector<32x8xf32>, vector<8x8xf32> -> vector<8x8xf32>
    %c1509 = arith.constant 1509 : index
    %c0_203 = arith.constant 0 : index
    %434 = vector.load %arg3[%c1509, %c0_203] : memref<3160x128xf32, #tpu.memory_space<vmem>>, vector<1x8xf32>
    %435 = vector.broadcast %434 : vector<1x8xf32> to vector<8x8xf32>
    %436 = arith.addf %433, %435 : vector<8x8xf32>
    %c1408 = arith.constant 1408 : index
    %c0_204 = arith.constant 0 : index
    %437 = vector.load %arg3[%c1408, %c0_204] : memref<3160x128xf32, #tpu.memory_space<vmem>>, vector<32x8xf32>
    %cst_205 = arith.constant dense<0.000000e+00> : vector<8x8xf32>
    %438 = tpu.matmul %385, %437, %cst_205 {dimension_numbers = #tpu.dot_dimension_numbers<[1], [0], [0], [1], [0, 0, 1, 1], [], []>} : vector<8x32xf32>, vector<32x8xf32>, vector<8x8xf32> -> vector<8x8xf32>
    %c1513 = arith.constant 1513 : index
    %c0_206 = arith.constant 0 : index
    %439 = vector.load %arg3[%c1513, %c0_206] : memref<3160x128xf32, #tpu.memory_space<vmem>>, vector<1x8xf32>
    %440 = vector.broadcast %439 : vector<1x8xf32> to vector<8x8xf32>
    %441 = arith.addf %438, %440 : vector<8x8xf32>
    %cst_207 = arith.constant dense<0.000000e+00> : vector<8x8xf32>
    %442 = tpu.matmul %431, %436, %cst_207 {dimension_numbers = #tpu.dot_dimension_numbers<[1], [1], [0], [0], [0, 0, 1, 0], [], []>} : vector<8x8xf32>, vector<8x8xf32>, vector<8x8xf32> -> vector<8x8xf32>
    %cst_208 = arith.constant 0.353553385 : f32
    %443 = vector.broadcast %cst_208 : f32 to vector<8x8xf32>
    %444 = arith.mulf %442, %443 : vector<8x8xf32>
    %445 = arith.addf %444, %391 : vector<8x8xf32>
    %cst_209 = arith.constant dense<0xFF800000> : vector<8xf32>
    %446 = vector.multi_reduction <maximumf>, %445, %cst_209 [1] : vector<8x8xf32> to vector<8xf32>
    %447 = vector.shape_cast %446 : vector<8xf32> to vector<8x1xf32>
    %448 = vector.broadcast %447 : vector<8x1xf32> to vector<8x8xf32>
    %449 = arith.subf %445, %448 : vector<8x8xf32>
    %450 = math.exp %449 : vector<8x8xf32>
    %cst_210 = arith.constant dense<0.000000e+00> : vector<8xf32>
    %451 = vector.multi_reduction <add>, %450, %cst_210 [1] : vector<8x8xf32> to vector<8xf32>
    %452 = vector.shape_cast %451 : vector<8xf32> to vector<8x1xf32>
    %453 = tpu.reciprocal %452 {approx = true} : vector<8x1xf32> -> vector<8x1xf32>
    %454 = vector.broadcast %453 : vector<8x1xf32> to vector<8x8xf32>
    %455 = arith.mulf %450, %454 : vector<8x8xf32>
    %cst_211 = arith.constant dense<0.000000e+00> : vector<8x8xf32>
    %456 = tpu.matmul %455, %441, %cst_211 {dimension_numbers = #tpu.dot_dimension_numbers<[1], [0], [0], [1], [0, 0, 1, 1], [], []>} : vector<8x8xf32>, vector<8x8xf32>, vector<8x8xf32> -> vector<8x8xf32>
    %c1528 = arith.constant 1528 : index
    %c0_212 = arith.constant 0 : index
    %457 = vector.load %arg3[%c1528, %c0_212] : memref<3160x128xf32, #tpu.memory_space<vmem>>, vector<8x32xf32>
    %cst_213 = arith.constant dense<0.000000e+00> : vector<8x32xf32>
    %458 = tpu.matmul %456, %457, %cst_213 {dimension_numbers = #tpu.dot_dimension_numbers<[1], [0], [0], [1], [0, 0, 1, 1], [], []>} : vector<8x8xf32>, vector<8x32xf32>, vector<8x32xf32> -> vector<8x32xf32>
    %459 = arith.addf %426, %458 : vector<8x32xf32>
    %c1184 = arith.constant 1184 : index
    %c0_214 = arith.constant 0 : index
    %460 = vector.load %arg3[%c1184, %c0_214] : memref<3160x128xf32, #tpu.memory_space<vmem>>, vector<32x8xf32>
    %cst_215 = arith.constant dense<0.000000e+00> : vector<8x8xf32>
    %461 = tpu.matmul %385, %460, %cst_215 {dimension_numbers = #tpu.dot_dimension_numbers<[1], [0], [0], [1], [0, 0, 1, 1], [], []>} : vector<8x32xf32>, vector<32x8xf32>, vector<8x8xf32> -> vector<8x8xf32>
    %c1506 = arith.constant 1506 : index
    %c0_216 = arith.constant 0 : index
    %462 = vector.load %arg3[%c1506, %c0_216] : memref<3160x128xf32, #tpu.memory_space<vmem>>, vector<1x8xf32>
    %463 = vector.broadcast %462 : vector<1x8xf32> to vector<8x8xf32>
    %464 = arith.addf %461, %463 : vector<8x8xf32>
    %c1312 = arith.constant 1312 : index
    %c0_217 = arith.constant 0 : index
    %465 = vector.load %arg3[%c1312, %c0_217] : memref<3160x128xf32, #tpu.memory_space<vmem>>, vector<32x8xf32>
    %cst_218 = arith.constant dense<0.000000e+00> : vector<8x8xf32>
    %466 = tpu.matmul %385, %465, %cst_218 {dimension_numbers = #tpu.dot_dimension_numbers<[1], [0], [0], [1], [0, 0, 1, 1], [], []>} : vector<8x32xf32>, vector<32x8xf32>, vector<8x8xf32> -> vector<8x8xf32>
    %c1510 = arith.constant 1510 : index
    %c0_219 = arith.constant 0 : index
    %467 = vector.load %arg3[%c1510, %c0_219] : memref<3160x128xf32, #tpu.memory_space<vmem>>, vector<1x8xf32>
    %468 = vector.broadcast %467 : vector<1x8xf32> to vector<8x8xf32>
    %469 = arith.addf %466, %468 : vector<8x8xf32>
    %c1440 = arith.constant 1440 : index
    %c0_220 = arith.constant 0 : index
    %470 = vector.load %arg3[%c1440, %c0_220] : memref<3160x128xf32, #tpu.memory_space<vmem>>, vector<32x8xf32>
    %cst_221 = arith.constant dense<0.000000e+00> : vector<8x8xf32>
    %471 = tpu.matmul %385, %470, %cst_221 {dimension_numbers = #tpu.dot_dimension_numbers<[1], [0], [0], [1], [0, 0, 1, 1], [], []>} : vector<8x32xf32>, vector<32x8xf32>, vector<8x8xf32> -> vector<8x8xf32>
    %c1514 = arith.constant 1514 : index
    %c0_222 = arith.constant 0 : index
    %472 = vector.load %arg3[%c1514, %c0_222] : memref<3160x128xf32, #tpu.memory_space<vmem>>, vector<1x8xf32>
    %473 = vector.broadcast %472 : vector<1x8xf32> to vector<8x8xf32>
    %474 = arith.addf %471, %473 : vector<8x8xf32>
    %cst_223 = arith.constant dense<0.000000e+00> : vector<8x8xf32>
    %475 = tpu.matmul %464, %469, %cst_223 {dimension_numbers = #tpu.dot_dimension_numbers<[1], [1], [0], [0], [0, 0, 1, 0], [], []>} : vector<8x8xf32>, vector<8x8xf32>, vector<8x8xf32> -> vector<8x8xf32>
    %cst_224 = arith.constant 0.353553385 : f32
    %476 = vector.broadcast %cst_224 : f32 to vector<8x8xf32>
    %477 = arith.mulf %475, %476 : vector<8x8xf32>
    %478 = arith.addf %477, %391 : vector<8x8xf32>
    %cst_225 = arith.constant dense<0xFF800000> : vector<8xf32>
    %479 = vector.multi_reduction <maximumf>, %478, %cst_225 [1] : vector<8x8xf32> to vector<8xf32>
    %480 = vector.shape_cast %479 : vector<8xf32> to vector<8x1xf32>
    %481 = vector.broadcast %480 : vector<8x1xf32> to vector<8x8xf32>
    %482 = arith.subf %478, %481 : vector<8x8xf32>
    %483 = math.exp %482 : vector<8x8xf32>
    %cst_226 = arith.constant dense<0.000000e+00> : vector<8xf32>
    %484 = vector.multi_reduction <add>, %483, %cst_226 [1] : vector<8x8xf32> to vector<8xf32>
    %485 = vector.shape_cast %484 : vector<8xf32> to vector<8x1xf32>
    %486 = tpu.reciprocal %485 {approx = true} : vector<8x1xf32> -> vector<8x1xf32>
    %487 = vector.broadcast %486 : vector<8x1xf32> to vector<8x8xf32>
    %488 = arith.mulf %483, %487 : vector<8x8xf32>
    %cst_227 = arith.constant dense<0.000000e+00> : vector<8x8xf32>
    %489 = tpu.matmul %488, %474, %cst_227 {dimension_numbers = #tpu.dot_dimension_numbers<[1], [0], [0], [1], [0, 0, 1, 1], [], []>} : vector<8x8xf32>, vector<8x8xf32>, vector<8x8xf32> -> vector<8x8xf32>
    %c1536 = arith.constant 1536 : index
    %c0_228 = arith.constant 0 : index
    %490 = vector.load %arg3[%c1536, %c0_228] : memref<3160x128xf32, #tpu.memory_space<vmem>>, vector<8x32xf32>
    %cst_229 = arith.constant dense<0.000000e+00> : vector<8x32xf32>
    %491 = tpu.matmul %489, %490, %cst_229 {dimension_numbers = #tpu.dot_dimension_numbers<[1], [0], [0], [1], [0, 0, 1, 1], [], []>} : vector<8x8xf32>, vector<8x32xf32>, vector<8x32xf32> -> vector<8x32xf32>
    %492 = arith.addf %459, %491 : vector<8x32xf32>
    %c1216 = arith.constant 1216 : index
    %c0_230 = arith.constant 0 : index
    %493 = vector.load %arg3[%c1216, %c0_230] : memref<3160x128xf32, #tpu.memory_space<vmem>>, vector<32x8xf32>
    %cst_231 = arith.constant dense<0.000000e+00> : vector<8x8xf32>
    %494 = tpu.matmul %385, %493, %cst_231 {dimension_numbers = #tpu.dot_dimension_numbers<[1], [0], [0], [1], [0, 0, 1, 1], [], []>} : vector<8x32xf32>, vector<32x8xf32>, vector<8x8xf32> -> vector<8x8xf32>
    %c1507 = arith.constant 1507 : index
    %c0_232 = arith.constant 0 : index
    %495 = vector.load %arg3[%c1507, %c0_232] : memref<3160x128xf32, #tpu.memory_space<vmem>>, vector<1x8xf32>
    %496 = vector.broadcast %495 : vector<1x8xf32> to vector<8x8xf32>
    %497 = arith.addf %494, %496 : vector<8x8xf32>
    %c1344 = arith.constant 1344 : index
    %c0_233 = arith.constant 0 : index
    %498 = vector.load %arg3[%c1344, %c0_233] : memref<3160x128xf32, #tpu.memory_space<vmem>>, vector<32x8xf32>
    %cst_234 = arith.constant dense<0.000000e+00> : vector<8x8xf32>
    %499 = tpu.matmul %385, %498, %cst_234 {dimension_numbers = #tpu.dot_dimension_numbers<[1], [0], [0], [1], [0, 0, 1, 1], [], []>} : vector<8x32xf32>, vector<32x8xf32>, vector<8x8xf32> -> vector<8x8xf32>
    %c1511 = arith.constant 1511 : index
    %c0_235 = arith.constant 0 : index
    %500 = vector.load %arg3[%c1511, %c0_235] : memref<3160x128xf32, #tpu.memory_space<vmem>>, vector<1x8xf32>
    %501 = vector.broadcast %500 : vector<1x8xf32> to vector<8x8xf32>
    %502 = arith.addf %499, %501 : vector<8x8xf32>
    %c1472 = arith.constant 1472 : index
    %c0_236 = arith.constant 0 : index
    %503 = vector.load %arg3[%c1472, %c0_236] : memref<3160x128xf32, #tpu.memory_space<vmem>>, vector<32x8xf32>
    %cst_237 = arith.constant dense<0.000000e+00> : vector<8x8xf32>
    %504 = tpu.matmul %385, %503, %cst_237 {dimension_numbers = #tpu.dot_dimension_numbers<[1], [0], [0], [1], [0, 0, 1, 1], [], []>} : vector<8x32xf32>, vector<32x8xf32>, vector<8x8xf32> -> vector<8x8xf32>
    %c1515 = arith.constant 1515 : index
    %c0_238 = arith.constant 0 : index
    %505 = vector.load %arg3[%c1515, %c0_238] : memref<3160x128xf32, #tpu.memory_space<vmem>>, vector<1x8xf32>
    %506 = vector.broadcast %505 : vector<1x8xf32> to vector<8x8xf32>
    %507 = arith.addf %504, %506 : vector<8x8xf32>
    %cst_239 = arith.constant dense<0.000000e+00> : vector<8x8xf32>
    %508 = tpu.matmul %497, %502, %cst_239 {dimension_numbers = #tpu.dot_dimension_numbers<[1], [1], [0], [0], [0, 0, 1, 0], [], []>} : vector<8x8xf32>, vector<8x8xf32>, vector<8x8xf32> -> vector<8x8xf32>
    %cst_240 = arith.constant 0.353553385 : f32
    %509 = vector.broadcast %cst_240 : f32 to vector<8x8xf32>
    %510 = arith.mulf %508, %509 : vector<8x8xf32>
    %511 = arith.addf %510, %391 : vector<8x8xf32>
    %cst_241 = arith.constant dense<0xFF800000> : vector<8xf32>
    %512 = vector.multi_reduction <maximumf>, %511, %cst_241 [1] : vector<8x8xf32> to vector<8xf32>
    %513 = vector.shape_cast %512 : vector<8xf32> to vector<8x1xf32>
    %514 = vector.broadcast %513 : vector<8x1xf32> to vector<8x8xf32>
    %515 = arith.subf %511, %514 : vector<8x8xf32>
    %516 = math.exp %515 : vector<8x8xf32>
    %cst_242 = arith.constant dense<0.000000e+00> : vector<8xf32>
    %517 = vector.multi_reduction <add>, %516, %cst_242 [1] : vector<8x8xf32> to vector<8xf32>
    %518 = vector.shape_cast %517 : vector<8xf32> to vector<8x1xf32>
    %519 = tpu.reciprocal %518 {approx = true} : vector<8x1xf32> -> vector<8x1xf32>
    %520 = vector.broadcast %519 : vector<8x1xf32> to vector<8x8xf32>
    %521 = arith.mulf %516, %520 : vector<8x8xf32>
    %cst_243 = arith.constant dense<0.000000e+00> : vector<8x8xf32>
    %522 = tpu.matmul %521, %507, %cst_243 {dimension_numbers = #tpu.dot_dimension_numbers<[1], [0], [0], [1], [0, 0, 1, 1], [], []>} : vector<8x8xf32>, vector<8x8xf32>, vector<8x8xf32> -> vector<8x8xf32>
    %c1544 = arith.constant 1544 : index
    %c0_244 = arith.constant 0 : index
    %523 = vector.load %arg3[%c1544, %c0_244] : memref<3160x128xf32, #tpu.memory_space<vmem>>, vector<8x32xf32>
    %cst_245 = arith.constant dense<0.000000e+00> : vector<8x32xf32>
    %524 = tpu.matmul %522, %523, %cst_245 {dimension_numbers = #tpu.dot_dimension_numbers<[1], [0], [0], [1], [0, 0, 1, 1], [], []>} : vector<8x8xf32>, vector<8x32xf32>, vector<8x32xf32> -> vector<8x32xf32>
    %525 = arith.addf %492, %524 : vector<8x32xf32>
    %526 = arith.addf %525, %385 : vector<8x32xf32>
    %c2000 = arith.constant 2000 : index
    %c0_246 = arith.constant 0 : index
    %527 = vector.load %arg3[%c2000, %c0_246] : memref<3160x128xf32, #tpu.memory_space<vmem>>, vector<1x32xf32>
    %c2001 = arith.constant 2001 : index
    %c0_247 = arith.constant 0 : index
    %528 = vector.load %arg3[%c2001, %c0_247] : memref<3160x128xf32, #tpu.memory_space<vmem>>, vector<1x32xf32>
    %cst_248 = arith.constant dense<0.000000e+00> : vector<8xf32>
    %529 = vector.multi_reduction <add>, %526, %cst_248 [1] : vector<8x32xf32> to vector<8xf32>
    %530 = vector.shape_cast %529 : vector<8xf32> to vector<8x1xf32>
    %cst_249 = arith.constant 3.200000e+01 : f32
    %531 = vector.broadcast %cst_249 : f32 to vector<8x1xf32>
    %532 = arith.divf %530, %531 : vector<8x1xf32>
    %533 = vector.broadcast %532 : vector<8x1xf32> to vector<8x32xf32>
    %534 = arith.subf %526, %533 : vector<8x32xf32>
    %535 = arith.mulf %534, %534 : vector<8x32xf32>
    %cst_250 = arith.constant dense<0.000000e+00> : vector<8xf32>
    %536 = vector.multi_reduction <add>, %535, %cst_250 [1] : vector<8x32xf32> to vector<8xf32>
    %537 = vector.shape_cast %536 : vector<8xf32> to vector<8x1xf32>
    %cst_251 = arith.constant 3.200000e+01 : f32
    %538 = vector.broadcast %cst_251 : f32 to vector<8x1xf32>
    %539 = arith.divf %537, %538 : vector<8x1xf32>
    %540 = vector.broadcast %532 : vector<8x1xf32> to vector<8x32xf32>
    %541 = arith.subf %526, %540 : vector<8x32xf32>
    %cst_252 = arith.constant 9.99999974E-6 : f32
    %542 = vector.broadcast %cst_252 : f32 to vector<8x1xf32>
    %543 = arith.addf %539, %542 : vector<8x1xf32>
    %544 = math.rsqrt %543 : vector<8x1xf32>
    %545 = vector.broadcast %544 : vector<8x1xf32> to vector<8x32xf32>
    %546 = arith.mulf %541, %545 : vector<8x32xf32>
    %547 = vector.broadcast %527 : vector<1x32xf32> to vector<8x32xf32>
    %548 = arith.mulf %546, %547 : vector<8x32xf32>
    %549 = vector.broadcast %528 : vector<1x32xf32> to vector<8x32xf32>
    %550 = arith.addf %548, %549 : vector<8x32xf32>
    %c1992 = arith.constant 1992 : index
    %c0_253 = arith.constant 0 : index
    %551 = vector.load %arg3[%c1992, %c0_253] : memref<3160x128xf32, #tpu.memory_space<vmem>>, vector<1x32xf32>
    %c1560 = arith.constant 1560 : index
    %c0_254 = arith.constant 0 : index
    %552 = vector.load %arg3[%c1560, %c0_254] : memref<3160x128xf32, #tpu.memory_space<vmem>>, vector<32x8xf32>
    %cst_255 = arith.constant dense<0.000000e+00> : vector<8x8xf32>
    %553 = tpu.matmul %385, %552, %cst_255 {dimension_numbers = #tpu.dot_dimension_numbers<[1], [0], [0], [1], [0, 0, 1, 1], [], []>} : vector<8x32xf32>, vector<32x8xf32>, vector<8x8xf32> -> vector<8x8xf32>
    %c1944 = arith.constant 1944 : index
    %c0_256 = arith.constant 0 : index
    %554 = vector.load %arg3[%c1944, %c0_256] : memref<3160x128xf32, #tpu.memory_space<vmem>>, vector<1x8xf32>
    %555 = vector.broadcast %554 : vector<1x8xf32> to vector<8x8xf32>
    %556 = arith.addf %553, %555 : vector<8x8xf32>
    %c1688 = arith.constant 1688 : index
    %c0_257 = arith.constant 0 : index
    %557 = vector.load %arg3[%c1688, %c0_257] : memref<3160x128xf32, #tpu.memory_space<vmem>>, vector<32x8xf32>
    %cst_258 = arith.constant dense<0.000000e+00> : vector<8x8xf32>
    %558 = tpu.matmul %384, %557, %cst_258 {dimension_numbers = #tpu.dot_dimension_numbers<[1], [0], [0], [1], [0, 0, 1, 1], [], []>} : vector<8x32xf32>, vector<32x8xf32>, vector<8x8xf32> -> vector<8x8xf32>
    %c1948 = arith.constant 1948 : index
    %c0_259 = arith.constant 0 : index
    %559 = vector.load %arg3[%c1948, %c0_259] : memref<3160x128xf32, #tpu.memory_space<vmem>>, vector<1x8xf32>
    %560 = vector.broadcast %559 : vector<1x8xf32> to vector<8x8xf32>
    %561 = arith.addf %558, %560 : vector<8x8xf32>
    %c1816 = arith.constant 1816 : index
    %c0_260 = arith.constant 0 : index
    %562 = vector.load %arg3[%c1816, %c0_260] : memref<3160x128xf32, #tpu.memory_space<vmem>>, vector<32x8xf32>
    %cst_261 = arith.constant dense<0.000000e+00> : vector<8x8xf32>
    %563 = tpu.matmul %384, %562, %cst_261 {dimension_numbers = #tpu.dot_dimension_numbers<[1], [0], [0], [1], [0, 0, 1, 1], [], []>} : vector<8x32xf32>, vector<32x8xf32>, vector<8x8xf32> -> vector<8x8xf32>
    %c1952 = arith.constant 1952 : index
    %c0_262 = arith.constant 0 : index
    %564 = vector.load %arg3[%c1952, %c0_262] : memref<3160x128xf32, #tpu.memory_space<vmem>>, vector<1x8xf32>
    %565 = vector.broadcast %564 : vector<1x8xf32> to vector<8x8xf32>
    %566 = arith.addf %563, %565 : vector<8x8xf32>
    %cst_263 = arith.constant dense<0.000000e+00> : vector<8x8xf32>
    %567 = tpu.matmul %556, %561, %cst_263 {dimension_numbers = #tpu.dot_dimension_numbers<[1], [1], [0], [0], [0, 0, 1, 0], [], []>} : vector<8x8xf32>, vector<8x8xf32>, vector<8x8xf32> -> vector<8x8xf32>
    %cst_264 = arith.constant 0.353553385 : f32
    %568 = vector.broadcast %cst_264 : f32 to vector<8x8xf32>
    %569 = arith.mulf %567, %568 : vector<8x8xf32>
    %cst_265 = arith.constant dense<0xFF800000> : vector<8xf32>
    %570 = vector.multi_reduction <maximumf>, %569, %cst_265 [1] : vector<8x8xf32> to vector<8xf32>
    %571 = vector.shape_cast %570 : vector<8xf32> to vector<8x1xf32>
    %572 = vector.broadcast %571 : vector<8x1xf32> to vector<8x8xf32>
    %573 = arith.subf %569, %572 : vector<8x8xf32>
    %574 = math.exp %573 : vector<8x8xf32>
    %cst_266 = arith.constant dense<0.000000e+00> : vector<8xf32>
    %575 = vector.multi_reduction <add>, %574, %cst_266 [1] : vector<8x8xf32> to vector<8xf32>
    %576 = vector.shape_cast %575 : vector<8xf32> to vector<8x1xf32>
    %577 = tpu.reciprocal %576 {approx = true} : vector<8x1xf32> -> vector<8x1xf32>
    %578 = vector.broadcast %577 : vector<8x1xf32> to vector<8x8xf32>
    %579 = arith.mulf %574, %578 : vector<8x8xf32>
    %cst_267 = arith.constant dense<0.000000e+00> : vector<8x8xf32>
    %580 = tpu.matmul %579, %566, %cst_267 {dimension_numbers = #tpu.dot_dimension_numbers<[1], [0], [0], [1], [0, 0, 1, 1], [], []>} : vector<8x8xf32>, vector<8x8xf32>, vector<8x8xf32> -> vector<8x8xf32>
    %c1960 = arith.constant 1960 : index
    %c0_268 = arith.constant 0 : index
    %581 = vector.load %arg3[%c1960, %c0_268] : memref<3160x128xf32, #tpu.memory_space<vmem>>, vector<8x32xf32>
    %cst_269 = arith.constant dense<0.000000e+00> : vector<8x32xf32>
    %582 = tpu.matmul %580, %581, %cst_269 {dimension_numbers = #tpu.dot_dimension_numbers<[1], [0], [0], [1], [0, 0, 1, 1], [], []>} : vector<8x8xf32>, vector<8x32xf32>, vector<8x32xf32> -> vector<8x32xf32>
    %583 = vector.broadcast %551 : vector<1x32xf32> to vector<8x32xf32>
    %584 = arith.addf %583, %582 : vector<8x32xf32>
    %c1592 = arith.constant 1592 : index
    %c0_270 = arith.constant 0 : index
    %585 = vector.load %arg3[%c1592, %c0_270] : memref<3160x128xf32, #tpu.memory_space<vmem>>, vector<32x8xf32>
    %cst_271 = arith.constant dense<0.000000e+00> : vector<8x8xf32>
    %586 = tpu.matmul %385, %585, %cst_271 {dimension_numbers = #tpu.dot_dimension_numbers<[1], [0], [0], [1], [0, 0, 1, 1], [], []>} : vector<8x32xf32>, vector<32x8xf32>, vector<8x8xf32> -> vector<8x8xf32>
    %c1945 = arith.constant 1945 : index
    %c0_272 = arith.constant 0 : index
    %587 = vector.load %arg3[%c1945, %c0_272] : memref<3160x128xf32, #tpu.memory_space<vmem>>, vector<1x8xf32>
    %588 = vector.broadcast %587 : vector<1x8xf32> to vector<8x8xf32>
    %589 = arith.addf %586, %588 : vector<8x8xf32>
    %c1720 = arith.constant 1720 : index
    %c0_273 = arith.constant 0 : index
    %590 = vector.load %arg3[%c1720, %c0_273] : memref<3160x128xf32, #tpu.memory_space<vmem>>, vector<32x8xf32>
    %cst_274 = arith.constant dense<0.000000e+00> : vector<8x8xf32>
    %591 = tpu.matmul %384, %590, %cst_274 {dimension_numbers = #tpu.dot_dimension_numbers<[1], [0], [0], [1], [0, 0, 1, 1], [], []>} : vector<8x32xf32>, vector<32x8xf32>, vector<8x8xf32> -> vector<8x8xf32>
    %c1949 = arith.constant 1949 : index
    %c0_275 = arith.constant 0 : index
    %592 = vector.load %arg3[%c1949, %c0_275] : memref<3160x128xf32, #tpu.memory_space<vmem>>, vector<1x8xf32>
    %593 = vector.broadcast %592 : vector<1x8xf32> to vector<8x8xf32>
    %594 = arith.addf %591, %593 : vector<8x8xf32>
    %c1848 = arith.constant 1848 : index
    %c0_276 = arith.constant 0 : index
    %595 = vector.load %arg3[%c1848, %c0_276] : memref<3160x128xf32, #tpu.memory_space<vmem>>, vector<32x8xf32>
    %cst_277 = arith.constant dense<0.000000e+00> : vector<8x8xf32>
    %596 = tpu.matmul %384, %595, %cst_277 {dimension_numbers = #tpu.dot_dimension_numbers<[1], [0], [0], [1], [0, 0, 1, 1], [], []>} : vector<8x32xf32>, vector<32x8xf32>, vector<8x8xf32> -> vector<8x8xf32>
    %c1953 = arith.constant 1953 : index
    %c0_278 = arith.constant 0 : index
    %597 = vector.load %arg3[%c1953, %c0_278] : memref<3160x128xf32, #tpu.memory_space<vmem>>, vector<1x8xf32>
    %598 = vector.broadcast %597 : vector<1x8xf32> to vector<8x8xf32>
    %599 = arith.addf %596, %598 : vector<8x8xf32>
    %cst_279 = arith.constant dense<0.000000e+00> : vector<8x8xf32>
    %600 = tpu.matmul %589, %594, %cst_279 {dimension_numbers = #tpu.dot_dimension_numbers<[1], [1], [0], [0], [0, 0, 1, 0], [], []>} : vector<8x8xf32>, vector<8x8xf32>, vector<8x8xf32> -> vector<8x8xf32>
    %cst_280 = arith.constant 0.353553385 : f32
    %601 = vector.broadcast %cst_280 : f32 to vector<8x8xf32>
    %602 = arith.mulf %600, %601 : vector<8x8xf32>
    %cst_281 = arith.constant dense<0xFF800000> : vector<8xf32>
    %603 = vector.multi_reduction <maximumf>, %602, %cst_281 [1] : vector<8x8xf32> to vector<8xf32>
    %604 = vector.shape_cast %603 : vector<8xf32> to vector<8x1xf32>
    %605 = vector.broadcast %604 : vector<8x1xf32> to vector<8x8xf32>
    %606 = arith.subf %602, %605 : vector<8x8xf32>
    %607 = math.exp %606 : vector<8x8xf32>
    %cst_282 = arith.constant dense<0.000000e+00> : vector<8xf32>
    %608 = vector.multi_reduction <add>, %607, %cst_282 [1] : vector<8x8xf32> to vector<8xf32>
    %609 = vector.shape_cast %608 : vector<8xf32> to vector<8x1xf32>
    %610 = tpu.reciprocal %609 {approx = true} : vector<8x1xf32> -> vector<8x1xf32>
    %611 = vector.broadcast %610 : vector<8x1xf32> to vector<8x8xf32>
    %612 = arith.mulf %607, %611 : vector<8x8xf32>
    %cst_283 = arith.constant dense<0.000000e+00> : vector<8x8xf32>
    %613 = tpu.matmul %612, %599, %cst_283 {dimension_numbers = #tpu.dot_dimension_numbers<[1], [0], [0], [1], [0, 0, 1, 1], [], []>} : vector<8x8xf32>, vector<8x8xf32>, vector<8x8xf32> -> vector<8x8xf32>
    %c1968 = arith.constant 1968 : index
    %c0_284 = arith.constant 0 : index
    %614 = vector.load %arg3[%c1968, %c0_284] : memref<3160x128xf32, #tpu.memory_space<vmem>>, vector<8x32xf32>
    %cst_285 = arith.constant dense<0.000000e+00> : vector<8x32xf32>
    %615 = tpu.matmul %613, %614, %cst_285 {dimension_numbers = #tpu.dot_dimension_numbers<[1], [0], [0], [1], [0, 0, 1, 1], [], []>} : vector<8x8xf32>, vector<8x32xf32>, vector<8x32xf32> -> vector<8x32xf32>
    %616 = arith.addf %584, %615 : vector<8x32xf32>
    %c1624 = arith.constant 1624 : index
    %c0_286 = arith.constant 0 : index
    %617 = vector.load %arg3[%c1624, %c0_286] : memref<3160x128xf32, #tpu.memory_space<vmem>>, vector<32x8xf32>
    %cst_287 = arith.constant dense<0.000000e+00> : vector<8x8xf32>
    %618 = tpu.matmul %385, %617, %cst_287 {dimension_numbers = #tpu.dot_dimension_numbers<[1], [0], [0], [1], [0, 0, 1, 1], [], []>} : vector<8x32xf32>, vector<32x8xf32>, vector<8x8xf32> -> vector<8x8xf32>
    %c1946 = arith.constant 1946 : index
    %c0_288 = arith.constant 0 : index
    %619 = vector.load %arg3[%c1946, %c0_288] : memref<3160x128xf32, #tpu.memory_space<vmem>>, vector<1x8xf32>
    %620 = vector.broadcast %619 : vector<1x8xf32> to vector<8x8xf32>
    %621 = arith.addf %618, %620 : vector<8x8xf32>
    %c1752 = arith.constant 1752 : index
    %c0_289 = arith.constant 0 : index
    %622 = vector.load %arg3[%c1752, %c0_289] : memref<3160x128xf32, #tpu.memory_space<vmem>>, vector<32x8xf32>
    %cst_290 = arith.constant dense<0.000000e+00> : vector<8x8xf32>
    %623 = tpu.matmul %384, %622, %cst_290 {dimension_numbers = #tpu.dot_dimension_numbers<[1], [0], [0], [1], [0, 0, 1, 1], [], []>} : vector<8x32xf32>, vector<32x8xf32>, vector<8x8xf32> -> vector<8x8xf32>
    %c1950 = arith.constant 1950 : index
    %c0_291 = arith.constant 0 : index
    %624 = vector.load %arg3[%c1950, %c0_291] : memref<3160x128xf32, #tpu.memory_space<vmem>>, vector<1x8xf32>
    %625 = vector.broadcast %624 : vector<1x8xf32> to vector<8x8xf32>
    %626 = arith.addf %623, %625 : vector<8x8xf32>
    %c1880 = arith.constant 1880 : index
    %c0_292 = arith.constant 0 : index
    %627 = vector.load %arg3[%c1880, %c0_292] : memref<3160x128xf32, #tpu.memory_space<vmem>>, vector<32x8xf32>
    %cst_293 = arith.constant dense<0.000000e+00> : vector<8x8xf32>
    %628 = tpu.matmul %384, %627, %cst_293 {dimension_numbers = #tpu.dot_dimension_numbers<[1], [0], [0], [1], [0, 0, 1, 1], [], []>} : vector<8x32xf32>, vector<32x8xf32>, vector<8x8xf32> -> vector<8x8xf32>
    %c1954 = arith.constant 1954 : index
    %c0_294 = arith.constant 0 : index
    %629 = vector.load %arg3[%c1954, %c0_294] : memref<3160x128xf32, #tpu.memory_space<vmem>>, vector<1x8xf32>
    %630 = vector.broadcast %629 : vector<1x8xf32> to vector<8x8xf32>
    %631 = arith.addf %628, %630 : vector<8x8xf32>
    %cst_295 = arith.constant dense<0.000000e+00> : vector<8x8xf32>
    %632 = tpu.matmul %621, %626, %cst_295 {dimension_numbers = #tpu.dot_dimension_numbers<[1], [1], [0], [0], [0, 0, 1, 0], [], []>} : vector<8x8xf32>, vector<8x8xf32>, vector<8x8xf32> -> vector<8x8xf32>
    %cst_296 = arith.constant 0.353553385 : f32
    %633 = vector.broadcast %cst_296 : f32 to vector<8x8xf32>
    %634 = arith.mulf %632, %633 : vector<8x8xf32>
    %cst_297 = arith.constant dense<0xFF800000> : vector<8xf32>
    %635 = vector.multi_reduction <maximumf>, %634, %cst_297 [1] : vector<8x8xf32> to vector<8xf32>
    %636 = vector.shape_cast %635 : vector<8xf32> to vector<8x1xf32>
    %637 = vector.broadcast %636 : vector<8x1xf32> to vector<8x8xf32>
    %638 = arith.subf %634, %637 : vector<8x8xf32>
    %639 = math.exp %638 : vector<8x8xf32>
    %cst_298 = arith.constant dense<0.000000e+00> : vector<8xf32>
    %640 = vector.multi_reduction <add>, %639, %cst_298 [1] : vector<8x8xf32> to vector<8xf32>
    %641 = vector.shape_cast %640 : vector<8xf32> to vector<8x1xf32>
    %642 = tpu.reciprocal %641 {approx = true} : vector<8x1xf32> -> vector<8x1xf32>
    %643 = vector.broadcast %642 : vector<8x1xf32> to vector<8x8xf32>
    %644 = arith.mulf %639, %643 : vector<8x8xf32>
    %cst_299 = arith.constant dense<0.000000e+00> : vector<8x8xf32>
    %645 = tpu.matmul %644, %631, %cst_299 {dimension_numbers = #tpu.dot_dimension_numbers<[1], [0], [0], [1], [0, 0, 1, 1], [], []>} : vector<8x8xf32>, vector<8x8xf32>, vector<8x8xf32> -> vector<8x8xf32>
    %c1976 = arith.constant 1976 : index
    %c0_300 = arith.constant 0 : index
    %646 = vector.load %arg3[%c1976, %c0_300] : memref<3160x128xf32, #tpu.memory_space<vmem>>, vector<8x32xf32>
    %cst_301 = arith.constant dense<0.000000e+00> : vector<8x32xf32>
    %647 = tpu.matmul %645, %646, %cst_301 {dimension_numbers = #tpu.dot_dimension_numbers<[1], [0], [0], [1], [0, 0, 1, 1], [], []>} : vector<8x8xf32>, vector<8x32xf32>, vector<8x32xf32> -> vector<8x32xf32>
    %648 = arith.addf %616, %647 : vector<8x32xf32>
    %c1656 = arith.constant 1656 : index
    %c0_302 = arith.constant 0 : index
    %649 = vector.load %arg3[%c1656, %c0_302] : memref<3160x128xf32, #tpu.memory_space<vmem>>, vector<32x8xf32>
    %cst_303 = arith.constant dense<0.000000e+00> : vector<8x8xf32>
    %650 = tpu.matmul %385, %649, %cst_303 {dimension_numbers = #tpu.dot_dimension_numbers<[1], [0], [0], [1], [0, 0, 1, 1], [], []>} : vector<8x32xf32>, vector<32x8xf32>, vector<8x8xf32> -> vector<8x8xf32>
    %c1947 = arith.constant 1947 : index
    %c0_304 = arith.constant 0 : index
    %651 = vector.load %arg3[%c1947, %c0_304] : memref<3160x128xf32, #tpu.memory_space<vmem>>, vector<1x8xf32>
    %652 = vector.broadcast %651 : vector<1x8xf32> to vector<8x8xf32>
    %653 = arith.addf %650, %652 : vector<8x8xf32>
    %c1784 = arith.constant 1784 : index
    %c0_305 = arith.constant 0 : index
    %654 = vector.load %arg3[%c1784, %c0_305] : memref<3160x128xf32, #tpu.memory_space<vmem>>, vector<32x8xf32>
    %cst_306 = arith.constant dense<0.000000e+00> : vector<8x8xf32>
    %655 = tpu.matmul %384, %654, %cst_306 {dimension_numbers = #tpu.dot_dimension_numbers<[1], [0], [0], [1], [0, 0, 1, 1], [], []>} : vector<8x32xf32>, vector<32x8xf32>, vector<8x8xf32> -> vector<8x8xf32>
    %c1951 = arith.constant 1951 : index
    %c0_307 = arith.constant 0 : index
    %656 = vector.load %arg3[%c1951, %c0_307] : memref<3160x128xf32, #tpu.memory_space<vmem>>, vector<1x8xf32>
    %657 = vector.broadcast %656 : vector<1x8xf32> to vector<8x8xf32>
    %658 = arith.addf %655, %657 : vector<8x8xf32>
    %c1912 = arith.constant 1912 : index
    %c0_308 = arith.constant 0 : index
    %659 = vector.load %arg3[%c1912, %c0_308] : memref<3160x128xf32, #tpu.memory_space<vmem>>, vector<32x8xf32>
    %cst_309 = arith.constant dense<0.000000e+00> : vector<8x8xf32>
    %660 = tpu.matmul %384, %659, %cst_309 {dimension_numbers = #tpu.dot_dimension_numbers<[1], [0], [0], [1], [0, 0, 1, 1], [], []>} : vector<8x32xf32>, vector<32x8xf32>, vector<8x8xf32> -> vector<8x8xf32>
    %c1955 = arith.constant 1955 : index
    %c0_310 = arith.constant 0 : index
    %661 = vector.load %arg3[%c1955, %c0_310] : memref<3160x128xf32, #tpu.memory_space<vmem>>, vector<1x8xf32>
    %662 = vector.broadcast %661 : vector<1x8xf32> to vector<8x8xf32>
    %663 = arith.addf %660, %662 : vector<8x8xf32>
    %cst_311 = arith.constant dense<0.000000e+00> : vector<8x8xf32>
    %664 = tpu.matmul %653, %658, %cst_311 {dimension_numbers = #tpu.dot_dimension_numbers<[1], [1], [0], [0], [0, 0, 1, 0], [], []>} : vector<8x8xf32>, vector<8x8xf32>, vector<8x8xf32> -> vector<8x8xf32>
    %cst_312 = arith.constant 0.353553385 : f32
    %665 = vector.broadcast %cst_312 : f32 to vector<8x8xf32>
    %666 = arith.mulf %664, %665 : vector<8x8xf32>
    %cst_313 = arith.constant dense<0xFF800000> : vector<8xf32>
    %667 = vector.multi_reduction <maximumf>, %666, %cst_313 [1] : vector<8x8xf32> to vector<8xf32>
    %668 = vector.shape_cast %667 : vector<8xf32> to vector<8x1xf32>
    %669 = vector.broadcast %668 : vector<8x1xf32> to vector<8x8xf32>
    %670 = arith.subf %666, %669 : vector<8x8xf32>
    %671 = math.exp %670 : vector<8x8xf32>
    %cst_314 = arith.constant dense<0.000000e+00> : vector<8xf32>
    %672 = vector.multi_reduction <add>, %671, %cst_314 [1] : vector<8x8xf32> to vector<8xf32>
    %673 = vector.shape_cast %672 : vector<8xf32> to vector<8x1xf32>
    %674 = tpu.reciprocal %673 {approx = true} : vector<8x1xf32> -> vector<8x1xf32>
    %675 = vector.broadcast %674 : vector<8x1xf32> to vector<8x8xf32>
    %676 = arith.mulf %671, %675 : vector<8x8xf32>
    %cst_315 = arith.constant dense<0.000000e+00> : vector<8x8xf32>
    %677 = tpu.matmul %676, %663, %cst_315 {dimension_numbers = #tpu.dot_dimension_numbers<[1], [0], [0], [1], [0, 0, 1, 1], [], []>} : vector<8x8xf32>, vector<8x8xf32>, vector<8x8xf32> -> vector<8x8xf32>
    %c1984 = arith.constant 1984 : index
    %c0_316 = arith.constant 0 : index
    %678 = vector.load %arg3[%c1984, %c0_316] : memref<3160x128xf32, #tpu.memory_space<vmem>>, vector<8x32xf32>
    %cst_317 = arith.constant dense<0.000000e+00> : vector<8x32xf32>
    %679 = tpu.matmul %677, %678, %cst_317 {dimension_numbers = #tpu.dot_dimension_numbers<[1], [0], [0], [1], [0, 0, 1, 1], [], []>} : vector<8x8xf32>, vector<8x32xf32>, vector<8x32xf32> -> vector<8x32xf32>
    %680 = arith.addf %648, %679 : vector<8x32xf32>
    %681 = arith.addf %680, %550 : vector<8x32xf32>
    %c2000_318 = arith.constant 2000 : index
    %c0_319 = arith.constant 0 : index
    %682 = vector.load %arg3[%c2000_318, %c0_319] : memref<3160x128xf32, #tpu.memory_space<vmem>>, vector<1x32xf32>
    %c2001_320 = arith.constant 2001 : index
    %c0_321 = arith.constant 0 : index
    %683 = vector.load %arg3[%c2001_320, %c0_321] : memref<3160x128xf32, #tpu.memory_space<vmem>>, vector<1x32xf32>
    %cst_322 = arith.constant dense<0.000000e+00> : vector<8xf32>
    %684 = vector.multi_reduction <add>, %681, %cst_322 [1] : vector<8x32xf32> to vector<8xf32>
    %685 = vector.shape_cast %684 : vector<8xf32> to vector<8x1xf32>
    %cst_323 = arith.constant 3.200000e+01 : f32
    %686 = vector.broadcast %cst_323 : f32 to vector<8x1xf32>
    %687 = arith.divf %685, %686 : vector<8x1xf32>
    %688 = vector.broadcast %687 : vector<8x1xf32> to vector<8x32xf32>
    %689 = arith.subf %681, %688 : vector<8x32xf32>
    %690 = arith.mulf %689, %689 : vector<8x32xf32>
    %cst_324 = arith.constant dense<0.000000e+00> : vector<8xf32>
    %691 = vector.multi_reduction <add>, %690, %cst_324 [1] : vector<8x32xf32> to vector<8xf32>
    %692 = vector.shape_cast %691 : vector<8xf32> to vector<8x1xf32>
    %cst_325 = arith.constant 3.200000e+01 : f32
    %693 = vector.broadcast %cst_325 : f32 to vector<8x1xf32>
    %694 = arith.divf %692, %693 : vector<8x1xf32>
    %695 = vector.broadcast %687 : vector<8x1xf32> to vector<8x32xf32>
    %696 = arith.subf %681, %695 : vector<8x32xf32>
    %cst_326 = arith.constant 9.99999974E-6 : f32
    %697 = vector.broadcast %cst_326 : f32 to vector<8x1xf32>
    %698 = arith.addf %694, %697 : vector<8x1xf32>
    %699 = math.rsqrt %698 : vector<8x1xf32>
    %700 = vector.broadcast %699 : vector<8x1xf32> to vector<8x32xf32>
    %701 = arith.mulf %696, %700 : vector<8x32xf32>
    %702 = vector.broadcast %682 : vector<1x32xf32> to vector<8x32xf32>
    %703 = arith.mulf %701, %702 : vector<8x32xf32>
    %704 = vector.broadcast %683 : vector<1x32xf32> to vector<8x32xf32>
    %705 = arith.addf %703, %704 : vector<8x32xf32>
    %c2008 = arith.constant 2008 : index
    %c0_327 = arith.constant 0 : index
    %706 = vector.load %arg3[%c2008, %c0_327] : memref<3160x128xf32, #tpu.memory_space<vmem>>, vector<32x64xf32>
    %cst_328 = arith.constant dense<0.000000e+00> : vector<8x64xf32>
    %707 = tpu.matmul %705, %706, %cst_328 {dimension_numbers = #tpu.dot_dimension_numbers<[1], [0], [0], [1], [0, 0, 1, 1], [], []>} : vector<8x32xf32>, vector<32x64xf32>, vector<8x64xf32> -> vector<8x64xf32>
    %c2040 = arith.constant 2040 : index
    %c0_329 = arith.constant 0 : index
    %708 = vector.load %arg3[%c2040, %c0_329] : memref<3160x128xf32, #tpu.memory_space<vmem>>, vector<1x64xf32>
    %709 = vector.broadcast %708 : vector<1x64xf32> to vector<8x64xf32>
    %710 = arith.addf %707, %709 : vector<8x64xf32>
    %cst_330 = arith.constant 0.000000e+00 : f32
    %711 = vector.broadcast %cst_330 : f32 to vector<8x64xf32>
    %712 = arith.maximumf %710, %711 : vector<8x64xf32>
    %c2048 = arith.constant 2048 : index
    %c0_331 = arith.constant 0 : index
    %713 = vector.load %arg3[%c2048, %c0_331] : memref<3160x128xf32, #tpu.memory_space<vmem>>, vector<64x32xf32>
    %cst_332 = arith.constant dense<0.000000e+00> : vector<8x32xf32>
    %714 = tpu.matmul %712, %713, %cst_332 {dimension_numbers = #tpu.dot_dimension_numbers<[1], [0], [0], [1], [0, 0, 1, 1], [], []>} : vector<8x64xf32>, vector<64x32xf32>, vector<8x32xf32> -> vector<8x32xf32>
    %c2112 = arith.constant 2112 : index
    %c0_333 = arith.constant 0 : index
    %715 = vector.load %arg3[%c2112, %c0_333] : memref<3160x128xf32, #tpu.memory_space<vmem>>, vector<1x32xf32>
    %716 = vector.broadcast %715 : vector<1x32xf32> to vector<8x32xf32>
    %717 = arith.addf %714, %716 : vector<8x32xf32>
    %718 = arith.addf %717, %705 : vector<8x32xf32>
    %c2000_334 = arith.constant 2000 : index
    %c0_335 = arith.constant 0 : index
    %719 = vector.load %arg3[%c2000_334, %c0_335] : memref<3160x128xf32, #tpu.memory_space<vmem>>, vector<1x32xf32>
    %c2001_336 = arith.constant 2001 : index
    %c0_337 = arith.constant 0 : index
    %720 = vector.load %arg3[%c2001_336, %c0_337] : memref<3160x128xf32, #tpu.memory_space<vmem>>, vector<1x32xf32>
    %cst_338 = arith.constant dense<0.000000e+00> : vector<8xf32>
    %721 = vector.multi_reduction <add>, %718, %cst_338 [1] : vector<8x32xf32> to vector<8xf32>
    %722 = vector.shape_cast %721 : vector<8xf32> to vector<8x1xf32>
    %cst_339 = arith.constant 3.200000e+01 : f32
    %723 = vector.broadcast %cst_339 : f32 to vector<8x1xf32>
    %724 = arith.divf %722, %723 : vector<8x1xf32>
    %725 = vector.broadcast %724 : vector<8x1xf32> to vector<8x32xf32>
    %726 = arith.subf %718, %725 : vector<8x32xf32>
    %727 = arith.mulf %726, %726 : vector<8x32xf32>
    %cst_340 = arith.constant dense<0.000000e+00> : vector<8xf32>
    %728 = vector.multi_reduction <add>, %727, %cst_340 [1] : vector<8x32xf32> to vector<8xf32>
    %729 = vector.shape_cast %728 : vector<8xf32> to vector<8x1xf32>
    %cst_341 = arith.constant 3.200000e+01 : f32
    %730 = vector.broadcast %cst_341 : f32 to vector<8x1xf32>
    %731 = arith.divf %729, %730 : vector<8x1xf32>
    %732 = vector.broadcast %724 : vector<8x1xf32> to vector<8x32xf32>
    %733 = arith.subf %718, %732 : vector<8x32xf32>
    %cst_342 = arith.constant 9.99999974E-6 : f32
    %734 = vector.broadcast %cst_342 : f32 to vector<8x1xf32>
    %735 = arith.addf %731, %734 : vector<8x1xf32>
    %736 = math.rsqrt %735 : vector<8x1xf32>
    %737 = vector.broadcast %736 : vector<8x1xf32> to vector<8x32xf32>
    %738 = arith.mulf %733, %737 : vector<8x32xf32>
    %739 = vector.broadcast %719 : vector<1x32xf32> to vector<8x32xf32>
    %740 = arith.mulf %738, %739 : vector<8x32xf32>
    %741 = vector.broadcast %720 : vector<1x32xf32> to vector<8x32xf32>
    %742 = arith.addf %740, %741 : vector<8x32xf32>
    %743 = tpu.iota {dimensions = array<i32: 0>} : vector<8x8xi32>
    %744 = tpu.iota {dimensions = array<i32: 1>} : vector<8x8xi32>
    %745 = arith.cmpi sgt, %744, %743 : vector<8x8xi32>
    %cst_343 = arith.constant -1.000000e+30 : f32
    %cst_344 = arith.constant 0.000000e+00 : f32
    %746 = vector.broadcast %cst_343 : f32 to vector<8x8xf32>
    %747 = vector.broadcast %cst_344 : f32 to vector<8x8xf32>
    %748 = arith.select %745, %746, %747 : vector<8x8xi1>, vector<8x8xf32>
    %c2552 = arith.constant 2552 : index
    %c0_345 = arith.constant 0 : index
    %749 = vector.load %arg3[%c2552, %c0_345] : memref<3160x128xf32, #tpu.memory_space<vmem>>, vector<1x32xf32>
    %c2120 = arith.constant 2120 : index
    %c0_346 = arith.constant 0 : index
    %750 = vector.load %arg3[%c2120, %c0_346] : memref<3160x128xf32, #tpu.memory_space<vmem>>, vector<32x8xf32>
    %cst_347 = arith.constant dense<0.000000e+00> : vector<8x8xf32>
    %751 = tpu.matmul %742, %750, %cst_347 {dimension_numbers = #tpu.dot_dimension_numbers<[1], [0], [0], [1], [0, 0, 1, 1], [], []>} : vector<8x32xf32>, vector<32x8xf32>, vector<8x8xf32> -> vector<8x8xf32>
    %c2504 = arith.constant 2504 : index
    %c0_348 = arith.constant 0 : index
    %752 = vector.load %arg3[%c2504, %c0_348] : memref<3160x128xf32, #tpu.memory_space<vmem>>, vector<1x8xf32>
    %753 = vector.broadcast %752 : vector<1x8xf32> to vector<8x8xf32>
    %754 = arith.addf %751, %753 : vector<8x8xf32>
    %c2248 = arith.constant 2248 : index
    %c0_349 = arith.constant 0 : index
    %755 = vector.load %arg3[%c2248, %c0_349] : memref<3160x128xf32, #tpu.memory_space<vmem>>, vector<32x8xf32>
    %cst_350 = arith.constant dense<0.000000e+00> : vector<8x8xf32>
    %756 = tpu.matmul %742, %755, %cst_350 {dimension_numbers = #tpu.dot_dimension_numbers<[1], [0], [0], [1], [0, 0, 1, 1], [], []>} : vector<8x32xf32>, vector<32x8xf32>, vector<8x8xf32> -> vector<8x8xf32>
    %c2508 = arith.constant 2508 : index
    %c0_351 = arith.constant 0 : index
    %757 = vector.load %arg3[%c2508, %c0_351] : memref<3160x128xf32, #tpu.memory_space<vmem>>, vector<1x8xf32>
    %758 = vector.broadcast %757 : vector<1x8xf32> to vector<8x8xf32>
    %759 = arith.addf %756, %758 : vector<8x8xf32>
    %c2376 = arith.constant 2376 : index
    %c0_352 = arith.constant 0 : index
    %760 = vector.load %arg3[%c2376, %c0_352] : memref<3160x128xf32, #tpu.memory_space<vmem>>, vector<32x8xf32>
    %cst_353 = arith.constant dense<0.000000e+00> : vector<8x8xf32>
    %761 = tpu.matmul %742, %760, %cst_353 {dimension_numbers = #tpu.dot_dimension_numbers<[1], [0], [0], [1], [0, 0, 1, 1], [], []>} : vector<8x32xf32>, vector<32x8xf32>, vector<8x8xf32> -> vector<8x8xf32>
    %c2512 = arith.constant 2512 : index
    %c0_354 = arith.constant 0 : index
    %762 = vector.load %arg3[%c2512, %c0_354] : memref<3160x128xf32, #tpu.memory_space<vmem>>, vector<1x8xf32>
    %763 = vector.broadcast %762 : vector<1x8xf32> to vector<8x8xf32>
    %764 = arith.addf %761, %763 : vector<8x8xf32>
    %cst_355 = arith.constant dense<0.000000e+00> : vector<8x8xf32>
    %765 = tpu.matmul %754, %759, %cst_355 {dimension_numbers = #tpu.dot_dimension_numbers<[1], [1], [0], [0], [0, 0, 1, 0], [], []>} : vector<8x8xf32>, vector<8x8xf32>, vector<8x8xf32> -> vector<8x8xf32>
    %cst_356 = arith.constant 0.353553385 : f32
    %766 = vector.broadcast %cst_356 : f32 to vector<8x8xf32>
    %767 = arith.mulf %765, %766 : vector<8x8xf32>
    %768 = arith.addf %767, %748 : vector<8x8xf32>
    %cst_357 = arith.constant dense<0xFF800000> : vector<8xf32>
    %769 = vector.multi_reduction <maximumf>, %768, %cst_357 [1] : vector<8x8xf32> to vector<8xf32>
    %770 = vector.shape_cast %769 : vector<8xf32> to vector<8x1xf32>
    %771 = vector.broadcast %770 : vector<8x1xf32> to vector<8x8xf32>
    %772 = arith.subf %768, %771 : vector<8x8xf32>
    %773 = math.exp %772 : vector<8x8xf32>
    %cst_358 = arith.constant dense<0.000000e+00> : vector<8xf32>
    %774 = vector.multi_reduction <add>, %773, %cst_358 [1] : vector<8x8xf32> to vector<8xf32>
    %775 = vector.shape_cast %774 : vector<8xf32> to vector<8x1xf32>
    %776 = tpu.reciprocal %775 {approx = true} : vector<8x1xf32> -> vector<8x1xf32>
    %777 = vector.broadcast %776 : vector<8x1xf32> to vector<8x8xf32>
    %778 = arith.mulf %773, %777 : vector<8x8xf32>
    %cst_359 = arith.constant dense<0.000000e+00> : vector<8x8xf32>
    %779 = tpu.matmul %778, %764, %cst_359 {dimension_numbers = #tpu.dot_dimension_numbers<[1], [0], [0], [1], [0, 0, 1, 1], [], []>} : vector<8x8xf32>, vector<8x8xf32>, vector<8x8xf32> -> vector<8x8xf32>
    %c2520 = arith.constant 2520 : index
    %c0_360 = arith.constant 0 : index
    %780 = vector.load %arg3[%c2520, %c0_360] : memref<3160x128xf32, #tpu.memory_space<vmem>>, vector<8x32xf32>
    %cst_361 = arith.constant dense<0.000000e+00> : vector<8x32xf32>
    %781 = tpu.matmul %779, %780, %cst_361 {dimension_numbers = #tpu.dot_dimension_numbers<[1], [0], [0], [1], [0, 0, 1, 1], [], []>} : vector<8x8xf32>, vector<8x32xf32>, vector<8x32xf32> -> vector<8x32xf32>
    %782 = vector.broadcast %749 : vector<1x32xf32> to vector<8x32xf32>
    %783 = arith.addf %782, %781 : vector<8x32xf32>
    %c2152 = arith.constant 2152 : index
    %c0_362 = arith.constant 0 : index
    %784 = vector.load %arg3[%c2152, %c0_362] : memref<3160x128xf32, #tpu.memory_space<vmem>>, vector<32x8xf32>
    %cst_363 = arith.constant dense<0.000000e+00> : vector<8x8xf32>
    %785 = tpu.matmul %742, %784, %cst_363 {dimension_numbers = #tpu.dot_dimension_numbers<[1], [0], [0], [1], [0, 0, 1, 1], [], []>} : vector<8x32xf32>, vector<32x8xf32>, vector<8x8xf32> -> vector<8x8xf32>
    %c2505 = arith.constant 2505 : index
    %c0_364 = arith.constant 0 : index
    %786 = vector.load %arg3[%c2505, %c0_364] : memref<3160x128xf32, #tpu.memory_space<vmem>>, vector<1x8xf32>
    %787 = vector.broadcast %786 : vector<1x8xf32> to vector<8x8xf32>
    %788 = arith.addf %785, %787 : vector<8x8xf32>
    %c2280 = arith.constant 2280 : index
    %c0_365 = arith.constant 0 : index
    %789 = vector.load %arg3[%c2280, %c0_365] : memref<3160x128xf32, #tpu.memory_space<vmem>>, vector<32x8xf32>
    %cst_366 = arith.constant dense<0.000000e+00> : vector<8x8xf32>
    %790 = tpu.matmul %742, %789, %cst_366 {dimension_numbers = #tpu.dot_dimension_numbers<[1], [0], [0], [1], [0, 0, 1, 1], [], []>} : vector<8x32xf32>, vector<32x8xf32>, vector<8x8xf32> -> vector<8x8xf32>
    %c2509 = arith.constant 2509 : index
    %c0_367 = arith.constant 0 : index
    %791 = vector.load %arg3[%c2509, %c0_367] : memref<3160x128xf32, #tpu.memory_space<vmem>>, vector<1x8xf32>
    %792 = vector.broadcast %791 : vector<1x8xf32> to vector<8x8xf32>
    %793 = arith.addf %790, %792 : vector<8x8xf32>
    %c2408 = arith.constant 2408 : index
    %c0_368 = arith.constant 0 : index
    %794 = vector.load %arg3[%c2408, %c0_368] : memref<3160x128xf32, #tpu.memory_space<vmem>>, vector<32x8xf32>
    %cst_369 = arith.constant dense<0.000000e+00> : vector<8x8xf32>
    %795 = tpu.matmul %742, %794, %cst_369 {dimension_numbers = #tpu.dot_dimension_numbers<[1], [0], [0], [1], [0, 0, 1, 1], [], []>} : vector<8x32xf32>, vector<32x8xf32>, vector<8x8xf32> -> vector<8x8xf32>
    %c2513 = arith.constant 2513 : index
    %c0_370 = arith.constant 0 : index
    %796 = vector.load %arg3[%c2513, %c0_370] : memref<3160x128xf32, #tpu.memory_space<vmem>>, vector<1x8xf32>
    %797 = vector.broadcast %796 : vector<1x8xf32> to vector<8x8xf32>
    %798 = arith.addf %795, %797 : vector<8x8xf32>
    %cst_371 = arith.constant dense<0.000000e+00> : vector<8x8xf32>
    %799 = tpu.matmul %788, %793, %cst_371 {dimension_numbers = #tpu.dot_dimension_numbers<[1], [1], [0], [0], [0, 0, 1, 0], [], []>} : vector<8x8xf32>, vector<8x8xf32>, vector<8x8xf32> -> vector<8x8xf32>
    %cst_372 = arith.constant 0.353553385 : f32
    %800 = vector.broadcast %cst_372 : f32 to vector<8x8xf32>
    %801 = arith.mulf %799, %800 : vector<8x8xf32>
    %802 = arith.addf %801, %748 : vector<8x8xf32>
    %cst_373 = arith.constant dense<0xFF800000> : vector<8xf32>
    %803 = vector.multi_reduction <maximumf>, %802, %cst_373 [1] : vector<8x8xf32> to vector<8xf32>
    %804 = vector.shape_cast %803 : vector<8xf32> to vector<8x1xf32>
    %805 = vector.broadcast %804 : vector<8x1xf32> to vector<8x8xf32>
    %806 = arith.subf %802, %805 : vector<8x8xf32>
    %807 = math.exp %806 : vector<8x8xf32>
    %cst_374 = arith.constant dense<0.000000e+00> : vector<8xf32>
    %808 = vector.multi_reduction <add>, %807, %cst_374 [1] : vector<8x8xf32> to vector<8xf32>
    %809 = vector.shape_cast %808 : vector<8xf32> to vector<8x1xf32>
    %810 = tpu.reciprocal %809 {approx = true} : vector<8x1xf32> -> vector<8x1xf32>
    %811 = vector.broadcast %810 : vector<8x1xf32> to vector<8x8xf32>
    %812 = arith.mulf %807, %811 : vector<8x8xf32>
    %cst_375 = arith.constant dense<0.000000e+00> : vector<8x8xf32>
    %813 = tpu.matmul %812, %798, %cst_375 {dimension_numbers = #tpu.dot_dimension_numbers<[1], [0], [0], [1], [0, 0, 1, 1], [], []>} : vector<8x8xf32>, vector<8x8xf32>, vector<8x8xf32> -> vector<8x8xf32>
    %c2528 = arith.constant 2528 : index
    %c0_376 = arith.constant 0 : index
    %814 = vector.load %arg3[%c2528, %c0_376] : memref<3160x128xf32, #tpu.memory_space<vmem>>, vector<8x32xf32>
    %cst_377 = arith.constant dense<0.000000e+00> : vector<8x32xf32>
    %815 = tpu.matmul %813, %814, %cst_377 {dimension_numbers = #tpu.dot_dimension_numbers<[1], [0], [0], [1], [0, 0, 1, 1], [], []>} : vector<8x8xf32>, vector<8x32xf32>, vector<8x32xf32> -> vector<8x32xf32>
    %816 = arith.addf %783, %815 : vector<8x32xf32>
    %c2184 = arith.constant 2184 : index
    %c0_378 = arith.constant 0 : index
    %817 = vector.load %arg3[%c2184, %c0_378] : memref<3160x128xf32, #tpu.memory_space<vmem>>, vector<32x8xf32>
    %cst_379 = arith.constant dense<0.000000e+00> : vector<8x8xf32>
    %818 = tpu.matmul %742, %817, %cst_379 {dimension_numbers = #tpu.dot_dimension_numbers<[1], [0], [0], [1], [0, 0, 1, 1], [], []>} : vector<8x32xf32>, vector<32x8xf32>, vector<8x8xf32> -> vector<8x8xf32>
    %c2506 = arith.constant 2506 : index
    %c0_380 = arith.constant 0 : index
    %819 = vector.load %arg3[%c2506, %c0_380] : memref<3160x128xf32, #tpu.memory_space<vmem>>, vector<1x8xf32>
    %820 = vector.broadcast %819 : vector<1x8xf32> to vector<8x8xf32>
    %821 = arith.addf %818, %820 : vector<8x8xf32>
    %c2312 = arith.constant 2312 : index
    %c0_381 = arith.constant 0 : index
    %822 = vector.load %arg3[%c2312, %c0_381] : memref<3160x128xf32, #tpu.memory_space<vmem>>, vector<32x8xf32>
    %cst_382 = arith.constant dense<0.000000e+00> : vector<8x8xf32>
    %823 = tpu.matmul %742, %822, %cst_382 {dimension_numbers = #tpu.dot_dimension_numbers<[1], [0], [0], [1], [0, 0, 1, 1], [], []>} : vector<8x32xf32>, vector<32x8xf32>, vector<8x8xf32> -> vector<8x8xf32>
    %c2510 = arith.constant 2510 : index
    %c0_383 = arith.constant 0 : index
    %824 = vector.load %arg3[%c2510, %c0_383] : memref<3160x128xf32, #tpu.memory_space<vmem>>, vector<1x8xf32>
    %825 = vector.broadcast %824 : vector<1x8xf32> to vector<8x8xf32>
    %826 = arith.addf %823, %825 : vector<8x8xf32>
    %c2440 = arith.constant 2440 : index
    %c0_384 = arith.constant 0 : index
    %827 = vector.load %arg3[%c2440, %c0_384] : memref<3160x128xf32, #tpu.memory_space<vmem>>, vector<32x8xf32>
    %cst_385 = arith.constant dense<0.000000e+00> : vector<8x8xf32>
    %828 = tpu.matmul %742, %827, %cst_385 {dimension_numbers = #tpu.dot_dimension_numbers<[1], [0], [0], [1], [0, 0, 1, 1], [], []>} : vector<8x32xf32>, vector<32x8xf32>, vector<8x8xf32> -> vector<8x8xf32>
    %c2514 = arith.constant 2514 : index
    %c0_386 = arith.constant 0 : index
    %829 = vector.load %arg3[%c2514, %c0_386] : memref<3160x128xf32, #tpu.memory_space<vmem>>, vector<1x8xf32>
    %830 = vector.broadcast %829 : vector<1x8xf32> to vector<8x8xf32>
    %831 = arith.addf %828, %830 : vector<8x8xf32>
    %cst_387 = arith.constant dense<0.000000e+00> : vector<8x8xf32>
    %832 = tpu.matmul %821, %826, %cst_387 {dimension_numbers = #tpu.dot_dimension_numbers<[1], [1], [0], [0], [0, 0, 1, 0], [], []>} : vector<8x8xf32>, vector<8x8xf32>, vector<8x8xf32> -> vector<8x8xf32>
    %cst_388 = arith.constant 0.353553385 : f32
    %833 = vector.broadcast %cst_388 : f32 to vector<8x8xf32>
    %834 = arith.mulf %832, %833 : vector<8x8xf32>
    %835 = arith.addf %834, %748 : vector<8x8xf32>
    %cst_389 = arith.constant dense<0xFF800000> : vector<8xf32>
    %836 = vector.multi_reduction <maximumf>, %835, %cst_389 [1] : vector<8x8xf32> to vector<8xf32>
    %837 = vector.shape_cast %836 : vector<8xf32> to vector<8x1xf32>
    %838 = vector.broadcast %837 : vector<8x1xf32> to vector<8x8xf32>
    %839 = arith.subf %835, %838 : vector<8x8xf32>
    %840 = math.exp %839 : vector<8x8xf32>
    %cst_390 = arith.constant dense<0.000000e+00> : vector<8xf32>
    %841 = vector.multi_reduction <add>, %840, %cst_390 [1] : vector<8x8xf32> to vector<8xf32>
    %842 = vector.shape_cast %841 : vector<8xf32> to vector<8x1xf32>
    %843 = tpu.reciprocal %842 {approx = true} : vector<8x1xf32> -> vector<8x1xf32>
    %844 = vector.broadcast %843 : vector<8x1xf32> to vector<8x8xf32>
    %845 = arith.mulf %840, %844 : vector<8x8xf32>
    %cst_391 = arith.constant dense<0.000000e+00> : vector<8x8xf32>
    %846 = tpu.matmul %845, %831, %cst_391 {dimension_numbers = #tpu.dot_dimension_numbers<[1], [0], [0], [1], [0, 0, 1, 1], [], []>} : vector<8x8xf32>, vector<8x8xf32>, vector<8x8xf32> -> vector<8x8xf32>
    %c2536 = arith.constant 2536 : index
    %c0_392 = arith.constant 0 : index
    %847 = vector.load %arg3[%c2536, %c0_392] : memref<3160x128xf32, #tpu.memory_space<vmem>>, vector<8x32xf32>
    %cst_393 = arith.constant dense<0.000000e+00> : vector<8x32xf32>
    %848 = tpu.matmul %846, %847, %cst_393 {dimension_numbers = #tpu.dot_dimension_numbers<[1], [0], [0], [1], [0, 0, 1, 1], [], []>} : vector<8x8xf32>, vector<8x32xf32>, vector<8x32xf32> -> vector<8x32xf32>
    %849 = arith.addf %816, %848 : vector<8x32xf32>
    %c2216 = arith.constant 2216 : index
    %c0_394 = arith.constant 0 : index
    %850 = vector.load %arg3[%c2216, %c0_394] : memref<3160x128xf32, #tpu.memory_space<vmem>>, vector<32x8xf32>
    %cst_395 = arith.constant dense<0.000000e+00> : vector<8x8xf32>
    %851 = tpu.matmul %742, %850, %cst_395 {dimension_numbers = #tpu.dot_dimension_numbers<[1], [0], [0], [1], [0, 0, 1, 1], [], []>} : vector<8x32xf32>, vector<32x8xf32>, vector<8x8xf32> -> vector<8x8xf32>
    %c2507 = arith.constant 2507 : index
    %c0_396 = arith.constant 0 : index
    %852 = vector.load %arg3[%c2507, %c0_396] : memref<3160x128xf32, #tpu.memory_space<vmem>>, vector<1x8xf32>
    %853 = vector.broadcast %852 : vector<1x8xf32> to vector<8x8xf32>
    %854 = arith.addf %851, %853 : vector<8x8xf32>
    %c2344 = arith.constant 2344 : index
    %c0_397 = arith.constant 0 : index
    %855 = vector.load %arg3[%c2344, %c0_397] : memref<3160x128xf32, #tpu.memory_space<vmem>>, vector<32x8xf32>
    %cst_398 = arith.constant dense<0.000000e+00> : vector<8x8xf32>
    %856 = tpu.matmul %742, %855, %cst_398 {dimension_numbers = #tpu.dot_dimension_numbers<[1], [0], [0], [1], [0, 0, 1, 1], [], []>} : vector<8x32xf32>, vector<32x8xf32>, vector<8x8xf32> -> vector<8x8xf32>
    %c2511 = arith.constant 2511 : index
    %c0_399 = arith.constant 0 : index
    %857 = vector.load %arg3[%c2511, %c0_399] : memref<3160x128xf32, #tpu.memory_space<vmem>>, vector<1x8xf32>
    %858 = vector.broadcast %857 : vector<1x8xf32> to vector<8x8xf32>
    %859 = arith.addf %856, %858 : vector<8x8xf32>
    %c2472 = arith.constant 2472 : index
    %c0_400 = arith.constant 0 : index
    %860 = vector.load %arg3[%c2472, %c0_400] : memref<3160x128xf32, #tpu.memory_space<vmem>>, vector<32x8xf32>
    %cst_401 = arith.constant dense<0.000000e+00> : vector<8x8xf32>
    %861 = tpu.matmul %742, %860, %cst_401 {dimension_numbers = #tpu.dot_dimension_numbers<[1], [0], [0], [1], [0, 0, 1, 1], [], []>} : vector<8x32xf32>, vector<32x8xf32>, vector<8x8xf32> -> vector<8x8xf32>
    %c2515 = arith.constant 2515 : index
    %c0_402 = arith.constant 0 : index
    %862 = vector.load %arg3[%c2515, %c0_402] : memref<3160x128xf32, #tpu.memory_space<vmem>>, vector<1x8xf32>
    %863 = vector.broadcast %862 : vector<1x8xf32> to vector<8x8xf32>
    %864 = arith.addf %861, %863 : vector<8x8xf32>
    %cst_403 = arith.constant dense<0.000000e+00> : vector<8x8xf32>
    %865 = tpu.matmul %854, %859, %cst_403 {dimension_numbers = #tpu.dot_dimension_numbers<[1], [1], [0], [0], [0, 0, 1, 0], [], []>} : vector<8x8xf32>, vector<8x8xf32>, vector<8x8xf32> -> vector<8x8xf32>
    %cst_404 = arith.constant 0.353553385 : f32
    %866 = vector.broadcast %cst_404 : f32 to vector<8x8xf32>
    %867 = arith.mulf %865, %866 : vector<8x8xf32>
    %868 = arith.addf %867, %748 : vector<8x8xf32>
    %cst_405 = arith.constant dense<0xFF800000> : vector<8xf32>
    %869 = vector.multi_reduction <maximumf>, %868, %cst_405 [1] : vector<8x8xf32> to vector<8xf32>
    %870 = vector.shape_cast %869 : vector<8xf32> to vector<8x1xf32>
    %871 = vector.broadcast %870 : vector<8x1xf32> to vector<8x8xf32>
    %872 = arith.subf %868, %871 : vector<8x8xf32>
    %873 = math.exp %872 : vector<8x8xf32>
    %cst_406 = arith.constant dense<0.000000e+00> : vector<8xf32>
    %874 = vector.multi_reduction <add>, %873, %cst_406 [1] : vector<8x8xf32> to vector<8xf32>
    %875 = vector.shape_cast %874 : vector<8xf32> to vector<8x1xf32>
    %876 = tpu.reciprocal %875 {approx = true} : vector<8x1xf32> -> vector<8x1xf32>
    %877 = vector.broadcast %876 : vector<8x1xf32> to vector<8x8xf32>
    %878 = arith.mulf %873, %877 : vector<8x8xf32>
    %cst_407 = arith.constant dense<0.000000e+00> : vector<8x8xf32>
    %879 = tpu.matmul %878, %864, %cst_407 {dimension_numbers = #tpu.dot_dimension_numbers<[1], [0], [0], [1], [0, 0, 1, 1], [], []>} : vector<8x8xf32>, vector<8x8xf32>, vector<8x8xf32> -> vector<8x8xf32>
    %c2544 = arith.constant 2544 : index
    %c0_408 = arith.constant 0 : index
    %880 = vector.load %arg3[%c2544, %c0_408] : memref<3160x128xf32, #tpu.memory_space<vmem>>, vector<8x32xf32>
    %cst_409 = arith.constant dense<0.000000e+00> : vector<8x32xf32>
    %881 = tpu.matmul %879, %880, %cst_409 {dimension_numbers = #tpu.dot_dimension_numbers<[1], [0], [0], [1], [0, 0, 1, 1], [], []>} : vector<8x8xf32>, vector<8x32xf32>, vector<8x32xf32> -> vector<8x32xf32>
    %882 = arith.addf %849, %881 : vector<8x32xf32>
    %883 = arith.addf %882, %742 : vector<8x32xf32>
    %c3000 = arith.constant 3000 : index
    %c0_410 = arith.constant 0 : index
    %884 = vector.load %arg3[%c3000, %c0_410] : memref<3160x128xf32, #tpu.memory_space<vmem>>, vector<1x32xf32>
    %c3001 = arith.constant 3001 : index
    %c0_411 = arith.constant 0 : index
    %885 = vector.load %arg3[%c3001, %c0_411] : memref<3160x128xf32, #tpu.memory_space<vmem>>, vector<1x32xf32>
    %cst_412 = arith.constant dense<0.000000e+00> : vector<8xf32>
    %886 = vector.multi_reduction <add>, %883, %cst_412 [1] : vector<8x32xf32> to vector<8xf32>
    %887 = vector.shape_cast %886 : vector<8xf32> to vector<8x1xf32>
    %cst_413 = arith.constant 3.200000e+01 : f32
    %888 = vector.broadcast %cst_413 : f32 to vector<8x1xf32>
    %889 = arith.divf %887, %888 : vector<8x1xf32>
    %890 = vector.broadcast %889 : vector<8x1xf32> to vector<8x32xf32>
    %891 = arith.subf %883, %890 : vector<8x32xf32>
    %892 = arith.mulf %891, %891 : vector<8x32xf32>
    %cst_414 = arith.constant dense<0.000000e+00> : vector<8xf32>
    %893 = vector.multi_reduction <add>, %892, %cst_414 [1] : vector<8x32xf32> to vector<8xf32>
    %894 = vector.shape_cast %893 : vector<8xf32> to vector<8x1xf32>
    %cst_415 = arith.constant 3.200000e+01 : f32
    %895 = vector.broadcast %cst_415 : f32 to vector<8x1xf32>
    %896 = arith.divf %894, %895 : vector<8x1xf32>
    %897 = vector.broadcast %889 : vector<8x1xf32> to vector<8x32xf32>
    %898 = arith.subf %883, %897 : vector<8x32xf32>
    %cst_416 = arith.constant 9.99999974E-6 : f32
    %899 = vector.broadcast %cst_416 : f32 to vector<8x1xf32>
    %900 = arith.addf %896, %899 : vector<8x1xf32>
    %901 = math.rsqrt %900 : vector<8x1xf32>
    %902 = vector.broadcast %901 : vector<8x1xf32> to vector<8x32xf32>
    %903 = arith.mulf %898, %902 : vector<8x32xf32>
    %904 = vector.broadcast %884 : vector<1x32xf32> to vector<8x32xf32>
    %905 = arith.mulf %903, %904 : vector<8x32xf32>
    %906 = vector.broadcast %885 : vector<1x32xf32> to vector<8x32xf32>
    %907 = arith.addf %905, %906 : vector<8x32xf32>
    %c2992 = arith.constant 2992 : index
    %c0_417 = arith.constant 0 : index
    %908 = vector.load %arg3[%c2992, %c0_417] : memref<3160x128xf32, #tpu.memory_space<vmem>>, vector<1x32xf32>
    %c2560 = arith.constant 2560 : index
    %c0_418 = arith.constant 0 : index
    %909 = vector.load %arg3[%c2560, %c0_418] : memref<3160x128xf32, #tpu.memory_space<vmem>>, vector<32x8xf32>
    %cst_419 = arith.constant dense<0.000000e+00> : vector<8x8xf32>
    %910 = tpu.matmul %742, %909, %cst_419 {dimension_numbers = #tpu.dot_dimension_numbers<[1], [0], [0], [1], [0, 0, 1, 1], [], []>} : vector<8x32xf32>, vector<32x8xf32>, vector<8x8xf32> -> vector<8x8xf32>
    %c2944 = arith.constant 2944 : index
    %c0_420 = arith.constant 0 : index
    %911 = vector.load %arg3[%c2944, %c0_420] : memref<3160x128xf32, #tpu.memory_space<vmem>>, vector<1x8xf32>
    %912 = vector.broadcast %911 : vector<1x8xf32> to vector<8x8xf32>
    %913 = arith.addf %910, %912 : vector<8x8xf32>
    %c2688 = arith.constant 2688 : index
    %c0_421 = arith.constant 0 : index
    %914 = vector.load %arg3[%c2688, %c0_421] : memref<3160x128xf32, #tpu.memory_space<vmem>>, vector<32x8xf32>
    %cst_422 = arith.constant dense<0.000000e+00> : vector<8x8xf32>
    %915 = tpu.matmul %384, %914, %cst_422 {dimension_numbers = #tpu.dot_dimension_numbers<[1], [0], [0], [1], [0, 0, 1, 1], [], []>} : vector<8x32xf32>, vector<32x8xf32>, vector<8x8xf32> -> vector<8x8xf32>
    %c2948 = arith.constant 2948 : index
    %c0_423 = arith.constant 0 : index
    %916 = vector.load %arg3[%c2948, %c0_423] : memref<3160x128xf32, #tpu.memory_space<vmem>>, vector<1x8xf32>
    %917 = vector.broadcast %916 : vector<1x8xf32> to vector<8x8xf32>
    %918 = arith.addf %915, %917 : vector<8x8xf32>
    %c2816 = arith.constant 2816 : index
    %c0_424 = arith.constant 0 : index
    %919 = vector.load %arg3[%c2816, %c0_424] : memref<3160x128xf32, #tpu.memory_space<vmem>>, vector<32x8xf32>
    %cst_425 = arith.constant dense<0.000000e+00> : vector<8x8xf32>
    %920 = tpu.matmul %384, %919, %cst_425 {dimension_numbers = #tpu.dot_dimension_numbers<[1], [0], [0], [1], [0, 0, 1, 1], [], []>} : vector<8x32xf32>, vector<32x8xf32>, vector<8x8xf32> -> vector<8x8xf32>
    %c2952 = arith.constant 2952 : index
    %c0_426 = arith.constant 0 : index
    %921 = vector.load %arg3[%c2952, %c0_426] : memref<3160x128xf32, #tpu.memory_space<vmem>>, vector<1x8xf32>
    %922 = vector.broadcast %921 : vector<1x8xf32> to vector<8x8xf32>
    %923 = arith.addf %920, %922 : vector<8x8xf32>
    %cst_427 = arith.constant dense<0.000000e+00> : vector<8x8xf32>
    %924 = tpu.matmul %913, %918, %cst_427 {dimension_numbers = #tpu.dot_dimension_numbers<[1], [1], [0], [0], [0, 0, 1, 0], [], []>} : vector<8x8xf32>, vector<8x8xf32>, vector<8x8xf32> -> vector<8x8xf32>
    %cst_428 = arith.constant 0.353553385 : f32
    %925 = vector.broadcast %cst_428 : f32 to vector<8x8xf32>
    %926 = arith.mulf %924, %925 : vector<8x8xf32>
    %cst_429 = arith.constant dense<0xFF800000> : vector<8xf32>
    %927 = vector.multi_reduction <maximumf>, %926, %cst_429 [1] : vector<8x8xf32> to vector<8xf32>
    %928 = vector.shape_cast %927 : vector<8xf32> to vector<8x1xf32>
    %929 = vector.broadcast %928 : vector<8x1xf32> to vector<8x8xf32>
    %930 = arith.subf %926, %929 : vector<8x8xf32>
    %931 = math.exp %930 : vector<8x8xf32>
    %cst_430 = arith.constant dense<0.000000e+00> : vector<8xf32>
    %932 = vector.multi_reduction <add>, %931, %cst_430 [1] : vector<8x8xf32> to vector<8xf32>
    %933 = vector.shape_cast %932 : vector<8xf32> to vector<8x1xf32>
    %934 = tpu.reciprocal %933 {approx = true} : vector<8x1xf32> -> vector<8x1xf32>
    %935 = vector.broadcast %934 : vector<8x1xf32> to vector<8x8xf32>
    %936 = arith.mulf %931, %935 : vector<8x8xf32>
    %cst_431 = arith.constant dense<0.000000e+00> : vector<8x8xf32>
    %937 = tpu.matmul %936, %923, %cst_431 {dimension_numbers = #tpu.dot_dimension_numbers<[1], [0], [0], [1], [0, 0, 1, 1], [], []>} : vector<8x8xf32>, vector<8x8xf32>, vector<8x8xf32> -> vector<8x8xf32>
    %c2960 = arith.constant 2960 : index
    %c0_432 = arith.constant 0 : index
    %938 = vector.load %arg3[%c2960, %c0_432] : memref<3160x128xf32, #tpu.memory_space<vmem>>, vector<8x32xf32>
    %cst_433 = arith.constant dense<0.000000e+00> : vector<8x32xf32>
    %939 = tpu.matmul %937, %938, %cst_433 {dimension_numbers = #tpu.dot_dimension_numbers<[1], [0], [0], [1], [0, 0, 1, 1], [], []>} : vector<8x8xf32>, vector<8x32xf32>, vector<8x32xf32> -> vector<8x32xf32>
    %940 = vector.broadcast %908 : vector<1x32xf32> to vector<8x32xf32>
    %941 = arith.addf %940, %939 : vector<8x32xf32>
    %c2592 = arith.constant 2592 : index
    %c0_434 = arith.constant 0 : index
    %942 = vector.load %arg3[%c2592, %c0_434] : memref<3160x128xf32, #tpu.memory_space<vmem>>, vector<32x8xf32>
    %cst_435 = arith.constant dense<0.000000e+00> : vector<8x8xf32>
    %943 = tpu.matmul %742, %942, %cst_435 {dimension_numbers = #tpu.dot_dimension_numbers<[1], [0], [0], [1], [0, 0, 1, 1], [], []>} : vector<8x32xf32>, vector<32x8xf32>, vector<8x8xf32> -> vector<8x8xf32>
    %c2945 = arith.constant 2945 : index
    %c0_436 = arith.constant 0 : index
    %944 = vector.load %arg3[%c2945, %c0_436] : memref<3160x128xf32, #tpu.memory_space<vmem>>, vector<1x8xf32>
    %945 = vector.broadcast %944 : vector<1x8xf32> to vector<8x8xf32>
    %946 = arith.addf %943, %945 : vector<8x8xf32>
    %c2720 = arith.constant 2720 : index
    %c0_437 = arith.constant 0 : index
    %947 = vector.load %arg3[%c2720, %c0_437] : memref<3160x128xf32, #tpu.memory_space<vmem>>, vector<32x8xf32>
    %cst_438 = arith.constant dense<0.000000e+00> : vector<8x8xf32>
    %948 = tpu.matmul %384, %947, %cst_438 {dimension_numbers = #tpu.dot_dimension_numbers<[1], [0], [0], [1], [0, 0, 1, 1], [], []>} : vector<8x32xf32>, vector<32x8xf32>, vector<8x8xf32> -> vector<8x8xf32>
    %c2949 = arith.constant 2949 : index
    %c0_439 = arith.constant 0 : index
    %949 = vector.load %arg3[%c2949, %c0_439] : memref<3160x128xf32, #tpu.memory_space<vmem>>, vector<1x8xf32>
    %950 = vector.broadcast %949 : vector<1x8xf32> to vector<8x8xf32>
    %951 = arith.addf %948, %950 : vector<8x8xf32>
    %c2848 = arith.constant 2848 : index
    %c0_440 = arith.constant 0 : index
    %952 = vector.load %arg3[%c2848, %c0_440] : memref<3160x128xf32, #tpu.memory_space<vmem>>, vector<32x8xf32>
    %cst_441 = arith.constant dense<0.000000e+00> : vector<8x8xf32>
    %953 = tpu.matmul %384, %952, %cst_441 {dimension_numbers = #tpu.dot_dimension_numbers<[1], [0], [0], [1], [0, 0, 1, 1], [], []>} : vector<8x32xf32>, vector<32x8xf32>, vector<8x8xf32> -> vector<8x8xf32>
    %c2953 = arith.constant 2953 : index
    %c0_442 = arith.constant 0 : index
    %954 = vector.load %arg3[%c2953, %c0_442] : memref<3160x128xf32, #tpu.memory_space<vmem>>, vector<1x8xf32>
    %955 = vector.broadcast %954 : vector<1x8xf32> to vector<8x8xf32>
    %956 = arith.addf %953, %955 : vector<8x8xf32>
    %cst_443 = arith.constant dense<0.000000e+00> : vector<8x8xf32>
    %957 = tpu.matmul %946, %951, %cst_443 {dimension_numbers = #tpu.dot_dimension_numbers<[1], [1], [0], [0], [0, 0, 1, 0], [], []>} : vector<8x8xf32>, vector<8x8xf32>, vector<8x8xf32> -> vector<8x8xf32>
    %cst_444 = arith.constant 0.353553385 : f32
    %958 = vector.broadcast %cst_444 : f32 to vector<8x8xf32>
    %959 = arith.mulf %957, %958 : vector<8x8xf32>
    %cst_445 = arith.constant dense<0xFF800000> : vector<8xf32>
    %960 = vector.multi_reduction <maximumf>, %959, %cst_445 [1] : vector<8x8xf32> to vector<8xf32>
    %961 = vector.shape_cast %960 : vector<8xf32> to vector<8x1xf32>
    %962 = vector.broadcast %961 : vector<8x1xf32> to vector<8x8xf32>
    %963 = arith.subf %959, %962 : vector<8x8xf32>
    %964 = math.exp %963 : vector<8x8xf32>
    %cst_446 = arith.constant dense<0.000000e+00> : vector<8xf32>
    %965 = vector.multi_reduction <add>, %964, %cst_446 [1] : vector<8x8xf32> to vector<8xf32>
    %966 = vector.shape_cast %965 : vector<8xf32> to vector<8x1xf32>
    %967 = tpu.reciprocal %966 {approx = true} : vector<8x1xf32> -> vector<8x1xf32>
    %968 = vector.broadcast %967 : vector<8x1xf32> to vector<8x8xf32>
    %969 = arith.mulf %964, %968 : vector<8x8xf32>
    %cst_447 = arith.constant dense<0.000000e+00> : vector<8x8xf32>
    %970 = tpu.matmul %969, %956, %cst_447 {dimension_numbers = #tpu.dot_dimension_numbers<[1], [0], [0], [1], [0, 0, 1, 1], [], []>} : vector<8x8xf32>, vector<8x8xf32>, vector<8x8xf32> -> vector<8x8xf32>
    %c2968 = arith.constant 2968 : index
    %c0_448 = arith.constant 0 : index
    %971 = vector.load %arg3[%c2968, %c0_448] : memref<3160x128xf32, #tpu.memory_space<vmem>>, vector<8x32xf32>
    %cst_449 = arith.constant dense<0.000000e+00> : vector<8x32xf32>
    %972 = tpu.matmul %970, %971, %cst_449 {dimension_numbers = #tpu.dot_dimension_numbers<[1], [0], [0], [1], [0, 0, 1, 1], [], []>} : vector<8x8xf32>, vector<8x32xf32>, vector<8x32xf32> -> vector<8x32xf32>
    %973 = arith.addf %941, %972 : vector<8x32xf32>
    %c2624 = arith.constant 2624 : index
    %c0_450 = arith.constant 0 : index
    %974 = vector.load %arg3[%c2624, %c0_450] : memref<3160x128xf32, #tpu.memory_space<vmem>>, vector<32x8xf32>
    %cst_451 = arith.constant dense<0.000000e+00> : vector<8x8xf32>
    %975 = tpu.matmul %742, %974, %cst_451 {dimension_numbers = #tpu.dot_dimension_numbers<[1], [0], [0], [1], [0, 0, 1, 1], [], []>} : vector<8x32xf32>, vector<32x8xf32>, vector<8x8xf32> -> vector<8x8xf32>
    %c2946 = arith.constant 2946 : index
    %c0_452 = arith.constant 0 : index
    %976 = vector.load %arg3[%c2946, %c0_452] : memref<3160x128xf32, #tpu.memory_space<vmem>>, vector<1x8xf32>
    %977 = vector.broadcast %976 : vector<1x8xf32> to vector<8x8xf32>
    %978 = arith.addf %975, %977 : vector<8x8xf32>
    %c2752 = arith.constant 2752 : index
    %c0_453 = arith.constant 0 : index
    %979 = vector.load %arg3[%c2752, %c0_453] : memref<3160x128xf32, #tpu.memory_space<vmem>>, vector<32x8xf32>
    %cst_454 = arith.constant dense<0.000000e+00> : vector<8x8xf32>
    %980 = tpu.matmul %384, %979, %cst_454 {dimension_numbers = #tpu.dot_dimension_numbers<[1], [0], [0], [1], [0, 0, 1, 1], [], []>} : vector<8x32xf32>, vector<32x8xf32>, vector<8x8xf32> -> vector<8x8xf32>
    %c2950 = arith.constant 2950 : index
    %c0_455 = arith.constant 0 : index
    %981 = vector.load %arg3[%c2950, %c0_455] : memref<3160x128xf32, #tpu.memory_space<vmem>>, vector<1x8xf32>
    %982 = vector.broadcast %981 : vector<1x8xf32> to vector<8x8xf32>
    %983 = arith.addf %980, %982 : vector<8x8xf32>
    %c2880 = arith.constant 2880 : index
    %c0_456 = arith.constant 0 : index
    %984 = vector.load %arg3[%c2880, %c0_456] : memref<3160x128xf32, #tpu.memory_space<vmem>>, vector<32x8xf32>
    %cst_457 = arith.constant dense<0.000000e+00> : vector<8x8xf32>
    %985 = tpu.matmul %384, %984, %cst_457 {dimension_numbers = #tpu.dot_dimension_numbers<[1], [0], [0], [1], [0, 0, 1, 1], [], []>} : vector<8x32xf32>, vector<32x8xf32>, vector<8x8xf32> -> vector<8x8xf32>
    %c2954 = arith.constant 2954 : index
    %c0_458 = arith.constant 0 : index
    %986 = vector.load %arg3[%c2954, %c0_458] : memref<3160x128xf32, #tpu.memory_space<vmem>>, vector<1x8xf32>
    %987 = vector.broadcast %986 : vector<1x8xf32> to vector<8x8xf32>
    %988 = arith.addf %985, %987 : vector<8x8xf32>
    %cst_459 = arith.constant dense<0.000000e+00> : vector<8x8xf32>
    %989 = tpu.matmul %978, %983, %cst_459 {dimension_numbers = #tpu.dot_dimension_numbers<[1], [1], [0], [0], [0, 0, 1, 0], [], []>} : vector<8x8xf32>, vector<8x8xf32>, vector<8x8xf32> -> vector<8x8xf32>
    %cst_460 = arith.constant 0.353553385 : f32
    %990 = vector.broadcast %cst_460 : f32 to vector<8x8xf32>
    %991 = arith.mulf %989, %990 : vector<8x8xf32>
    %cst_461 = arith.constant dense<0xFF800000> : vector<8xf32>
    %992 = vector.multi_reduction <maximumf>, %991, %cst_461 [1] : vector<8x8xf32> to vector<8xf32>
    %993 = vector.shape_cast %992 : vector<8xf32> to vector<8x1xf32>
    %994 = vector.broadcast %993 : vector<8x1xf32> to vector<8x8xf32>
    %995 = arith.subf %991, %994 : vector<8x8xf32>
    %996 = math.exp %995 : vector<8x8xf32>
    %cst_462 = arith.constant dense<0.000000e+00> : vector<8xf32>
    %997 = vector.multi_reduction <add>, %996, %cst_462 [1] : vector<8x8xf32> to vector<8xf32>
    %998 = vector.shape_cast %997 : vector<8xf32> to vector<8x1xf32>
    %999 = tpu.reciprocal %998 {approx = true} : vector<8x1xf32> -> vector<8x1xf32>
    %1000 = vector.broadcast %999 : vector<8x1xf32> to vector<8x8xf32>
    %1001 = arith.mulf %996, %1000 : vector<8x8xf32>
    %cst_463 = arith.constant dense<0.000000e+00> : vector<8x8xf32>
    %1002 = tpu.matmul %1001, %988, %cst_463 {dimension_numbers = #tpu.dot_dimension_numbers<[1], [0], [0], [1], [0, 0, 1, 1], [], []>} : vector<8x8xf32>, vector<8x8xf32>, vector<8x8xf32> -> vector<8x8xf32>
    %c2976 = arith.constant 2976 : index
    %c0_464 = arith.constant 0 : index
    %1003 = vector.load %arg3[%c2976, %c0_464] : memref<3160x128xf32, #tpu.memory_space<vmem>>, vector<8x32xf32>
    %cst_465 = arith.constant dense<0.000000e+00> : vector<8x32xf32>
    %1004 = tpu.matmul %1002, %1003, %cst_465 {dimension_numbers = #tpu.dot_dimension_numbers<[1], [0], [0], [1], [0, 0, 1, 1], [], []>} : vector<8x8xf32>, vector<8x32xf32>, vector<8x32xf32> -> vector<8x32xf32>
    %1005 = arith.addf %973, %1004 : vector<8x32xf32>
    %c2656 = arith.constant 2656 : index
    %c0_466 = arith.constant 0 : index
    %1006 = vector.load %arg3[%c2656, %c0_466] : memref<3160x128xf32, #tpu.memory_space<vmem>>, vector<32x8xf32>
    %cst_467 = arith.constant dense<0.000000e+00> : vector<8x8xf32>
    %1007 = tpu.matmul %742, %1006, %cst_467 {dimension_numbers = #tpu.dot_dimension_numbers<[1], [0], [0], [1], [0, 0, 1, 1], [], []>} : vector<8x32xf32>, vector<32x8xf32>, vector<8x8xf32> -> vector<8x8xf32>
    %c2947 = arith.constant 2947 : index
    %c0_468 = arith.constant 0 : index
    %1008 = vector.load %arg3[%c2947, %c0_468] : memref<3160x128xf32, #tpu.memory_space<vmem>>, vector<1x8xf32>
    %1009 = vector.broadcast %1008 : vector<1x8xf32> to vector<8x8xf32>
    %1010 = arith.addf %1007, %1009 : vector<8x8xf32>
    %c2784 = arith.constant 2784 : index
    %c0_469 = arith.constant 0 : index
    %1011 = vector.load %arg3[%c2784, %c0_469] : memref<3160x128xf32, #tpu.memory_space<vmem>>, vector<32x8xf32>
    %cst_470 = arith.constant dense<0.000000e+00> : vector<8x8xf32>
    %1012 = tpu.matmul %384, %1011, %cst_470 {dimension_numbers = #tpu.dot_dimension_numbers<[1], [0], [0], [1], [0, 0, 1, 1], [], []>} : vector<8x32xf32>, vector<32x8xf32>, vector<8x8xf32> -> vector<8x8xf32>
    %c2951 = arith.constant 2951 : index
    %c0_471 = arith.constant 0 : index
    %1013 = vector.load %arg3[%c2951, %c0_471] : memref<3160x128xf32, #tpu.memory_space<vmem>>, vector<1x8xf32>
    %1014 = vector.broadcast %1013 : vector<1x8xf32> to vector<8x8xf32>
    %1015 = arith.addf %1012, %1014 : vector<8x8xf32>
    %c2912 = arith.constant 2912 : index
    %c0_472 = arith.constant 0 : index
    %1016 = vector.load %arg3[%c2912, %c0_472] : memref<3160x128xf32, #tpu.memory_space<vmem>>, vector<32x8xf32>
    %cst_473 = arith.constant dense<0.000000e+00> : vector<8x8xf32>
    %1017 = tpu.matmul %384, %1016, %cst_473 {dimension_numbers = #tpu.dot_dimension_numbers<[1], [0], [0], [1], [0, 0, 1, 1], [], []>} : vector<8x32xf32>, vector<32x8xf32>, vector<8x8xf32> -> vector<8x8xf32>
    %c2955 = arith.constant 2955 : index
    %c0_474 = arith.constant 0 : index
    %1018 = vector.load %arg3[%c2955, %c0_474] : memref<3160x128xf32, #tpu.memory_space<vmem>>, vector<1x8xf32>
    %1019 = vector.broadcast %1018 : vector<1x8xf32> to vector<8x8xf32>
    %1020 = arith.addf %1017, %1019 : vector<8x8xf32>
    %cst_475 = arith.constant dense<0.000000e+00> : vector<8x8xf32>
    %1021 = tpu.matmul %1010, %1015, %cst_475 {dimension_numbers = #tpu.dot_dimension_numbers<[1], [1], [0], [0], [0, 0, 1, 0], [], []>} : vector<8x8xf32>, vector<8x8xf32>, vector<8x8xf32> -> vector<8x8xf32>
    %cst_476 = arith.constant 0.353553385 : f32
    %1022 = vector.broadcast %cst_476 : f32 to vector<8x8xf32>
    %1023 = arith.mulf %1021, %1022 : vector<8x8xf32>
    %cst_477 = arith.constant dense<0xFF800000> : vector<8xf32>
    %1024 = vector.multi_reduction <maximumf>, %1023, %cst_477 [1] : vector<8x8xf32> to vector<8xf32>
    %1025 = vector.shape_cast %1024 : vector<8xf32> to vector<8x1xf32>
    %1026 = vector.broadcast %1025 : vector<8x1xf32> to vector<8x8xf32>
    %1027 = arith.subf %1023, %1026 : vector<8x8xf32>
    %1028 = math.exp %1027 : vector<8x8xf32>
    %cst_478 = arith.constant dense<0.000000e+00> : vector<8xf32>
    %1029 = vector.multi_reduction <add>, %1028, %cst_478 [1] : vector<8x8xf32> to vector<8xf32>
    %1030 = vector.shape_cast %1029 : vector<8xf32> to vector<8x1xf32>
    %1031 = tpu.reciprocal %1030 {approx = true} : vector<8x1xf32> -> vector<8x1xf32>
    %1032 = vector.broadcast %1031 : vector<8x1xf32> to vector<8x8xf32>
    %1033 = arith.mulf %1028, %1032 : vector<8x8xf32>
    %cst_479 = arith.constant dense<0.000000e+00> : vector<8x8xf32>
    %1034 = tpu.matmul %1033, %1020, %cst_479 {dimension_numbers = #tpu.dot_dimension_numbers<[1], [0], [0], [1], [0, 0, 1, 1], [], []>} : vector<8x8xf32>, vector<8x8xf32>, vector<8x8xf32> -> vector<8x8xf32>
    %c2984 = arith.constant 2984 : index
    %c0_480 = arith.constant 0 : index
    %1035 = vector.load %arg3[%c2984, %c0_480] : memref<3160x128xf32, #tpu.memory_space<vmem>>, vector<8x32xf32>
    %cst_481 = arith.constant dense<0.000000e+00> : vector<8x32xf32>
    %1036 = tpu.matmul %1034, %1035, %cst_481 {dimension_numbers = #tpu.dot_dimension_numbers<[1], [0], [0], [1], [0, 0, 1, 1], [], []>} : vector<8x8xf32>, vector<8x32xf32>, vector<8x32xf32> -> vector<8x32xf32>
    %1037 = arith.addf %1005, %1036 : vector<8x32xf32>
    %1038 = arith.addf %1037, %907 : vector<8x32xf32>
    %c3000_482 = arith.constant 3000 : index
    %c0_483 = arith.constant 0 : index
    %1039 = vector.load %arg3[%c3000_482, %c0_483] : memref<3160x128xf32, #tpu.memory_space<vmem>>, vector<1x32xf32>
    %c3001_484 = arith.constant 3001 : index
    %c0_485 = arith.constant 0 : index
    %1040 = vector.load %arg3[%c3001_484, %c0_485] : memref<3160x128xf32, #tpu.memory_space<vmem>>, vector<1x32xf32>
    %cst_486 = arith.constant dense<0.000000e+00> : vector<8xf32>
    %1041 = vector.multi_reduction <add>, %1038, %cst_486 [1] : vector<8x32xf32> to vector<8xf32>
    %1042 = vector.shape_cast %1041 : vector<8xf32> to vector<8x1xf32>
    %cst_487 = arith.constant 3.200000e+01 : f32
    %1043 = vector.broadcast %cst_487 : f32 to vector<8x1xf32>
    %1044 = arith.divf %1042, %1043 : vector<8x1xf32>
    %1045 = vector.broadcast %1044 : vector<8x1xf32> to vector<8x32xf32>
    %1046 = arith.subf %1038, %1045 : vector<8x32xf32>
    %1047 = arith.mulf %1046, %1046 : vector<8x32xf32>
    %cst_488 = arith.constant dense<0.000000e+00> : vector<8xf32>
    %1048 = vector.multi_reduction <add>, %1047, %cst_488 [1] : vector<8x32xf32> to vector<8xf32>
    %1049 = vector.shape_cast %1048 : vector<8xf32> to vector<8x1xf32>
    %cst_489 = arith.constant 3.200000e+01 : f32
    %1050 = vector.broadcast %cst_489 : f32 to vector<8x1xf32>
    %1051 = arith.divf %1049, %1050 : vector<8x1xf32>
    %1052 = vector.broadcast %1044 : vector<8x1xf32> to vector<8x32xf32>
    %1053 = arith.subf %1038, %1052 : vector<8x32xf32>
    %cst_490 = arith.constant 9.99999974E-6 : f32
    %1054 = vector.broadcast %cst_490 : f32 to vector<8x1xf32>
    %1055 = arith.addf %1051, %1054 : vector<8x1xf32>
    %1056 = math.rsqrt %1055 : vector<8x1xf32>
    %1057 = vector.broadcast %1056 : vector<8x1xf32> to vector<8x32xf32>
    %1058 = arith.mulf %1053, %1057 : vector<8x32xf32>
    %1059 = vector.broadcast %1039 : vector<1x32xf32> to vector<8x32xf32>
    %1060 = arith.mulf %1058, %1059 : vector<8x32xf32>
    %1061 = vector.broadcast %1040 : vector<1x32xf32> to vector<8x32xf32>
    %1062 = arith.addf %1060, %1061 : vector<8x32xf32>
    %c3008 = arith.constant 3008 : index
    %c0_491 = arith.constant 0 : index
    %1063 = vector.load %arg3[%c3008, %c0_491] : memref<3160x128xf32, #tpu.memory_space<vmem>>, vector<32x64xf32>
    %cst_492 = arith.constant dense<0.000000e+00> : vector<8x64xf32>
    %1064 = tpu.matmul %1062, %1063, %cst_492 {dimension_numbers = #tpu.dot_dimension_numbers<[1], [0], [0], [1], [0, 0, 1, 1], [], []>} : vector<8x32xf32>, vector<32x64xf32>, vector<8x64xf32> -> vector<8x64xf32>
    %c3040 = arith.constant 3040 : index
    %c0_493 = arith.constant 0 : index
    %1065 = vector.load %arg3[%c3040, %c0_493] : memref<3160x128xf32, #tpu.memory_space<vmem>>, vector<1x64xf32>
    %1066 = vector.broadcast %1065 : vector<1x64xf32> to vector<8x64xf32>
    %1067 = arith.addf %1064, %1066 : vector<8x64xf32>
    %cst_494 = arith.constant 0.000000e+00 : f32
    %1068 = vector.broadcast %cst_494 : f32 to vector<8x64xf32>
    %1069 = arith.maximumf %1067, %1068 : vector<8x64xf32>
    %c3048 = arith.constant 3048 : index
    %c0_495 = arith.constant 0 : index
    %1070 = vector.load %arg3[%c3048, %c0_495] : memref<3160x128xf32, #tpu.memory_space<vmem>>, vector<64x32xf32>
    %cst_496 = arith.constant dense<0.000000e+00> : vector<8x32xf32>
    %1071 = tpu.matmul %1069, %1070, %cst_496 {dimension_numbers = #tpu.dot_dimension_numbers<[1], [0], [0], [1], [0, 0, 1, 1], [], []>} : vector<8x64xf32>, vector<64x32xf32>, vector<8x32xf32> -> vector<8x32xf32>
    %c3112 = arith.constant 3112 : index
    %c0_497 = arith.constant 0 : index
    %1072 = vector.load %arg3[%c3112, %c0_497] : memref<3160x128xf32, #tpu.memory_space<vmem>>, vector<1x32xf32>
    %1073 = vector.broadcast %1072 : vector<1x32xf32> to vector<8x32xf32>
    %1074 = arith.addf %1071, %1073 : vector<8x32xf32>
    %1075 = arith.addf %1074, %1062 : vector<8x32xf32>
    %c3000_498 = arith.constant 3000 : index
    %c0_499 = arith.constant 0 : index
    %1076 = vector.load %arg3[%c3000_498, %c0_499] : memref<3160x128xf32, #tpu.memory_space<vmem>>, vector<1x32xf32>
    %c3001_500 = arith.constant 3001 : index
    %c0_501 = arith.constant 0 : index
    %1077 = vector.load %arg3[%c3001_500, %c0_501] : memref<3160x128xf32, #tpu.memory_space<vmem>>, vector<1x32xf32>
    %cst_502 = arith.constant dense<0.000000e+00> : vector<8xf32>
    %1078 = vector.multi_reduction <add>, %1075, %cst_502 [1] : vector<8x32xf32> to vector<8xf32>
    %1079 = vector.shape_cast %1078 : vector<8xf32> to vector<8x1xf32>
    %cst_503 = arith.constant 3.200000e+01 : f32
    %1080 = vector.broadcast %cst_503 : f32 to vector<8x1xf32>
    %1081 = arith.divf %1079, %1080 : vector<8x1xf32>
    %1082 = vector.broadcast %1081 : vector<8x1xf32> to vector<8x32xf32>
    %1083 = arith.subf %1075, %1082 : vector<8x32xf32>
    %1084 = arith.mulf %1083, %1083 : vector<8x32xf32>
    %cst_504 = arith.constant dense<0.000000e+00> : vector<8xf32>
    %1085 = vector.multi_reduction <add>, %1084, %cst_504 [1] : vector<8x32xf32> to vector<8xf32>
    %1086 = vector.shape_cast %1085 : vector<8xf32> to vector<8x1xf32>
    %cst_505 = arith.constant 3.200000e+01 : f32
    %1087 = vector.broadcast %cst_505 : f32 to vector<8x1xf32>
    %1088 = arith.divf %1086, %1087 : vector<8x1xf32>
    %1089 = vector.broadcast %1081 : vector<8x1xf32> to vector<8x32xf32>
    %1090 = arith.subf %1075, %1089 : vector<8x32xf32>
    %cst_506 = arith.constant 9.99999974E-6 : f32
    %1091 = vector.broadcast %cst_506 : f32 to vector<8x1xf32>
    %1092 = arith.addf %1088, %1091 : vector<8x1xf32>
    %1093 = math.rsqrt %1092 : vector<8x1xf32>
    %1094 = vector.broadcast %1093 : vector<8x1xf32> to vector<8x32xf32>
    %1095 = arith.mulf %1090, %1094 : vector<8x32xf32>
    %1096 = vector.broadcast %1076 : vector<1x32xf32> to vector<8x32xf32>
    %1097 = arith.mulf %1095, %1096 : vector<8x32xf32>
    %1098 = vector.broadcast %1077 : vector<1x32xf32> to vector<8x32xf32>
    %1099 = arith.addf %1097, %1098 : vector<8x32xf32>
    %c3120 = arith.constant 3120 : index
    %c0_507 = arith.constant 0 : index
    %1100 = vector.load %arg3[%c3120, %c0_507] : memref<3160x128xf32, #tpu.memory_space<vmem>>, vector<32x128xf32>
    %cst_508 = arith.constant dense<0.000000e+00> : vector<8x128xf32>
    %1101 = tpu.matmul %1099, %1100, %cst_508 {dimension_numbers = #tpu.dot_dimension_numbers<[1], [0], [0], [1], [0, 0, 1, 1], [], []>} : vector<8x32xf32>, vector<32x128xf32>, vector<8x128xf32> -> vector<8x128xf32>
    %c3152 = arith.constant 3152 : index
    %c0_509 = arith.constant 0 : index
    %1102 = vector.load %arg3[%c3152, %c0_509] : memref<3160x128xf32, #tpu.memory_space<vmem>>, vector<1x128xf32>
    %1103 = vector.broadcast %1102 : vector<1x128xf32> to vector<8x128xf32>
    %1104 = arith.addf %1101, %1103 : vector<8x128xf32>
    %c0_510 = arith.constant 0 : index
    %c0_511 = arith.constant 0 : index
    %1105 = vector.load %arg4[%c0_510, %c0_511] : memref<8x128xf32, #tpu.memory_space<vmem>>, vector<8x128xf32>
    tpu.vector_store %arg4[%c0_510, %c0_511], %1104 {strides = array<i32>} : memref<8x128xf32, #tpu.memory_space<vmem>>, vector<8x128xf32>,
    return
  }
  func.func @transform_0(%arg0: i32) -> (i32, i32) {
    %c0_i32 = arith.constant 0 : i32
    %c0_i32_0 = arith.constant 0 : i32
    return %arg0, %c0_i32 : i32, i32
  }
  func.func @transform_1(%arg0: i32) -> (i32, i32) {
    %c0_i32 = arith.constant 0 : i32
    %c0_i32_0 = arith.constant 0 : i32
    return %arg0, %c0_i32 : i32, i32
  }
  func.func @transform_2(%arg0: i32) -> (i32, i32) {
    %c0_i32 = arith.constant 0 : i32
    %c0_i32_0 = arith.constant 0 : i32
    %c0_i32_1 = arith.constant 0 : i32
    return %c0_i32, %c0_i32_0 : i32, i32
  }
  func.func @transform_3(%arg0: i32) -> (i32, i32) {
    %c0_i32 = arith.constant 0 : i32
    %c0_i32_0 = arith.constant 0 : i32
    return %arg0, %c0_i32 : i32, i32
  }
}

</mosaic_0001>

<bundles_post_ra>
// kernel: chatbot_forward.1
= control target key start
LH: loop header
LB: loop body
LE: loop exit
PB: predicated region body
PF: predicated region fallthrough
CT: control target
= control target key end

     0   :  { %8 = vsyncpa [#allocation3], 0  ;;  %s16733_s0 = inlined_call_operand.vmem [shape: f32[16,32], index: 0, kind: input, shape index: {}]   ;;  %s16734_s1 = inlined_call_operand.vmem [shape: f32[16,32], index: 1, kind: input, shape index: {}]   ;;  %s16735_s2 = inlined_call_operand.hbm [shape: f32[3160,128], index: 2, kind: input, shape index: {}]   ;;  %s16736_s3 = inlined_call_operand.hbm [shape: f32[16,128], index: 3, kind: output, shape index: {}]  }
   0x1   :  { %9 = vsyncpa [#allocation4], 0 }
   0x2   :  { %11 = vsyncpa [#allocation4 + $0x1], 0  ;;  %s15609_s12 = smov 0   ;;  %s15611_s13 = smov 0  }
   0x3   :  { %s15613_s14 = smov 0   ;;  %s15615_s15 = smov 0  }
   0x4 LB: > { %s15630_s16 = sadd.s32 4294967295, %s15580_s15   ;;  %s12671_s17 = sadd.s32 4294967294, %s15580_s15   ;;  %s15580_s15 = sphi %s15615_s15, %s16752_s15   ;;  %s15576_s14 = sphi %s15613_s14, %s16751_s14   ;;  %s15572_s13 = sphi %s15611_s13, %s16750_s13   ;;  %s15568_s12 = sphi %s15609_s12, %s16749_s12  }
   0x5   : > { %s15634_s18 = sadd.s32 1, %s15580_s15   ;;  %s97_s19 = sadd.s32 1, %s15576_s14 }
   0x6   : > { %s94_s20 = ssub.s32 %s15580_s15, %s15634_s18  ;;  %p107_p0 = scmp.ne.s32.totalorder %s15576_s14, %s15572_s13 }
   0x7   : > { %p95_p1 = scmp.eq.s32.totalorder %s94_s20, 0  ;;  %p108_p2 = scmp.eq.s32.totalorder %s15630_s16, 1 }
   0x8   : > { %p113_p3 = scmp.ne.s32.totalorder %s15572_s13, %s15568_s12  ;;  %p114_p4 = scmp.eq.s32.totalorder %s12671_s17, 1 }
   0x9   : > { %s15645_s21 = scalar_select %p95_p1, %s15576_s14, %s97_s19  }
   0xa   : > { %p15647_p5 = por %p108_p2, %p107_p0  ;;  %p15651_p6 = por %p114_p4, %p113_p3 }
   0xb   : > { %p12672_p7 = scmp.ge.s32.totalorder %s15580_s15, 1  ;;  %p121_p8 = scmp.lt.s32.totalorder %s15580_s15, 3 }
   0xc   : > { %s16740_s22 = scalar_select %p15647_p5, 1, 0 }
   0xd   : > { %s16741_s23 = scalar_select %p15651_p6, 1, 0 }
   0xe   : > { %p16737_p9 = scmp.eq.s32.totalorder %s15630_s16, 0  ;;  %p15658_p10 = pnand %p12672_p7, %p121_p8 }
   0xf   : > { %s15582_s25 = smov [#allocation2]   ;;  %s15486_s30 = scalar_lea.hbm %s16735_s2, 50560 }
  0x10   : > { %s16742_s24 = scalar_select %p15658_p10, 1, 0 }
  0x11   : > { %s133_s26 = sshll.u32 %s15582_s25, 4  ;;  %p15320_p11 = pneg %p15658_p10  ;;  %s134_s26 = int_to_ptr.vmem [resolvable:$true] %s133_s26 }
  0x12   : > { %p15487_p13 = scmp.ne.s32.totalorder %s16735_s2, %s15486_s30  ;;  %p15493_p3 = scmp.lt.u32.totalorder %s15486_s30, %s16735_s2 }
  0x13   : > { %p15666_p12 = pnand %p16737_p9, %p15320_p11 }
  0x15   : > { %p15488_p0 = pneg %p15666_p12 }
  0x17   : > { %p15489_p1 = pnand %p15488_p0, %p15487_p13 }
  0x19   : > { %p15490_p2 = pneg %p15489_p1 }
  0x1b   : > { %p15495_p4 = pnand %p15493_p3, %p15490_p2 }
  0x1d   : > { %15498 = shalt.err (!%p15495_p4)
}
  0x1e   : > { %s15499_s8 = scalar_lea.vmem %s134_s26, 50560  ;;  %p15507_p9 = scmp.lt.s32.totalorder %s134_s26, %s134_s26 }
  0x1f   : > { %p15500_p7 = scmp.ne.s32.totalorder %s134_s26, %s15499_s8  ;;  %p15508_p6 = scmp.lt.s32.totalorder %s15499_s8, %s15499_s8 }
  0x21   : > { %p15502_p8 = pnand %p15500_p7, %p15488_p0  ;;  %p15509_p5 = por %p15508_p6, %p15507_p9 }
  0x23   : > { %p15503_p11 = pneg %p15502_p8 }
  0x25   : > { %p15510_p10 = pnand %p15509_p5, %p15503_p11 }
  0x27   : > { %15513 = shalt.err (!%p15510_p10)
}
  0x28   : > { %s15583_s9 = smov 128   ;;  %s15584_s10 = smov 8  }
  0x29   : > { %15323 = dma.hbm_to_vmem [thread:$0]  (!%p15666_p12), %s16735_s2, 50560, %s134_s26, [#allocation3], %s15583_s9, %s15583_s9, %s15584_s10  }
  0x2a   : > { %p16744_p13 = scmp.ne.s32.totalorder %s16742_s24, 0 }
  0x2b   : > { %p16745_p1 = scmp.eq.s32.totalorder (!%p16744_p13), %s15630_s16, 0 }
  0x2c   : > { %163 = sbr.rel (%p16744_p13) target bundleno = 27817 (0x6ca9), region = 32 }
  0x33   : > { %15559 = dma.done.wait (%p16745_p1), [#allocation3], 50560   ;;  %p16746_p0 = pmov %p16745_p1 }
  0x34   : > { %p190_p5 = scmp.lt.s32.totalorder %s15630_s16, 1  ;;  %v15585_v0 = vmov 0.0|0.0   ;;  %vm15586_vm0 = vmmov 0   ;;  %v15587_v1 = vmov 0.0   ;;  %v283_v2 = vld [vmem:[#allocation2 + $0x80] sm:$0xff]  ;;  %v284_v3 = vld [vmem:[#allocation2 + $0x88] sm:$0xff] }
  0x35   : > { %15561 = vsyncadd (%p16746_p0), [#allocation3], 4294916736  ;;  %14810 = vmatprep.subr.bf16.mxu1 %v15585_v0  ;;  %14804 = vmatprep.subr.bf16.mxu0 %v15585_v0  ;;  %v200_v4 = vld [vmem:[#allocation2] sm:$0xff]  ;;  %v14811_v5 = vpack.c.bf16 %v284_v3, %v283_v2  ;;  %v201_v6 = vld [vmem:[#allocation2 + $0x8] sm:$0xff]  ;;  %vm209_vm1 = vcmask 261120   ;;  %vm441_vm2 = vcmask 64512  }
  0x36   : > { %13540 = vmatprep.mubr.msk.f32.mxu1 %vm15586_vm0, %v15587_v1  ;;  %13529 = vmatprep.mubr.msk.f32.mxu0 %vm15586_vm0, %v15587_v1  ;;  %s15700_s19 = scalar_select %p190_p5, %s15630_s16, 1  ;;  %v285_v7 = vld [vmem:[#allocation2 + $0x90] sm:$0xff]  ;;  %v286_v8 = vld [vmem:[#allocation2 + $0x98] sm:$0xff]  ;;  %v14805_v9 = vpack.c.bf16 %v201_v6, %v200_v4  ;;  %v12682_v15 = vld [vmem:[#allocation2 + $0x184] ss:$0 sm:$0xff]  ;;  %vm2224_vm3 = vcmask 523264  }
  0x37   : > { %v202_v10 = vld [vmem:[#allocation2 + $0x10] sm:$0xff]  ;;  %v203_v11 = vld [vmem:[#allocation2 + $0x18] sm:$0xff]  ;;  %14812 = vmatpush3.bf16.msra.mxu1 %v14811_v5  ;;  %v14814_v12 = vpack.c.bf16 %v286_v8, %v285_v7  ;;  %v12680_v16 = vld [vmem:[#allocation2 + $0x180] ss:$0 sm:$0xff]  ;;  %s187_s30 = sand.u32 1, %s15572_s13   ;;  %s12953_s5 = sshll.u32 %s15630_s16, 7 }
  0x38   : > { %s12678_s20 = sshll.u32 %s15700_s19, 3  ;;  %14806 = vmatpush3.bf16.msra.mxu0 %v14805_v9  ;;  %14813 = vmatprep.subr.bf16.mxu1 %v15585_v0  ;;  %v14808_v13 = vpack.c.bf16 %v203_v11, %v202_v10  ;;  %v362_v23 = vld [vmem:[#allocation2 + $0x100] sm:$0xff]  ;;  %v363_v24 = vld [vmem:[#allocation2 + $0x108] sm:$0xff]  ;;  %v364_v25 = vld [vmem:[#allocation2 + $0x110] sm:$0xff]  ;;  %s12677_s4 = sshll.u32 %s187_s30, 3 }
  0x39   : > { %s193_s26 = scalar_lea.vmem %s16733_s0, %s12678_s20  ;;  %14807 = vmatprep.subr.bf16.mxu0 %v15585_v0  ;;  %v14817_v26 = vpack.c.bf16 %v363_v24, %v362_v23  ;;  %v365_v27 = vld [vmem:[#allocation2 + $0x118] sm:$0xff]  ;;  %v12684_v39 = vld [vmem:[#allocation2 + $0x188] ss:$0 sm:$0xff]  ;;  %v603_v42 = vld [vmem:[#allocation2 + $0x190] sm:$0xff]  ;;  %s16030_s29 = scalar_lea.vmem %s16734_s1, %s12678_s20 }
  0x3a   : > { %v15710_v14 = vld [vmem:[%s193_s26] sm:$0xff]  ;;  %v14820_v28 = vpack.c.bf16 %v365_v27, %v364_v25  ;;  %v683_v47 = vld [vmem:[#allocation2 + $0x28] sm:$0xff]  ;;  %v684_v49 = vld [vmem:[#allocation2 + $0x30] sm:$0xff]  ;;  %s189_s6 = scalar_lea.vmem [#allocation5], %s12677_s4  ;;  %s16691_s10 = scalar_lea.hbm %s16736_s3, %s12953_s5 }
  0x3b   : > { %14815 = vmatpush3.bf16.msra.mxu1 %v14814_v12  ;;  %v682_v46 = vld [vmem:[#allocation2 + $0x20] sm:$0xff]  ;;  %v685_v50 = vld [vmem:[#allocation2 + $0x38] sm:$0xff]  ;;  %v762_v53 = vld [vmem:[#allocation2 + $0xa8] sm:$0xff]  ;;  %s12588_s7 = sshll.u32 %s189_s6, 4  ;;  %s12575_s11 = scalar_lea.sflag [#allocation4], %s187_s30  ;;  %s16693_s7 = int_to_ptr.vmem [resolvable:$true] %s12588_s7 }
  0x3c   : > { %14809 = vmatpush3.bf16.msra.mxu0 %v14808_v13  ;;  %13554 = vmatprep.subr.mxu1 %v15587_v1  ;;  %v14823_v48 = vpack.c.bf16 %v683_v47, %v682_v46  ;;  %v14826_v51 = vpack.c.bf16 %v685_v50, %v684_v49  ;;  %v761_v52 = vld [vmem:[#allocation2 + $0xa0] sm:$0xff]  ;;  %v763_v55 = vld [vmem:[#allocation2 + $0xb0] sm:$0xff]  ;;  %v764_v56 = vld [vmem:[#allocation2 + $0xb8] sm:$0xff]  ;;  %s15514_s17 = scalar_lea.vmem %s16693_s7, 128  ;;  %p16747_p9 = scmp.ne.s32.totalorder %s16740_s22, 0 }
  0x3d   : > { %14816 = vmatprep.subr.bf16.mxu0 %v15585_v0  ;;  %v14829_v54 = vpack.c.bf16 %v762_v53, %v761_v52  ;;  %v14832_v59 = vpack.c.bf16 %v764_v56, %v763_v55  ;;  %v12693_v2 = vld [vmem:[#allocation2 + $0x185] ss:$0 sm:$0xff]  ;;  %v12691_v3 = vld [vmem:[#allocation2 + $0x181] ss:$0 sm:$0xff]  ;;  %v841_v9 = vld [vmem:[#allocation2 + $0x128] sm:$0xff]  ;;  %p15515_p6 = scmp.ne.s32.totalorder %s16693_s7, %s15514_s17  ;;  %s15588_s16 = smov [#allocation5]  }
  0x3e   : > { %13541 = vmatmul.mubr.msk.f32.vlgmr.msra.gmra.mrb[0].mxu1 %vm209_vm1, %v15710_v14  ;;  %v840_v8 = vld [vmem:[#allocation2 + $0x120] sm:$0xff]  ;;  %v842_v10 = vld [vmem:[#allocation2 + $0x130] sm:$0xff]  ;;  %v843_v12 = vld [vmem:[#allocation2 + $0x138] sm:$0xff]  ;;  %s15518_s19 = sshll.u32 %s15588_s16, 4  ;;  %s15519_s19 = int_to_ptr.vmem [resolvable:$false] %s15518_s19 }
  0x3f   : > { %13530 = vmatmul.mubr.msk.f32.vlgmr.msra.gmra.mrb[0].mxu0 %vm209_vm1, %v15710_v14  ;;  %13556 = vmatprep.mubr.msk.f32.mxu1 %vm15586_vm0, %v15587_v1  ;;  %v14835_v11 = vpack.c.bf16 %v841_v9, %v840_v8  ;;  %v14838_v13 = vpack.c.bf16 %v843_v12, %v842_v10  ;;  %v12695_v25 = vld [vmem:[#allocation2 + $0x189] ss:$0 sm:$0xff]  ;;  %v12703_v53 = vld [vmem:[#allocation2 + $0x186] ss:$0 sm:$0xff]  ;;  %p15516_p10 = pnand %p15515_p6, %p16747_p9  ;;  %s15520_s20 = scalar_lea.vmem %s15519_s19, 256 }
  0x40   : > { %13551 = vmatprep.mubr.msk.f32.mxu0 %vm15586_vm0, %v15587_v1  ;;  %14818 = vmatpush3.bf16.msra.mxu0 %v14817_v26  ;;  %p15521_p2 = scmp.lt.s32.totalorder %s16693_s7, %s15519_s19  ;;  %p15522_p3 = scmp.lt.s32.totalorder %s15520_s20, %s15514_s17 }
  0x41   : > { %14819 = vmatprep.subr.bf16.mxu0 %v15585_v0  ;;  %p15517_p12 = pneg %p15516_p10 }
  0x42   : > { %p15523_p4 = por %p15522_p3, %p15521_p2 }
  0x44   : > { %14821 = vmatpush3.bf16.msra.mxu0 %v14820_v28  ;;  %v1080_v28 = vld [vmem:[#allocation2 + $0x198] sm:$0xff]  ;;  %p15524_p7 = pnand %p15523_p4, %p15517_p12 }
  0x45   : > { %13564 = vmatprep.subr.mxu0 %v15587_v1 }
  0x47   : > { %13552 = vmatmul.mubr.msk.f32.vlgmr.msra.gmra.mrb[2].mxu0 %vm209_vm1, %v15710_v14 }
  0x48   : > { %13566 = vmatprep.mubr.msk.f32.mxu0 %vm15586_vm0, %v15587_v1  ;;  %13565 = vmatpush3.msra.mxu0 %v603_v42  ;;  %v1237_v42 = vld [vmem:[#allocation2 + $0xd8] sm:$0xff] }
  0x49   : > { %14828 = vmatprep.subr.bf16.mxu0 %v15585_v0 }
 0x111   : > { %v358_v17 = vpop.f32.mrb[0].mxu1 }
 0x112   : > { %v359_v18 = vadd.f32 %v12682_v15, %v358_v17  ;;  %v13542_v19 = vpop.f32.mrb[1].mxu1  ;;  %v279_v20 = vpop.f32.mrb[0].mxu0 }
 0x113   : > { %v280_v21 = vadd.f32 %v12680_v16, %v279_v20  ;;  %v13531_v22 = vpop.f32.mrb[1].mxu0 }
 0x114   : > { %13555 = vmatpush3.xpose.msk.msra.mxu1 %vm441_vm2, %v359_v18 }
 0x115   : > { %13559 = vmatprep.subr.mxu1 %v15587_v1 }
 0x117   : > { %13557 = vmatmul.mubr.msk.f32.vlgmr.msra.gmra.mrb[2].mxu1 %vm441_vm2, %v280_v21 }
 0x118   : > { %13561 = vmatprep.mubr.msk.f32.mxu1 %vm15586_vm0, %v15587_v1 }
 0x11a   : > { %v437_v38 = vpop.f32.mrb[2].mxu0 }
 0x11b   : > { %v13553_v40 = vpop.f32.mrb[3].mxu0  ;;  %v438_v41 = vadd.f32 %v12684_v39, %v437_v38  ;;  %v1234_v38 = vld [vmem:[#allocation2 + $0xc0] sm:$0xff]  ;;  %v1235_v39 = vld [vmem:[#allocation2 + $0xc8] sm:$0xff] }
 0x11c   : > { %v14847_v40 = vpack.c.bf16 %v1235_v39, %v1234_v38 }
 0x11d   : > { %13560 = vmatpush3.msra.mxu1 %v438_v41  ;;  %v1236_v41 = vld [vmem:[#allocation2 + $0xd0] sm:$0xff] }
 0x11e   : > { %14822 = vmatprep.subr.bf16.mxu1 %v15585_v0 }
 0x1ea   : > { %v514_v29 = vpop.f32.mrb[2].mxu1 }
 0x1eb   : > { %v518_v30 = vmul.f32 0.35355338, %v514_v29  ;;  %v13558_v31 = vpop.f32.mrb[3].mxu1 }
 0x1ed   : > { %v519_v32 = vsel %vm441_vm2, %v518_v30, -inf }
 0x1ee   : > { %520 = vmax.xlane.f32.xlu0 %v519_v32  ;;  %v1155_v32 = vld [vmem:[#allocation2 + $0x40] sm:$0xff] }
 0x27b   : > { %v521_v33 = vpop.xlane.xlu0 %520 }
 0x27c   : > { %v522_v34 = vsub.f32 %v518_v30, %v521_v33  ;;  %v1156_v33 = vld [vmem:[#allocation2 + $0x48] sm:$0xff] }
 0x27e   : > { %v523_v35 = vmul.f32 1.442695, %v522_v34  ;;  %v14841_v34 = vpack.c.bf16 %v1156_v33, %v1155_v32 }
 0x280   : > { %15369 = vpow2.f32 %v523_v35  ;;  %v1157_v35 = vld [vmem:[#allocation2 + $0x50] sm:$0xff] }
 0x28a   : > { %v15370_v36 = vpop.eup %15369 }
 0x28b   : > { %v525_v37 = vsel %vm441_vm2, %v15370_v36, 0.0 }
 0x28c   : > { %526 = vadd.xlane.f32.xlu0 %v525_v37 }
 0x319   : > { %v527_v43 = vpop.xlane.xlu0 %526 }
 0x31a   : > { %15371 = vrcp.f32 %v527_v43 }
 0x324   : > { %v15372_v44 = vpop.eup %15371 }
 0x325   : > { %v529_v45 = vmul.f32 %v15372_v44, %v15370_v36  ;;  %v1158_v36 = vld [vmem:[#allocation2 + $0x58] sm:$0xff] }
 0x326   : > { %v14844_v37 = vpack.c.bf16 %v1158_v36, %v1157_v35 }
 0x327   : > { %13562 = vmatmul.mubr.msk.f32.vlgmr.msra.gmra.mrb[4].mxu1 %vm441_vm2, %v529_v45  ;;  %v14850_v45 = vpack.c.bf16 %v1237_v42, %v1236_v41  ;;  %v12711_v41 = vld [vmem:[#allocation2 + $0x183] ss:$0 sm:$0xff] }
 0x328   : > { %13577 = vmatprep.mubr.msk.f32.mxu1 %vm15586_vm0, %v15587_v1  ;;  %14824 = vmatpush3.bf16.msra.mxu1 %v14823_v48  ;;  %v12690_v48 = vld [vmem:[#allocation2 + $0x1b0] ss:$0 sm:$0xff] }
 0x329   : > { %14825 = vmatprep.subr.bf16.mxu1 %v15585_v0 }
 0x32c   : > { %14827 = vmatpush3.bf16.msra.mxu1 %v14826_v51 }
 0x32d   : > { %14834 = vmatprep.subr.bf16.mxu1 %v15585_v0 }
 0x32f   : > { %13578 = vmatmul.mubr.msk.f32.vlgmr.msra.gmra.mrb[6].mxu1 %vm209_vm1, %v15710_v14 }
 0x330   : > { %13599 = vmatprep.mubr.msk.f32.mxu1 %vm15586_vm0, %v15587_v1  ;;  %14836 = vmatpush3.bf16.msra.mxu1 %v14835_v11 }
 0x331   : > { %14837 = vmatprep.subr.bf16.mxu1 %v15585_v0 }
 0x334   : > { %14839 = vmatpush3.bf16.msra.mxu1 %v14838_v13  ;;  %v12705_v13 = vld [vmem:[#allocation2 + $0x18a] ss:$0 sm:$0xff] }
 0x335   : > { %13612 = vmatprep.subr.mxu1 %v15587_v1 }
 0x337   : > { %13600 = vmatmul.mubr.msk.f32.vlgmr.msra.gmra.mrb[8].mxu1 %vm209_vm1, %v15710_v14 }
 0x338   : > { %13614 = vmatprep.mubr.msk.f32.mxu1 %vm15586_vm0, %v15587_v1  ;;  %13613 = vmatpush3.msra.mxu1 %v1080_v28  ;;  %v1708_v28 = vld [vmem:[#allocation2 + $0xe8] sm:$0xff] }
 0x339   : > { %14846 = vmatprep.subr.bf16.mxu1 %v15585_v0 }
 0x3fa   : > { %v599_v57 = vpop.f32.mrb[4].mxu1 }
 0x3fb   : > { %v13563_v58 = vpop.f32.mrb[5].mxu1  ;;  %13567 = vmatmul.mubr.msk.f32.vlgmr.msra.gmra.mrb[4].mxu0 %vm441_vm2, %v599_v57 }
 0x3fc   : > { %14830 = vmatpush3.bf16.msra.mxu0 %v14829_v54  ;;  %13588 = vmatprep.mubr.msk.f32.mxu0 %vm15586_vm0, %v15587_v1  ;;  %v12701_v54 = vld [vmem:[#allocation2 + $0x182] ss:$0 sm:$0xff] }
 0x3fd   : > { %14831 = vmatprep.subr.bf16.mxu0 %v15585_v0 }
 0x400   : > { %14833 = vmatpush3.bf16.msra.mxu0 %v14832_v59  ;;  %v1313_v59 = vld [vmem:[#allocation2 + $0x140] sm:$0xff] }
 0x401   : > { %13602 = vmatprep.subr.mxu0 %v15587_v1 }
 0x402   : > { %v757_v60 = vpop.f32.mrb[6].mxu1 }
 0x403   : > { %13589 = vmatmul.mubr.msk.f32.vlgmr.msra.gmra.mrb[6].mxu0 %vm209_vm1, %v15710_v14  ;;  %v13579_v61 = vpop.f32.mrb[7].mxu1  ;;  %v758_v7 = vadd.f32 %v12691_v3, %v757_v60  ;;  %v1314_v60 = vld [vmem:[#allocation2 + $0x148] sm:$0xff] }
 0x404   : > { %13604 = vmatprep.mubr.msk.f32.mxu0 %vm15586_vm0, %v15587_v1  ;;  %v1315_v61 = vld [vmem:[#allocation2 + $0x150] sm:$0xff] }
 0x40a   : > { %v915_v24 = vpop.f32.mrb[8].mxu1 }
 0x40b   : > { %v13601_v26 = vpop.f32.mrb[9].mxu1  ;;  %v916_v27 = vadd.f32 %v12695_v25, %v915_v24  ;;  %v1630_v24 = vld [vmem:[#allocation2 + $0x70] sm:$0xff]  ;;  %v1631_v25 = vld [vmem:[#allocation2 + $0x78] sm:$0xff] }
 0x40c   : > { %v14862_v26 = vpack.c.bf16 %v1631_v25, %v1630_v24  ;;  %v2131_v24 = vld [vmem:[#allocation2 + $0x1d8] sm:$0xff] }
 0x4ce   : > { %v15755_v62 = vpop.f32.mrb[4].mxu0 }
 0x4cf   : > { %v13568_v63 = vpop.f32.mrb[5].mxu0  ;;  %v681_v49 = vadd.f32 %v12690_v48, %v15755_v62  ;;  %v14853_v62 = vpack.c.bf16 %v1314_v60, %v1313_v59  ;;  %v1788_v48 = vld [vmem:[#allocation2 + $0x170] sm:$0xff] }
 0x4d0   : > { %v1316_v63 = vld [vmem:[#allocation2 + $0x158] sm:$0xff] }
 0x4d6   : > { %v836_v4 = vpop.f32.mrb[6].mxu0 }
 0x4d7   : > { %v837_v5 = vadd.f32 %v12693_v2, %v836_v4  ;;  %v13590_v6 = vpop.f32.mrb[7].mxu0  ;;  %v14856_v2 = vpack.c.bf16 %v1316_v63, %v1315_v61 }
 0x4d9   : > { %13603 = vmatpush3.xpose.msk.msra.mxu0 %vm441_vm2, %v837_v5 }
 0x4da   : > { %13607 = vmatprep.subr.mxu0 %v15587_v1 }
 0x4dc   : > { %13605 = vmatmul.mubr.msk.f32.vlgmr.msra.gmra.mrb[8].mxu0 %vm441_vm2, %v758_v7 }
 0x4dd   : > { %13609 = vmatprep.mubr.msk.f32.mxu0 %vm15586_vm0, %v15587_v1  ;;  %13608 = vmatpush3.msra.mxu0 %v916_v27  ;;  %v1707_v27 = vld [vmem:[#allocation2 + $0xe0] sm:$0xff] }
 0x4de   : > { %14840 = vmatprep.subr.bf16.mxu0 %v15585_v0 }
 0x5af   : > { %v991_v15 = vpop.f32.mrb[8].mxu0 }
 0x5b0   : > { %v995_v16 = vmul.f32 0.35355338, %v991_v15  ;;  %v13606_v17 = vpop.f32.mrb[9].mxu0 }
 0x5b1   : > { %v1553_v17 = vld [vmem:[#allocation2 + $0x1a0] sm:$0xff] }
 0x5b2   : > { %v996_v18 = vsel %vm441_vm2, %v995_v16, -inf }
 0x5b3   : > { %997 = vmax.xlane.f32.xlu1 %v996_v18 }
 0x640   : > { %v998_v19 = vpop.xlane.xlu1 %997 }
 0x641   : > { %v999_v20 = vsub.f32 %v995_v16, %v998_v19 }
 0x643   : > { %v1000_v21 = vmul.f32 1.442695, %v999_v20 }
 0x645   : > { %15373 = vpow2.f32 %v1000_v21  ;;  %v1628_v21 = vld [vmem:[#allocation2 + $0x60] sm:$0xff] }
 0x64f   : > { %v15374_v22 = vpop.eup %15373 }
 0x650   : > { %v1002_v23 = vsel %vm441_vm2, %v15374_v22, 0.0 }
 0x651   : > { %1003 = vadd.xlane.f32.xlu1 %v1002_v23 }
 0x6de   : > { %v1004_v29 = vpop.xlane.xlu1 %1003 }
 0x6df   : > { %15375 = vrcp.f32 %v1004_v29  ;;  %v14865_v29 = vpack.c.bf16 %v1708_v28, %v1707_v27  ;;  %v2213_v27 = vld [vmem:[#allocation2 + $0x1f8] sm:$0xff] }
 0x6e9   : > { %v15376_v30 = vpop.eup %15375 }
 0x6ea   : > { %v1006_v31 = vmul.f32 %v15376_v30, %v15374_v22  ;;  %v1629_v22 = vld [vmem:[#allocation2 + $0x68] sm:$0xff]  ;;  %v1709_v30 = vld [vmem:[#allocation2 + $0xf0] sm:$0xff] }
 0x6eb   : > { %v14859_v23 = vpack.c.bf16 %v1629_v22, %v1628_v21  ;;  %v2129_v21 = vld [vmem:[#allocation2 + $0x1c8] sm:$0xff] }
 0x6ec   : > { %13610 = vmatmul.mubr.msk.f32.vlgmr.msra.gmra.mrb[10].mxu0 %vm441_vm2, %v1006_v31  ;;  %v1710_v31 = vld [vmem:[#allocation2 + $0xf8] sm:$0xff] }
 0x6ed   : > { %13625 = vmatprep.mubr.msk.f32.mxu0 %vm15586_vm0, %v15587_v1  ;;  %14842 = vmatpush3.bf16.msra.mxu0 %v14841_v34  ;;  %v14868_v34 = vpack.c.bf16 %v1710_v31, %v1709_v30  ;;  %v2215_v31 = vld [vmem:[#allocation2 + $0x208] sm:$0xff] }
 0x6ee   : > { %14843 = vmatprep.subr.bf16.mxu0 %v15585_v0 }
 0x6f1   : > { %14845 = vmatpush3.bf16.msra.mxu0 %v14844_v37 }
 0x6f2   : > { %14852 = vmatprep.subr.bf16.mxu0 %v15585_v0 }
 0x6f4   : > { %13626 = vmatmul.mubr.msk.f32.vlgmr.msra.gmra.mrb[12].mxu0 %vm209_vm1, %v15710_v14 }
 0x6f5   : > { %13647 = vmatprep.mubr.msk.f32.mxu0 %vm15586_vm0, %v15587_v1  ;;  %14854 = vmatpush3.bf16.msra.mxu0 %v14853_v62  ;;  %v12715_v62 = vld [vmem:[#allocation2 + $0x18b] ss:$0 sm:$0xff] }
 0x6f6   : > { %14855 = vmatprep.subr.bf16.mxu0 %v15585_v0 }
 0x6f9   : > { %14857 = vmatpush3.bf16.msra.mxu0 %v14856_v2 }
 0x6fa   : > { %13660 = vmatprep.subr.mxu0 %v15587_v1 }
 0x6fc   : > { %13648 = vmatmul.mubr.msk.f32.vlgmr.msra.gmra.mrb[14].mxu0 %vm209_vm1, %v15710_v14 }
 0x6fd   : > { %13662 = vmatprep.mubr.msk.f32.mxu0 %vm15586_vm0, %v15587_v1  ;;  %13661 = vmatpush3.msra.mxu0 %v1553_v17 }
 0x6fe   : > { %14864 = vmatprep.subr.bf16.mxu0 %v15585_v0 }
 0x7bf   : > { %v1076_v43 = vpop.f32.mrb[10].mxu0 }
 0x7c0   : > { %v13611_v44 = vpop.f32.mrb[11].mxu0  ;;  %13615 = vmatmul.mubr.msk.f32.vlgmr.msra.gmra.mrb[10].mxu1 %vm441_vm2, %v1076_v43 }
 0x7c1   : > { %14848 = vmatpush3.bf16.msra.mxu1 %v14847_v40  ;;  %13636 = vmatprep.mubr.msk.f32.mxu1 %vm15586_vm0, %v15587_v1  ;;  %v12713_v40 = vld [vmem:[#allocation2 + $0x187] ss:$0 sm:$0xff] }
 0x7c2   : > { %14849 = vmatprep.subr.bf16.mxu1 %v15585_v0 }
 0x7c5   : > { %14851 = vmatpush3.bf16.msra.mxu1 %v14850_v45 }
 0x7c6   : > { %13650 = vmatprep.subr.mxu1 %v15587_v1 }
 0x7c7   : > { %v1230_v46 = vpop.f32.mrb[12].mxu0 }
 0x7c8   : > { %13637 = vmatmul.mubr.msk.f32.vlgmr.msra.gmra.mrb[12].mxu1 %vm209_vm1, %v15710_v14  ;;  %v13627_v47 = vpop.f32.mrb[13].mxu0  ;;  %v1231_v58 = vadd.f32 %v12701_v54, %v1230_v46  ;;  %v1786_v46 = vld [vmem:[#allocation2 + $0x160] sm:$0xff] }
 0x7c9   : > { %13652 = vmatprep.mubr.msk.f32.mxu1 %vm15586_vm0, %v15587_v1  ;;  %v1787_v47 = vld [vmem:[#allocation2 + $0x168] sm:$0xff] }
 0x7cf   : > { %v1388_v12 = vpop.f32.mrb[14].mxu0 }
 0x7d0   : > { %v13649_v15 = vpop.f32.mrb[15].mxu0  ;;  %v1389_v16 = vadd.f32 %v12705_v13, %v1388_v12 }
 0x893   : > { %v1150_v50 = vpop.f32.mrb[10].mxu1 }
 0x894   : > { %v15791_v51 = vadd.f32 %v1150_v50, %v681_v49  ;;  %v13616_v52 = vpop.f32.mrb[11].mxu1  ;;  %v14871_v49 = vpack.c.bf16 %v1787_v47, %v1786_v46  ;;  %v1789_v50 = vld [vmem:[#allocation2 + $0x178] sm:$0xff]  ;;  %v12723_v46 = vld [vmem:[#allocation2 + $0x1e0] ss:$0 sm:$0xff] }
 0x89b   : > { %v1309_v55 = vpop.f32.mrb[12].mxu1 }
 0x89c   : > { %v1310_v56 = vadd.f32 %v12703_v53, %v1309_v55  ;;  %v13638_v57 = vpop.f32.mrb[13].mxu1 }
 0x89e   : > { %13651 = vmatpush3.xpose.msk.msra.mxu1 %vm441_vm2, %v1310_v56 }
 0x89f   : > { %13655 = vmatprep.subr.mxu1 %v15587_v1 }
 0x8a1   : > { %13653 = vmatmul.mubr.msk.f32.vlgmr.msra.gmra.mrb[14].mxu1 %vm441_vm2, %v1231_v58 }
 0x8a2   : > { %13657 = vmatprep.mubr.msk.f32.mxu1 %vm15586_vm0, %v15587_v1  ;;  %13656 = vmatpush3.msra.mxu1 %v1389_v16 }
 0x8a3   : > { %14858 = vmatprep.subr.bf16.mxu1 %v15585_v0 }
 0x974   : > { %v1464_v3 = vpop.f32.mrb[14].mxu1 }
 0x975   : > { %v1468_v4 = vmul.f32 0.35355338, %v1464_v3  ;;  %v13654_v5 = vpop.f32.mrb[15].mxu1  ;;  %v2026_v3 = vld [vmem:[#allocation2 + $0x1a8] sm:$0xff] }
 0x977   : > { %v1469_v6 = vsel %vm441_vm2, %v1468_v4, -inf }
 0x978   : > { %1470 = vmax.xlane.f32.xlu0 %v1469_v6 }
 0xa05   : > { %v1471_v7 = vpop.xlane.xlu0 %1470 }
 0xa06   : > { %v1472_v8 = vsub.f32 %v1468_v4, %v1471_v7 }
 0xa08   : > { %v1473_v9 = vmul.f32 1.442695, %v1472_v8 }
 0xa0a   : > { %15377 = vpow2.f32 %v1473_v9 }
 0xa14   : > { %v15378_v10 = vpop.eup %15377 }
 0xa15   : > { %v1475_v11 = vsel %vm441_vm2, %v15378_v10, 0.0 }
 0xa16   : > { %1476 = vadd.xlane.f32.xlu1 %v1475_v11 }
 0xaa3   : > { %v1477_v18 = vpop.xlane.xlu1 %1476 }
 0xaa4   : > { %15379 = vrcp.f32 %v1477_v18 }
 0xaae   : > { %v15380_v19 = vpop.eup %15379 }
 0xaaf   : > { %v1479_v20 = vmul.f32 %v15380_v19, %v15378_v10 }
 0xab1   : > { %13658 = vmatmul.mubr.msk.f32.vlgmr.msra.gmra.mrb[16].mxu1 %vm441_vm2, %v1479_v20  ;;  %v2128_v20 = vld [vmem:[#allocation2 + $0x1c0] sm:$0xff] }
 0xab2   : > { %13673 = vmatprep.mubr.msk.f32.mxu1 %vm15586_vm0, %v15587_v1  ;;  %14860 = vmatpush3.bf16.msra.mxu1 %v14859_v23  ;;  %v14877_v22 = vpack.c.bf16 %v2129_v21, %v2128_v20  ;;  %v2130_v23 = vld [vmem:[#allocation2 + $0x1d0] sm:$0xff] }
 0xab3   : > { %14861 = vmatprep.subr.bf16.mxu1 %v15585_v0  ;;  %v14880_v25 = vpack.c.bf16 %v2131_v24, %v2130_v23  ;;  %v2399_v23 = vld [vmem:[#allocation2 + $0x2c0] sm:$0xff]  ;;  %v2400_v24 = vld [vmem:[#allocation2 + $0x2c8] sm:$0xff] }
 0xab6   : > { %14863 = vmatpush3.bf16.msra.mxu1 %v14862_v26  ;;  %v2212_v26 = vld [vmem:[#allocation2 + $0x1f0] sm:$0xff] }
 0xab7   : > { %14870 = vmatprep.subr.bf16.mxu1 %v15585_v0 }
 0xab9   : > { %13674 = vmatmul.mubr.msk.f32.vlgmr.msra.gmra.mrb[18].mxu1 %vm209_vm1, %v15710_v14 }
 0xaba   : > { %13695 = vmatprep.mubr.msk.f32.mxu1 %vm15586_vm0, %v15587_v1  ;;  %14872 = vmatpush3.bf16.msra.mxu1 %v14871_v49 }
 0xabb   : > { %14873 = vmatprep.subr.bf16.mxu1 %v15585_v0 }
 0xb84   : > { %v1549_v32 = vpop.f32.mrb[16].mxu1 }
 0xb85   : > { %v13659_v33 = vpop.f32.mrb[17].mxu1  ;;  %13663 = vmatmul.mubr.msk.f32.vlgmr.msra.gmra.mrb[16].mxu0 %vm441_vm2, %v1549_v32  ;;  %v2216_v32 = vld [vmem:[#allocation2 + $0x210] sm:$0xff] }
 0xb86   : > { %14866 = vmatpush3.bf16.msra.mxu0 %v14865_v29  ;;  %13684 = vmatprep.mubr.msk.f32.mxu0 %vm15586_vm0, %v15587_v1  ;;  %v2214_v29 = vld [vmem:[#allocation2 + $0x200] sm:$0xff]  ;;  %v14889_v33 = vpack.c.bf16 %v2216_v32, %v2215_v31  ;;  %v12729_v31 = vld [vmem:[#allocation2 + $0x3b4] ss:$0 sm:$0xff] }
 0xb87   : > { %14867 = vmatprep.subr.bf16.mxu0 %v15585_v0  ;;  %v14886_v30 = vpack.c.bf16 %v2214_v29, %v2213_v27 }
 0xb8a   : > { %14869 = vmatpush3.bf16.msra.mxu0 %v14868_v34 }
 0xb8b   : > { %13698 = vmatprep.subr.mxu0 %v15587_v1 }
 0xb8c   : > { %v1703_v35 = vpop.f32.mrb[18].mxu1 }
 0xb8d   : > { %13685 = vmatmul.mubr.msk.f32.vlgmr.msra.gmra.mrb[18].mxu0 %vm209_vm1, %v15710_v14  ;;  %v13675_v36 = vpop.f32.mrb[19].mxu1  ;;  %v1704_v45 = vadd.f32 %v12711_v41, %v1703_v35 }
 0xb8e   : > { %13700 = vmatprep.mubr.msk.f32.mxu0 %vm15586_vm0, %v15587_v1 }
 0xc58   : > { %v1623_v37 = vpop.f32.mrb[16].mxu0 }
 0xc59   : > { %v1627_v38 = vadd.f32 %v1623_v37, %v15791_v51  ;;  %v13664_v39 = vpop.f32.mrb[17].mxu0  ;;  %v14874_v51 = vpack.c.bf16 %v1789_v50, %v1788_v48 }
 0xc5b   : > { %14875 = vmatpush3.bf16.msra.mxu1 %v14874_v51  ;;  %v12725_v51 = vld [vmem:[#allocation2 + $0x228] ss:$0 sm:$0xff] }
 0xc5c   : > { %13708 = vmatprep.subr.mxu1 %v15587_v1 }
 0xc5e   : > { %13696 = vmatmul.mubr.msk.f32.vlgmr.msra.gmra.mrb[20].mxu1 %vm209_vm1, %v15710_v14 }
 0xc5f   : > { %13710 = vmatprep.mubr.msk.f32.mxu1 %vm15586_vm0, %v15587_v1  ;;  %13709 = vmatpush3.msra.mxu1 %v2026_v3  ;;  %v2476_v3 = vld [vmem:[#allocation2 + $0x330] sm:$0xff] }
 0xc60   : > { %v1782_v42 = vpop.f32.mrb[18].mxu0  ;;  %14882 = vmatprep.subr.bf16.mxu1 %v15585_v0 }
 0xc61   : > { %v1783_v43 = vadd.f32 %v12713_v40, %v1782_v42  ;;  %v13686_v44 = vpop.f32.mrb[19].mxu0  ;;  %v12722_v40 = vld [vmem:[#allocation2 + $0x1b9] ss:$0 sm:$0xff] }
 0xc62   : > { %v2218_v44 = vld [vmem:[#allocation2 + $0x220] sm:$0xff] }
 0xc63   : > { %13699 = vmatpush3.xpose.msk.msra.mxu0 %vm441_vm2, %v1783_v43  ;;  %v2217_v43 = vld [vmem:[#allocation2 + $0x218] sm:$0xff] }
 0xc64   : > { %13703 = vmatprep.subr.mxu0 %v15587_v1 }
 0xc66   : > { %13701 = vmatmul.mubr.msk.f32.vlgmr.msra.gmra.mrb[20].mxu0 %vm441_vm2, %v1704_v45  ;;  %v14892_v45 = vpack.c.bf16 %v2218_v44, %v2217_v43 }
 0xc67   : > { %13705 = vmatprep.mubr.msk.f32.mxu0 %vm15586_vm0, %v15587_v1 }
 0xd31   : > { %v1861_v61 = vpop.f32.mrb[20].mxu1 }
 0xd32   : > { %v13697_v63 = vpop.f32.mrb[21].mxu1  ;;  %v1862_v2 = vadd.f32 %v12715_v62, %v1861_v61  ;;  %v2315_v62 = vld [vmem:[#allocation2 + $0x230] sm:$0xff] }
 0xd33   : > { %v2316_v63 = vld [vmem:[#allocation2 + $0x238] sm:$0xff] }
 0xd34   : > { %13704 = vmatpush3.msra.mxu0 %v1862_v2  ;;  %v14895_v2 = vpack.c.bf16 %v2316_v63, %v2315_v62  ;;  %v2874_v62 = vld [vmem:[#allocation2 + $0x2d0] sm:$0xff]  ;;  %v2875_v63 = vld [vmem:[#allocation2 + $0x2d8] sm:$0xff] }
 0xd35   : > { %14876 = vmatprep.subr.bf16.mxu0 %v15585_v0 }
 0xd39   : > { %v1937_v52 = vpop.f32.mrb[20].mxu0 }
 0xd3a   : > { %v1941_v53 = vmul.f32 0.35355338, %v1937_v52  ;;  %v13702_v54 = vpop.f32.mrb[21].mxu0 }
 0xd3c   : > { %v1942_v55 = vsel %vm441_vm2, %v1941_v53, -inf }
 0xd3d   : > { %1943 = vmax.xlane.f32.xlu0 %v1942_v55 }
 0xdca   : > { %v1944_v56 = vpop.xlane.xlu0 %1943 }
 0xdcb   : > { %v1945_v57 = vsub.f32 %v1941_v53, %v1944_v56 }
 0xdcd   : > { %v1946_v58 = vmul.f32 1.442695, %v1945_v57 }
 0xdcf   : > { %15381 = vpow2.f32 %v1946_v58 }
 0xdd9   : > { %v15382_v59 = vpop.eup %15381 }
 0xdda   : > { %v1948_v60 = vsel %vm441_vm2, %v15382_v59, 0.0 }
 0xddb   : > { %1949 = vadd.xlane.f32.xlu1 %v1948_v60 }
 0xe68   : > { %v1950_v4 = vpop.xlane.xlu1 %1949 }
 0xe69   : > { %15383 = vrcp.f32 %v1950_v4  ;;  %v2477_v4 = vld [vmem:[#allocation2 + $0x338] sm:$0xff] }
 0xe73   : > { %v15384_v5 = vpop.eup %15383 }
 0xe74   : > { %v1952_v6 = vmul.f32 %v15384_v5, %v15382_v59  ;;  %v14907_v5 = vpack.c.bf16 %v2477_v4, %v2476_v3  ;;  %v2876_v3 = vld [vmem:[#allocation2 + $0x2e0] sm:$0xff]  ;;  %v2877_v4 = vld [vmem:[#allocation2 + $0x2e8] sm:$0xff] }
 0xe76   : > { %13706 = vmatmul.mubr.msk.f32.vlgmr.msra.gmra.mrb[22].mxu0 %vm441_vm2, %v1952_v6  ;;  %v2317_v6 = vld [vmem:[#allocation2 + $0x240] sm:$0xff] }
 0xe77   : > { %13721 = vmatprep.mubr.msk.f32.mxu0 %vm15586_vm0, %v15587_v1  ;;  %14878 = vmatpush3.bf16.msra.mxu0 %v14877_v22 }
 0xe78   : > { %14879 = vmatprep.subr.bf16.mxu0 %v15585_v0 }
 0xe7b   : > { %14881 = vmatpush3.bf16.msra.mxu0 %v14880_v25  ;;  %v14904_v25 = vpack.c.bf16 %v2400_v24, %v2399_v23 }
 0xe7c   : > { %14894 = vmatprep.subr.bf16.mxu0 %v15585_v0 }
 0xf49   : > { %v2022_v7 = vpop.f32.mrb[22].mxu0 }
 0xf4a   : > { %v13707_v8 = vpop.f32.mrb[23].mxu0  ;;  %13711 = vmatmul.mubr.msk.f32.vlgmr.msra.gmra.mrb[22].mxu1 %vm441_vm2, %v2022_v7  ;;  %v2318_v7 = vld [vmem:[#allocation2 + $0x248] sm:$0xff] }
 0xf4b   : > { %13740 = vmatprep.mubr.msk.f32.mxu1 %vm15586_vm0, %v15587_v1  ;;  %v14898_v8 = vpack.c.bf16 %v2318_v7, %v2317_v6  ;;  %v14922_v7 = vpack.c.bf16 %v2877_v4, %v2876_v3  ;;  %v12750_v3 = vld [vmem:[#allocation2 + $0x3b6] ss:$0 sm:$0xff] }
0x101d   : > { %v2096_v9 = vpop.f32.mrb[22].mxu1 }
0x101e   : > { %v2100_v10 = vadd.f32 %v2096_v9, %v1627_v38  ;;  %v13712_v11 = vpop.f32.mrb[23].mxu1  ;;  %v12721_v38 = vld [vmem:[#allocation2 + $0x1b8] ss:$0 sm:$0xff]  ;;  %v2478_v9 = vld [vmem:[#allocation2 + $0x340] sm:$0xff] }
0x1020   : > { %v2101_v12 = vadd.f32 %v2100_v10, %v15710_v14  ;;  %v2211_v14 = vld [vmem:[#allocation2 + $0x1e8] sm:$0xff] }
0x1021   : > { %v14883_v28 = vpack.c.bf16 %v2212_v26, %v2211_v14  ;;  %v2479_v10 = vld [vmem:[#allocation2 + $0x348] sm:$0xff]  ;;  %v12731_v14 = vld [vmem:[#allocation2 + $0x3b8] ss:$0 sm:$0xff] }
0x1022   : > { %v2104_v13 = vsel %vm209_vm1, %v2101_v12, 0.0  ;;  %v14910_v11 = vpack.c.bf16 %v2479_v10, %v2478_v9 }
0x1023   : > { %2105 = vadd.xlane.f32.xlu0 %v2104_v13  ;;  %14884 = vmatpush3.bf16.msra.mxu1 %v14883_v28 }
0x1024   : > { %14885 = vmatprep.subr.bf16.mxu1 %v15585_v0 }
0x1027   : > { %14887 = vmatpush3.bf16.msra.mxu1 %v14886_v30 }
0x1028   : > { %14888 = vmatprep.subr.bf16.mxu1 %v15585_v0 }
0x102b   : > { %14890 = vmatpush3.bf16.msra.mxu1 %v14889_v33  ;;  %v12727_v33 = vld [vmem:[#allocation2 + $0x3b0] ss:$0 sm:$0xff] }
0x102c   : > { %14891 = vmatprep.subr.bf16.mxu1 %v15585_v0 }
0x102f   : > { %14893 = vmatpush3.bf16.msra.mxu1 %v14892_v45 }
0x1030   : > { %14906 = vmatprep.subr.bf16.mxu1 %v15585_v0 }
0x10b0   : > { %v2106_v15 = vpop.xlane.xlu0 %2105 }
0x10b1   : > { %v2108_v16 = vmul.f32 0.03125, %v2106_v15 }
0x10b3   : > { %v2109_v17 = vsub.f32 %v2101_v12, %v2108_v16 }
0x10b5   : > { %v2110_v18 = vmul.f32 %v2109_v17, %v2109_v17 }
0x10b7   : > { %v2111_v19 = vsel %vm209_vm1, %v2110_v18, 0.0  ;;  %v2397_v18 = vld [vmem:[#allocation2 + $0x2b0] sm:$0xff] }
0x10b8   : > { %2112 = vadd.xlane.f32.xlu1 %v2111_v19  ;;  %v2398_v19 = vld [vmem:[#allocation2 + $0x2b8] sm:$0xff] }
0x10b9   : > { %v14901_v21 = vpack.c.bf16 %v2398_v19, %v2397_v18 }
0x1145   : > { %v2113_v34 = vpop.xlane.xlu1 %2112 }
0x1146   : > { %v2114_v35 = vmul.f32 0.03125, %v2113_v34 }
0x1148   : > { %v2115_v36 = vadd.f32 1e-05, %v2114_v35 }
0x114a   : > { %15385 = vrsqrt.f32 %v2115_v36 }
0x1154   : > { %v15386_v37 = vpop.eup %15385 }
0x1155   : > { %v2117_v39 = vmul.f32 %v15386_v37, %v2109_v17 }
0x1157   : > { %v2122_v41 = vmul.f32 %v12721_v38, %v2117_v39 }
0x1159   : > { %v2127_v42 = vadd.f32 %v12722_v40, %v2122_v41 }
0x115b   : > { %13722 = vmatmul.mubr.msk.f32.vlgmr.msra.gmra.mrb[24].mxu0 %vm209_vm1, %v2127_v42 }
0x115c   : > { %13751 = vmatprep.mubr.msk.f32.mxu0 %vm15586_vm0, %v15587_v1  ;;  %14896 = vmatpush3.bf16.msra.mxu0 %v14895_v2  ;;  %v14919_v2 = vpack.c.bf16 %v2875_v63, %v2874_v62 }
0x115d   : > { %14897 = vmatprep.subr.bf16.mxu0 %v15585_v0 }
0x1160   : > { %14899 = vmatpush3.bf16.msra.mxu0 %v14898_v8 }
0x1161   : > { %14900 = vmatprep.subr.bf16.mxu0 %v15585_v0 }
0x122e   : > { %v2206_v47 = vpop.f32.mrb[24].mxu0 }
0x122f   : > { %v2207_v48 = vadd.f32 %v12723_v46, %v2206_v47  ;;  %v13723_v49 = vpop.f32.mrb[25].mxu0  ;;  %v2716_v46 = vld [vmem:[#allocation2 + $0x3c0] sm:$0xff] }
0x1230   : > { %v2796_v49 = vld [vmem:[#allocation2 + $0x258] sm:$0xff] }
0x1231   : > { %v2210_v50 = vmax.f32 %v2207_v48, 0.0  ;;  %v2795_v48 = vld [vmem:[#allocation2 + $0x250] sm:$0xff] }
0x1233   : > { %13741 = vmatmul.mubr.msk.f32.vlgmr.msra.gmra.mrb[24].mxu1 %vm2224_vm3, %v2210_v50 }
0x1234   : > { %13773 = vmatprep.mubr.msk.f32.mxu1 %vm15586_vm0, %v15587_v1  ;;  %14908 = vmatpush3.bf16.msra.mxu1 %v14907_v5 }
0x1235   : > { %14909 = vmatprep.subr.bf16.mxu1 %v15585_v0 }
0x1238   : > { %14911 = vmatpush3.bf16.msra.mxu1 %v14910_v11 }
0x1239   : > { %13781 = vmatprep.subr.mxu1 %v15587_v1 }
0x1306   : > { %v2294_v52 = vpop.f32.mrb[24].mxu1 }
0x1307   : > { %v2295_v53 = vadd.f32 %v12725_v51, %v2294_v52  ;;  %v13742_v54 = vpop.f32.mrb[25].mxu1  ;;  %v14913_v51 = vpack.c.bf16 %v2796_v49, %v2795_v48  ;;  %v3347_v48 = vld [vmem:[#allocation2 + $0x2f0] sm:$0xff]  ;;  %v3348_v49 = vld [vmem:[#allocation2 + $0x2f8] sm:$0xff] }
0x1308   : > { %v2798_v54 = vld [vmem:[#allocation2 + $0x268] sm:$0xff] }
0x1309   : > { %v2298_v55 = vadd.f32 %v2295_v53, %v2127_v42  ;;  %v2797_v53 = vld [vmem:[#allocation2 + $0x260] sm:$0xff] }
0x130b   : > { %v2299_v56 = vsel %vm209_vm1, %v2298_v55, 0.0 }
0x130c   : > { %2300 = vadd.xlane.f32.xlu0 %v2299_v56  ;;  %v2953_v56 = vld [vmem:[#allocation2 + $0x350] sm:$0xff] }
0x1399   : > { %v2301_v57 = vpop.xlane.xlu0 %2300 }
0x139a   : > { %v2302_v58 = vmul.f32 0.03125, %v2301_v57  ;;  %v2954_v57 = vld [vmem:[#allocation2 + $0x358] sm:$0xff] }
0x139c   : > { %v2303_v59 = vsub.f32 %v2298_v55, %v2302_v58  ;;  %v14916_v55 = vpack.c.bf16 %v2798_v54, %v2797_v53  ;;  %v14925_v58 = vpack.c.bf16 %v2954_v57, %v2953_v56 }
0x139e   : > { %v2304_v60 = vmul.f32 %v2303_v59, %v2303_v59 }
0x13a0   : > { %v2305_v61 = vsel %vm209_vm1, %v2304_v60, 0.0  ;;  %v2956_v60 = vld [vmem:[#allocation2 + $0x368] sm:$0xff] }
0x13a1   : > { %2306 = vadd.xlane.f32.xlu1 %v2305_v61 }
0x142e   : > { %v2307_v12 = vpop.xlane.xlu1 %2306 }
0x142f   : > { %v2308_v13 = vmul.f32 0.03125, %v2307_v12 }
0x1431   : > { %v2309_v15 = vadd.f32 1e-05, %v2308_v13 }
0x1433   : > { %15387 = vrsqrt.f32 %v2309_v15  ;;  %v12740_v15 = vld [vmem:[#allocation2 + $0x3b5] ss:$0 sm:$0xff] }
0x143d   : > { %v15388_v16 = vpop.eup %15387 }
0x143e   : > { %v2311_v17 = vmul.f32 %v15388_v16, %v2303_v59  ;;  %v2955_v59 = vld [vmem:[#allocation2 + $0x360] sm:$0xff] }
0x143f   : > { %v14928_v61 = vpack.c.bf16 %v2956_v60, %v2955_v59  ;;  %v12737_v60 = vld [vmem:[#allocation2 + $0x3e0] ss:$0 sm:$0xff] }
0x1440   : > { %v2312_v20 = vmul.f32 %v12721_v38, %v2311_v17  ;;  %v12738_v17 = vld [vmem:[#allocation2 + $0x3b1] ss:$0 sm:$0xff] }
0x1442   : > { %v15869_v22 = vadd.f32 %v12722_v40, %v2312_v20  ;;  %v12742_v20 = vld [vmem:[#allocation2 + $0x3b9] ss:$0 sm:$0xff] }
0x1444   : > { %13752 = vmatmul.mubr.msk.f32.vlgmr.msra.gmra.mrb[26].mxu0 %vm209_vm1, %v15869_v22  ;;  %13774 = vmatmul.mubr.msk.f32.vlgmr.msra.gmra.mrb[26].mxu1 %vm209_vm1, %v15869_v22 }
0x1445   : > { %14902 = vmatpush3.bf16.msra.mxu0 %v14901_v21  ;;  %13762 = vmatprep.mubr.msk.f32.mxu0 %vm15586_vm0, %v15587_v1 }
0x1446   : > { %14903 = vmatprep.subr.bf16.mxu0 %v15585_v0  ;;  %13783 = vmatprep.mubr.msk.f32.mxu1 %vm15586_vm0, %v15587_v1 }
0x1449   : > { %14905 = vmatpush3.bf16.msra.mxu0 %v14904_v25 }
0x144a   : > { %13776 = vmatprep.subr.mxu0 %v15587_v1 }
0x144c   : > { %13763 = vmatmul.mubr.msk.f32.vlgmr.msra.gmra.mrb[28].mxu0 %vm209_vm1, %v15869_v22 }
0x144d   : > { %13778 = vmatprep.mubr.msk.f32.mxu0 %vm15586_vm0, %v15587_v1 }
0x1517   : > { %v2393_v26 = vpop.f32.mrb[26].mxu0  ;;  %v2551_v27 = vpop.f32.mrb[26].mxu1 }
0x1518   : > { %v2552_v28 = vadd.f32 %v12731_v14, %v2551_v27  ;;  %v13753_v29 = vpop.f32.mrb[27].mxu0  ;;  %v13775_v30 = vpop.f32.mrb[27].mxu1  ;;  %v2394_v36 = vadd.f32 %v12727_v33, %v2393_v26 }
0x151a   : > { %13782 = vmatpush3.msra.mxu1 %v2552_v28 }
0x151b   : > { %14912 = vmatprep.subr.bf16.mxu1 %v15585_v0 }
0x151f   : > { %v2472_v32 = vpop.f32.mrb[28].mxu0 }
0x1520   : > { %v2473_v34 = vadd.f32 %v12729_v31, %v2472_v32  ;;  %v13764_v35 = vpop.f32.mrb[29].mxu0  ;;  %v3193_v32 = vld [vmem:[#allocation2 + $0x3c8] sm:$0xff] }
0x1521   : > { %v3269_v35 = vld [vmem:[#allocation2 + $0x278] sm:$0xff] }
0x1522   : > { %13777 = vmatpush3.xpose.msk.msra.mxu0 %vm441_vm2, %v2473_v34  ;;  %v3268_v34 = vld [vmem:[#allocation2 + $0x270] sm:$0xff] }
0x1523   : > { %13786 = vmatprep.subr.mxu0 %v15587_v1 }
0x1525   : > { %13779 = vmatmul.mubr.msk.f32.vlgmr.msra.gmra.mrb[30].mxu0 %vm441_vm2, %v2394_v36 }
0x1526   : > { %13788 = vmatprep.mubr.msk.f32.mxu0 %vm15586_vm0, %v15587_v1  ;;  %13787 = vmatpush3.msra.mxu0 %v2716_v46  ;;  %v3429_v46 = vld [vmem:[#allocation2 + $0x388] sm:$0xff] }
0x1527   : > { %14918 = vmatprep.subr.bf16.mxu0 %v15585_v0 }
0x15f8   : > { %v2627_v37 = vpop.f32.mrb[30].mxu0 }
0x15f9   : > { %v2631_v38 = vmul.f32 0.35355338, %v2627_v37  ;;  %v13780_v39 = vpop.f32.mrb[31].mxu0  ;;  %v14931_v37 = vpack.c.bf16 %v3269_v35, %v3268_v34  ;;  %v3901_v34 = vld [vmem:[#allocation2 + $0x3a0] sm:$0xff]  ;;  %v3902_v35 = vld [vmem:[#allocation2 + $0x3a8] sm:$0xff] }
0x15fa   : > { %v3270_v39 = vld [vmem:[#allocation2 + $0x280] sm:$0xff] }
0x15fb   : > { %v2632_v40 = vsel %vm441_vm2, %v2631_v38, -inf }
0x15fc   : > { %2633 = vmax.xlane.f32.xlu0 %v2632_v40  ;;  %v3271_v40 = vld [vmem:[#allocation2 + $0x288] sm:$0xff] }
0x1689   : > { %v2634_v41 = vpop.xlane.xlu0 %2633 }
0x168a   : > { %v2635_v42 = vsub.f32 %v2631_v38, %v2634_v41  ;;  %v14934_v41 = vpack.c.bf16 %v3271_v40, %v3270_v39  ;;  %v3822_v40 = vld [vmem:[#allocation2 + $0x320] sm:$0xff] }
0x168c   : > { %v2636_v43 = vmul.f32 1.442695, %v2635_v42  ;;  %v3426_v42 = vld [vmem:[#allocation2 + $0x370] sm:$0xff] }
0x168e   : > { %15389 = vpow2.f32 %v2636_v43  ;;  %v3427_v43 = vld [vmem:[#allocation2 + $0x378] sm:$0xff] }
0x1698   : > { %v15390_v44 = vpop.eup %15389 }
0x1699   : > { %v2638_v45 = vsel %vm441_vm2, %v15390_v44, 0.0 }
0x169a   : > { %2639 = vadd.xlane.f32.xlu1 %v2638_v45  ;;  %v3428_v45 = vld [vmem:[#allocation2 + $0x380] sm:$0xff] }
0x1727   : > { %v2640_v47 = vpop.xlane.xlu1 %2639 }
0x1728   : > { %15391 = vrcp.f32 %v2640_v47  ;;  %v14946_v47 = vpack.c.bf16 %v3429_v46, %v3428_v45 }
0x1732   : > { %v15392_v50 = vpop.eup %15391 }
0x1733   : > { %v2642_v52 = vmul.f32 %v15392_v50, %v15390_v44  ;;  %v14943_v44 = vpack.c.bf16 %v3427_v43, %v3426_v42  ;;  %v14937_v50 = vpack.c.bf16 %v3348_v49, %v3347_v48 }
0x1735   : > { %13784 = vmatmul.mubr.msk.f32.vlgmr.msra.gmra.mrb[28].mxu1 %vm441_vm2, %v2642_v52  ;;  %v3350_v52 = vld [vmem:[#allocation2 + $0x308] sm:$0xff] }
0x1736   : > { %14914 = vmatpush3.bf16.msra.mxu1 %v14913_v51  ;;  %13799 = vmatprep.mubr.msk.f32.mxu1 %vm15586_vm0, %v15587_v1  ;;  %v3349_v51 = vld [vmem:[#allocation2 + $0x300] sm:$0xff] }
0x1737   : > { %14915 = vmatprep.subr.bf16.mxu1 %v15585_v0 }
0x173a   : > { %14917 = vmatpush3.bf16.msra.mxu1 %v14916_v55  ;;  %v14940_v55 = vpack.c.bf16 %v3350_v52, %v3349_v51  ;;  %v12760_v52 = vld [vmem:[#allocation2 + $0x3b7] ss:$0 sm:$0xff] }
0x173b   : > { %14924 = vmatprep.subr.bf16.mxu1 %v15585_v0 }
0x173d   : > { %13800 = vmatmul.mubr.msk.f32.vlgmr.msra.gmra.mrb[30].mxu1 %vm209_vm1, %v15869_v22 }
0x173e   : > { %14926 = vmatpush3.bf16.msra.mxu1 %v14925_v58  ;;  %13821 = vmatprep.mubr.msk.f32.mxu1 %vm15586_vm0, %v15587_v1 }
0x173f   : > { %14927 = vmatprep.subr.bf16.mxu1 %v15585_v0 }
0x1742   : > { %14929 = vmatpush3.bf16.msra.mxu1 %v14928_v61 }
0x1743   : > { %13834 = vmatprep.subr.mxu1 %v15587_v1 }
0x1745   : > { %13822 = vmatmul.mubr.msk.f32.vlgmr.msra.gmra.mrb[32].mxu1 %vm209_vm1, %v15869_v22 }
0x1746   : > { %13836 = vmatprep.mubr.msk.f32.mxu1 %vm15586_vm0, %v15587_v1  ;;  %13835 = vmatpush3.msra.mxu1 %v3193_v32  ;;  %v3900_v32 = vld [vmem:[#allocation2 + $0x398] sm:$0xff] }
0x1747   : > { %14936 = vmatprep.subr.bf16.mxu1 %v15585_v0 }
0x1808   : > { %v2712_v5 = vpop.f32.mrb[28].mxu1 }
0x1809   : > { %v13785_v6 = vpop.f32.mrb[29].mxu1  ;;  %13789 = vmatmul.mubr.msk.f32.vlgmr.msra.gmra.mrb[32].mxu0 %vm441_vm2, %v2712_v5  ;;  %v12748_v5 = vld [vmem:[#allocation2 + $0x3b2] ss:$0 sm:$0xff] }
0x180a   : > { %14920 = vmatpush3.bf16.msra.mxu0 %v14919_v2  ;;  %13810 = vmatprep.mubr.msk.f32.mxu0 %vm15586_vm0, %v15587_v1 }
0x180b   : > { %14921 = vmatprep.subr.bf16.mxu0 %v15585_v0 }
0x180e   : > { %14923 = vmatpush3.bf16.msra.mxu0 %v14922_v7 }
0x180f   : > { %13824 = vmatprep.subr.mxu0 %v15587_v1 }
0x1810   : > { %v2870_v8 = vpop.f32.mrb[30].mxu1 }
0x1811   : > { %v13801_v9 = vpop.f32.mrb[31].mxu1  ;;  %13811 = vmatmul.mubr.msk.f32.vlgmr.msra.gmra.mrb[34].mxu0 %vm209_vm1, %v15869_v22  ;;  %v2871_v21 = vadd.f32 %v12738_v17, %v2870_v8  ;;  %v12752_v8 = vld [vmem:[#allocation2 + $0x3ba] ss:$0 sm:$0xff] }
0x1812   : > { %13826 = vmatprep.mubr.msk.f32.mxu0 %vm15586_vm0, %v15587_v1 }
0x1818   : > { %v3028_v10 = vpop.f32.mrb[32].mxu1 }
0x1819   : > { %v13823_v11 = vpop.f32.mrb[33].mxu1  ;;  %v3029_v23 = vadd.f32 %v12742_v20, %v3028_v10 }
0x18dc   : > { %v15918_v12 = vpop.f32.mrb[32].mxu0 }
0x18dd   : > { %v13790_v13 = vpop.f32.mrb[33].mxu0  ;;  %v2794_v61 = vadd.f32 %v12737_v60, %v15918_v12 }
0x18e4   : > { %v2949_v16 = vpop.f32.mrb[34].mxu0 }
0x18e5   : > { %v2950_v18 = vadd.f32 %v12740_v15, %v2949_v16  ;;  %v13812_v19 = vpop.f32.mrb[35].mxu0 }
0x18e7   : > { %13825 = vmatpush3.xpose.msk.msra.mxu0 %vm441_vm2, %v2950_v18 }
0x18e8   : > { %13829 = vmatprep.subr.mxu0 %v15587_v1 }
0x18ea   : > { %13827 = vmatmul.mubr.msk.f32.vlgmr.msra.gmra.mrb[36].mxu0 %vm441_vm2, %v2871_v21  ;;  %v3666_v21 = vld [vmem:[#allocation2 + $0x3d0] sm:$0xff] }
0x18eb   : > { %13830 = vmatpush3.msra.mxu0 %v3029_v23  ;;  %13831 = vmatprep.mubr.msk.f32.mxu0 %vm15586_vm0, %v15587_v1 }
0x18ec   : > { %14930 = vmatprep.subr.bf16.mxu0 %v15585_v0 }
0x19bd   : > { %v3104_v24 = vpop.f32.mrb[36].mxu0 }
0x19be   : > { %v3108_v25 = vmul.f32 0.35355338, %v3104_v24  ;;  %v13828_v14 = vpop.f32.mrb[37].mxu0  ;;  %v3741_v24 = vld [vmem:[#allocation2 + $0x290] sm:$0xff] }
0x19c0   : > { %v3109_v26 = vsel %vm441_vm2, %v3108_v25, -inf }
0x19c1   : > { %3110 = vmax.xlane.f32.xlu0 %v3109_v26 }
0x1a4e   : > { %v3111_v27 = vpop.xlane.xlu0 %3110 }
0x1a4f   : > { %v3112_v28 = vsub.f32 %v3108_v25, %v3111_v27  ;;  %v3742_v25 = vld [vmem:[#allocation2 + $0x298] sm:$0xff] }
0x1a50   : > { %v14949_v26 = vpack.c.bf16 %v3742_v25, %v3741_v24  ;;  %v4240_v25 = vld [vmem:[#allocation2 + $0x3f0] sm:$0xff] }
0x1a51   : > { %v3113_v29 = vmul.f32 1.442695, %v3112_v28  ;;  %v3743_v28 = vld [vmem:[#allocation2 + $0x2a0] sm:$0xff] }
0x1a53   : > { %15393 = vpow2.f32 %v3113_v29  ;;  %v3744_v29 = vld [vmem:[#allocation2 + $0x2a8] sm:$0xff] }
0x1a5d   : > { %v15394_v30 = vpop.eup %15393 }
0x1a5e   : > { %v3115_v31 = vsel %vm441_vm2, %v15394_v30, 0.0 }
0x1a5f   : > { %3116 = vadd.xlane.f32.xlu1 %v3115_v31  ;;  %v3899_v31 = vld [vmem:[#allocation2 + $0x390] sm:$0xff] }
0x1aec   : > { %v3117_v33 = vpop.xlane.xlu1 %3116 }
0x1aed   : > { %15395 = vrcp.f32 %v3117_v33  ;;  %v14961_v33 = vpack.c.bf16 %v3900_v32, %v3899_v31  ;;  %v4325_v31 = vld [vmem:[#allocation2 + $0x428] sm:$0xff] }
0x1af7   : > { %v15396_v36 = vpop.eup %15395 }
0x1af8   : > { %v3119_v38 = vmul.f32 %v15396_v36, %v15394_v30  ;;  %v14952_v30 = vpack.c.bf16 %v3744_v29, %v3743_v28  ;;  %v14964_v36 = vpack.c.bf16 %v3902_v35, %v3901_v34  ;;  %v4243_v28 = vld [vmem:[#allocation2 + $0x408] sm:$0xff]  ;;  %v4327_v35 = vld [vmem:[#allocation2 + $0x438] sm:$0xff] }
0x1afa   : > { %13832 = vmatmul.mubr.msk.f32.vlgmr.msra.gmra.mrb[38].mxu0 %vm441_vm2, %v3119_v38  ;;  %v3821_v38 = vld [vmem:[#allocation2 + $0x318] sm:$0xff] }
0x1afb   : > { %14932 = vmatpush3.bf16.msra.mxu0 %v14931_v37  ;;  %13847 = vmatprep.mubr.msk.f32.mxu0 %vm15586_vm0, %v15587_v1  ;;  %v3820_v37 = vld [vmem:[#allocation2 + $0x310] sm:$0xff] }
0x1afc   : > { %14933 = vmatprep.subr.bf16.mxu0 %v15585_v0  ;;  %v14955_v39 = vpack.c.bf16 %v3821_v38, %v3820_v37 }
0x1aff   : > { %14935 = vmatpush3.bf16.msra.mxu0 %v14934_v41  ;;  %v3823_v41 = vld [vmem:[#allocation2 + $0x328] sm:$0xff] }
0x1b00   : > { %14942 = vmatprep.subr.bf16.mxu0 %v15585_v0 }
0x1b02   : > { %13848 = vmatmul.mubr.msk.f32.vlgmr.msra.gmra.mrb[40].mxu0 %vm209_vm1, %v15869_v22 }
0x1b03   : > { %14944 = vmatpush3.bf16.msra.mxu0 %v14943_v44  ;;  %13869 = vmatprep.mubr.msk.f32.mxu0 %vm15586_vm0, %v15587_v1  ;;  %v14958_v44 = vpack.c.bf16 %v3823_v41, %v3822_v40 }
0x1b04   : > { %14945 = vmatprep.subr.bf16.mxu0 %v15585_v0 }
0x1b07   : > { %14947 = vmatpush3.bf16.msra.mxu0 %v14946_v47 }
0x1b08   : > { %13882 = vmatprep.subr.mxu0 %v15587_v1 }
0x1b0a   : > { %13870 = vmatmul.mubr.msk.f32.vlgmr.msra.gmra.mrb[42].mxu0 %vm209_vm1, %v15869_v22 }
0x1b0b   : > { %13884 = vmatprep.mubr.msk.f32.mxu0 %vm15586_vm0, %v15587_v1  ;;  %13883 = vmatpush3.msra.mxu0 %v3666_v21 }
0x1b0c   : > { %14954 = vmatprep.subr.bf16.mxu0 %v15585_v0 }
0x1bcd   : > { %v3189_v53 = vpop.f32.mrb[38].mxu0 }
0x1bce   : > { %v13833_v54 = vpop.f32.mrb[39].mxu0  ;;  %13837 = vmatmul.mubr.msk.f32.vlgmr.msra.gmra.mrb[34].mxu1 %vm441_vm2, %v3189_v53 }
0x1bcf   : > { %14938 = vmatpush3.bf16.msra.mxu1 %v14937_v50  ;;  %13858 = vmatprep.mubr.msk.f32.mxu1 %vm15586_vm0, %v15587_v1  ;;  %v12758_v54 = vld [vmem:[#allocation2 + $0x3b3] ss:$0 sm:$0xff] }
0x1bd0   : > { %14939 = vmatprep.subr.bf16.mxu1 %v15585_v0 }
0x1bd3   : > { %14941 = vmatpush3.bf16.msra.mxu1 %v14940_v55 }
0x1bd4   : > { %13872 = vmatprep.subr.mxu1 %v15587_v1 }
0x1bd5   : > { %v3343_v56 = vpop.f32.mrb[40].mxu0 }
0x1bd6   : > { %v13849_v57 = vpop.f32.mrb[41].mxu0  ;;  %13859 = vmatmul.mubr.msk.f32.vlgmr.msra.gmra.mrb[36].mxu1 %vm209_vm1, %v15869_v22  ;;  %v3344_v9 = vadd.f32 %v12748_v5, %v3343_v56 }
0x1bd7   : > { %13874 = vmatprep.mubr.msk.f32.mxu1 %vm15586_vm0, %v15587_v1  ;;  %v12762_v57 = vld [vmem:[#allocation2 + $0x3bb] ss:$0 sm:$0xff] }
0x1bdd   : > { %v3501_v58 = vpop.f32.mrb[42].mxu0 }
0x1bde   : > { %v13871_v59 = vpop.f32.mrb[43].mxu0  ;;  %v3502_v10 = vadd.f32 %v12752_v8, %v3501_v58 }
0x1ca1   : > { %v3263_v62 = vpop.f32.mrb[34].mxu1 }
0x1ca2   : > { %v15954_v63 = vadd.f32 %v3263_v62, %v2794_v61  ;;  %v13838_v2 = vpop.f32.mrb[35].mxu1 }
0x1ca9   : > { %v3422_v4 = vpop.f32.mrb[36].mxu1 }
0x1caa   : > { %v3423_v6 = vadd.f32 %v12750_v3, %v3422_v4  ;;  %v13860_v7 = vpop.f32.mrb[37].mxu1 }
0x1cab   : > { %v4139_v7 = vld [vmem:[#allocation2 + $0x3d8] sm:$0xff] }
0x1cac   : > { %13873 = vmatpush3.xpose.msk.msra.mxu1 %vm441_vm2, %v3423_v6 }
0x1cad   : > { %13877 = vmatprep.subr.mxu1 %v15587_v1 }
0x1caf   : > { %13875 = vmatmul.mubr.msk.f32.vlgmr.msra.gmra.mrb[38].mxu1 %vm441_vm2, %v3344_v9 }
0x1cb0   : > { %13878 = vmatpush3.msra.mxu1 %v3502_v10  ;;  %13879 = vmatprep.mubr.msk.f32.mxu1 %vm15586_vm0, %v15587_v1 }
0x1cb1   : > { %14948 = vmatprep.subr.bf16.mxu1 %v15585_v0 }
0x1d82   : > { %v3577_v11 = vpop.f32.mrb[38].mxu1 }
0x1d83   : > { %v3581_v12 = vmul.f32 0.35355338, %v3577_v11  ;;  %v13876_v13 = vpop.f32.mrb[39].mxu1 }
0x1d85   : > { %v3582_v15 = vsel %vm441_vm2, %v3581_v12, -inf }
0x1d86   : > { %3583 = vmax.xlane.f32.xlu0 %v3582_v15 }
0x1e13   : > { %v3584_v16 = vpop.xlane.xlu0 %3583 }
0x1e14   : > { %v3585_v17 = vsub.f32 %v3581_v12, %v3584_v16 }
0x1e16   : > { %v3586_v18 = vmul.f32 1.442695, %v3585_v17 }
0x1e18   : > { %15397 = vpow2.f32 %v3586_v18 }
0x1e22   : > { %v15398_v19 = vpop.eup %15397 }
0x1e23   : > { %v3588_v20 = vsel %vm441_vm2, %v15398_v19, 0.0 }
0x1e24   : > { %3589 = vadd.xlane.f32.xlu1 %v3588_v20 }
0x1eb1   : > { %v3590_v23 = vpop.xlane.xlu1 %3589 }
0x1eb2   : > { %15399 = vrcp.f32 %v3590_v23 }
0x1ebc   : > { %v15400_v14 = vpop.eup %15399 }
0x1ebd   : > { %v3592_v27 = vmul.f32 %v15400_v14, %v15398_v19  ;;  %v4241_v14 = vld [vmem:[#allocation2 + $0x3f8] sm:$0xff] }
0x1ebf   : > { %13880 = vmatmul.mubr.msk.f32.vlgmr.msra.gmra.mrb[40].mxu1 %vm441_vm2, %v3592_v27  ;;  %v4242_v27 = vld [vmem:[#allocation2 + $0x400] sm:$0xff] }
0x1ec0   : > { %14950 = vmatpush3.bf16.msra.mxu1 %v14949_v26  ;;  %13895 = vmatprep.mubr.msk.f32.mxu1 %vm15586_vm0, %v15587_v1  ;;  %v14967_v26 = vpack.c.bf16 %v4241_v14, %v4240_v25  ;;  %v14970_v29 = vpack.c.bf16 %v4243_v28, %v4242_v27 }
0x1ec1   : > { %14951 = vmatprep.subr.bf16.mxu1 %v15585_v0 }
0x1ec4   : > { %14953 = vmatpush3.bf16.msra.mxu1 %v14952_v30  ;;  %v4324_v30 = vld [vmem:[#allocation2 + $0x420] sm:$0xff] }
0x1ec5   : > { %14960 = vmatprep.subr.bf16.mxu1 %v15585_v0 }
0x1ec7   : > { %13896 = vmatmul.mubr.msk.f32.vlgmr.msra.gmra.mrb[42].mxu1 %vm209_vm1, %v15869_v22 }
0x1ec8   : > { %14962 = vmatpush3.bf16.msra.mxu1 %v14961_v33  ;;  %13917 = vmatprep.mubr.msk.f32.mxu1 %vm15586_vm0, %v15587_v1  ;;  %v4326_v33 = vld [vmem:[#allocation2 + $0x430] sm:$0xff] }
0x1ec9   : > { %14963 = vmatprep.subr.bf16.mxu1 %v15585_v0  ;;  %v14976_v34 = vpack.c.bf16 %v4326_v33, %v4325_v31 }
0x1ecc   : > { %14965 = vmatpush3.bf16.msra.mxu1 %v14964_v36  ;;  %v4328_v36 = vld [vmem:[#allocation2 + $0x440] sm:$0xff] }
0x1ecd   : > { %13930 = vmatprep.subr.mxu1 %v15587_v1  ;;  %v14979_v37 = vpack.c.bf16 %v4328_v36, %v4327_v35 }
0x1ecf   : > { %13918 = vmatmul.mubr.msk.f32.vlgmr.msra.gmra.mrb[44].mxu1 %vm209_vm1, %v15869_v22 }
0x1ed0   : > { %13932 = vmatprep.mubr.msk.f32.mxu1 %vm15586_vm0, %v15587_v1  ;;  %13931 = vmatpush3.msra.mxu1 %v4139_v7 }
0x1ed1   : > { %14972 = vmatprep.subr.bf16.mxu1 %v15585_v0 }
0x1f92   : > { %v3662_v42 = vpop.f32.mrb[40].mxu1 }
0x1f93   : > { %v13881_v43 = vpop.f32.mrb[41].mxu1  ;;  %13885 = vmatmul.mubr.msk.f32.vlgmr.msra.gmra.mrb[44].mxu0 %vm441_vm2, %v3662_v42  ;;  %v16013_v42 = vld [vmem:[#allocation2 + $0x3e8] ss:$0 sm:$0xff] }
0x1f94   : > { %14956 = vmatpush3.bf16.msra.mxu0 %v14955_v39  ;;  %13906 = vmatprep.mubr.msk.f32.mxu0 %vm15586_vm0, %v15587_v1 }
0x1f95   : > { %14957 = vmatprep.subr.bf16.mxu0 %v15585_v0 }
0x1f98   : > { %14959 = vmatpush3.bf16.msra.mxu0 %v14958_v44  ;;  %v4433_v44 = vld [vmem:[#allocation2 + $0x460] sm:$0xff] }
0x1f99   : > { %13920 = vmatprep.subr.mxu0 %v15587_v1 }
0x1f9a   : > { %v3816_v45 = vpop.f32.mrb[42].mxu1 }
0x1f9b   : > { %v13897_v46 = vpop.f32.mrb[43].mxu1  ;;  %13907 = vmatmul.mubr.msk.f32.vlgmr.msra.gmra.mrb[46].mxu0 %vm209_vm1, %v15869_v22  ;;  %v3817_v58 = vadd.f32 %v12758_v54, %v3816_v45  ;;  %v4434_v45 = vld [vmem:[#allocation2 + $0x468] sm:$0xff] }
0x1f9c   : > { %13922 = vmatprep.mubr.msk.f32.mxu0 %vm15586_vm0, %v15587_v1  ;;  %v16015_v46 = vld [vmem:[#allocation2 + $0x3e9] ss:$0 sm:$0xff] }
0x1f9d   : > { %v4516_v54 = vld [vmem:[#allocation2 + $0x4e8] sm:$0xff] }
0x1fa2   : > { %v3974_v47 = vpop.f32.mrb[44].mxu1 }
0x1fa3   : > { %v13919_v48 = vpop.f32.mrb[45].mxu1  ;;  %v3975_v59 = vadd.f32 %v12762_v57, %v3974_v47  ;;  %v4517_v57 = vld [vmem:[#allocation2 + $0x4f0] sm:$0xff] }
0x1fa4   : > { %v14985_v48 = vpack.c.bf16 %v4434_v45, %v4433_v44  ;;  %v4914_v45 = vld [vmem:[#allocation2 + $0x480] sm:$0xff] }
0x2066   : > { %v3736_v49 = vpop.f32.mrb[44].mxu0 }
0x2067   : > { %v3740_v50 = vadd.f32 %v3736_v49, %v15954_v63  ;;  %v13886_v51 = vpop.f32.mrb[45].mxu0 }
0x2068   : > { %v4436_v51 = vld [vmem:[#allocation2 + $0x478] sm:$0xff] }
0x206e   : > { %v3895_v53 = vpop.f32.mrb[46].mxu0 }
0x206f   : > { %v3896_v55 = vadd.f32 %v12760_v52, %v3895_v53  ;;  %v13908_v56 = vpop.f32.mrb[47].mxu0  ;;  %v4515_v53 = vld [vmem:[#allocation2 + $0x4e0] sm:$0xff] }
0x2070   : > { %v14991_v56 = vpack.c.bf16 %v4516_v54, %v4515_v53  ;;  %v4993_v53 = vld [vmem:[#allocation2 + $0x500] sm:$0xff]  ;;  %v4994_v54 = vld [vmem:[#allocation2 + $0x508] sm:$0xff] }
0x2071   : > { %13921 = vmatpush3.xpose.msk.msra.mxu0 %vm441_vm2, %v3896_v55  ;;  %v16034_v55 = vld [vmem:[%s16030_s29] sm:$0xff] }
0x2072   : > { %13925 = vmatprep.subr.mxu0 %v15587_v1 }
0x2074   : > { %13923 = vmatmul.mubr.msk.f32.vlgmr.msra.gmra.mrb[48].mxu0 %vm441_vm2, %v3817_v58  ;;  %v4518_v58 = vld [vmem:[#allocation2 + $0x4f8] sm:$0xff] }
0x2075   : > { %13926 = vmatpush3.msra.mxu0 %v3975_v59  ;;  %13927 = vmatprep.mubr.msk.f32.mxu0 %vm15586_vm0, %v15587_v1  ;;  %v14994_v59 = vpack.c.bf16 %v4518_v58, %v4517_v57  ;;  %v4995_v57 = vld [vmem:[#allocation2 + $0x510] sm:$0xff]  ;;  %v4996_v58 = vld [vmem:[#allocation2 + $0x518] sm:$0xff] }
0x2076   : > { %14966 = vmatprep.subr.bf16.mxu0 %v15585_v0 }
0x2147   : > { %v4050_v60 = vpop.f32.mrb[48].mxu0 }
0x2148   : > { %v4054_v61 = vmul.f32 0.35355338, %v4050_v60  ;;  %v13924_v62 = vpop.f32.mrb[49].mxu0  ;;  %v4329_v60 = vld [vmem:[#allocation2 + $0x448] sm:$0xff] }
0x214a   : > { %v4055_v63 = vsel %vm441_vm2, %v4054_v61, -inf }
0x214b   : > { %4056 = vmax.xlane.f32.xlu0 %v4055_v63  ;;  %v12770_v63 = vld [vmem:[#allocation2 + $0x410] ss:$0 sm:$0xff] }
0x21d8   : > { %v4057_v2 = vpop.xlane.xlu0 %4056 }
0x21d9   : > { %v4058_v3 = vsub.f32 %v4054_v61, %v4057_v2  ;;  %v4330_v61 = vld [vmem:[#allocation2 + $0x450] sm:$0xff] }
0x21da   : > { %v14982_v62 = vpack.c.bf16 %v4330_v61, %v4329_v60  ;;  %v15012_v61 = vpack.c.bf16 %v4996_v58, %v4995_v57 }
0x21db   : > { %v4059_v4 = vmul.f32 1.442695, %v4058_v3 }
0x21dd   : > { %15401 = vpow2.f32 %v4059_v4 }
0x21e7   : > { %v15402_v5 = vpop.eup %15401 }
0x21e8   : > { %v4061_v6 = vsel %vm441_vm2, %v15402_v5, 0.0 }
0x21e9   : > { %4062 = vadd.xlane.f32.xlu1 %v4061_v6 }
0x2276   : > { %v4063_v8 = vpop.xlane.xlu1 %4062 }
0x2277   : > { %15403 = vrcp.f32 %v4063_v8  ;;  %v12776_v8 = vld [vmem:[#allocation2 + $0x5e4] ss:$0 sm:$0xff] }
0x2281   : > { %v15404_v9 = vpop.eup %15403 }
0x2282   : > { %v4065_v10 = vmul.f32 %v15404_v9, %v15402_v5 }
0x2284   : > { %13928 = vmatmul.mubr.msk.f32.vlgmr.msra.gmra.mrb[50].mxu0 %vm441_vm2, %v4065_v10  ;;  %v12774_v10 = vld [vmem:[#allocation2 + $0x5e0] ss:$0 sm:$0xff] }
0x2285   : > { %13943 = vmatprep.mubr.msk.f32.mxu0 %vm15586_vm0, %v15587_v1  ;;  %14968 = vmatpush3.bf16.msra.mxu0 %v14967_v26 }
0x2286   : > { %14969 = vmatprep.subr.bf16.mxu0 %v15585_v0 }
0x2289   : > { %14971 = vmatpush3.bf16.msra.mxu0 %v14970_v29 }
0x228a   : > { %14984 = vmatprep.subr.bf16.mxu0 %v15585_v0 }
0x2357   : > { %v4135_v11 = vpop.f32.mrb[50].mxu0 }
0x2358   : > { %v13929_v12 = vpop.f32.mrb[51].mxu0  ;;  %13933 = vmatmul.mubr.msk.f32.vlgmr.msra.gmra.mrb[46].mxu1 %vm441_vm2, %v4135_v11 }
0x2359   : > { %13962 = vmatprep.mubr.msk.f32.mxu1 %vm15586_vm0, %v15587_v1 }
0x242b   : > { %v4209_v13 = vpop.f32.mrb[46].mxu1 }
0x242c   : > { %v4213_v15 = vadd.f32 %v4209_v13, %v3740_v50  ;;  %v13934_v16 = vpop.f32.mrb[47].mxu1  ;;  %v4435_v50 = vld [vmem:[#allocation2 + $0x470] sm:$0xff] }
0x242d   : > { %v14988_v52 = vpack.c.bf16 %v4436_v51, %v4435_v50  ;;  %v4595_v16 = vld [vmem:[#allocation2 + $0x568] sm:$0xff]  ;;  %v4916_v50 = vld [vmem:[#allocation2 + $0x490] sm:$0xff]  ;;  %v4917_v51 = vld [vmem:[#allocation2 + $0x498] sm:$0xff] }
0x242e   : > { %v4214_v17 = vadd.f32 %v4213_v15, %v15869_v22  ;;  %v4323_v22 = vld [vmem:[#allocation2 + $0x418] sm:$0xff]  ;;  %v4594_v15 = vld [vmem:[#allocation2 + $0x560] sm:$0xff] }
0x242f   : > { %v14973_v32 = vpack.c.bf16 %v4324_v30, %v4323_v22 }
0x2430   : > { %v4217_v18 = vsel %vm209_vm1, %v4214_v17, 0.0 }
0x2431   : > { %4218 = vadd.xlane.f32.xlu0 %v4217_v18  ;;  %14974 = vmatpush3.bf16.msra.mxu1 %v14973_v32  ;;  %v14997_v18 = vpack.c.bf16 %v4595_v16, %v4594_v15  ;;  %v5075_v15 = vld [vmem:[#allocation2 + $0x598] sm:$0xff] }
0x2432   : > { %14975 = vmatprep.subr.bf16.mxu1 %v15585_v0 }
0x2435   : > { %14977 = vmatpush3.bf16.msra.mxu1 %v14976_v34 }
0x2436   : > { %14978 = vmatprep.subr.bf16.mxu1 %v15585_v0 }
0x2439   : > { %14980 = vmatpush3.bf16.msra.mxu1 %v14979_v37  ;;  %v12778_v37 = vld [vmem:[#allocation2 + $0x5e8] ss:$0 sm:$0xff] }
0x243a   : > { %14981 = vmatprep.subr.bf16.mxu1 %v15585_v0 }
0x243d   : > { %14983 = vmatpush3.bf16.msra.mxu1 %v14982_v62 }
0x243e   : > { %14996 = vmatprep.subr.bf16.mxu1 %v15585_v0 }
0x24be   : > { %v4219_v19 = vpop.xlane.xlu0 %4218 }
0x24bf   : > { %v4220_v20 = vmul.f32 0.03125, %v4219_v19  ;;  %v4597_v19 = vld [vmem:[#allocation2 + $0x578] sm:$0xff] }
0x24c1   : > { %v4221_v21 = vsub.f32 %v4214_v17, %v4220_v20  ;;  %v4596_v17 = vld [vmem:[#allocation2 + $0x570] sm:$0xff] }
0x24c2   : > { %v15000_v20 = vpack.c.bf16 %v4597_v19, %v4596_v17 }
0x24c3   : > { %v4222_v23 = vmul.f32 %v4221_v21, %v4221_v21 }
0x24c5   : > { %v4223_v24 = vsel %vm209_vm1, %v4222_v23, 0.0 }
0x24c6   : > { %4224 = vadd.xlane.f32.xlu1 %v4223_v24  ;;  %v4426_v24 = vlaneseq }
0x24c8   : > { %v4427_v25 = vshrl.u32 %v4426_v24, 7  ;;  %v4429_v14 = vand.u32 127, %v4426_v24 }
0x24ca   : > { %vm4430_vm4 = vcmp.gt.s32.totalorder %v4429_v14, %v4427_v25 }
0x24cb   : > { %v16065_v27 = vsel %vm4430_vm4, -1e+30, %v15587_v1 }
0x2553   : > { %v4225_v38 = vpop.xlane.xlu1 %4224 }
0x2554   : > { %v4226_v39 = vmul.f32 0.03125, %v4225_v38 }
0x2556   : > { %v4227_v40 = vadd.f32 1e-05, %v4226_v39 }
0x2558   : > { %15405 = vrsqrt.f32 %v4227_v40  ;;  %v4835_v40 = vld [vmem:[#allocation2 + $0x5f0] sm:$0xff] }
0x2562   : > { %v15406_v41 = vpop.eup %15405 }
0x2563   : > { %v4229_v43 = vmul.f32 %v15406_v41, %v4221_v21 }
0x2565   : > { %v4234_v47 = vmul.f32 %v16013_v42, %v4229_v43 }
0x2567   : > { %v16019_v49 = vadd.f32 %v16015_v46, %v4234_v47  ;;  %v4915_v47 = vld [vmem:[#allocation2 + $0x488] sm:$0xff] }
0x2569   : > { %13944 = vmatmul.mubr.msk.f32.vlgmr.msra.gmra.mrb[52].mxu0 %vm209_vm1, %v16019_v49 }
0x256a   : > { %14986 = vmatpush3.bf16.msra.mxu0 %v14985_v48  ;;  %13973 = vmatprep.mubr.msk.f32.mxu0 %vm15586_vm0, %v15587_v1  ;;  %v15003_v48 = vpack.c.bf16 %v4915_v47, %v4914_v45  ;;  %v5469_v47 = vld [vmem:[#allocation2 + $0x530] sm:$0xff] }
0x256b   : > { %14987 = vmatprep.subr.bf16.mxu0 %v15585_v0 }
0x256e   : > { %14989 = vmatpush3.bf16.msra.mxu0 %v14988_v52  ;;  %v15006_v52 = vpack.c.bf16 %v4917_v51, %v4916_v50 }
0x256f   : > { %14990 = vmatprep.subr.bf16.mxu0 %v15585_v0 }
0x2571   : > { %13974 = vmatmul.mubr.msk.f32.vlgmr.msra.gmra.mrb[54].mxu0 %vm209_vm1, %v16034_v55 }
0x2572   : > { %14992 = vmatpush3.bf16.msra.mxu0 %v14991_v56  ;;  %13984 = vmatprep.mubr.msk.f32.mxu0 %vm15586_vm0, %v15587_v1  ;;  %v15009_v56 = vpack.c.bf16 %v4994_v54, %v4993_v53 }
0x2573   : > { %14993 = vmatprep.subr.bf16.mxu0 %v15585_v0 }
0x2576   : > { %14995 = vmatpush3.bf16.msra.mxu0 %v14994_v59 }
0x2577   : > { %13998 = vmatprep.subr.mxu0 %v15587_v1 }
0x2579   : > { %13985 = vmatmul.mubr.msk.f32.vlgmr.msra.gmra.mrb[56].mxu0 %vm209_vm1, %v16034_v55 }
0x257a   : > { %14000 = vmatprep.mubr.msk.f32.mxu0 %vm15586_vm0, %v15587_v1 }
0x263c   : > { %v4318_v2 = vpop.f32.mrb[52].mxu0 }
0x263d   : > { %v4319_v3 = vadd.f32 %v12770_v63, %v4318_v2  ;;  %v13945_v4 = vpop.f32.mrb[53].mxu0 }
0x263e   : > { %v12787_v4 = vld [vmem:[#allocation2 + $0x5e5] ss:$0 sm:$0xff] }
0x263f   : > { %v4322_v5 = vmax.f32 %v4319_v3, 0.0 }
0x2641   : > { %13963 = vmatmul.mubr.msk.f32.vlgmr.msra.gmra.mrb[48].mxu1 %vm2224_vm3, %v4322_v5  ;;  %v12785_v5 = vld [vmem:[#allocation2 + $0x5e1] ss:$0 sm:$0xff] }
0x2642   : > { %13995 = vmatprep.mubr.msk.f32.mxu1 %vm15586_vm0, %v15587_v1  ;;  %14998 = vmatpush3.bf16.msra.mxu1 %v14997_v18 }
0x2643   : > { %14999 = vmatprep.subr.bf16.mxu1 %v15585_v0 }
0x2644   : > { %v4511_v6 = vpop.f32.mrb[54].mxu0 }
0x2645   : > { %v13975_v7 = vpop.f32.mrb[55].mxu0  ;;  %v4512_v13 = vadd.f32 %v12774_v10, %v4511_v6  ;;  %v5072_v10 = vld [vmem:[#allocation2 + $0x580] sm:$0xff] }
0x2646   : > { %15001 = vmatpush3.bf16.msra.mxu1 %v15000_v20 }
0x2647   : > { %14003 = vmatprep.subr.mxu1 %v15587_v1 }
0x2649   : > { %13996 = vmatmul.mubr.msk.f32.vlgmr.msra.gmra.mrb[50].mxu1 %vm209_vm1, %v16034_v55 }
0x264a   : > { %14005 = vmatprep.mubr.msk.f32.mxu1 %vm15586_vm0, %v15587_v1 }
0x264c   : > { %v4590_v9 = vpop.f32.mrb[56].mxu0 }
0x264d   : > { %v4591_v11 = vadd.f32 %v12776_v8, %v4590_v9  ;;  %v13986_v12 = vpop.f32.mrb[57].mxu0 }
0x264e   : > { %v5074_v12 = vld [vmem:[#allocation2 + $0x590] sm:$0xff] }
0x264f   : > { %13999 = vmatpush3.xpose.msk.msra.mxu0 %vm441_vm2, %v4591_v11  ;;  %v5073_v11 = vld [vmem:[#allocation2 + $0x588] sm:$0xff]  ;;  %v15018_v16 = vpack.c.bf16 %v5075_v15, %v5074_v12 }
0x2650   : > { %14008 = vmatprep.subr.mxu0 %v15587_v1 }
0x2652   : > { %14001 = vmatmul.mubr.msk.f32.vlgmr.msra.gmra.mrb[58].mxu0 %vm441_vm2, %v4512_v13  ;;  %v15015_v13 = vpack.c.bf16 %v5073_v11, %v5072_v10 }
0x2653   : > { %14010 = vmatprep.mubr.msk.f32.mxu0 %vm15586_vm0, %v15587_v1  ;;  %14009 = vmatpush3.msra.mxu0 %v4835_v40  ;;  %v5391_v40 = vld [vmem:[#allocation2 + $0x4b8] sm:$0xff] }
0x2654   : > { %15008 = vmatprep.subr.bf16.mxu0 %v15585_v0 }
0x2714   : > { %v16062_v21 = vpop.f32.mrb[48].mxu1 }
0x2715   : > { %v13964_v23 = vpop.f32.mrb[49].mxu1 }
0x271c   : > { %v4669_v36 = vpop.f32.mrb[50].mxu1 }
0x271d   : > { %v13997_v38 = vpop.f32.mrb[51].mxu1  ;;  %v4670_v39 = vadd.f32 %v12778_v37, %v4669_v36  ;;  %v5388_v36 = vld [vmem:[#allocation2 + $0x4a0] sm:$0xff]  ;;  %v5389_v37 = vld [vmem:[#allocation2 + $0x4a8] sm:$0xff] }
0x271e   : > { %v15021_v38 = vpack.c.bf16 %v5389_v37, %v5388_v36  ;;  %v5941_v37 = vld [vmem:[#allocation2 + $0x540] sm:$0xff] }
0x271f   : > { %14004 = vmatpush3.msra.mxu1 %v4670_v39  ;;  %v5390_v39 = vld [vmem:[#allocation2 + $0x4b0] sm:$0xff] }
0x2720   : > { %15002 = vmatprep.subr.bf16.mxu1 %v15585_v0 }
0x2725   : > { %v4745_v26 = vpop.f32.mrb[58].mxu0 }
0x2726   : > { %v4749_v28 = vmul.f32 0.35355338, %v4745_v26  ;;  %v14002_v29 = vpop.f32.mrb[59].mxu0 }
0x2728   : > { %v4750_v22 = vadd.f32 %v4749_v28, %v16065_v27 }
0x272a   : > { %v4751_v30 = vsel %vm441_vm2, %v4750_v22, -inf }
0x272b   : > { %4752 = vmax.xlane.f32.xlu0 %v4751_v30 }
0x27b8   : > { %v4753_v31 = vpop.xlane.xlu0 %4752 }
0x27b9   : > { %v4754_v32 = vsub.f32 %v4750_v22, %v4753_v31  ;;  %v12789_v22 = vld [vmem:[#allocation2 + $0x5e9] ss:$0 sm:$0xff] }
0x27bb   : > { %v4755_v33 = vmul.f32 1.442695, %v4754_v32  ;;  %v5313_v32 = vld [vmem:[#allocation2 + $0x5f8] sm:$0xff] }
0x27bd   : > { %15407 = vpow2.f32 %v4755_v33 }
0x27c7   : > { %v15408_v34 = vpop.eup %15407 }
0x27c8   : > { %v4757_v35 = vsel %vm441_vm2, %v15408_v34, 0.0 }
0x27c9   : > { %4758 = vadd.xlane.f32.xlu1 %v4757_v35 }
0x2856   : > { %v4759_v41 = vpop.xlane.xlu1 %4758 }
0x2857   : > { %15409 = vrcp.f32 %v4759_v41  ;;  %v15024_v41 = vpack.c.bf16 %v5391_v40, %v5390_v39  ;;  %v5943_v40 = vld [vmem:[#allocation2 + $0x550] sm:$0xff] }
0x2861   : > { %v15410_v43 = vpop.eup %15409 }
0x2862   : > { %v4761_v44 = vmul.f32 %v15410_v43, %v15408_v34  ;;  %v5467_v43 = vld [vmem:[#allocation2 + $0x520] sm:$0xff] }
0x2864   : > { %14006 = vmatmul.mubr.msk.f32.vlgmr.msra.gmra.mrb[52].mxu1 %vm441_vm2, %v4761_v44  ;;  %v5468_v44 = vld [vmem:[#allocation2 + $0x528] sm:$0xff] }
0x2865   : > { %14021 = vmatprep.mubr.msk.f32.mxu1 %vm15586_vm0, %v15587_v1  ;;  %15004 = vmatpush3.bf16.msra.mxu1 %v15003_v48  ;;  %v15027_v45 = vpack.c.bf16 %v5468_v44, %v5467_v43  ;;  %v5470_v48 = vld [vmem:[#allocation2 + $0x538] sm:$0xff] }
0x2866   : > { %15005 = vmatprep.subr.bf16.mxu1 %v15585_v0 }
0x2869   : > { %15007 = vmatpush3.bf16.msra.mxu1 %v15006_v52  ;;  %v15030_v52 = vpack.c.bf16 %v5470_v48, %v5469_v47 }
0x286a   : > { %15014 = vmatprep.subr.bf16.mxu1 %v15585_v0 }
0x286c   : > { %14022 = vmatmul.mubr.msk.f32.vlgmr.msra.gmra.mrb[54].mxu1 %vm209_vm1, %v16034_v55 }
0x286d   : > { %14043 = vmatprep.mubr.msk.f32.mxu1 %vm15586_vm0, %v15587_v1  ;;  %15016 = vmatpush3.bf16.msra.mxu1 %v15015_v13 }
0x286e   : > { %15017 = vmatprep.subr.bf16.mxu1 %v15585_v0 }
0x2871   : > { %15019 = vmatpush3.bf16.msra.mxu1 %v15018_v16 }
0x2872   : > { %14056 = vmatprep.subr.mxu1 %v15587_v1 }
0x2874   : > { %14044 = vmatmul.mubr.msk.f32.vlgmr.msra.gmra.mrb[56].mxu1 %vm209_vm1, %v16034_v55 }
0x2875   : > { %14058 = vmatprep.mubr.msk.f32.mxu1 %vm15586_vm0, %v15587_v1  ;;  %14057 = vmatpush3.msra.mxu1 %v5313_v32  ;;  %v5863_v32 = vld [vmem:[#allocation2 + $0x4c8] sm:$0xff] }
0x2876   : > { %15026 = vmatprep.subr.bf16.mxu1 %v15585_v0 }
0x2937   : > { %v4831_v59 = vpop.f32.mrb[52].mxu1 }
0x2938   : > { %v14007_v60 = vpop.f32.mrb[53].mxu1  ;;  %14011 = vmatmul.mubr.msk.f32.vlgmr.msra.gmra.mrb[60].mxu0 %vm441_vm2, %v4831_v59 }
0x2939   : > { %15010 = vmatpush3.bf16.msra.mxu0 %v15009_v56  ;;  %14032 = vmatprep.mubr.msk.f32.mxu0 %vm15586_vm0, %v15587_v1  ;;  %v12784_v56 = vld [vmem:[#allocation2 + $0x610] ss:$0 sm:$0xff] }
0x293a   : > { %15011 = vmatprep.subr.bf16.mxu0 %v15585_v0 }
0x293d   : > { %15013 = vmatpush3.bf16.msra.mxu0 %v15012_v61  ;;  %v12797_v61 = vld [vmem:[#allocation2 + $0x5e6] ss:$0 sm:$0xff] }
0x293e   : > { %14046 = vmatprep.subr.mxu0 %v15587_v1 }
0x293f   : > { %v4989_v62 = vpop.f32.mrb[54].mxu1 }
0x2940   : > { %14033 = vmatmul.mubr.msk.f32.vlgmr.msra.gmra.mrb[62].mxu0 %vm209_vm1, %v16034_v55  ;;  %v14023_v63 = vpop.f32.mrb[55].mxu1  ;;  %v4990_v9 = vadd.f32 %v12785_v5, %v4989_v62  ;;  %v12795_v62 = vld [vmem:[#allocation2 + $0x5e2] ss:$0 sm:$0xff] }
0x2941   : > { %14048 = vmatprep.mubr.msk.f32.mxu0 %vm15586_vm0, %v15587_v1 }
0x2947   : > { %v5147_v29 = vpop.f32.mrb[56].mxu1 }
0x2948   : > { %v14045_v30 = vpop.f32.mrb[57].mxu1  ;;  %v5148_v31 = vadd.f32 %v12789_v22, %v5147_v29 }
0x2a0b   : > { %v16090_v2 = vpop.f32.mrb[60].mxu0 }
0x2a0c   : > { %v14012_v3 = vpop.f32.mrb[61].mxu0  ;;  %v4913_v57 = vadd.f32 %v12784_v56, %v16090_v2  ;;  %v5546_v2 = vld [vmem:[#allocation2 + $0x5a0] sm:$0xff] }
0x2a13   : > { %v5068_v6 = vpop.f32.mrb[62].mxu0 }
0x2a14   : > { %v5069_v7 = vadd.f32 %v12787_v4, %v5068_v6  ;;  %v14034_v8 = vpop.f32.mrb[63].mxu0  ;;  %v5547_v6 = vld [vmem:[#allocation2 + $0x5a8] sm:$0xff] }
0x2a15   : > { %v15033_v8 = vpack.c.bf16 %v5547_v6, %v5546_v2 }
0x2a16   : > { %14047 = vmatpush3.xpose.msk.msra.mxu0 %vm441_vm2, %v5069_v7  ;;  %v5548_v7 = vld [vmem:[#allocation2 + $0x5b0] sm:$0xff] }
0x2a17   : > { %14051 = vmatprep.subr.mxu0 %v15587_v1 }
0x2a19   : > { %14049 = vmatmul.mubr.msk.f32.vlgmr.msra.gmra.mrb[64].mxu0 %vm441_vm2, %v4990_v9  ;;  %v5549_v9 = vld [vmem:[#allocation2 + $0x5b8] sm:$0xff] }
0x2a1a   : > { %14053 = vmatprep.mubr.msk.f32.mxu0 %vm15586_vm0, %v15587_v1  ;;  %14052 = vmatpush3.msra.mxu0 %v5148_v31  ;;  %v15036_v10 = vpack.c.bf16 %v5549_v9, %v5548_v7  ;;  %v5862_v31 = vld [vmem:[#allocation2 + $0x4c0] sm:$0xff] }
0x2a1b   : > { %15020 = vmatprep.subr.bf16.mxu0 %v15585_v0 }
0x2aec   : > { %v5223_v17 = vpop.f32.mrb[64].mxu0 }
0x2aed   : > { %v5227_v18 = vmul.f32 0.35355338, %v5223_v17  ;;  %v14050_v19 = vpop.f32.mrb[65].mxu0 }
0x2aef   : > { %v5228_v20 = vadd.f32 %v5227_v18, %v16065_v27 }
0x2af1   : > { %v5229_v23 = vsel %vm441_vm2, %v5228_v20, -inf }
0x2af2   : > { %5230 = vmax.xlane.f32.xlu0 %v5229_v23 }
0x2b7f   : > { %v5231_v24 = vpop.xlane.xlu0 %5230 }
0x2b80   : > { %v5232_v25 = vsub.f32 %v5228_v20, %v5231_v24 }
0x2b82   : > { %v5233_v14 = vmul.f32 1.442695, %v5232_v25  ;;  %v12799_v25 = vld [vmem:[#allocation2 + $0x5ea] ss:$0 sm:$0xff] }
0x2b84   : > { %15411 = vpow2.f32 %v5233_v14 }
0x2b8e   : > { %v15412_v26 = vpop.eup %15411 }
0x2b8f   : > { %v5235_v28 = vsel %vm441_vm2, %v15412_v26, 0.0 }
0x2b90   : > { %5236 = vadd.xlane.f32.xlu1 %v5235_v28  ;;  %v5787_v28 = vld [vmem:[#allocation2 + $0x600] sm:$0xff] }
0x2c1d   : > { %v5237_v33 = vpop.xlane.xlu1 %5236 }
0x2c1e   : > { %15413 = vrcp.f32 %v5237_v33  ;;  %v15039_v33 = vpack.c.bf16 %v5863_v32, %v5862_v31  ;;  %v6363_v32 = vld [vmem:[#allocation2 + $0x618] sm:$0xff] }
0x2c28   : > { %v15414_v34 = vpop.eup %15413 }
0x2c29   : > { %v5239_v35 = vmul.f32 %v15414_v34, %v15412_v26  ;;  %v5864_v34 = vld [vmem:[#allocation2 + $0x4d0] sm:$0xff] }
0x2c2b   : > { %14054 = vmatmul.mubr.msk.f32.vlgmr.msra.gmra.mrb[66].mxu0 %vm441_vm2, %v5239_v35  ;;  %v5865_v35 = vld [vmem:[#allocation2 + $0x4d8] sm:$0xff] }
0x2c2c   : > { %14069 = vmatprep.mubr.msk.f32.mxu0 %vm15586_vm0, %v15587_v1  ;;  %15022 = vmatpush3.bf16.msra.mxu0 %v15021_v38  ;;  %v15042_v36 = vpack.c.bf16 %v5865_v35, %v5864_v34  ;;  %v5942_v38 = vld [vmem:[#allocation2 + $0x548] sm:$0xff] }
0x2c2d   : > { %15023 = vmatprep.subr.bf16.mxu0 %v15585_v0  ;;  %v15045_v39 = vpack.c.bf16 %v5942_v38, %v5941_v37  ;;  %v6365_v37 = vld [vmem:[#allocation2 + $0x628] sm:$0xff]  ;;  %v6366_v38 = vld [vmem:[#allocation2 + $0x630] sm:$0xff] }
0x2c30   : > { %15025 = vmatpush3.bf16.msra.mxu0 %v15024_v41  ;;  %v5944_v41 = vld [vmem:[#allocation2 + $0x558] sm:$0xff] }
0x2c31   : > { %15032 = vmatprep.subr.bf16.mxu0 %v15585_v0 }
0x2c33   : > { %14070 = vmatmul.mubr.msk.f32.vlgmr.msra.gmra.mrb[68].mxu0 %vm209_vm1, %v16034_v55 }
0x2c34   : > { %14091 = vmatprep.mubr.msk.f32.mxu0 %vm15586_vm0, %v15587_v1  ;;  %15034 = vmatpush3.bf16.msra.mxu0 %v15033_v8 }
0x2c35   : > { %15035 = vmatprep.subr.bf16.mxu0 %v15585_v0 }
0x2c38   : > { %15037 = vmatpush3.bf16.msra.mxu0 %v15036_v10 }
0x2c39   : > { %14104 = vmatprep.subr.mxu0 %v15587_v1 }
0x2c3b   : > { %14092 = vmatmul.mubr.msk.f32.vlgmr.msra.gmra.mrb[70].mxu0 %vm209_vm1, %v16034_v55 }
0x2c3c   : > { %14106 = vmatprep.mubr.msk.f32.mxu0 %vm15586_vm0, %v15587_v1  ;;  %14105 = vmatpush3.msra.mxu0 %v5787_v28  ;;  %v6261_v28 = vld [vmem:[#allocation2 + $0x608] sm:$0xff] }
0x2c3d   : > { %15044 = vmatprep.subr.bf16.mxu0 %v15585_v0 }
0x2cfe   : > { %v5309_v50 = vpop.f32.mrb[66].mxu0 }
0x2cff   : > { %v14055_v51 = vpop.f32.mrb[67].mxu0  ;;  %14059 = vmatmul.mubr.msk.f32.vlgmr.msra.gmra.mrb[58].mxu1 %vm441_vm2, %v5309_v50 }
0x2d00   : > { %15028 = vmatpush3.bf16.msra.mxu1 %v15027_v45  ;;  %14080 = vmatprep.mubr.msk.f32.mxu1 %vm15586_vm0, %v15587_v1  ;;  %v15048_v45 = vpack.c.bf16 %v5944_v41, %v5943_v40  ;;  %v6524_v40 = vld [vmem:[#allocation2 + $0x718] sm:$0xff]  ;;  %v6525_v41 = vld [vmem:[#allocation2 + $0x720] sm:$0xff] }
0x2d01   : > { %15029 = vmatprep.subr.bf16.mxu1 %v15585_v0 }
0x2d04   : > { %15031 = vmatpush3.bf16.msra.mxu1 %v15030_v52 }
0x2d05   : > { %14094 = vmatprep.subr.mxu1 %v15587_v1 }
0x2d06   : > { %v5463_v53 = vpop.f32.mrb[68].mxu0 }
0x2d07   : > { %14081 = vmatmul.mubr.msk.f32.vlgmr.msra.gmra.mrb[60].mxu1 %vm209_vm1, %v16034_v55  ;;  %v14071_v54 = vpop.f32.mrb[69].mxu0  ;;  %v5464_v5 = vadd.f32 %v12795_v62, %v5463_v53  ;;  %v12807_v53 = vld [vmem:[#allocation2 + $0x5e7] ss:$0 sm:$0xff]  ;;  %v6021_v62 = vld [vmem:[#allocation2 + $0x5c8] sm:$0xff] }
0x2d08   : > { %14096 = vmatprep.mubr.msk.f32.mxu1 %vm15586_vm0, %v15587_v1  ;;  %v12805_v54 = vld [vmem:[#allocation2 + $0x5e3] ss:$0 sm:$0xff] }
0x2d0e   : > { %v5621_v24 = vpop.f32.mrb[70].mxu0 }
0x2d0f   : > { %v14093_v14 = vpop.f32.mrb[71].mxu0  ;;  %v5622_v26 = vadd.f32 %v12799_v25, %v5621_v24 }
0x2dd2   : > { %v5383_v58 = vpop.f32.mrb[58].mxu1 }
0x2dd3   : > { %v16127_v59 = vadd.f32 %v5383_v58, %v4913_v57  ;;  %v14060_v60 = vpop.f32.mrb[59].mxu1 }
0x2dda   : > { %v5542_v63 = vpop.f32.mrb[60].mxu1 }
0x2ddb   : > { %v5543_v3 = vadd.f32 %v12797_v61, %v5542_v63  ;;  %v14082_v4 = vpop.f32.mrb[61].mxu1  ;;  %v6020_v61 = vld [vmem:[#allocation2 + $0x5c0] sm:$0xff] }
0x2ddc   : > { %v15051_v63 = vpack.c.bf16 %v6021_v62, %v6020_v61 }
0x2ddd   : > { %14095 = vmatpush3.xpose.msk.msra.mxu1 %vm441_vm2, %v5543_v3  ;;  %v6023_v3 = vld [vmem:[#allocation2 + $0x5d8] sm:$0xff] }
0x2dde   : > { %14099 = vmatprep.subr.mxu1 %v15587_v1 }
0x2de0   : > { %14097 = vmatmul.mubr.msk.f32.vlgmr.msra.gmra.mrb[62].mxu1 %vm441_vm2, %v5464_v5  ;;  %v12772_v5 = vld [vmem:[#allocation2 + $0x458] ss:$0 sm:$0xff] }
0x2de1   : > { %14101 = vmatprep.mubr.msk.f32.mxu1 %vm15586_vm0, %v15587_v1  ;;  %14100 = vmatpush3.msra.mxu1 %v5622_v26  ;;  %v4406_v6 = vadd.f32 %v12772_v5, %v16062_v21 }
0x2de2   : > { %15038 = vmatprep.subr.bf16.mxu1 %v15585_v0 }
0x2eb3   : > { %v5697_v11 = vpop.f32.mrb[62].mxu1 }
0x2eb4   : > { %v5701_v12 = vmul.f32 0.35355338, %v5697_v11  ;;  %v14098_v13 = vpop.f32.mrb[63].mxu1  ;;  %v4409_v11 = vadd.f32 %v4406_v6, %v16019_v49  ;;  %v12809_v49 = vld [vmem:[#allocation2 + $0x5eb] ss:$0 sm:$0xff] }
0x2eb5   : > { %v12819_v6 = vld [vmem:[#allocation2 + $0x79c] ss:$0 sm:$0xff] }
0x2eb6   : > { %v5702_v15 = vadd.f32 %v5701_v12, %v16065_v27  ;;  %v4410_v12 = vsel %vm209_vm1, %v4409_v11, 0.0 }
0x2eb8   : > { %v5703_v16 = vsel %vm441_vm2, %v5702_v15, -inf }
0x2eb9   : > { %5704 = vmax.xlane.f32.xlu0 %v5703_v16 }
0x2f46   : > { %v5705_v17 = vpop.xlane.xlu0 %5704 }
0x2f47   : > { %v5706_v18 = vsub.f32 %v5702_v15, %v5705_v17 }
0x2f49   : > { %v5707_v19 = vmul.f32 1.442695, %v5706_v18 }
0x2f4b   : > { %15415 = vpow2.f32 %v5707_v19 }
0x2f55   : > { %v15416_v20 = vpop.eup %15415 }
0x2f56   : > { %v5709_v23 = vsel %vm441_vm2, %v15416_v20, 0.0 }
0x2f57   : > { %5710 = vadd.xlane.f32.xlu1 %v5709_v23 }
0x2fe4   : > { %v5711_v29 = vpop.xlane.xlu1 %5710 }
0x2fe5   : > { %15417 = vrcp.f32 %v5711_v29 }
0x2fef   : > { %v15418_v22 = vpop.eup %15417 }
0x2ff0   : > { %v5713_v30 = vmul.f32 %v15418_v22, %v15416_v20 }
0x2ff2   : > { %14102 = vmatmul.mubr.msk.f32.vlgmr.msra.gmra.mrb[64].mxu1 %vm441_vm2, %v5713_v30 }
0x2ff3   : > { %14117 = vmatprep.mubr.msk.f32.mxu1 %vm15586_vm0, %v15587_v1  ;;  %15040 = vmatpush3.bf16.msra.mxu1 %v15039_v33  ;;  %v6364_v33 = vld [vmem:[#allocation2 + $0x620] sm:$0xff] }
0x2ff4   : > { %15041 = vmatprep.subr.bf16.mxu1 %v15585_v0  ;;  %v15057_v35 = vpack.c.bf16 %v6364_v33, %v6363_v32  ;;  %v7001_v32 = vld [vmem:[#allocation2 + $0x738] sm:$0xff]  ;;  %v7002_v33 = vld [vmem:[#allocation2 + $0x740] sm:$0xff] }
0x2ff7   : > { %15043 = vmatpush3.bf16.msra.mxu1 %v15042_v36 }
0x2ff8   : > { %15050 = vmatprep.subr.bf16.mxu1 %v15585_v0 }
0x2ffa   : > { %14118 = vmatmul.mubr.msk.f32.vlgmr.msra.gmra.mrb[66].mxu1 %vm209_vm1, %v16034_v55 }
0x2ffb   : > { %14139 = vmatprep.mubr.msk.f32.mxu1 %vm15586_vm0, %v15587_v1  ;;  %15052 = vmatpush3.bf16.msra.mxu1 %v15051_v63 }
0x2ffc   : > { %15053 = vmatprep.subr.bf16.mxu1 %v15585_v0 }
0x30c5   : > { %v5783_v43 = vpop.f32.mrb[64].mxu1 }
0x30c6   : > { %v14103_v44 = vpop.f32.mrb[65].mxu1  ;;  %14107 = vmatmul.mubr.msk.f32.vlgmr.msra.gmra.mrb[72].mxu0 %vm441_vm2, %v5783_v43 }
0x30c7   : > { %15046 = vmatpush3.bf16.msra.mxu0 %v15045_v39  ;;  %14128 = vmatprep.mubr.msk.f32.mxu0 %vm15586_vm0, %v15587_v1  ;;  %v15060_v39 = vpack.c.bf16 %v6366_v38, %v6365_v37  ;;  %v15069_v44 = vpack.c.bf16 %v6525_v41, %v6524_v40  ;;  %v6922_v38 = vld [vmem:[#allocation2 + $0x6b8] sm:$0xff]  ;;  %v6925_v41 = vld [vmem:[#allocation2 + $0x6d0] sm:$0xff] }
0x30c8   : > { %15047 = vmatprep.subr.bf16.mxu0 %v15585_v0 }
0x30cb   : > { %15049 = vmatpush3.bf16.msra.mxu0 %v15048_v45 }
0x30cc   : > { %14142 = vmatprep.subr.mxu0 %v15587_v1 }
0x30cd   : > { %v5937_v47 = vpop.f32.mrb[66].mxu1 }
0x30ce   : > { %14129 = vmatmul.mubr.msk.f32.vlgmr.msra.gmra.mrb[74].mxu0 %vm209_vm1, %v16034_v55  ;;  %v14119_v48 = vpop.f32.mrb[67].mxu1  ;;  %v5938_v60 = vadd.f32 %v12805_v54, %v5937_v47  ;;  %v6526_v47 = vld [vmem:[#allocation2 + $0x728] sm:$0xff]  ;;  %v6442_v54 = vld [vmem:[#allocation2 + $0x698] sm:$0xff] }
0x30cf   : > { %14144 = vmatprep.mubr.msk.f32.mxu0 %vm15586_vm0, %v15587_v1  ;;  %v6527_v48 = vld [vmem:[#allocation2 + $0x730] sm:$0xff] }
0x3199   : > { %v5857_v50 = vpop.f32.mrb[72].mxu0 }
0x319a   : > { %v16164_v51 = vadd.f32 %v5857_v50, %v16127_v59  ;;  %v14108_v52 = vpop.f32.mrb[73].mxu0  ;;  %v6022_v59 = vld [vmem:[#allocation2 + $0x5d0] sm:$0xff]  ;;  %v15072_v50 = vpack.c.bf16 %v6527_v48, %v6526_v47 }
0x319b   : > { %v15054_v4 = vpack.c.bf16 %v6023_v3, %v6022_v59 }
0x319d   : > { %15055 = vmatpush3.bf16.msra.mxu1 %v15054_v4 }
0x319e   : > { %14152 = vmatprep.subr.mxu1 %v15587_v1 }
0x31a0   : > { %14140 = vmatmul.mubr.msk.f32.vlgmr.msra.gmra.mrb[68].mxu1 %vm209_vm1, %v16034_v55 }
0x31a1   : > { %v6016_v56 = vpop.f32.mrb[74].mxu0  ;;  %14154 = vmatprep.mubr.msk.f32.mxu1 %vm15586_vm0, %v15587_v1  ;;  %14153 = vmatpush3.msra.mxu1 %v6261_v28 }
0x31a2   : > { %v6017_v57 = vadd.f32 %v12807_v53, %v6016_v56  ;;  %v14130_v58 = vpop.f32.mrb[75].mxu0  ;;  %15062 = vmatprep.subr.bf16.mxu1 %v15585_v0  ;;  %v6443_v56 = vld [vmem:[#allocation2 + $0x6a0] sm:$0xff] }
0x31a3   : > { %v6444_v58 = vld [vmem:[#allocation2 + $0x6a8] sm:$0xff] }
0x31a4   : > { %14143 = vmatpush3.xpose.msk.msra.mxu0 %vm441_vm2, %v6017_v57  ;;  %v15063_v57 = vpack.c.bf16 %v6443_v56, %v6442_v54 }
0x31a5   : > { %14147 = vmatprep.subr.mxu0 %v15587_v1 }
0x31a7   : > { %14145 = vmatmul.mubr.msk.f32.vlgmr.msra.gmra.mrb[76].mxu0 %vm441_vm2, %v5938_v60  ;;  %v6445_v60 = vld [vmem:[#allocation2 + $0x6b0] sm:$0xff] }
0x31a8   : > { %14149 = vmatprep.mubr.msk.f32.mxu0 %vm15586_vm0, %v15587_v1 }
0x3273   : > { %v6095_v25 = vpop.f32.mrb[68].mxu1 }
0x3274   : > { %v6096_v14 = vadd.f32 %v12809_v49, %v6095_v25  ;;  %v14141_v26 = vpop.f32.mrb[69].mxu1  ;;  %v6843_v25 = vld [vmem:[#allocation2 + $0x638] sm:$0xff] }
0x3276   : > { %14148 = vmatpush3.msra.mxu0 %v6096_v14  ;;  %v6844_v14 = vld [vmem:[#allocation2 + $0x640] sm:$0xff] }
0x3277   : > { %15056 = vmatprep.subr.bf16.mxu0 %v15585_v0  ;;  %v15075_v28 = vpack.c.bf16 %v6844_v14, %v6843_v25  ;;  %v7477_v25 = vld [vmem:[#allocation2 + $0x770] sm:$0xff]  ;;  %v16267_v14 = vld [vmem:[%s16030_s29] sm:$0xff] }
0x327a   : > { %v6171_v2 = vpop.f32.mrb[76].mxu0 }
0x327b   : > { %v6175_v7 = vmul.f32 0.35355338, %v6171_v2  ;;  %v14146_v8 = vpop.f32.mrb[77].mxu0 }
0x327d   : > { %v6176_v9 = vadd.f32 %v6175_v7, %v16065_v27  ;;  %v12817_v7 = vld [vmem:[#allocation2 + $0x798] ss:$0 sm:$0xff] }
0x327f   : > { %v6177_v10 = vsel %vm441_vm2, %v6176_v9, -inf }
0x3280   : > { %6178 = vmax.xlane.f32.xlu0 %v6177_v10 }
0x3284   : > { %4411 = vadd.xlane.f32.xlu0 %v4410_v12  ;;  %v12821_v12 = vld [vmem:[#allocation2 + $0x7a0] ss:$0 sm:$0xff] }
0x330d   : > { %v6179_v13 = vpop.xlane.xlu0 %6178 }
0x330e   : > { %v6180_v15 = vsub.f32 %v6176_v9, %v6179_v13 }
0x3310   : > { %v6181_v16 = vmul.f32 1.442695, %v6180_v15 }
0x3311   : > { %v4412_v17 = vpop.xlane.xlu0 %4411 }
0x3312   : > { %15419 = vpow2.f32 %v6181_v16  ;;  %v4413_v18 = vmul.f32 0.03125, %v4412_v17 }
0x3314   : > { %v4414_v19 = vsub.f32 %v4409_v11, %v4413_v18 }
0x3316   : > { %v4415_v23 = vmul.f32 %v4414_v19, %v4414_v19 }
0x3318   : > { %v4416_v24 = vsel %vm209_vm1, %v4415_v23, 0.0 }
0x331c   : > { %v15420_v21 = vpop.eup %15419 }
0x331d   : > { %v6183_v20 = vsel %vm441_vm2, %v15420_v21, 0.0 }
0x331e   : > { %6184 = vadd.xlane.f32.xlu1 %v6183_v20 }
0x3322   : > { %4417 = vadd.xlane.f32.xlu1 %v4416_v24  ;;  %v6764_v24 = vld [vmem:[#allocation2 + $0x7a8] sm:$0xff] }
0x33ab   : > { %v6185_v29 = vpop.xlane.xlu1 %6184 }
0x33ac   : > { %15421 = vrcp.f32 %v6185_v29 }
0x33af   : > { %v4418_v22 = vpop.xlane.xlu1 %4417 }
0x33b0   : > { %v4419_v30 = vmul.f32 0.03125, %v4418_v22  ;;  %v6845_v22 = vld [vmem:[#allocation2 + $0x648] sm:$0xff] }
0x33b2   : > { %v4420_v31 = vadd.f32 1e-05, %v4419_v30  ;;  %v6846_v30 = vld [vmem:[#allocation2 + $0x650] sm:$0xff] }
0x33b4   : > { %15423 = vrsqrt.f32 %v4420_v31  ;;  %v15078_v31 = vpack.c.bf16 %v6846_v30, %v6845_v22  ;;  %v7397_v30 = vld [vmem:[#allocation2 + $0x6e8] sm:$0xff] }
0x33b6   : > { %v15422_v34 = vpop.eup %15421 }
0x33b7   : > { %v6187_v36 = vmul.f32 %v15422_v34, %v15420_v21  ;;  %v15087_v34 = vpack.c.bf16 %v7002_v33, %v7001_v32 }
0x33b9   : > { %14150 = vmatmul.mubr.msk.f32.vlgmr.msra.gmra.mrb[78].mxu0 %vm441_vm2, %v6187_v36  ;;  %v7004_v36 = vld [vmem:[#allocation2 + $0x750] sm:$0xff] }
0x33ba   : > { %15058 = vmatpush3.bf16.msra.mxu0 %v15057_v35  ;;  %14165 = vmatprep.mubr.msk.f32.mxu0 %vm15586_vm0, %v15587_v1  ;;  %v7003_v35 = vld [vmem:[#allocation2 + $0x748] sm:$0xff] }
0x33bb   : > { %15059 = vmatprep.subr.bf16.mxu0 %v15585_v0  ;;  %v15090_v37 = vpack.c.bf16 %v7004_v36, %v7003_v35 }
0x33be   : > { %v15424_v43 = vpop.eup %15423  ;;  %15061 = vmatpush3.bf16.msra.mxu0 %v15060_v39  ;;  %v6923_v39 = vld [vmem:[#allocation2 + $0x6c0] sm:$0xff] }
0x33bf   : > { %v4422_v45 = vmul.f32 %v15424_v43, %v4414_v19  ;;  %15068 = vmatprep.subr.bf16.mxu0 %v15585_v0  ;;  %v15081_v40 = vpack.c.bf16 %v6923_v39, %v6922_v38  ;;  %v12827_v39 = vld [vmem:[#allocation2 + $0x7c8] ss:$0 sm:$0xff] }
0x33c1   : > { %14166 = vmatmul.mubr.msk.f32.vlgmr.msra.gmra.mrb[80].mxu0 %vm209_vm1, %v16034_v55  ;;  %v4423_v52 = vmul.f32 %v16013_v42, %v4422_v45 }
0x33c2   : > { %15070 = vmatpush3.bf16.msra.mxu0 %v15069_v44  ;;  %14187 = vmatprep.mubr.msk.f32.mxu0 %vm15586_vm0, %v15587_v1 }
0x33c3   : > { %15071 = vmatprep.subr.bf16.mxu0 %v15585_v0  ;;  %v16198_v53 = vadd.f32 %v16015_v46, %v4423_v52  ;;  %v15066_v46 = vpack.c.bf16 %v6445_v60, %v6444_v58  ;;  %v12828_v58 = vld [vmem:[#allocation2 + $0x799] ss:$0 sm:$0xff] }
0x33c6   : > { %15073 = vmatpush3.bf16.msra.mxu0 %v15072_v50 }
0x33c7   : > { %14200 = vmatprep.subr.mxu0 %v15587_v1 }
0x33c9   : > { %14188 = vmatmul.mubr.msk.f32.vlgmr.msra.gmra.mrb[82].mxu0 %vm209_vm1, %v16198_v53 }
0x33ca   : > { %14202 = vmatprep.mubr.msk.f32.mxu0 %vm15586_vm0, %v15587_v1  ;;  %14201 = vmatpush3.msra.mxu0 %v6764_v24 }
0x33cb   : > { %15080 = vmatprep.subr.bf16.mxu0 %v15585_v0 }
0x348c   : > { %v6257_v42 = vpop.f32.mrb[78].mxu0 }
0x348d   : > { %v14151_v61 = vpop.f32.mrb[79].mxu0  ;;  %14155 = vmatmul.mubr.msk.f32.vlgmr.msra.gmra.mrb[70].mxu1 %vm441_vm2, %v6257_v42 }
0x348e   : > { %15064 = vmatpush3.bf16.msra.mxu1 %v15063_v57  ;;  %14176 = vmatprep.mubr.msk.f32.mxu1 %vm15586_vm0, %v15587_v1  ;;  %v12830_v57 = vld [vmem:[#allocation2 + $0x79d] ss:$0 sm:$0xff] }
0x348f   : > { %15065 = vmatprep.subr.bf16.mxu1 %v15585_v0 }
0x3492   : > { %15067 = vmatpush3.bf16.msra.mxu1 %v15066_v46 }
0x3493   : > { %14190 = vmatprep.subr.mxu1 %v15587_v1 }
0x3494   : > { %v6438_v62 = vpop.f32.mrb[80].mxu0 }
0x3495   : > { %14177 = vmatmul.mubr.msk.f32.vlgmr.msra.gmra.mrb[72].mxu1 %vm209_vm1, %v16198_v53  ;;  %v14167_v59 = vpop.f32.mrb[81].mxu0  ;;  %v6439_v11 = vadd.f32 %v12817_v7, %v6438_v62  ;;  %v12832_v62 = vld [vmem:[#allocation2 + $0x7a1] ss:$0 sm:$0xff] }
0x3496   : > { %14192 = vmatprep.mubr.msk.f32.mxu1 %vm15586_vm0, %v15587_v1 }
0x349c   : > { %v6599_v63 = vpop.f32.mrb[82].mxu0 }
0x349d   : > { %v14189_v3 = vpop.f32.mrb[83].mxu0  ;;  %v6600_v13 = vadd.f32 %v12821_v12, %v6599_v63 }
0x3560   : > { %v6331_v4 = vpop.f32.mrb[70].mxu1 }
0x3561   : > { %v16215_v5 = vadd.f32 %v6331_v4, %v16164_v51  ;;  %v14156_v2 = vpop.f32.mrb[71].mxu1 }
0x3568   : > { %v6520_v8 = vpop.f32.mrb[72].mxu1 }
0x3569   : > { %v6521_v9 = vadd.f32 %v12819_v6, %v6520_v8  ;;  %v14178_v10 = vpop.f32.mrb[73].mxu1 }
0x356b   : > { %14191 = vmatpush3.xpose.msk.msra.mxu1 %vm441_vm2, %v6521_v9 }
0x356c   : > { %14195 = vmatprep.subr.mxu1 %v15587_v1 }
0x356e   : > { %14193 = vmatmul.mubr.msk.f32.vlgmr.msra.gmra.mrb[74].mxu1 %vm441_vm2, %v6439_v11  ;;  %v7241_v11 = vld [vmem:[#allocation2 + $0x7b0] sm:$0xff] }
0x356f   : > { %14196 = vmatpush3.msra.mxu1 %v6600_v13  ;;  %14197 = vmatprep.mubr.msk.f32.mxu1 %vm15586_vm0, %v15587_v1  ;;  %v7316_v13 = vld [vmem:[#allocation2 + $0x658] sm:$0xff] }
0x3570   : > { %15074 = vmatprep.subr.bf16.mxu1 %v15585_v0 }
0x3641   : > { %v6675_v51 = vpop.f32.mrb[74].mxu1 }
0x3642   : > { %v6679_v15 = vmul.f32 0.35355338, %v6675_v51  ;;  %v14194_v16 = vpop.f32.mrb[75].mxu1  ;;  %v7317_v51 = vld [vmem:[#allocation2 + $0x660] sm:$0xff] }
0x3643   : > { %v15093_v16 = vpack.c.bf16 %v7317_v51, %v7316_v13  ;;  %v7947_v13 = vld [vmem:[#allocation2 + $0x778] sm:$0xff]  ;;  %v7948_v51 = vld [vmem:[#allocation2 + $0x780] sm:$0xff] }
0x3644   : > { %v6680_v17 = vsel %vm441_vm2, %v6679_v15, -inf }
0x3645   : > { %6681 = vmax.xlane.f32.xlu0 %v6680_v17 }
0x36d2   : > { %v6682_v18 = vpop.xlane.xlu0 %6681 }
0x36d3   : > { %v6683_v19 = vsub.f32 %v6679_v15, %v6682_v18  ;;  %v7318_v18 = vld [vmem:[#allocation2 + $0x668] sm:$0xff] }
0x36d5   : > { %v6684_v21 = vmul.f32 1.442695, %v6683_v19  ;;  %v7319_v19 = vld [vmem:[#allocation2 + $0x670] sm:$0xff] }
0x36d7   : > { %15425 = vpow2.f32 %v6684_v21  ;;  %v15096_v21 = vpack.c.bf16 %v7319_v19, %v7318_v18  ;;  %v7868_v19 = vld [vmem:[#allocation2 + $0x6f8] sm:$0xff] }
0x36e1   : > { %v15426_v20 = vpop.eup %15425 }
0x36e2   : > { %v6686_v23 = vsel %vm441_vm2, %v15426_v20, 0.0 }
0x36e3   : > { %6687 = vadd.xlane.f32.xlu1 %v6686_v23  ;;  %v7475_v23 = vld [vmem:[#allocation2 + $0x760] sm:$0xff] }
0x3770   : > { %v6688_v49 = vpop.xlane.xlu1 %6687 }
0x3771   : > { %15427 = vrcp.f32 %v6688_v49  ;;  %v7476_v49 = vld [vmem:[#allocation2 + $0x768] sm:$0xff] }
0x377b   : > { %v15428_v26 = vpop.eup %15427 }
0x377c   : > { %v6690_v29 = vmul.f32 %v15428_v26, %v15426_v20  ;;  %v7474_v20 = vld [vmem:[#allocation2 + $0x758] sm:$0xff]  ;;  %v15108_v26 = vpack.c.bf16 %v7477_v25, %v7476_v49 }
0x377d   : > { %v15105_v24 = vpack.c.bf16 %v7475_v23, %v7474_v20  ;;  %v7870_v23 = vld [vmem:[#allocation2 + $0x708] sm:$0xff] }
0x377e   : > { %14198 = vmatmul.mubr.msk.f32.vlgmr.msra.gmra.mrb[76].mxu1 %vm441_vm2, %v6690_v29  ;;  %v7396_v29 = vld [vmem:[#allocation2 + $0x6e0] sm:$0xff] }
0x377f   : > { %15076 = vmatpush3.bf16.msra.mxu1 %v15075_v28  ;;  %14213 = vmatprep.mubr.msk.f32.mxu1 %vm15586_vm0, %v15587_v1  ;;  %v7395_v28 = vld [vmem:[#allocation2 + $0x6d8] sm:$0xff] }
0x3780   : > { %15077 = vmatprep.subr.bf16.mxu1 %v15585_v0  ;;  %v15099_v22 = vpack.c.bf16 %v7396_v29, %v7395_v28 }
0x3783   : > { %15079 = vmatpush3.bf16.msra.mxu1 %v15078_v31  ;;  %v7398_v31 = vld [vmem:[#allocation2 + $0x6f0] sm:$0xff] }
0x3784   : > { %15086 = vmatprep.subr.bf16.mxu1 %v15585_v0 }
0x3786   : > { %14214 = vmatmul.mubr.msk.f32.vlgmr.msra.gmra.mrb[78].mxu1 %vm209_vm1, %v16034_v55  ;;  %v6924_v55 = vld [vmem:[#allocation2 + $0x6c8] sm:$0xff] }
0x3787   : > { %15088 = vmatpush3.bf16.msra.mxu1 %v15087_v34  ;;  %14235 = vmatprep.mubr.msk.f32.mxu1 %vm15586_vm0, %v15587_v1  ;;  %v15084_v45 = vpack.c.bf16 %v6925_v41, %v6924_v55  ;;  %v15102_v34 = vpack.c.bf16 %v7398_v31, %v7397_v30 }
0x3788   : > { %15089 = vmatprep.subr.bf16.mxu1 %v15585_v0 }
0x378b   : > { %15091 = vmatpush3.bf16.msra.mxu1 %v15090_v37 }
0x378c   : > { %14248 = vmatprep.subr.mxu1 %v15587_v1 }
0x378e   : > { %14236 = vmatmul.mubr.msk.f32.vlgmr.msra.gmra.mrb[80].mxu1 %vm209_vm1, %v16198_v53 }
0x378f   : > { %14250 = vmatprep.mubr.msk.f32.mxu1 %vm15586_vm0, %v15587_v1  ;;  %14249 = vmatpush3.msra.mxu1 %v7241_v11  ;;  %v7792_v11 = vld [vmem:[#allocation2 + $0x690] sm:$0xff] }
0x3790   : > { %15098 = vmatprep.subr.bf16.mxu1 %v15585_v0 }
0x3851   : > { %v6760_v43 = vpop.f32.mrb[76].mxu1 }
0x3852   : > { %v14199_v44 = vpop.f32.mrb[77].mxu1  ;;  %14203 = vmatmul.mubr.msk.f32.vlgmr.msra.gmra.mrb[84].mxu0 %vm441_vm2, %v6760_v43 }
0x3853   : > { %15082 = vmatpush3.bf16.msra.mxu0 %v15081_v40  ;;  %14224 = vmatprep.mubr.msk.f32.mxu0 %vm15586_vm0, %v15587_v1  ;;  %v12840_v44 = vld [vmem:[#allocation2 + $0x79e] ss:$0 sm:$0xff] }
0x3854   : > { %15083 = vmatprep.subr.bf16.mxu0 %v15585_v0 }
0x3857   : > { %15085 = vmatpush3.bf16.msra.mxu0 %v15084_v45  ;;  %v12838_v45 = vld [vmem:[#allocation2 + $0x79a] ss:$0 sm:$0xff] }
0x3858   : > { %14238 = vmatprep.subr.mxu0 %v15587_v1 }
0x3859   : > { %v6918_v47 = vpop.f32.mrb[78].mxu1 }
0x385a   : > { %14225 = vmatmul.mubr.msk.f32.vlgmr.msra.gmra.mrb[86].mxu0 %vm209_vm1, %v16198_v53  ;;  %v14215_v48 = vpop.f32.mrb[79].mxu1  ;;  %v6919_v46 = vadd.f32 %v12828_v58, %v6918_v47 }
0x385b   : > { %14240 = vmatprep.mubr.msk.f32.mxu0 %vm15586_vm0, %v15587_v1 }
0x3861   : > { %v7076_v50 = vpop.f32.mrb[80].mxu1 }
0x3862   : > { %v14237_v52 = vpop.f32.mrb[81].mxu1  ;;  %v7077_v59 = vadd.f32 %v12832_v62, %v7076_v50 }
0x3925   : > { %v16250_v54 = vpop.f32.mrb[84].mxu0 }
0x3926   : > { %v14204_v56 = vpop.f32.mrb[85].mxu0  ;;  %v6842_v40 = vadd.f32 %v12827_v39, %v16250_v54 }
0x3927   : > { %v12842_v56 = vld [vmem:[#allocation2 + $0x7a2] ss:$0 sm:$0xff] }
0x392d   : > { %v6997_v60 = vpop.f32.mrb[86].mxu0 }
0x392e   : > { %v6998_v42 = vadd.f32 %v12830_v57, %v6997_v60  ;;  %v14226_v61 = vpop.f32.mrb[87].mxu0 }
0x3930   : > { %14239 = vmatpush3.xpose.msk.msra.mxu0 %vm441_vm2, %v6998_v42 }
0x3931   : > { %14243 = vmatprep.subr.mxu0 %v15587_v1 }
0x3933   : > { %14241 = vmatmul.mubr.msk.f32.vlgmr.msra.gmra.mrb[88].mxu0 %vm441_vm2, %v6919_v46 }
0x3934   : > { %14244 = vmatpush3.msra.mxu0 %v7077_v59  ;;  %14245 = vmatprep.mubr.msk.f32.mxu0 %vm15586_vm0, %v15587_v1 }
0x3935   : > { %15092 = vmatprep.subr.bf16.mxu0 %v15585_v0 }
0x3a06   : > { %v7152_v63 = vpop.f32.mrb[88].mxu0 }
0x3a07   : > { %v7156_v3 = vmul.f32 0.35355338, %v7152_v63  ;;  %v14242_v4 = vpop.f32.mrb[89].mxu0 }
0x3a09   : > { %v7157_v2 = vsel %vm441_vm2, %v7156_v3, -inf }
0x3a0a   : > { %7158 = vmax.xlane.f32.xlu0 %v7157_v2  ;;  %v7789_v2 = vld [vmem:[#allocation2 + $0x678] sm:$0xff] }
0x3a97   : > { %v7159_v6 = vpop.xlane.xlu0 %7158 }
0x3a98   : > { %v7160_v7 = vsub.f32 %v7156_v3, %v7159_v6  ;;  %v7714_v3 = vld [vmem:[#allocation2 + $0x7b8] sm:$0xff]  ;;  %v7790_v6 = vld [vmem:[#allocation2 + $0x680] sm:$0xff] }
0x3a9a   : > { %v7161_v8 = vmul.f32 1.442695, %v7160_v7 }
0x3a9c   : > { %15429 = vpow2.f32 %v7161_v8  ;;  %v15111_v8 = vpack.c.bf16 %v7790_v6, %v7789_v2 }
0x3aa6   : > { %v15430_v9 = vpop.eup %15429 }
0x3aa7   : > { %v7163_v10 = vsel %vm441_vm2, %v15430_v9, 0.0 }
0x3aa8   : > { %7164 = vadd.xlane.f32.xlu1 %v7163_v10  ;;  %v7791_v10 = vld [vmem:[#allocation2 + $0x688] sm:$0xff] }
0x3b35   : > { %v7165_v12 = vpop.xlane.xlu1 %7164 }
0x3b36   : > { %15431 = vrcp.f32 %v7165_v12  ;;  %v15114_v12 = vpack.c.bf16 %v7792_v11, %v7791_v10  ;;  %v16347_v11 = vld [vmem:[#allocation2 + $0x7d1] ss:$0 sm:$0xff] }
0x3b40   : > { %v15432_v15 = vpop.eup %15431 }
0x3b41   : > { %v7167_v17 = vmul.f32 %v15432_v15, %v15430_v9  ;;  %v15123_v15 = vpack.c.bf16 %v7948_v51, %v7947_v13 }
0x3b43   : > { %14246 = vmatmul.mubr.msk.f32.vlgmr.msra.gmra.mrb[90].mxu0 %vm441_vm2, %v7167_v17  ;;  %v7950_v17 = vld [vmem:[#allocation2 + $0x790] sm:$0xff] }
0x3b44   : > { %15094 = vmatpush3.bf16.msra.mxu0 %v15093_v16  ;;  %14261 = vmatprep.mubr.msk.f32.mxu0 %vm15586_vm0, %v15587_v1  ;;  %v7949_v16 = vld [vmem:[#allocation2 + $0x788] sm:$0xff] }
0x3b45   : > { %15095 = vmatprep.subr.bf16.mxu0 %v15585_v0  ;;  %v15126_v18 = vpack.c.bf16 %v7950_v17, %v7949_v16 }
0x3b48   : > { %15097 = vmatpush3.bf16.msra.mxu0 %v15096_v21  ;;  %v7869_v21 = vld [vmem:[#allocation2 + $0x700] sm:$0xff] }
0x3b49   : > { %15104 = vmatprep.subr.bf16.mxu0 %v15585_v0  ;;  %v15117_v20 = vpack.c.bf16 %v7869_v21, %v7868_v19 }
0x3b4b   : > { %14262 = vmatmul.mubr.msk.f32.vlgmr.msra.gmra.mrb[92].mxu0 %vm209_vm1, %v16267_v14 }
0x3b4c   : > { %15106 = vmatpush3.bf16.msra.mxu0 %v15105_v24  ;;  %14283 = vmatprep.mubr.msk.f32.mxu0 %vm15586_vm0, %v15587_v1  ;;  %v7871_v24 = vld [vmem:[#allocation2 + $0x710] sm:$0xff] }
0x3b4d   : > { %15107 = vmatprep.subr.bf16.mxu0 %v15585_v0 }
0x3b50   : > { %15109 = vmatpush3.bf16.msra.mxu0 %v15108_v26  ;;  %v15120_v26 = vpack.c.bf16 %v7871_v24, %v7870_v23  ;;  %v8278_v24 = vld [vmem:[#allocation2 + $0x7d8] sm:$0xff] }
0x3b51   : > { %14296 = vmatprep.subr.mxu0 %v15587_v1 }
0x3b53   : > { %14284 = vmatmul.mubr.msk.f32.vlgmr.msra.gmra.mrb[94].mxu0 %vm209_vm1, %v16198_v53 }
0x3b54   : > { %14298 = vmatprep.mubr.msk.f32.mxu0 %vm15586_vm0, %v15587_v1  ;;  %14297 = vmatpush3.msra.mxu0 %v7714_v3 }
0x3b55   : > { %15116 = vmatprep.subr.bf16.mxu0 %v15585_v0 }
0x3c16   : > { %v7237_v32 = vpop.f32.mrb[90].mxu0 }
0x3c17   : > { %v14247_v33 = vpop.f32.mrb[91].mxu0  ;;  %14251 = vmatmul.mubr.msk.f32.vlgmr.msra.gmra.mrb[82].mxu1 %vm441_vm2, %v7237_v32 }
0x3c18   : > { %15100 = vmatpush3.bf16.msra.mxu1 %v15099_v22  ;;  %14272 = vmatprep.mubr.msk.f32.mxu1 %vm15586_vm0, %v15587_v1 }
0x3c19   : > { %15101 = vmatprep.subr.bf16.mxu1 %v15585_v0 }
0x3c1c   : > { %15103 = vmatpush3.bf16.msra.mxu1 %v15102_v34  ;;  %v12850_v34 = vld [vmem:[#allocation2 + $0x79f] ss:$0 sm:$0xff] }
0x3c1d   : > { %14286 = vmatprep.subr.mxu1 %v15587_v1 }
0x3c1e   : > { %v7391_v35 = vpop.f32.mrb[92].mxu0 }
0x3c1f   : > { %14273 = vmatmul.mubr.msk.f32.vlgmr.msra.gmra.mrb[84].mxu1 %vm209_vm1, %v16198_v53  ;;  %v14263_v36 = vpop.f32.mrb[93].mxu0  ;;  %v7392_v52 = vadd.f32 %v12838_v45, %v7391_v35  ;;  %v12848_v35 = vld [vmem:[#allocation2 + $0x79b] ss:$0 sm:$0xff] }
0x3c20   : > { %14288 = vmatprep.mubr.msk.f32.mxu1 %vm15586_vm0, %v15587_v1 }
0x3c26   : > { %v7549_v37 = vpop.f32.mrb[94].mxu0 }
0x3c27   : > { %v14285_v38 = vpop.f32.mrb[95].mxu0  ;;  %v7550_v57 = vadd.f32 %v12842_v56, %v7549_v37 }
0x3cea   : > { %v7311_v55 = vpop.f32.mrb[82].mxu1 }
0x3ceb   : > { %v16289_v41 = vadd.f32 %v7311_v55, %v6842_v40  ;;  %v14252_v43 = vpop.f32.mrb[83].mxu1  ;;  %v12852_v40 = vld [vmem:[#allocation2 + $0x7a3] ss:$0 sm:$0xff] }
0x3cf2   : > { %v7470_v47 = vpop.f32.mrb[84].mxu1 }
0x3cf3   : > { %v7471_v48 = vadd.f32 %v12840_v44, %v7470_v47  ;;  %v14274_v50 = vpop.f32.mrb[85].mxu1  ;;  %v6336_v47 = vadd.f32 %v16267_v14, %v16215_v5  ;;  %v8187_v5 = vld [vmem:[#allocation2 + $0x7c0] sm:$0xff] }
0x3cf5   : > { %14287 = vmatpush3.xpose.msk.msra.mxu1 %vm441_vm2, %v7471_v48  ;;  %v6339_v48 = vsel %vm209_vm1, %v6336_v47, 0.0 }
0x3cf6   : > { %14291 = vmatprep.subr.mxu1 %v15587_v1 }
0x3cf8   : > { %14289 = vmatmul.mubr.msk.f32.vlgmr.msra.gmra.mrb[86].mxu1 %vm441_vm2, %v7392_v52 }
0x3cf9   : > { %14292 = vmatpush3.msra.mxu1 %v7550_v57  ;;  %14293 = vmatprep.mubr.msk.f32.mxu1 %vm15586_vm0, %v15587_v1 }
0x3cfa   : > { %15110 = vmatprep.subr.bf16.mxu1 %v15585_v0 }
0x3dcb   : > { %v7625_v54 = vpop.f32.mrb[86].mxu1 }
0x3dcc   : > { %v7629_v58 = vmul.f32 0.35355338, %v7625_v54  ;;  %v14290_v60 = vpop.f32.mrb[87].mxu1 }
0x3dce   : > { %v7630_v42 = vsel %vm441_vm2, %v7629_v58, -inf }
0x3dcf   : > { %7631 = vmax.xlane.f32.xlu0 %v7630_v42 }
0x3e5c   : > { %v7632_v61 = vpop.xlane.xlu0 %7631 }
0x3e5d   : > { %v7633_v46 = vsub.f32 %v7629_v58, %v7632_v61 }
0x3e5f   : > { %v7634_v62 = vmul.f32 1.442695, %v7633_v46 }
0x3e61   : > { %15433 = vpow2.f32 %v7634_v62 }
0x3e6b   : > { %v15434_v59 = vpop.eup %15433 }
0x3e6c   : > { %v7636_v63 = vsel %vm441_vm2, %v15434_v59, 0.0 }
0x3e6d   : > { %7637 = vadd.xlane.f32.xlu1 %v7636_v63 }
0x3efa   : > { %v7638_v4 = vpop.xlane.xlu1 %7637 }
0x3efb   : > { %15435 = vrcp.f32 %v7638_v4 }
0x3f05   : > { %v15436_v7 = vpop.eup %15435 }
0x3f06   : > { %v7640_v9 = vmul.f32 %v15436_v7, %v15434_v59 }
0x3f08   : > { %14294 = vmatmul.mubr.msk.f32.vlgmr.msra.gmra.mrb[88].mxu1 %vm441_vm2, %v7640_v9  ;;  %v16344_v9 = vld [vmem:[#allocation2 + $0x7d0] ss:$0 sm:$0xff] }
0x3f09   : > { %15112 = vmatpush3.bf16.msra.mxu1 %v15111_v8  ;;  %14309 = vmatprep.mubr.msk.f32.mxu1 %vm15586_vm0, %v15587_v1 }
0x3f0a   : > { %15113 = vmatprep.subr.bf16.mxu1 %v15585_v0 }
0x3f0d   : > { %15115 = vmatpush3.bf16.msra.mxu1 %v15114_v12 }
0x3f0e   : > { %15122 = vmatprep.subr.bf16.mxu1 %v15585_v0 }
0x3f10   : > { %14310 = vmatmul.mubr.msk.f32.vlgmr.msra.gmra.mrb[90].mxu1 %vm209_vm1, %v16267_v14 }
0x3f11   : > { %15124 = vmatpush3.bf16.msra.mxu1 %v15123_v15  ;;  %14331 = vmatprep.mubr.msk.f32.mxu1 %vm15586_vm0, %v15587_v1 }
0x3f12   : > { %15125 = vmatprep.subr.bf16.mxu1 %v15585_v0 }
0x3f15   : > { %15127 = vmatpush3.bf16.msra.mxu1 %v15126_v18 }
0x3f16   : > { %14344 = vmatprep.subr.mxu1 %v15587_v1 }
0x3f18   : > { %14332 = vmatmul.mubr.msk.f32.vlgmr.msra.gmra.mrb[92].mxu1 %vm209_vm1, %v16198_v53 }
0x3f19   : > { %14346 = vmatprep.mubr.msk.f32.mxu1 %vm15586_vm0, %v15587_v1  ;;  %14345 = vmatpush3.msra.mxu1 %v8187_v5 }
0x3f1a   : > { %15134 = vmatprep.subr.bf16.mxu1 %v15585_v0 }
0x3fdb   : > { %v7710_v49 = vpop.f32.mrb[88].mxu1 }
0x3fdc   : > { %v14295_v25 = vpop.f32.mrb[89].mxu1  ;;  %14299 = vmatmul.mubr.msk.f32.vlgmr.msra.gmra.mrb[96].mxu0 %vm441_vm2, %v7710_v49  ;;  %v8279_v49 = vld [vmem:[#allocation2 + $0x7e0] sm:$0xff] }
0x3fdd   : > { %15118 = vmatpush3.bf16.msra.mxu0 %v15117_v20  ;;  %14320 = vmatprep.mubr.msk.f32.mxu0 %vm15586_vm0, %v15587_v1  ;;  %v15129_v25 = vpack.c.bf16 %v8279_v49, %v8278_v24  ;;  %v8546_v24 = vld [vmem:[#allocation2 + $0x8c8] sm:$0xff]  ;;  %v8547_v49 = vld [vmem:[#allocation2 + $0x8d0] sm:$0xff] }
0x3fde   : > { %15119 = vmatprep.subr.bf16.mxu0 %v15585_v0 }
0x3fe1   : > { %15121 = vmatpush3.bf16.msra.mxu0 %v15120_v26  ;;  %v8280_v26 = vld [vmem:[#allocation2 + $0x7e8] sm:$0xff] }
0x3fe2   : > { %14334 = vmatprep.subr.mxu0 %v15587_v1 }
0x3fe3   : > { %v7864_v28 = vpop.f32.mrb[90].mxu1 }
0x3fe4   : > { %14321 = vmatmul.mubr.msk.f32.vlgmr.msra.gmra.mrb[98].mxu0 %vm209_vm1, %v16198_v53  ;;  %v14311_v29 = vpop.f32.mrb[91].mxu1  ;;  %v7865_v39 = vadd.f32 %v12848_v35, %v7864_v28  ;;  %v8281_v28 = vld [vmem:[#allocation2 + $0x7f0] sm:$0xff]  ;;  %v8365_v35 = vld [vmem:[#allocation2 + $0x820] sm:$0xff] }
0x3fe5   : > { %14336 = vmatprep.mubr.msk.f32.mxu0 %vm15586_vm0, %v15587_v1  ;;  %v15132_v29 = vpack.c.bf16 %v8281_v28, %v8280_v26  ;;  %v15153_v26 = vpack.c.bf16 %v8547_v49, %v8546_v24  ;;  %v12875_v24 = vld [vmem:[#allocation2 + $0x9cd] ss:$0 sm:$0xff] }
0x3feb   : > { %v8022_v22 = vpop.f32.mrb[92].mxu1 }
0x3fec   : > { %v14333_v30 = vpop.f32.mrb[93].mxu1  ;;  %v8023_v55 = vadd.f32 %v12852_v40, %v8022_v22  ;;  %v8361_v22 = vld [vmem:[#allocation2 + $0x800] sm:$0xff] }
0x3fed   : > { %v8362_v30 = vld [vmem:[#allocation2 + $0x808] sm:$0xff] }
0x40af   : > { %v7784_v31 = vpop.f32.mrb[96].mxu0 }
0x40b0   : > { %v7788_v32 = vadd.f32 %v7784_v31, %v16289_v41  ;;  %v14300_v33 = vpop.f32.mrb[97].mxu0  ;;  %v8363_v31 = vld [vmem:[#allocation2 + $0x810] sm:$0xff] }
0x40b1   : > { %v8364_v33 = vld [vmem:[#allocation2 + $0x818] sm:$0xff] }
0x40b7   : > { %v7943_v36 = vpop.f32.mrb[98].mxu0 }
0x40b8   : > { %v7944_v37 = vadd.f32 %v12850_v34, %v7943_v36  ;;  %v14322_v38 = vpop.f32.mrb[99].mxu0  ;;  %v15138_v34 = vpack.c.bf16 %v8364_v33, %v8363_v31  ;;  %v8366_v36 = vld [vmem:[#allocation2 + $0x828] sm:$0xff] }
0x40ba   : > { %14335 = vmatpush3.xpose.msk.msra.mxu0 %vm441_vm2, %v7944_v37  ;;  %v15141_v37 = vpack.c.bf16 %v8366_v36, %v8365_v35  ;;  %v12864_v35 = vld [vmem:[#allocation2 + $0x9cc] ss:$0 sm:$0xff] }
0x40bb   : > { %14339 = vmatprep.subr.mxu0 %v15587_v1 }
0x40bd   : > { %14337 = vmatmul.mubr.msk.f32.vlgmr.msra.gmra.mrb[100].mxu0 %vm441_vm2, %v7865_v39 }
0x40be   : > { %14340 = vmatpush3.msra.mxu0 %v8023_v55  ;;  %14341 = vmatprep.mubr.msk.f32.mxu0 %vm15586_vm0, %v15587_v1 }
0x40bf   : > { %15128 = vmatprep.subr.bf16.mxu0 %v15585_v0 }
0x4190   : > { %v8098_v41 = vpop.f32.mrb[100].mxu0 }
0x4191   : > { %v8102_v43 = vmul.f32 0.35355338, %v8098_v41  ;;  %v14338_v44 = vpop.f32.mrb[101].mxu0 }
0x4193   : > { %v8103_v45 = vsel %vm441_vm2, %v8102_v43, -inf }
0x4194   : > { %8104 = vmax.xlane.f32.xlu0 %v8103_v45  ;;  %v8367_v45 = vld [vmem:[#allocation2 + $0x830] sm:$0xff] }
0x4198   : > { %6340 = vadd.xlane.f32.xlu0 %v6339_v48 }
0x4221   : > { %v8105_v50 = vpop.xlane.xlu0 %8104 }
0x4222   : > { %v8106_v52 = vsub.f32 %v8102_v43, %v8105_v50  ;;  %v12858_v50 = vld [vmem:[#allocation2 + $0x7f8] ss:$0 sm:$0xff] }
0x4224   : > { %v8107_v56 = vmul.f32 1.442695, %v8106_v52 }
0x4225   : > { %v6341_v57 = vpop.xlane.xlu0 %6340 }
0x4226   : > { %15437 = vpow2.f32 %v8107_v56  ;;  %v6342_v54 = vmul.f32 0.03125, %v6341_v57 }
0x4228   : > { %v6343_v58 = vsub.f32 %v6336_v47, %v6342_v54  ;;  %v8368_v47 = vld [vmem:[#allocation2 + $0x838] sm:$0xff] }
0x4229   : > { %v15144_v48 = vpack.c.bf16 %v8368_v47, %v8367_v45 }
0x422a   : > { %v6344_v61 = vmul.f32 %v6343_v58, %v6343_v58 }
0x422c   : > { %v6345_v46 = vsel %vm209_vm1, %v6344_v61, 0.0 }
0x4230   : > { %v15438_v60 = vpop.eup %15437 }
0x4231   : > { %v8109_v42 = vsel %vm441_vm2, %v15438_v60, 0.0 }
0x4232   : > { %8110 = vadd.xlane.f32.xlu1 %v8109_v42 }
0x4236   : > { %6346 = vadd.xlane.f32.xlu1 %v6345_v46 }
0x42bf   : > { %v8111_v14 = vpop.xlane.xlu1 %8110 }
0x42c0   : > { %15439 = vrcp.f32 %v8111_v14 }
0x42c3   : > { %v6347_v4 = vpop.xlane.xlu1 %6346 }
0x42c4   : > { %v6348_v2 = vmul.f32 0.03125, %v6347_v4  ;;  %v8464_v4 = vld [vmem:[#allocation2 + $0x848] sm:$0xff] }
0x42c6   : > { %v6349_v6 = vadd.f32 1e-05, %v6348_v2  ;;  %v8465_v2 = vld [vmem:[#allocation2 + $0x850] sm:$0xff] }
0x42c8   : > { %15441 = vrsqrt.f32 %v6349_v6  ;;  %v15147_v6 = vpack.c.bf16 %v8465_v2, %v8464_v4  ;;  %v9105_v4 = vld [vmem:[#allocation2 + $0x978] sm:$0xff]  ;;  %v9106_v2 = vld [vmem:[#allocation2 + $0x980] sm:$0xff] }
0x42ca   : > { %v15440_v62 = vpop.eup %15439 }
0x42cb   : > { %v8113_v59 = vmul.f32 %v15440_v62, %v15438_v60 }
0x42cd   : > { %14342 = vmatmul.mubr.msk.f32.vlgmr.msra.gmra.mrb[102].mxu0 %vm441_vm2, %v8113_v59 }
0x42ce   : > { %14357 = vmatprep.mubr.msk.f32.mxu0 %vm15586_vm0, %v15587_v1  ;;  %15130 = vmatpush3.bf16.msra.mxu0 %v15129_v25 }
0x42cf   : > { %15131 = vmatprep.subr.bf16.mxu0 %v15585_v0 }
0x42d2   : > { %v15442_v7 = vpop.eup %15441  ;;  %15133 = vmatpush3.bf16.msra.mxu0 %v15132_v29  ;;  %v8548_v29 = vld [vmem:[#allocation2 + $0x8d8] sm:$0xff] }
0x42d3   : > { %v6351_v8 = vmul.f32 %v15442_v7, %v6343_v58  ;;  %15146 = vmatprep.subr.bf16.mxu0 %v15585_v0  ;;  %v12860_v58 = vld [vmem:[#allocation2 + $0x840] ss:$0 sm:$0xff]  ;;  %v8625_v7 = vld [vmem:[#allocation2 + $0x948] sm:$0xff] }
0x42d5   : > { %v6356_v10 = vmul.f32 %v16344_v9, %v6351_v8  ;;  %v8626_v8 = vld [vmem:[#allocation2 + $0x950] sm:$0xff] }
0x42d7   : > { %v6361_v15 = vadd.f32 %v16347_v11, %v6356_v10  ;;  %v15159_v10 = vpack.c.bf16 %v8626_v8, %v8625_v7  ;;  %v9024_v7 = vld [vmem:[#allocation2 + $0x8e8] sm:$0xff]  ;;  %v9025_v8 = vld [vmem:[#allocation2 + $0x8f0] sm:$0xff] }
0x43a0   : > { %v8183_v63 = vpop.f32.mrb[102].mxu0 }
0x43a1   : > { %v14343_v3 = vpop.f32.mrb[103].mxu0  ;;  %14347 = vmatmul.mubr.msk.f32.vlgmr.msra.gmra.mrb[94].mxu1 %vm441_vm2, %v8183_v63 }
0x43a2   : > { %14376 = vmatprep.mubr.msk.f32.mxu1 %vm15586_vm0, %v15587_v1 }
0x4474   : > { %v8257_v12 = vpop.f32.mrb[94].mxu1 }
0x4475   : > { %v8261_v13 = vadd.f32 %v8257_v12, %v7788_v32  ;;  %v14348_v51 = vpop.f32.mrb[95].mxu1  ;;  %v15135_v32 = vpack.c.bf16 %v8362_v30, %v8361_v22  ;;  %v8466_v12 = vld [vmem:[#allocation2 + $0x858] sm:$0xff]  ;;  %v8549_v22 = vld [vmem:[#allocation2 + $0x8e0] sm:$0xff] }
0x4476   : > { %v15156_v30 = vpack.c.bf16 %v8549_v22, %v8548_v29  ;;  %v12877_v22 = vld [vmem:[#allocation2 + $0x9d1] ss:$0 sm:$0xff] }
0x4477   : > { %v8262_v16 = vadd.f32 %v8261_v13, %v6361_v15  ;;  %15136 = vmatpush3.bf16.msra.mxu1 %v15135_v32  ;;  %v8467_v13 = vld [vmem:[#allocation2 + $0x860] sm:$0xff]  ;;  %v8627_v15 = vld [vmem:[#allocation2 + $0x958] sm:$0xff] }
0x4478   : > { %15137 = vmatprep.subr.bf16.mxu1 %v15585_v0  ;;  %v15150_v51 = vpack.c.bf16 %v8467_v13, %v8466_v12  ;;  %v9026_v12 = vld [vmem:[#allocation2 + $0x8f8] sm:$0xff]  ;;  %v9027_v13 = vld [vmem:[#allocation2 + $0x900] sm:$0xff] }
0x4479   : > { %v8263_v17 = vsel %vm209_vm1, %v8262_v16, 0.0 }
0x447a   : > { %8264 = vadd.xlane.f32.xlu0 %v8263_v17 }
0x447b   : > { %15139 = vmatpush3.bf16.msra.mxu1 %v15138_v34 }
0x447c   : > { %15140 = vmatprep.subr.bf16.mxu1 %v15585_v0 }
0x447f   : > { %15142 = vmatpush3.bf16.msra.mxu1 %v15141_v37  ;;  %v12862_v37 = vld [vmem:[#allocation2 + $0x9c8] ss:$0 sm:$0xff] }
0x4480   : > { %15143 = vmatprep.subr.bf16.mxu1 %v15585_v0 }
0x4483   : > { %15145 = vmatpush3.bf16.msra.mxu1 %v15144_v48 }
0x4484   : > { %15158 = vmatprep.subr.bf16.mxu1 %v15585_v0 }
0x4507   : > { %v8265_v18 = vpop.xlane.xlu0 %8264 }
0x4508   : > { %v8266_v19 = vmul.f32 0.03125, %v8265_v18 }
0x450a   : > { %v8267_v21 = vsub.f32 %v8262_v16, %v8266_v19  ;;  %v8628_v16 = vld [vmem:[#allocation2 + $0x960] sm:$0xff] }
0x450b   : > { %v15162_v17 = vpack.c.bf16 %v8628_v16, %v8627_v15  ;;  %v15174_v16 = vpack.c.bf16 %v9027_v13, %v9026_v12 }
0x450c   : > { %v8268_v20 = vmul.f32 %v8267_v21, %v8267_v21 }
0x450e   : > { %v8269_v23 = vsel %vm209_vm1, %v8268_v20, 0.0 }
0x450f   : > { %8270 = vadd.xlane.f32.xlu1 %v8269_v23 }
0x459c   : > { %v8271_v38 = vpop.xlane.xlu1 %8270 }
0x459d   : > { %v8272_v39 = vmul.f32 0.03125, %v8271_v38 }
0x459f   : > { %v8273_v40 = vadd.f32 1e-05, %v8272_v39 }
0x45a1   : > { %15443 = vrsqrt.f32 %v8273_v40 }
0x45ab   : > { %v15444_v55 = vpop.eup %15443 }
0x45ac   : > { %v8275_v41 = vmul.f32 %v15444_v55, %v8267_v21 }
0x45ae   : > { %v8276_v43 = vmul.f32 %v16344_v9, %v8275_v41 }
0x45b0   : > { %v8277_v44 = vadd.f32 %v16347_v11, %v8276_v43 }
0x45b2   : > { %14358 = vmatmul.mubr.msk.f32.vlgmr.msra.gmra.mrb[104].mxu0 %vm209_vm1, %v8277_v44 }
0x45b3   : > { %14387 = vmatprep.mubr.msk.f32.mxu0 %vm15586_vm0, %v15587_v1  ;;  %15148 = vmatpush3.bf16.msra.mxu0 %v15147_v6  ;;  %v15180_v6 = vpack.c.bf16 %v9106_v2, %v9105_v4 }
0x45b4   : > { %15149 = vmatprep.subr.bf16.mxu0 %v15585_v0 }
0x45b7   : > { %15151 = vmatpush3.bf16.msra.mxu0 %v15150_v51 }
0x45b8   : > { %15152 = vmatprep.subr.bf16.mxu0 %v15585_v0 }
0x4685   : > { %v8356_v52 = vpop.f32.mrb[104].mxu0 }
0x4686   : > { %v8357_v56 = vadd.f32 %v12858_v50, %v8356_v52  ;;  %v14359_v57 = vpop.f32.mrb[105].mxu0 }
0x4687   : > { %v8866_v57 = vld [vmem:[#allocation2 + $0x9d8] sm:$0xff] }
0x4688   : > { %v8360_v54 = vmax.f32 %v8357_v56, 0.0 }
0x468a   : > { %14377 = vmatmul.mubr.msk.f32.vlgmr.msra.gmra.mrb[96].mxu1 %vm2224_vm3, %v8360_v54 }
0x468b   : > { %14409 = vmatprep.mubr.msk.f32.mxu1 %vm15586_vm0, %v15587_v1  ;;  %15160 = vmatpush3.bf16.msra.mxu1 %v15159_v10  ;;  %v15171_v10 = vpack.c.bf16 %v9025_v8, %v9024_v7  ;;  %v12872_v8 = vld [vmem:[#allocation2 + $0x9f8] ss:$0 sm:$0xff] }
0x468c   : > { %15161 = vmatprep.subr.bf16.mxu1 %v15585_v0 }
0x468f   : > { %15163 = vmatpush3.bf16.msra.mxu1 %v15162_v17 }
0x4690   : > { %14417 = vmatprep.subr.mxu1 %v15587_v1 }
0x475d   : > { %v8443_v60 = vpop.f32.mrb[96].mxu1 }
0x475e   : > { %v8444_v42 = vadd.f32 %v12860_v58, %v8443_v60  ;;  %v14378_v61 = vpop.f32.mrb[97].mxu1  ;;  %v8945_v58 = vld [vmem:[#allocation2 + $0x868] sm:$0xff]  ;;  %v8946_v60 = vld [vmem:[#allocation2 + $0x870] sm:$0xff] }
0x475f   : > { %v15165_v61 = vpack.c.bf16 %v8946_v60, %v8945_v58  ;;  %v9579_v58 = vld [vmem:[#allocation2 + $0x998] sm:$0xff]  ;;  %v9580_v60 = vld [vmem:[#allocation2 + $0x9a0] sm:$0xff] }
0x4760   : > { %v8447_v46 = vadd.f32 %v8444_v42, %v8277_v44 }
0x4762   : > { %v8448_v5 = vsel %vm209_vm1, %v8447_v46, 0.0 }
0x4763   : > { %8449 = vadd.xlane.f32.xlu0 %v8448_v5  ;;  %v8947_v5 = vld [vmem:[#allocation2 + $0x878] sm:$0xff] }
0x47f0   : > { %v8450_v14 = vpop.xlane.xlu0 %8449 }
0x47f1   : > { %v8451_v62 = vmul.f32 0.03125, %v8450_v14  ;;  %v8948_v14 = vld [vmem:[#allocation2 + $0x880] sm:$0xff] }
0x47f3   : > { %v8452_v59 = vsub.f32 %v8447_v46, %v8451_v62  ;;  %v15168_v62 = vpack.c.bf16 %v8948_v14, %v8947_v5  ;;  %v9500_v14 = vld [vmem:[#allocation2 + $0x918] sm:$0xff] }
0x47f5   : > { %v8453_v63 = vmul.f32 %v8452_v59, %v8452_v59 }
0x47f7   : > { %v8454_v3 = vsel %vm209_vm1, %v8453_v63, 0.0  ;;  %v9104_v63 = vld [vmem:[#allocation2 + $0x970] sm:$0xff] }
0x47f8   : > { %8455 = vadd.xlane.f32.xlu1 %v8454_v3 }
0x4885   : > { %v8456_v18 = vpop.xlane.xlu1 %8455 }
0x4886   : > { %v8457_v19 = vmul.f32 0.03125, %v8456_v18 }
0x4888   : > { %v8458_v21 = vadd.f32 1e-05, %v8457_v19 }
0x488a   : > { %15445 = vrsqrt.f32 %v8458_v21 }
0x4894   : > { %v15446_v20 = vpop.eup %15445 }
0x4895   : > { %v8460_v23 = vmul.f32 %v15446_v20, %v8452_v59  ;;  %v9103_v59 = vld [vmem:[#allocation2 + $0x968] sm:$0xff] }
0x4896   : > { %v15177_v3 = vpack.c.bf16 %v9104_v63, %v9103_v59 }
0x4897   : > { %v8461_v25 = vmul.f32 %v16344_v9, %v8460_v23  ;;  %v12866_v9 = vld [vmem:[#allocation2 + $0x9d0] ss:$0 sm:$0xff] }
0x4899   : > { %v16374_v28 = vadd.f32 %v16347_v11, %v8461_v25  ;;  %v12873_v25 = vld [vmem:[#allocation2 + $0x9c9] ss:$0 sm:$0xff] }
0x489b   : > { %14388 = vmatmul.mubr.msk.f32.vlgmr.msra.gmra.mrb[106].mxu0 %vm209_vm1, %v16374_v28  ;;  %14410 = vmatmul.mubr.msk.f32.vlgmr.msra.gmra.mrb[98].mxu1 %vm209_vm1, %v16374_v28 }
0x489c   : > { %15154 = vmatpush3.bf16.msra.mxu0 %v15153_v26  ;;  %14398 = vmatprep.mubr.msk.f32.mxu0 %vm15586_vm0, %v15587_v1 }
0x489d   : > { %15155 = vmatprep.subr.bf16.mxu0 %v15585_v0  ;;  %14419 = vmatprep.mubr.msk.f32.mxu1 %vm15586_vm0, %v15587_v1 }
0x48a0   : > { %15157 = vmatpush3.bf16.msra.mxu0 %v15156_v30 }
0x48a1   : > { %14412 = vmatprep.subr.mxu0 %v15587_v1 }
0x48a3   : > { %14399 = vmatmul.mubr.msk.f32.vlgmr.msra.gmra.mrb[108].mxu0 %vm209_vm1, %v16374_v28 }
0x48a4   : > { %14414 = vmatprep.mubr.msk.f32.mxu0 %vm15586_vm0, %v15587_v1 }
0x496e   : > { %v8542_v11 = vpop.f32.mrb[106].mxu0  ;;  %v8700_v31 = vpop.f32.mrb[98].mxu1 }
0x496f   : > { %v8701_v32 = vadd.f32 %v12866_v9, %v8700_v31  ;;  %v14389_v33 = vpop.f32.mrb[107].mxu0  ;;  %v14411_v34 = vpop.f32.mrb[99].mxu1  ;;  %v8543_v40 = vadd.f32 %v12862_v37, %v8542_v11 }
0x4971   : > { %14418 = vmatpush3.msra.mxu1 %v8701_v32 }
0x4972   : > { %15164 = vmatprep.subr.bf16.mxu1 %v15585_v0 }
0x4976   : > { %v8621_v36 = vpop.f32.mrb[108].mxu0 }
0x4977   : > { %v8622_v38 = vadd.f32 %v12864_v35, %v8621_v36  ;;  %v14400_v39 = vpop.f32.mrb[109].mxu0 }
0x4979   : > { %14413 = vmatpush3.xpose.msk.msra.mxu0 %vm441_vm2, %v8622_v38 }
0x497a   : > { %14422 = vmatprep.subr.mxu0 %v15587_v1 }
0x497c   : > { %14415 = vmatmul.mubr.msk.f32.vlgmr.msra.gmra.mrb[110].mxu0 %vm441_vm2, %v8543_v40  ;;  %v9344_v40 = vld [vmem:[#allocation2 + $0x9e0] sm:$0xff] }
0x497d   : > { %14424 = vmatprep.mubr.msk.f32.mxu0 %vm15586_vm0, %v15587_v1  ;;  %14423 = vmatpush3.msra.mxu0 %v8866_v57  ;;  %v9578_v57 = vld [vmem:[#allocation2 + $0x990] sm:$0xff] }
0x497e   : > { %15170 = vmatprep.subr.bf16.mxu0 %v15585_v0 }
0x4a4f   : > { %v8776_v55 = vpop.f32.mrb[110].mxu0 }
0x4a50   : > { %v8780_v41 = vmul.f32 0.35355338, %v8776_v55  ;;  %v14416_v43 = vpop.f32.mrb[111].mxu0 }
0x4a51   : > { %v9420_v43 = vld [vmem:[#allocation2 + $0x890] sm:$0xff] }
0x4a52   : > { %v8781_v44 = vadd.f32 %v8780_v41, %v16065_v27  ;;  %v9419_v41 = vld [vmem:[#allocation2 + $0x888] sm:$0xff] }
0x4a54   : > { %v8782_v45 = vsel %vm441_vm2, %v8781_v44, -inf }
0x4a55   : > { %8783 = vmax.xlane.f32.xlu0 %v8782_v45  ;;  %v15183_v45 = vpack.c.bf16 %v9420_v43, %v9419_v41  ;;  %v10051_v41 = vld [vmem:[#allocation2 + $0x9a8] sm:$0xff]  ;;  %v10052_v43 = vld [vmem:[#allocation2 + $0x9b0] sm:$0xff] }
0x4ae2   : > { %v8784_v47 = vpop.xlane.xlu0 %8783 }
0x4ae3   : > { %v8785_v48 = vsub.f32 %v8781_v44, %v8784_v47 }
0x4ae5   : > { %v8786_v50 = vmul.f32 1.442695, %v8785_v48  ;;  %v9421_v48 = vld [vmem:[#allocation2 + $0x898] sm:$0xff] }
0x4ae7   : > { %15447 = vpow2.f32 %v8786_v50  ;;  %v9422_v50 = vld [vmem:[#allocation2 + $0x8a0] sm:$0xff] }
0x4af1   : > { %v15448_v52 = vpop.eup %15447 }
0x4af2   : > { %v8788_v56 = vsel %vm441_vm2, %v15448_v52, 0.0 }
0x4af3   : > { %8789 = vadd.xlane.f32.xlu1 %v8788_v56  ;;  %v9577_v56 = vld [vmem:[#allocation2 + $0x988] sm:$0xff] }
0x4b80   : > { %v8790_v54 = vpop.xlane.xlu1 %8789 }
0x4b81   : > { %15449 = vrcp.f32 %v8790_v54  ;;  %v15195_v54 = vpack.c.bf16 %v9578_v57, %v9577_v56  ;;  %v9974_v57 = vld [vmem:[#allocation2 + $0x938] sm:$0xff] }
0x4b8b   : > { %v15450_v42 = vpop.eup %15449 }
0x4b8c   : > { %v8792_v46 = vmul.f32 %v15450_v42, %v15448_v52  ;;  %v15186_v52 = vpack.c.bf16 %v9422_v50, %v9421_v48  ;;  %v15198_v42 = vpack.c.bf16 %v9580_v60, %v9579_v58  ;;  %v9972_v50 = vld [vmem:[#allocation2 + $0x928] sm:$0xff] }
0x4b8e   : > { %14420 = vmatmul.mubr.msk.f32.vlgmr.msra.gmra.mrb[100].mxu1 %vm441_vm2, %v8792_v46  ;;  %v9499_v46 = vld [vmem:[#allocation2 + $0x910] sm:$0xff] }
0x4b8f   : > { %15166 = vmatpush3.bf16.msra.mxu1 %v15165_v61  ;;  %14435 = vmatprep.mubr.msk.f32.mxu1 %vm15586_vm0, %v15587_v1  ;;  %v9498_v61 = vld [vmem:[#allocation2 + $0x908] sm:$0xff] }
0x4b90   : > { %15167 = vmatprep.subr.bf16.mxu1 %v15585_v0  ;;  %v15189_v5 = vpack.c.bf16 %v9499_v46, %v9498_v61 }
0x4b93   : > { %15169 = vmatpush3.bf16.msra.mxu1 %v15168_v62  ;;  %v9501_v62 = vld [vmem:[#allocation2 + $0x920] sm:$0xff] }
0x4b94   : > { %15176 = vmatprep.subr.bf16.mxu1 %v15585_v0 }
0x4b96   : > { %14436 = vmatmul.mubr.msk.f32.vlgmr.msra.gmra.mrb[102].mxu1 %vm209_vm1, %v16374_v28 }
0x4b97   : > { %15178 = vmatpush3.bf16.msra.mxu1 %v15177_v3  ;;  %14457 = vmatprep.mubr.msk.f32.mxu1 %vm15586_vm0, %v15587_v1  ;;  %v15192_v3 = vpack.c.bf16 %v9501_v62, %v9500_v14 }
0x4b98   : > { %15179 = vmatprep.subr.bf16.mxu1 %v15585_v0 }
0x4b9b   : > { %15181 = vmatpush3.bf16.msra.mxu1 %v15180_v6 }
0x4b9c   : > { %14470 = vmatprep.subr.mxu1 %v15587_v1 }
0x4b9e   : > { %14458 = vmatmul.mubr.msk.f32.vlgmr.msra.gmra.mrb[104].mxu1 %vm209_vm1, %v16374_v28 }
0x4b9f   : > { %14472 = vmatprep.mubr.msk.f32.mxu1 %vm15586_vm0, %v15587_v1  ;;  %14471 = vmatpush3.msra.mxu1 %v9344_v40  ;;  %v9896_v40 = vld [vmem:[#allocation2 + $0x8c0] sm:$0xff] }
0x4ba0   : > { %15188 = vmatprep.subr.bf16.mxu1 %v15585_v0 }
0x4c61   : > { %v8862_v51 = vpop.f32.mrb[100].mxu1 }
0x4c62   : > { %v14421_v15 = vpop.f32.mrb[101].mxu1  ;;  %14425 = vmatmul.mubr.msk.f32.vlgmr.msra.gmra.mrb[112].mxu0 %vm441_vm2, %v8862_v51 }
0x4c63   : > { %15172 = vmatpush3.bf16.msra.mxu0 %v15171_v10  ;;  %14446 = vmatprep.mubr.msk.f32.mxu0 %vm15586_vm0, %v15587_v1  ;;  %v12885_v15 = vld [vmem:[#allocation2 + $0x9ce] ss:$0 sm:$0xff] }
0x4c64   : > { %15173 = vmatprep.subr.bf16.mxu0 %v15585_v0 }
0x4c67   : > { %15175 = vmatpush3.bf16.msra.mxu0 %v15174_v16 }
0x4c68   : > { %14460 = vmatprep.subr.mxu0 %v15587_v1 }
0x4c69   : > { %v9020_v17 = vpop.f32.mrb[102].mxu1 }
0x4c6a   : > { %v14437_v18 = vpop.f32.mrb[103].mxu1  ;;  %14447 = vmatmul.mubr.msk.f32.vlgmr.msra.gmra.mrb[114].mxu0 %vm209_vm1, %v16374_v28  ;;  %v9021_v30 = vadd.f32 %v12873_v25, %v9020_v17  ;;  %v12883_v17 = vld [vmem:[#allocation2 + $0x9ca] ss:$0 sm:$0xff] }
0x4c6b   : > { %14462 = vmatprep.mubr.msk.f32.mxu0 %vm15586_vm0, %v15587_v1 }
0x4c71   : > { %v9178_v19 = vpop.f32.mrb[104].mxu1 }
0x4c72   : > { %v14459_v21 = vpop.f32.mrb[105].mxu1  ;;  %v9179_v9 = vadd.f32 %v12877_v22, %v9178_v19 }
0x4c73   : > { %v12887_v21 = vld [vmem:[#allocation2 + $0x9d2] ss:$0 sm:$0xff] }
0x4d35   : > { %v16424_v20 = vpop.f32.mrb[112].mxu0 }
0x4d36   : > { %v14426_v23 = vpop.f32.mrb[113].mxu0  ;;  %v8944_v10 = vadd.f32 %v12872_v8, %v16424_v20  ;;  %v12897_v8 = vld [vmem:[#allocation2 + $0x9d3] ss:$0 sm:$0xff] }
0x4d3d   : > { %v9099_v49 = vpop.f32.mrb[114].mxu0 }
0x4d3e   : > { %v9100_v26 = vadd.f32 %v12875_v24, %v9099_v49  ;;  %v14448_v29 = vpop.f32.mrb[115].mxu0 }
0x4d40   : > { %14461 = vmatpush3.xpose.msk.msra.mxu0 %vm441_vm2, %v9100_v26 }
0x4d41   : > { %14465 = vmatprep.subr.mxu0 %v15587_v1 }
0x4d43   : > { %14463 = vmatmul.mubr.msk.f32.vlgmr.msra.gmra.mrb[116].mxu0 %vm441_vm2, %v9021_v30 }
0x4d44   : > { %14466 = vmatpush3.msra.mxu0 %v9179_v9  ;;  %14467 = vmatprep.mubr.msk.f32.mxu0 %vm15586_vm0, %v15587_v1 }
0x4d45   : > { %15182 = vmatprep.subr.bf16.mxu0 %v15585_v0 }
0x4e16   : > { %v9254_v11 = vpop.f32.mrb[116].mxu0 }
0x4e17   : > { %v9258_v31 = vmul.f32 0.35355338, %v9254_v11  ;;  %v14464_v32 = vpop.f32.mrb[117].mxu0 }
0x4e18   : > { %v9818_v32 = vld [vmem:[#allocation2 + $0x9e8] sm:$0xff] }
0x4e19   : > { %v9259_v33 = vadd.f32 %v9258_v31, %v16065_v27 }
0x4e1b   : > { %v9260_v34 = vsel %vm441_vm2, %v9259_v33, -inf }
0x4e1c   : > { %9261 = vmax.xlane.f32.xlu0 %v9260_v34  ;;  %v9893_v34 = vld [vmem:[#allocation2 + $0x8a8] sm:$0xff] }
0x4ea9   : > { %v9262_v35 = vpop.xlane.xlu0 %9261 }
0x4eaa   : > { %v9263_v36 = vsub.f32 %v9259_v33, %v9262_v35  ;;  %v9894_v35 = vld [vmem:[#allocation2 + $0x8b0] sm:$0xff] }
0x4eac   : > { %v9264_v37 = vmul.f32 1.442695, %v9263_v36 }
0x4eae   : > { %15451 = vpow2.f32 %v9264_v37  ;;  %v15201_v37 = vpack.c.bf16 %v9894_v35, %v9893_v34  ;;  %v10554_v34 = vld [vmem:[#allocation2 + $0xb10] sm:$0xff]  ;;  %v10555_v35 = vld [vmem:[#allocation2 + $0xb18] sm:$0xff] }
0x4eb8   : > { %v15452_v38 = vpop.eup %15451 }
0x4eb9   : > { %v9266_v39 = vsel %vm441_vm2, %v15452_v38, 0.0 }
0x4eba   : > { %9267 = vadd.xlane.f32.xlu1 %v9266_v39  ;;  %v9895_v39 = vld [vmem:[#allocation2 + $0x8b8] sm:$0xff] }
0x4f47   : > { %v9268_v55 = vpop.xlane.xlu1 %9267 }
0x4f48   : > { %15453 = vrcp.f32 %v9268_v55  ;;  %v15204_v55 = vpack.c.bf16 %v9896_v40, %v9895_v39  ;;  %v10475_v40 = vld [vmem:[#allocation2 + $0xa90] sm:$0xff] }
0x4f52   : > { %v15454_v44 = vpop.eup %15453 }
0x4f53   : > { %v9270_v47 = vmul.f32 %v15454_v44, %v15452_v38  ;;  %v15213_v44 = vpack.c.bf16 %v10052_v43, %v10051_v41 }
0x4f55   : > { %14468 = vmatmul.mubr.msk.f32.vlgmr.msra.gmra.mrb[118].mxu0 %vm441_vm2, %v9270_v47  ;;  %v10054_v47 = vld [vmem:[#allocation2 + $0x9c0] sm:$0xff] }
0x4f56   : > { %15184 = vmatpush3.bf16.msra.mxu0 %v15183_v45  ;;  %14483 = vmatprep.mubr.msk.f32.mxu0 %vm15586_vm0, %v15587_v1  ;;  %v10053_v45 = vld [vmem:[#allocation2 + $0x9b8] sm:$0xff] }
0x4f57   : > { %15185 = vmatprep.subr.bf16.mxu0 %v15585_v0  ;;  %v15216_v48 = vpack.c.bf16 %v10054_v47, %v10053_v45 }
0x4f5a   : > { %15187 = vmatpush3.bf16.msra.mxu0 %v15186_v52  ;;  %v9973_v52 = vld [vmem:[#allocation2 + $0x930] sm:$0xff] }
0x4f5b   : > { %15194 = vmatprep.subr.bf16.mxu0 %v15585_v0  ;;  %v15207_v56 = vpack.c.bf16 %v9973_v52, %v9972_v50 }
0x4f5d   : > { %14484 = vmatmul.mubr.msk.f32.vlgmr.msra.gmra.mrb[120].mxu0 %vm209_vm1, %v16374_v28 }
0x4f5e   : > { %15196 = vmatpush3.bf16.msra.mxu0 %v15195_v54  ;;  %14505 = vmatprep.mubr.msk.f32.mxu0 %vm15586_vm0, %v15587_v1  ;;  %v9975_v54 = vld [vmem:[#allocation2 + $0x940] sm:$0xff] }
0x4f5f   : > { %15197 = vmatprep.subr.bf16.mxu0 %v15585_v0 }
0x4f62   : > { %15199 = vmatpush3.bf16.msra.mxu0 %v15198_v42  ;;  %v15210_v42 = vpack.c.bf16 %v9975_v54, %v9974_v57  ;;  %v12907_v54 = vld [vmem:[#allocation2 + $0xb84] ss:$0 sm:$0xff] }
0x4f63   : > { %14518 = vmatprep.subr.mxu0 %v15587_v1 }
0x4f65   : > { %14506 = vmatmul.mubr.msk.f32.vlgmr.msra.gmra.mrb[122].mxu0 %vm209_vm1, %v16374_v28 }
0x4f66   : > { %14520 = vmatprep.mubr.msk.f32.mxu0 %vm15586_vm0, %v15587_v1  ;;  %14519 = vmatpush3.msra.mxu0 %v9818_v32  ;;  %v10553_v32 = vld [vmem:[#allocation2 + $0xb08] sm:$0xff] }
0x4f67   : > { %15206 = vmatprep.subr.bf16.mxu0 %v15585_v0 }
0x5028   : > { %v9340_v59 = vpop.f32.mrb[118].mxu0 }
0x5029   : > { %v14469_v63 = vpop.f32.mrb[119].mxu0  ;;  %14473 = vmatmul.mubr.msk.f32.vlgmr.msra.gmra.mrb[106].mxu1 %vm441_vm2, %v9340_v59 }
0x502a   : > { %15190 = vmatpush3.bf16.msra.mxu1 %v15189_v5  ;;  %14494 = vmatprep.mubr.msk.f32.mxu1 %vm15586_vm0, %v15587_v1 }
0x502b   : > { %15191 = vmatprep.subr.bf16.mxu1 %v15585_v0 }
0x502e   : > { %15193 = vmatpush3.bf16.msra.mxu1 %v15192_v3  ;;  %v12895_v3 = vld [vmem:[#allocation2 + $0x9cf] ss:$0 sm:$0xff] }
0x502f   : > { %14508 = vmatprep.subr.mxu1 %v15587_v1 }
0x5030   : > { %v9494_v4 = vpop.f32.mrb[120].mxu0 }
0x5031   : > { %v14485_v2 = vpop.f32.mrb[121].mxu0  ;;  %14495 = vmatmul.mubr.msk.f32.vlgmr.msra.gmra.mrb[108].mxu1 %vm209_vm1, %v16374_v28  ;;  %v9495_v23 = vadd.f32 %v12883_v17, %v9494_v4 }
0x5032   : > { %14510 = vmatprep.mubr.msk.f32.mxu1 %vm15586_vm0, %v15587_v1  ;;  %v12893_v2 = vld [vmem:[#allocation2 + $0x9cb] ss:$0 sm:$0xff] }
0x5038   : > { %v9652_v6 = vpop.f32.mrb[122].mxu0 }
0x5039   : > { %v14507_v7 = vpop.f32.mrb[123].mxu0  ;;  %v9653_v24 = vadd.f32 %v12887_v21, %v9652_v6 }
0x50fc   : > { %v9414_v12 = vpop.f32.mrb[106].mxu1 }
0x50fd   : > { %v16461_v13 = vadd.f32 %v9414_v12, %v8944_v10  ;;  %v14474_v51 = vpop.f32.mrb[107].mxu1 }
0x5104   : > { %v9573_v16 = vpop.f32.mrb[108].mxu1 }
0x5105   : > { %v9574_v18 = vadd.f32 %v12885_v15, %v9573_v16  ;;  %v14496_v19 = vpop.f32.mrb[109].mxu1 }
0x5107   : > { %14509 = vmatpush3.xpose.msk.msra.mxu1 %vm441_vm2, %v9574_v18 }
0x5108   : > { %14513 = vmatprep.subr.mxu1 %v15587_v1 }
0x510a   : > { %14511 = vmatmul.mubr.msk.f32.vlgmr.msra.gmra.mrb[110].mxu1 %vm441_vm2, %v9495_v23 }
0x510b   : > { %14514 = vmatpush3.msra.mxu1 %v9653_v24  ;;  %14515 = vmatprep.mubr.msk.f32.mxu1 %vm15586_vm0, %v15587_v1 }
0x510c   : > { %15200 = vmatprep.subr.bf16.mxu1 %v15585_v0 }
0x51dd   : > { %v9728_v20 = vpop.f32.mrb[110].mxu1 }
0x51de   : > { %v9732_v49 = vmul.f32 0.35355338, %v9728_v20  ;;  %v14512_v25 = vpop.f32.mrb[111].mxu1  ;;  %v10292_v20 = vld [vmem:[#allocation2 + $0x9f0] sm:$0xff] }
0x51df   : > { %v10394_v25 = vld [vmem:[#allocation2 + $0xa00] sm:$0xff] }
0x51e0   : > { %v9733_v26 = vadd.f32 %v9732_v49, %v16065_v27 }
0x51e2   : > { %v9734_v29 = vsel %vm441_vm2, %v9733_v26, -inf }
0x51e3   : > { %9735 = vmax.xlane.f32.xlu0 %v9734_v29 }
0x5270   : > { %v9736_v22 = vpop.xlane.xlu0 %9735 }
0x5271   : > { %v9737_v30 = vsub.f32 %v9733_v26, %v9736_v22  ;;  %v10395_v26 = vld [vmem:[#allocation2 + $0xa08] sm:$0xff] }
0x5272   : > { %v15219_v29 = vpack.c.bf16 %v10395_v26, %v10394_v25  ;;  %v11032_v25 = vld [vmem:[#allocation2 + $0xb38] sm:$0xff] }
0x5273   : > { %v9738_v9 = vmul.f32 1.442695, %v9737_v30  ;;  %v10396_v30 = vld [vmem:[#allocation2 + $0xa10] sm:$0xff] }
0x5275   : > { %15455 = vpow2.f32 %v9738_v9  ;;  %v10397_v9 = vld [vmem:[#allocation2 + $0xa18] sm:$0xff] }
0x527f   : > { %v15456_v11 = vpop.eup %15455 }
0x5280   : > { %v9740_v31 = vsel %vm441_vm2, %v15456_v11, 0.0 }
0x5281   : > { %9741 = vadd.xlane.f32.xlu1 %v9740_v31  ;;  %v10552_v31 = vld [vmem:[#allocation2 + $0xb00] sm:$0xff] }
0x530e   : > { %v9742_v33 = vpop.xlane.xlu1 %9741 }
0x530f   : > { %15457 = vrcp.f32 %v9742_v33  ;;  %v15231_v33 = vpack.c.bf16 %v10553_v32, %v10552_v31 }
0x5319   : > { %v15458_v36 = vpop.eup %15457 }
0x531a   : > { %v9744_v38 = vmul.f32 %v15458_v36, %v15456_v11  ;;  %v15222_v11 = vpack.c.bf16 %v10397_v9, %v10396_v30  ;;  %v15234_v36 = vpack.c.bf16 %v10555_v35, %v10554_v34  ;;  %v10952_v30 = vld [vmem:[#allocation2 + $0xab0] sm:$0xff]  ;;  %v10953_v9 = vld [vmem:[#allocation2 + $0xab8] sm:$0xff] }
0x531b   : > { %v15246_v32 = vpack.c.bf16 %v10953_v9, %v10952_v30 }
0x531c   : > { %14516 = vmatmul.mubr.msk.f32.vlgmr.msra.gmra.mrb[112].mxu1 %vm441_vm2, %v9744_v38  ;;  %v10474_v38 = vld [vmem:[#allocation2 + $0xa88] sm:$0xff] }
0x531d   : > { %15202 = vmatpush3.bf16.msra.mxu1 %v15201_v37  ;;  %14531 = vmatprep.mubr.msk.f32.mxu1 %vm15586_vm0, %v15587_v1  ;;  %v10473_v37 = vld [vmem:[#allocation2 + $0xa80] sm:$0xff] }
0x531e   : > { %15203 = vmatprep.subr.bf16.mxu1 %v15585_v0  ;;  %v15225_v39 = vpack.c.bf16 %v10474_v38, %v10473_v37 }
0x5321   : > { %15205 = vmatpush3.bf16.msra.mxu1 %v15204_v55  ;;  %v10476_v55 = vld [vmem:[#allocation2 + $0xa98] sm:$0xff] }
0x5322   : > { %15212 = vmatprep.subr.bf16.mxu1 %v15585_v0 }
0x5324   : > { %14532 = vmatmul.mubr.msk.f32.vlgmr.msra.gmra.mrb[114].mxu1 %vm209_vm1, %v16374_v28 }
0x5325   : > { %15214 = vmatpush3.bf16.msra.mxu1 %v15213_v44  ;;  %14553 = vmatprep.mubr.msk.f32.mxu1 %vm15586_vm0, %v15587_v1  ;;  %v15228_v44 = vpack.c.bf16 %v10476_v55, %v10475_v40  ;;  %v12916_v55 = vld [vmem:[#allocation2 + $0xb81] ss:$0 sm:$0xff] }
0x5326   : > { %15215 = vmatprep.subr.bf16.mxu1 %v15585_v0 }
0x5329   : > { %15217 = vmatpush3.bf16.msra.mxu1 %v15216_v48 }
0x532a   : > { %14566 = vmatprep.subr.mxu1 %v15587_v1 }
0x532c   : > { %14554 = vmatmul.mubr.msk.f32.vlgmr.msra.gmra.mrb[116].mxu1 %vm209_vm1, %v16374_v28 }
0x532d   : > { %14568 = vmatprep.mubr.msk.f32.mxu1 %vm15586_vm0, %v15587_v1  ;;  %14567 = vmatpush3.msra.mxu1 %v10292_v20 }
0x532e   : > { %15224 = vmatprep.subr.bf16.mxu1 %v15585_v0 }
0x53ef   : > { %v9814_v58 = vpop.f32.mrb[112].mxu1 }
0x53f0   : > { %v14517_v60 = vpop.f32.mrb[113].mxu1  ;;  %14521 = vmatmul.mubr.msk.f32.vlgmr.msra.gmra.mrb[124].mxu0 %vm441_vm2, %v9814_v58 }
0x53f1   : > { %15208 = vmatpush3.bf16.msra.mxu0 %v15207_v56  ;;  %14542 = vmatprep.mubr.msk.f32.mxu0 %vm15586_vm0, %v15587_v1  ;;  %v12905_v60 = vld [vmem:[#allocation2 + $0xb80] ss:$0 sm:$0xff] }
0x53f2   : > { %15209 = vmatprep.subr.bf16.mxu0 %v15585_v0 }
0x53f5   : > { %15211 = vmatpush3.bf16.msra.mxu0 %v15210_v42 }
0x53f6   : > { %14556 = vmatprep.subr.mxu0 %v15587_v1 }
0x53f7   : > { %v9968_v61 = vpop.f32.mrb[114].mxu1 }
0x53f8   : > { %v14533_v46 = vpop.f32.mrb[115].mxu1  ;;  %14543 = vmatmul.mubr.msk.f32.vlgmr.msra.gmra.mrb[126].mxu0 %vm209_vm1, %v16374_v28  ;;  %v9969_v10 = vadd.f32 %v12893_v2, %v9968_v61 }
0x53f9   : > { %14558 = vmatprep.mubr.msk.f32.mxu0 %vm15586_vm0, %v15587_v1  ;;  %v12909_v46 = vld [vmem:[#allocation2 + $0xb88] ss:$0 sm:$0xff] }
0x53ff   : > { %v10126_v5 = vpop.f32.mrb[116].mxu1 }
0x5400   : > { %v14555_v14 = vpop.f32.mrb[117].mxu1  ;;  %v10127_v12 = vadd.f32 %v12897_v8, %v10126_v5 }
0x54c3   : > { %v9888_v62 = vpop.f32.mrb[124].mxu0 }
0x54c4   : > { %v16498_v59 = vadd.f32 %v9888_v62, %v16461_v13  ;;  %v14522_v63 = vpop.f32.mrb[125].mxu0 }
0x54cb   : > { %v10047_v4 = vpop.f32.mrb[126].mxu0 }
0x54cc   : > { %v10048_v6 = vadd.f32 %v12895_v3, %v10047_v4  ;;  %v14544_v7 = vpop.f32.mrb[127].mxu0 }
0x54ce   : > { %14557 = vmatpush3.xpose.msk.msra.mxu0 %vm441_vm2, %v10048_v6 }
0x54cf   : > { %14561 = vmatprep.subr.mxu0 %v15587_v1 }
0x54d1   : > { %14559 = vmatmul.mubr.msk.f32.vlgmr.msra.gmra.mrb[128].mxu0 %vm441_vm2, %v9969_v10  ;;  %v10792_v10 = vld [vmem:[#allocation2 + $0xb90] sm:$0xff] }
0x54d2   : > { %14562 = vmatpush3.msra.mxu0 %v10127_v12  ;;  %14563 = vmatprep.mubr.msk.f32.mxu0 %vm15586_vm0, %v15587_v1 }
0x54d3   : > { %15218 = vmatprep.subr.bf16.mxu0 %v15585_v0 }
0x55a4   : > { %v10202_v13 = vpop.f32.mrb[128].mxu0 }
0x55a5   : > { %v10206_v51 = vmul.f32 0.35355338, %v10202_v13  ;;  %v14560_v15 = vpop.f32.mrb[129].mxu0  ;;  %v10871_v13 = vld [vmem:[#allocation2 + $0xa20] sm:$0xff] }
0x55a7   : > { %v10207_v16 = vadd.f32 %v10206_v51, %v16065_v27  ;;  %v10872_v51 = vld [vmem:[#allocation2 + $0xa28] sm:$0xff] }
0x55a9   : > { %v10208_v17 = vsel %vm441_vm2, %v10207_v16, -inf }
0x55aa   : > { %10209 = vmax.xlane.f32.xlu0 %v10208_v17 }
0x5637   : > { %v10210_v18 = vpop.xlane.xlu0 %10209 }
0x5638   : > { %v10211_v19 = vsub.f32 %v10207_v16, %v10210_v18  ;;  %v15237_v16 = vpack.c.bf16 %v10872_v51, %v10871_v13  ;;  %v10873_v18 = vld [vmem:[#allocation2 + $0xa30] sm:$0xff]  ;;  %v11505_v13 = vld [vmem:[#allocation2 + $0xb58] sm:$0xff] }
0x563a   : > { %v10212_v21 = vmul.f32 1.442695, %v10211_v19  ;;  %v10874_v19 = vld [vmem:[#allocation2 + $0xa38] sm:$0xff] }
0x563c   : > { %15459 = vpow2.f32 %v10212_v21  ;;  %v15240_v21 = vpack.c.bf16 %v10874_v19, %v10873_v18  ;;  %v11425_v18 = vld [vmem:[#allocation2 + $0xad0] sm:$0xff]  ;;  %v11426_v19 = vld [vmem:[#allocation2 + $0xad8] sm:$0xff] }
0x5646   : > { %v15460_v23 = vpop.eup %15459 }
0x5647   : > { %v10214_v24 = vsel %vm441_vm2, %v15460_v23, 0.0 }
0x5648   : > { %10215 = vadd.xlane.f32.xlu1 %v10214_v24  ;;  %v11030_v24 = vld [vmem:[#allocation2 + $0xb28] sm:$0xff] }
0x56d5   : > { %v10216_v49 = vpop.xlane.xlu1 %10215 }
0x56d6   : > { %15461 = vrcp.f32 %v10216_v49  ;;  %v11031_v49 = vld [vmem:[#allocation2 + $0xb30] sm:$0xff] }
0x56d7   : > { %v15252_v26 = vpack.c.bf16 %v11032_v25, %v11031_v49 }
0x56e0   : > { %v15462_v27 = vpop.eup %15461 }
0x56e1   : > { %v10218_v22 = vmul.f32 %v15462_v27, %v15460_v23  ;;  %v11029_v23 = vld [vmem:[#allocation2 + $0xb20] sm:$0xff] }
0x56e2   : > { %v15249_v20 = vpack.c.bf16 %v11030_v24, %v11029_v23  ;;  %v10950_v27 = vld [vmem:[#allocation2 + $0xaa0] sm:$0xff]  ;;  %v15264_v24 = vpack.c.bf16 %v11426_v19, %v11425_v18 }
0x56e3   : > { %14564 = vmatmul.mubr.msk.f32.vlgmr.msra.gmra.mrb[130].mxu0 %vm441_vm2, %v10218_v22 }
0x56e4   : > { %15220 = vmatpush3.bf16.msra.mxu0 %v15219_v29  ;;  %14579 = vmatprep.mubr.msk.f32.mxu0 %vm15586_vm0, %v15587_v1  ;;  %v10951_v29 = vld [vmem:[#allocation2 + $0xaa8] sm:$0xff] }
0x56e5   : > { %15221 = vmatprep.subr.bf16.mxu0 %v15585_v0  ;;  %v15243_v22 = vpack.c.bf16 %v10951_v29, %v10950_v27  ;;  %v12915_v27 = vld [vmem:[#allocation2 + $0xbb0] ss:$0 sm:$0xff] }
0x56e8   : > { %15223 = vmatpush3.bf16.msra.mxu0 %v15222_v11 }
0x56e9   : > { %15230 = vmatprep.subr.bf16.mxu0 %v15585_v0 }
0x56eb   : > { %14580 = vmatmul.mubr.msk.f32.vlgmr.msra.gmra.mrb[132].mxu0 %vm209_vm1, %v16374_v28 }
0x56ec   : > { %15232 = vmatpush3.bf16.msra.mxu0 %v15231_v33  ;;  %14601 = vmatprep.mubr.msk.f32.mxu0 %vm15586_vm0, %v15587_v1 }
0x56ed   : > { %15233 = vmatprep.subr.bf16.mxu0 %v15585_v0 }
0x56f0   : > { %15235 = vmatpush3.bf16.msra.mxu0 %v15234_v36 }
0x56f1   : > { %14614 = vmatprep.subr.mxu0 %v15587_v1 }
0x56f3   : > { %14602 = vmatmul.mubr.msk.f32.vlgmr.msra.gmra.mrb[134].mxu0 %vm209_vm1, %v16198_v53 }
0x56f4   : > { %14616 = vmatprep.mubr.msk.f32.mxu0 %vm15586_vm0, %v15587_v1  ;;  %14615 = vmatpush3.msra.mxu0 %v10792_v10 }
0x56f5   : > { %15242 = vmatprep.subr.bf16.mxu0 %v15585_v0 }
0x57b6   : > { %v10288_v41 = vpop.f32.mrb[130].mxu0 }
0x57b7   : > { %v14565_v43 = vpop.f32.mrb[131].mxu0  ;;  %14569 = vmatmul.mubr.msk.f32.vlgmr.msra.gmra.mrb[118].mxu1 %vm441_vm2, %v10288_v41 }
0x57b8   : > { %15226 = vmatpush3.bf16.msra.mxu1 %v15225_v39  ;;  %14590 = vmatprep.mubr.msk.f32.mxu1 %vm15586_vm0, %v15587_v1  ;;  %v12918_v39 = vld [vmem:[#allocation2 + $0xb85] ss:$0 sm:$0xff] }
0x57b9   : > { %15227 = vmatprep.subr.bf16.mxu1 %v15585_v0 }
0x57bc   : > { %15229 = vmatpush3.bf16.msra.mxu1 %v15228_v44  ;;  %v12920_v44 = vld [vmem:[#allocation2 + $0xb89] ss:$0 sm:$0xff] }
0x57bd   : > { %14604 = vmatprep.subr.mxu1 %v15587_v1 }
0x57be   : > { %v10469_v45 = vpop.f32.mrb[132].mxu0 }
0x57bf   : > { %v14581_v47 = vpop.f32.mrb[133].mxu0  ;;  %14591 = vmatmul.mubr.msk.f32.vlgmr.msra.gmra.mrb[120].mxu1 %vm209_vm1, %v16198_v53  ;;  %v10470_v5 = vadd.f32 %v12905_v60, %v10469_v45 }
0x57c0   : > { %14606 = vmatprep.mubr.msk.f32.mxu1 %vm15586_vm0, %v15587_v1 }
0x57c6   : > { %v10627_v48 = vpop.f32.mrb[134].mxu0 }
0x57c7   : > { %v14603_v50 = vpop.f32.mrb[135].mxu0  ;;  %v10628_v14 = vadd.f32 %v12909_v46, %v10627_v48  ;;  %v11269_v46 = vld [vmem:[#allocation2 + $0xb98] sm:$0xff] }
0x588a   : > { %v10362_v52 = vpop.f32.mrb[118].mxu1 }
0x588b   : > { %v16535_v56 = vadd.f32 %v10362_v52, %v16498_v59  ;;  %v14570_v57 = vpop.f32.mrb[119].mxu1 }
0x5892   : > { %v10548_v58 = vpop.f32.mrb[120].mxu1 }
0x5893   : > { %v10549_v42 = vadd.f32 %v12907_v54, %v10548_v58  ;;  %v14592_v61 = vpop.f32.mrb[121].mxu1 }
0x5895   : > { %14605 = vmatpush3.xpose.msk.msra.mxu1 %vm441_vm2, %v10549_v42 }
0x5896   : > { %14609 = vmatprep.subr.mxu1 %v15587_v1 }
0x5898   : > { %14607 = vmatmul.mubr.msk.f32.vlgmr.msra.gmra.mrb[122].mxu1 %vm441_vm2, %v10470_v5 }
0x5899   : > { %14610 = vmatpush3.msra.mxu1 %v10628_v14  ;;  %14611 = vmatprep.mubr.msk.f32.mxu1 %vm15586_vm0, %v15587_v1  ;;  %v11344_v14 = vld [vmem:[#allocation2 + $0xa40] sm:$0xff] }
0x589a   : > { %15236 = vmatprep.subr.bf16.mxu1 %v15585_v0 }
0x596b   : > { %v10703_v62 = vpop.f32.mrb[122].mxu1 }
0x596c   : > { %v10707_v59 = vmul.f32 0.35355338, %v10703_v62  ;;  %v14608_v63 = vpop.f32.mrb[123].mxu1  ;;  %v11345_v62 = vld [vmem:[#allocation2 + $0xa48] sm:$0xff] }
0x596d   : > { %v15255_v63 = vpack.c.bf16 %v11345_v62, %v11344_v14  ;;  %v11976_v14 = vld [vmem:[#allocation2 + $0xb68] sm:$0xff] }
0x596e   : > { %v10708_v3 = vsel %vm441_vm2, %v10707_v59, -inf }
0x596f   : > { %10709 = vmax.xlane.f32.xlu0 %v10708_v3 }
0x59fc   : > { %v10710_v4 = vpop.xlane.xlu0 %10709 }
0x59fd   : > { %v10711_v2 = vsub.f32 %v10707_v59, %v10710_v4  ;;  %v11346_v4 = vld [vmem:[#allocation2 + $0xa50] sm:$0xff] }
0x59ff   : > { %v10712_v6 = vmul.f32 1.442695, %v10711_v2  ;;  %v11347_v2 = vld [vmem:[#allocation2 + $0xa58] sm:$0xff] }
0x5a01   : > { %15463 = vpow2.f32 %v10712_v6  ;;  %v15258_v6 = vpack.c.bf16 %v11347_v2, %v11346_v4  ;;  %v11896_v4 = vld [vmem:[#allocation2 + $0xae0] sm:$0xff]  ;;  %v11897_v2 = vld [vmem:[#allocation2 + $0xae8] sm:$0xff] }
0x5a0b   : > { %v15464_v7 = vpop.eup %15463 }
0x5a0c   : > { %v10714_v8 = vsel %vm441_vm2, %v15464_v7, 0.0 }
0x5a0d   : > { %10715 = vadd.xlane.f32.xlu1 %v10714_v8  ;;  %v11503_v8 = vld [vmem:[#allocation2 + $0xb48] sm:$0xff] }
0x5a9a   : > { %v10716_v12 = vpop.xlane.xlu1 %10715 }
0x5a9b   : > { %15465 = vrcp.f32 %v10716_v12  ;;  %v11504_v12 = vld [vmem:[#allocation2 + $0xb50] sm:$0xff] }
0x5a9c   : > { %v15270_v51 = vpack.c.bf16 %v11505_v13, %v11504_v12 }
0x5aa5   : > { %v15466_v15 = vpop.eup %15465 }
0x5aa6   : > { %v10718_v17 = vmul.f32 %v15466_v15, %v15464_v7  ;;  %v11502_v7 = vld [vmem:[#allocation2 + $0xb40] sm:$0xff] }
0x5aa7   : > { %v15267_v10 = vpack.c.bf16 %v11503_v8, %v11502_v7  ;;  %v11423_v15 = vld [vmem:[#allocation2 + $0xac0] sm:$0xff]  ;;  %v11898_v7 = vld [vmem:[#allocation2 + $0xaf0] sm:$0xff]  ;;  %v11899_v8 = vld [vmem:[#allocation2 + $0xaf8] sm:$0xff] }
0x5aa8   : > { %14612 = vmatmul.mubr.msk.f32.vlgmr.msra.gmra.mrb[124].mxu1 %vm441_vm2, %v10718_v17  ;;  %v15282_v13 = vpack.c.bf16 %v11899_v8, %v11898_v7  ;;  %v12307_v7 = vld [vmem:[#allocation2 + $0xbc8] sm:$0xff] }
0x5aa9   : > { %15238 = vmatpush3.bf16.msra.mxu1 %v15237_v16  ;;  %14627 = vmatprep.mubr.msk.f32.mxu1 %vm15586_vm0, %v15587_v1  ;;  %v11424_v16 = vld [vmem:[#allocation2 + $0xac8] sm:$0xff] }
0x5aaa   : > { %15239 = vmatprep.subr.bf16.mxu1 %v15585_v0  ;;  %v15261_v17 = vpack.c.bf16 %v11424_v16, %v11423_v15 }
0x5aad   : > { %15241 = vmatpush3.bf16.msra.mxu1 %v15240_v21 }
0x5aae   : > { %15248 = vmatprep.subr.bf16.mxu1 %v15585_v0 }
0x5ab0   : > { %14628 = vmatmul.mubr.msk.f32.vlgmr.msra.gmra.mrb[126].mxu1 %vm209_vm1, %v16374_v28 }
0x5ab1   : > { %15250 = vmatpush3.bf16.msra.mxu1 %v15249_v20  ;;  %14649 = vmatprep.mubr.msk.f32.mxu1 %vm15586_vm0, %v15587_v1 }
0x5ab2   : > { %15251 = vmatprep.subr.bf16.mxu1 %v15585_v0 }
0x5ab5   : > { %15253 = vmatpush3.bf16.msra.mxu1 %v15252_v26 }
0x5ab6   : > { %14662 = vmatprep.subr.mxu1 %v15587_v1 }
0x5ab8   : > { %14650 = vmatmul.mubr.msk.f32.vlgmr.msra.gmra.mrb[128].mxu1 %vm209_vm1, %v16198_v53 }
0x5ab9   : > { %14664 = vmatprep.mubr.msk.f32.mxu1 %vm15586_vm0, %v15587_v1  ;;  %14663 = vmatpush3.msra.mxu1 %v11269_v46 }
0x5aba   : > { %15260 = vmatprep.subr.bf16.mxu1 %v15585_v0 }
0x5b7b   : > { %v10788_v11 = vpop.f32.mrb[124].mxu1 }
0x5b7c   : > { %v14613_v31 = vpop.f32.mrb[125].mxu1  ;;  %14617 = vmatmul.mubr.msk.f32.vlgmr.msra.gmra.mrb[136].mxu0 %vm441_vm2, %v10788_v11  ;;  %v12928_v11 = vld [vmem:[#allocation2 + $0xb86] ss:$0 sm:$0xff] }
0x5b7d   : > { %15244 = vmatpush3.bf16.msra.mxu0 %v15243_v22  ;;  %14638 = vmatprep.mubr.msk.f32.mxu0 %vm15586_vm0, %v15587_v1 }
0x5b7e   : > { %15245 = vmatprep.subr.bf16.mxu0 %v15585_v0 }
0x5b81   : > { %15247 = vmatpush3.bf16.msra.mxu0 %v15246_v32  ;;  %v12926_v32 = vld [vmem:[#allocation2 + $0xb82] ss:$0 sm:$0xff] }
0x5b82   : > { %14652 = vmatprep.subr.mxu0 %v15587_v1 }
0x5b83   : > { %v10946_v33 = vpop.f32.mrb[126].mxu1 }
0x5b84   : > { %v14629_v34 = vpop.f32.mrb[127].mxu1  ;;  %14639 = vmatmul.mubr.msk.f32.vlgmr.msra.gmra.mrb[138].mxu0 %vm209_vm1, %v16198_v53  ;;  %v10947_v45 = vadd.f32 %v12916_v55, %v10946_v33 }
0x5b85   : > { %14654 = vmatprep.mubr.msk.f32.mxu0 %vm15586_vm0, %v15587_v1 }
0x5b8b   : > { %v11104_v35 = vpop.f32.mrb[128].mxu1 }
0x5b8c   : > { %v14651_v36 = vpop.f32.mrb[129].mxu1  ;;  %v11105_v47 = vadd.f32 %v12920_v44, %v11104_v35  ;;  %v12930_v35 = vld [vmem:[#allocation2 + $0xb8a] ss:$0 sm:$0xff] }
0x5c4f   : > { %v16570_v37 = vpop.f32.mrb[136].mxu0 }
0x5c50   : > { %v14618_v38 = vpop.f32.mrb[137].mxu0  ;;  %v10870_v29 = vadd.f32 %v12915_v27, %v16570_v37 }
0x5c57   : > { %v11025_v40 = vpop.f32.mrb[138].mxu0 }
0x5c58   : > { %v11026_v41 = vadd.f32 %v12918_v39, %v11025_v40  ;;  %v14640_v43 = vpop.f32.mrb[139].mxu0 }
0x5c5a   : > { %14653 = vmatpush3.xpose.msk.msra.mxu0 %vm441_vm2, %v11026_v41 }
0x5c5b   : > { %14657 = vmatprep.subr.mxu0 %v15587_v1 }
0x5c5d   : > { %14655 = vmatmul.mubr.msk.f32.vlgmr.msra.gmra.mrb[140].mxu0 %vm441_vm2, %v10947_v45 }
0x5c5e   : > { %14658 = vmatpush3.msra.mxu0 %v11105_v47  ;;  %14659 = vmatprep.mubr.msk.f32.mxu0 %vm15586_vm0, %v15587_v1 }
0x5c5f   : > { %15254 = vmatprep.subr.bf16.mxu0 %v15585_v0 }
0x5d30   : > { %v11180_v48 = vpop.f32.mrb[140].mxu0 }
0x5d31   : > { %v11184_v50 = vmul.f32 0.35355338, %v11180_v48  ;;  %v14656_v52 = vpop.f32.mrb[141].mxu0  ;;  %v11742_v48 = vld [vmem:[#allocation2 + $0xba0] sm:$0xff] }
0x5d32   : > { %v11817_v52 = vld [vmem:[#allocation2 + $0xa60] sm:$0xff] }
0x5d33   : > { %v11185_v57 = vsel %vm441_vm2, %v11184_v50, -inf }
0x5d34   : > { %11186 = vmax.xlane.f32.xlu0 %v11185_v57  ;;  %v11818_v57 = vld [vmem:[#allocation2 + $0xa68] sm:$0xff] }
0x5dc1   : > { %v11187_v54 = vpop.xlane.xlu0 %11186 }
0x5dc2   : > { %v11188_v58 = vsub.f32 %v11184_v50, %v11187_v54 }
0x5dc4   : > { %v11189_v60 = vmul.f32 1.442695, %v11188_v58  ;;  %v15273_v58 = vpack.c.bf16 %v11818_v57, %v11817_v52 }
0x5dc6   : > { %15467 = vpow2.f32 %v11189_v60 }
0x5dd0   : > { %v15468_v42 = vpop.eup %15467 }
0x5dd1   : > { %v11191_v61 = vsel %vm441_vm2, %v15468_v42, 0.0 }
0x5dd2   : > { %11192 = vadd.xlane.f32.xlu1 %v11191_v61  ;;  %v11820_v61 = vld [vmem:[#allocation2 + $0xa78] sm:$0xff] }
0x5e5f   : > { %v11193_v5 = vpop.xlane.xlu1 %11192 }
0x5e60   : > { %15469 = vrcp.f32 %v11193_v5  ;;  %v11975_v5 = vld [vmem:[#allocation2 + $0xb60] sm:$0xff] }
0x5e61   : > { %v15285_v62 = vpack.c.bf16 %v11976_v14, %v11975_v5 }
0x5e6a   : > { %v15470_v59 = vpop.eup %15469 }
0x5e6b   : > { %v11195_v3 = vmul.f32 %v15470_v59, %v15468_v42  ;;  %v11819_v42 = vld [vmem:[#allocation2 + $0xa70] sm:$0xff] }
0x5e6c   : > { %v15276_v46 = vpack.c.bf16 %v11820_v61, %v11819_v42  ;;  %v11977_v59 = vld [vmem:[#allocation2 + $0xb70] sm:$0xff] }
0x5e6d   : > { %14660 = vmatmul.mubr.msk.f32.vlgmr.msra.gmra.mrb[142].mxu0 %vm441_vm2, %v11195_v3 }
0x5e6e   : > { %15256 = vmatpush3.bf16.msra.mxu0 %v15255_v63  ;;  %14675 = vmatprep.mubr.msk.f32.mxu0 %vm15586_vm0, %v15587_v1  ;;  %v11978_v63 = vld [vmem:[#allocation2 + $0xb78] sm:$0xff] }
0x5e6f   : > { %15257 = vmatprep.subr.bf16.mxu0 %v15585_v0  ;;  %v15288_v3 = vpack.c.bf16 %v11978_v63, %v11977_v59 }
0x5e72   : > { %15259 = vmatpush3.bf16.msra.mxu0 %v15258_v6  ;;  %v15279_v6 = vpack.c.bf16 %v11897_v2, %v11896_v4 }
0x5e73   : > { %15266 = vmatprep.subr.bf16.mxu0 %v15585_v0 }
0x5e75   : > { %14676 = vmatmul.mubr.msk.f32.vlgmr.msra.gmra.mrb[144].mxu0 %vm209_vm1, %v16374_v28 }
0x5e76   : > { %15268 = vmatpush3.bf16.msra.mxu0 %v15267_v10  ;;  %14697 = vmatprep.mubr.msk.f32.mxu0 %vm15586_vm0, %v15587_v1 }
0x5e77   : > { %15269 = vmatprep.subr.bf16.mxu0 %v15585_v0 }
0x5e7a   : > { %15271 = vmatpush3.bf16.msra.mxu0 %v15270_v51 }
0x5e7b   : > { %14710 = vmatprep.subr.mxu0 %v15587_v1 }
0x5e7d   : > { %14698 = vmatmul.mubr.msk.f32.vlgmr.msra.gmra.mrb[146].mxu0 %vm209_vm1, %v16198_v53 }
0x5e7e   : > { %14712 = vmatprep.mubr.msk.f32.mxu0 %vm15586_vm0, %v15587_v1  ;;  %14711 = vmatpush3.msra.mxu0 %v11742_v48 }
0x5e7f   : > { %15278 = vmatprep.subr.bf16.mxu0 %v15585_v0 }
0x5f40   : > { %v11265_v21 = vpop.f32.mrb[142].mxu0 }
0x5f41   : > { %v14661_v23 = vpop.f32.mrb[143].mxu0  ;;  %14665 = vmatmul.mubr.msk.f32.vlgmr.msra.gmra.mrb[130].mxu1 %vm441_vm2, %v11265_v21 }
0x5f42   : > { %15262 = vmatpush3.bf16.msra.mxu1 %v15261_v17  ;;  %14686 = vmatprep.mubr.msk.f32.mxu1 %vm15586_vm0, %v15587_v1  ;;  %v12938_v23 = vld [vmem:[#allocation2 + $0xb87] ss:$0 sm:$0xff] }
0x5f43   : > { %15263 = vmatprep.subr.bf16.mxu1 %v15585_v0 }
0x5f46   : > { %15265 = vmatpush3.bf16.msra.mxu1 %v15264_v24 }
0x5f47   : > { %14700 = vmatprep.subr.mxu1 %v15587_v1 }
0x5f48   : > { %v11419_v20 = vpop.f32.mrb[144].mxu0 }
0x5f49   : > { %v14677_v49 = vpop.f32.mrb[145].mxu0  ;;  %14687 = vmatmul.mubr.msk.f32.vlgmr.msra.gmra.mrb[132].mxu1 %vm209_vm1, %v16198_v53  ;;  %v11420_v36 = vadd.f32 %v12926_v32, %v11419_v20  ;;  %v12936_v20 = vld [vmem:[#allocation2 + $0xb83] ss:$0 sm:$0xff] }
0x5f4a   : > { %14702 = vmatprep.mubr.msk.f32.mxu1 %vm15586_vm0, %v15587_v1 }
0x5f50   : > { %v11577_v25 = vpop.f32.mrb[146].mxu0 }
0x5f51   : > { %v14699_v26 = vpop.f32.mrb[147].mxu0  ;;  %v11578_v38 = vadd.f32 %v12930_v35, %v11577_v25 }
0x5f52   : > { %v12940_v26 = vld [vmem:[#allocation2 + $0xb8b] ss:$0 sm:$0xff] }
0x6014   : > { %v11339_v22 = vpop.f32.mrb[130].mxu1 }
0x6015   : > { %v16606_v30 = vadd.f32 %v11339_v22, %v10870_v29  ;;  %v14666_v9 = vpop.f32.mrb[131].mxu1 }
0x601c   : > { %v11498_v31 = vpop.f32.mrb[132].mxu1 }
0x601d   : > { %v11499_v33 = vadd.f32 %v12928_v11, %v11498_v31  ;;  %v14688_v34 = vpop.f32.mrb[133].mxu1  ;;  %v10367_v11 = vadd.f32 %v16535_v56, %v16374_v28 }
0x601f   : > { %14701 = vmatpush3.xpose.msk.msra.mxu1 %vm441_vm2, %v11499_v33  ;;  %v10370_v31 = vsel %vm209_vm1, %v10367_v11, 0.0 }
0x6020   : > { %14705 = vmatprep.subr.mxu1 %v15587_v1 }
0x6022   : > { %14703 = vmatmul.mubr.msk.f32.vlgmr.msra.gmra.mrb[134].mxu1 %vm441_vm2, %v11420_v36 }
0x6023   : > { %14706 = vmatpush3.msra.mxu1 %v11578_v38  ;;  %14707 = vmatprep.mubr.msk.f32.mxu1 %vm15586_vm0, %v15587_v1 }
0x6024   : > { %15272 = vmatprep.subr.bf16.mxu1 %v15585_v0 }
0x60f5   : > { %v11653_v37 = vpop.f32.mrb[134].mxu1 }
0x60f6   : > { %v11657_v39 = vmul.f32 0.35355338, %v11653_v37  ;;  %v14704_v40 = vpop.f32.mrb[135].mxu1 }
0x60f8   : > { %v11658_v55 = vsel %vm441_vm2, %v11657_v39, -inf }
0x60f9   : > { %11659 = vmax.xlane.f32.xlu0 %v11658_v55 }
0x6186   : > { %v11660_v41 = vpop.xlane.xlu0 %11659 }
0x6187   : > { %v11661_v43 = vsub.f32 %v11657_v39, %v11660_v41 }
0x6189   : > { %v11662_v44 = vmul.f32 1.442695, %v11661_v43 }
0x618b   : > { %15471 = vpow2.f32 %v11662_v44 }
0x6195   : > { %v15472_v45 = vpop.eup %15471 }
0x6196   : > { %v11664_v47 = vsel %vm441_vm2, %v15472_v45, 0.0 }
0x6197   : > { %11665 = vadd.xlane.f32.xlu1 %v11664_v47 }
0x6224   : > { %v11666_v50 = vpop.xlane.xlu1 %11665 }
0x6225   : > { %15473 = vrcp.f32 %v11666_v50 }
0x622f   : > { %v15474_v54 = vpop.eup %15473 }
0x6230   : > { %v11668_v60 = vmul.f32 %v15474_v54, %v15472_v45  ;;  %v16661_v54 = vld [vmem:[#allocation2 + $0xbb8] ss:$0 sm:$0xff] }
0x6232   : > { %14708 = vmatmul.mubr.msk.f32.vlgmr.msra.gmra.mrb[136].mxu1 %vm441_vm2, %v11668_v60  ;;  %v16664_v60 = vld [vmem:[#allocation2 + $0xbb9] ss:$0 sm:$0xff] }
0x6233   : > { %15274 = vmatpush3.bf16.msra.mxu1 %v15273_v58  ;;  %14723 = vmatprep.mubr.msk.f32.mxu1 %vm15586_vm0, %v15587_v1 }
0x6234   : > { %15275 = vmatprep.subr.bf16.mxu1 %v15585_v0 }
0x6237   : > { %15277 = vmatpush3.bf16.msra.mxu1 %v15276_v46 }
0x6238   : > { %15284 = vmatprep.subr.bf16.mxu1 %v15585_v0 }
0x623a   : > { %14724 = vmatmul.mubr.msk.f32.vlgmr.msra.gmra.mrb[138].mxu1 %vm209_vm1, %v16374_v28  ;;  %v12215_v28 = vld [vmem:[#allocation2 + $0xba8] sm:$0xff] }
0x623b   : > { %15286 = vmatpush3.bf16.msra.mxu1 %v15285_v62  ;;  %14745 = vmatprep.mubr.msk.f32.mxu1 %vm15586_vm0, %v15587_v1 }
0x623c   : > { %15287 = vmatprep.subr.bf16.mxu1 %v15585_v0 }
0x623f   : > { %15289 = vmatpush3.bf16.msra.mxu1 %v15288_v3 }
0x6240   : > { %14758 = vmatprep.subr.mxu1 %v15587_v1 }
0x6242   : > { %14746 = vmatmul.mubr.msk.f32.vlgmr.msra.gmra.mrb[140].mxu1 %vm209_vm1, %v16198_v53 }
0x6243   : > { %14760 = vmatprep.mubr.msk.f32.mxu1 %vm15586_vm0, %v15587_v1  ;;  %14759 = vmatpush3.msra.mxu1 %v12215_v28 }
0x6244   : > { %15296 = vmatprep.subr.bf16.mxu1 %v15585_v0 }
0x6305   : > { %v11738_v10 = vpop.f32.mrb[136].mxu1 }
0x6306   : > { %v14709_v12 = vpop.f32.mrb[137].mxu1  ;;  %14713 = vmatmul.mubr.msk.f32.vlgmr.msra.gmra.mrb[148].mxu0 %vm441_vm2, %v11738_v10  ;;  %v12308_v10 = vld [vmem:[#allocation2 + $0xbd0] sm:$0xff] }
0x6307   : > { %15280 = vmatpush3.bf16.msra.mxu0 %v15279_v6  ;;  %14734 = vmatprep.mubr.msk.f32.mxu0 %vm15586_vm0, %v15587_v1  ;;  %v12306_v6 = vld [vmem:[#allocation2 + $0xbc0] sm:$0xff]  ;;  %v12309_v12 = vld [vmem:[#allocation2 + $0xbd8] sm:$0xff] }
0x6308   : > { %15281 = vmatprep.subr.bf16.mxu0 %v15585_v0  ;;  %v15291_v8 = vpack.c.bf16 %v12307_v7, %v12306_v6 }
0x630b   : > { %15283 = vmatpush3.bf16.msra.mxu0 %v15282_v13  ;;  %v15294_v13 = vpack.c.bf16 %v12309_v12, %v12308_v10 }
0x630c   : > { %14748 = vmatprep.subr.mxu0 %v15587_v1 }
0x630d   : > { %v11892_v51 = vpop.f32.mrb[138].mxu1 }
0x630e   : > { %v14725_v15 = vpop.f32.mrb[139].mxu1  ;;  %14735 = vmatmul.mubr.msk.f32.vlgmr.msra.gmra.mrb[150].mxu0 %vm209_vm1, %v16198_v53  ;;  %v11893_v27 = vadd.f32 %v12936_v20, %v11892_v51  ;;  %v12389_v51 = vld [vmem:[#allocation2 + $0xbe8] sm:$0xff] }
0x630f   : > { %14750 = vmatprep.mubr.msk.f32.mxu0 %vm15586_vm0, %v15587_v1  ;;  %v12390_v15 = vld [vmem:[#allocation2 + $0xbf0] sm:$0xff] }
0x6315   : > { %v12050_v16 = vpop.f32.mrb[140].mxu1 }
0x6316   : > { %v14747_v17 = vpop.f32.mrb[141].mxu1  ;;  %v12051_v53 = vadd.f32 %v12940_v26, %v12050_v16  ;;  %v12391_v16 = vld [vmem:[#allocation2 + $0xbf8] sm:$0xff] }
0x6317   : > { %v15297_v17 = vpack.c.bf16 %v12390_v15, %v12389_v51 }
0x63d9   : > { %v11812_v18 = vpop.f32.mrb[148].mxu0 }
0x63da   : > { %v11816_v19 = vadd.f32 %v11812_v18, %v16606_v30  ;;  %v14714_v21 = vpop.f32.mrb[149].mxu0  ;;  %v12392_v18 = vld [vmem:[#allocation2 + $0xc00] sm:$0xff] }
0x63db   : > { %v12393_v21 = vld [vmem:[#allocation2 + $0xc08] sm:$0xff] }
0x63e1   : > { %v11971_v24 = vpop.f32.mrb[150].mxu0 }
0x63e2   : > { %v11972_v49 = vadd.f32 %v12938_v23, %v11971_v24  ;;  %v14736_v25 = vpop.f32.mrb[151].mxu0  ;;  %v12394_v23 = vld [vmem:[#allocation2 + $0xc10] sm:$0xff] }
0x63e3   : > { %v15303_v24 = vpack.c.bf16 %v12394_v23, %v12393_v21 }
0x63e4   : > { %14749 = vmatpush3.xpose.msk.msra.mxu0 %vm441_vm2, %v11972_v49 }
0x63e5   : > { %14753 = vmatprep.subr.mxu0 %v15587_v1 }
0x63e7   : > { %14751 = vmatmul.mubr.msk.f32.vlgmr.msra.gmra.mrb[152].mxu0 %vm441_vm2, %v11893_v27 }
0x63e8   : > { %14754 = vmatpush3.msra.mxu0 %v12051_v53  ;;  %14755 = vmatprep.mubr.msk.f32.mxu0 %vm15586_vm0, %v15587_v1 }
0x63e9   : > { %15290 = vmatprep.subr.bf16.mxu0 %v15585_v0 }
0x64ba   : > { %v12126_v29 = vpop.f32.mrb[152].mxu0 }
0x64bb   : > { %v12130_v22 = vmul.f32 0.35355338, %v12126_v29  ;;  %v14752_v30 = vpop.f32.mrb[153].mxu0 }
0x64bc   : > { %v12396_v30 = vld [vmem:[#allocation2 + $0xc20] sm:$0xff] }
0x64bd   : > { %v12131_v9 = vsel %vm441_vm2, %v12130_v22, -inf }
0x64be   : > { %12132 = vmax.xlane.f32.xlu0 %v12131_v9 }
0x64c2   : > { %10371 = vadd.xlane.f32.xlu0 %v10370_v31 }
0x654b   : > { %v12133_v32 = vpop.xlane.xlu0 %12132 }
0x654c   : > { %v12134_v33 = vsub.f32 %v12130_v22, %v12133_v32  ;;  %v12395_v22 = vld [vmem:[#allocation2 + $0xc18] sm:$0xff] }
0x654d   : > { %v15306_v9 = vpack.c.bf16 %v12396_v30, %v12395_v22 }
0x654e   : > { %v12135_v34 = vmul.f32 1.442695, %v12134_v33 }
0x654f   : > { %v10372_v35 = vpop.xlane.xlu0 %10371 }
0x6550   : > { %15475 = vpow2.f32 %v12135_v34  ;;  %v10373_v36 = vmul.f32 0.03125, %v10372_v35  ;;  %v12948_v35 = vld [vmem:[#allocation2 + $0xc28] ss:$0 sm:$0xff] }
0x6552   : > { %v10374_v38 = vsub.f32 %v10367_v11, %v10373_v36  ;;  %v12946_v11 = vld [vmem:[#allocation2 + $0xbe0] ss:$0 sm:$0xff] }
0x6554   : > { %v10375_v40 = vmul.f32 %v10374_v38, %v10374_v38 }
0x6556   : > { %v10376_v55 = vsel %vm209_vm1, %v10375_v40, 0.0 }
0x655a   : > { %v15476_v37 = vpop.eup %15475 }
0x655b   : > { %v12137_v39 = vsel %vm441_vm2, %v15476_v37, 0.0 }
0x655c   : > { %12138 = vadd.xlane.f32.xlu1 %v12137_v39 }
0x6560   : > { %10377 = vadd.xlane.f32.xlu1 %v10376_v55 }
0x65e9   : > { %v12139_v56 = vpop.xlane.xlu1 %12138 }
0x65ea   : > { %15477 = vrcp.f32 %v12139_v56 }
0x65ed   : > { %v10378_v47 = vpop.xlane.xlu1 %10377 }
0x65ee   : > { %v10379_v48 = vmul.f32 0.03125, %v10378_v47  ;;  %v12493_v47 = vld [vmem:[#allocation2 + $0xc40] sm:$0xff] }
0x65f0   : > { %v10380_v50 = vadd.f32 1e-05, %v10379_v48  ;;  %v12494_v48 = vld [vmem:[#allocation2 + $0xc48] sm:$0xff] }
0x65f2   : > { %15479 = vrsqrt.f32 %v10380_v50  ;;  %v15312_v50 = vpack.c.bf16 %v12494_v48, %v12493_v47 }
0x65f4   : > { %v15478_v41 = vpop.eup %15477 }
0x65f5   : > { %v12141_v43 = vmul.f32 %v15478_v41, %v15476_v37 }
0x65f7   : > { %14756 = vmatmul.mubr.msk.f32.vlgmr.msra.gmra.mrb[154].mxu0 %vm441_vm2, %v12141_v43  ;;  %v12491_v43 = vld [vmem:[#allocation2 + $0xc30] sm:$0xff] }
0x65f8   : > { %14771 = vmatprep.mubr.msk.f32.mxu0 %vm15586_vm0, %v15587_v1  ;;  %15292 = vmatpush3.bf16.msra.mxu0 %v15291_v8 }
0x65f9   : > { %15293 = vmatprep.subr.bf16.mxu0 %v15585_v0 }
0x65fc   : > { %v15480_v52 = vpop.eup %15479  ;;  %15295 = vmatpush3.bf16.msra.mxu0 %v15294_v13 }
0x65fd   : > { %v10382_v57 = vmul.f32 %v15480_v52, %v10374_v38  ;;  %15308 = vmatprep.subr.bf16.mxu0 %v15585_v0 }
0x65ff   : > { %v10387_v58 = vmul.f32 %v16661_v54, %v10382_v57 }
0x6601   : > { %v10392_v5 = vadd.f32 %v16664_v60, %v10387_v58 }
0x66ca   : > { %v12211_v44 = vpop.f32.mrb[154].mxu0 }
0x66cb   : > { %v14757_v45 = vpop.f32.mrb[155].mxu0  ;;  %14761 = vmatmul.mubr.msk.f32.vlgmr.msra.gmra.mrb[142].mxu1 %vm441_vm2, %v12211_v44  ;;  %v12492_v44 = vld [vmem:[#allocation2 + $0xc38] sm:$0xff] }
0x66cc   : > { %14790 = vmatprep.mubr.msk.f32.mxu1 %vm15586_vm0, %v15587_v1  ;;  %15298 = vmatpush3.bf16.msra.mxu1 %v15297_v17  ;;  %v15309_v45 = vpack.c.bf16 %v12492_v44, %v12491_v43 }
0x66cd   : > { %15299 = vmatprep.subr.bf16.mxu1 %v15585_v0 }
0x679e   : > { %v12285_v42 = vpop.f32.mrb[142].mxu1 }
0x679f   : > { %v12289_v61 = vadd.f32 %v12285_v42, %v11816_v19  ;;  %v14762_v46 = vpop.f32.mrb[143].mxu1  ;;  %v15300_v19 = vpack.c.bf16 %v12392_v18, %v12391_v16 }
0x67a1   : > { %v12290_v14 = vadd.f32 %v12289_v61, %v10392_v5  ;;  %15301 = vmatpush3.bf16.msra.mxu1 %v15300_v19 }
0x67a2   : > { %15302 = vmatprep.subr.bf16.mxu1 %v15585_v0 }
0x67a3   : > { %v12291_v62 = vsel %vm209_vm1, %v12290_v14, 0.0 }
0x67a4   : > { %12292 = vadd.xlane.f32.xlu0 %v12291_v62 }
0x67a5   : > { %15304 = vmatpush3.bf16.msra.mxu1 %v15303_v24 }
0x67a6   : > { %15305 = vmatprep.subr.bf16.mxu1 %v15585_v0 }
0x67a9   : > { %15307 = vmatpush3.bf16.msra.mxu1 %v15306_v9 }
0x6831   : > { %v12293_v59 = vpop.xlane.xlu0 %12292 }
0x6832   : > { %v12294_v63 = vmul.f32 0.03125, %v12293_v59 }
0x6834   : > { %v12295_v3 = vsub.f32 %v12290_v14, %v12294_v63 }
0x6836   : > { %v12296_v4 = vmul.f32 %v12295_v3, %v12295_v3 }
0x6838   : > { %v12297_v2 = vsel %vm209_vm1, %v12296_v4, 0.0 }
0x6839   : > { %12298 = vadd.xlane.f32.xlu1 %v12297_v2 }
0x68c6   : > { %v12299_v20 = vpop.xlane.xlu1 %12298 }
0x68c7   : > { %v12300_v49 = vmul.f32 0.03125, %v12299_v20 }
0x68c9   : > { %v12301_v25 = vadd.f32 1e-05, %v12300_v49 }
0x68cb   : > { %15481 = vrsqrt.f32 %v12301_v25 }
0x68d5   : > { %v15482_v26 = vpop.eup %15481 }
0x68d6   : > { %v12303_v27 = vmul.f32 %v15482_v26, %v12295_v3 }
0x68d8   : > { %v12304_v53 = vmul.f32 %v16661_v54, %v12303_v27 }
0x68da   : > { %v12305_v29 = vadd.f32 %v16664_v60, %v12304_v53 }
0x68dc   : > { %14772 = vmatmul.mubr.msk.f32.vlgmr.msra.gmra.mrb[156].mxu0 %vm209_vm1, %v12305_v29 }
0x68dd   : > { %14801 = vmatprep.mubr.msk.f32.mxu0 %vm15586_vm0, %v15587_v1  ;;  %15310 = vmatpush3.bf16.msra.mxu0 %v15309_v45 }
0x68de   : > { %15311 = vmatprep.subr.bf16.mxu0 %v15585_v0  ;;  %v12950_v0 = vld [vmem:[#allocation2 + $0xc50] ss:$0 sm:$0xff] }
0x68e1   : > { %15313 = vmatpush3.bf16.msra.mxu0 %v15312_v50 }
0x69af   : > { %v12384_v31 = vpop.f32.mrb[156].mxu0 }
0x69b0   : > { %v12385_v32 = vadd.f32 %v12946_v11, %v12384_v31  ;;  %v14773_v33 = vpop.f32.mrb[157].mxu0 }
0x69b2   : > { %v12388_v34 = vmax.f32 %v12385_v32, 0.0 }
0x69b4   : > { %14791 = vmatmul.mubr.msk.f32.vlgmr.msra.gmra.mrb[144].mxu1 %vm2224_vm3, %v12388_v34 }
0x6a87   : > { %v12471_v36 = vpop.f32.mrb[144].mxu1 }
0x6a88   : > { %v12472_v38 = vadd.f32 %v12948_v35, %v12471_v36  ;;  %v14792_v37 = vpop.f32.mrb[145].mxu1 }
0x6a8a   : > { %v12475_v39 = vadd.f32 %v12472_v38, %v12305_v29 }
0x6a8c   : > { %v12476_v40 = vsel %vm209_vm1, %v12475_v39, 0.0 }
0x6a8d   : > { %12477 = vadd.xlane.f32.xlu0 %v12476_v40 }
0x6b1a   : > { %v12478_v1 = vpop.xlane.xlu0 %12477 }
0x6b1b   : > { %v12479_v55 = vmul.f32 0.03125, %v12478_v1 }
0x6b1d   : > { %v12480_v28 = vsub.f32 %v12475_v39, %v12479_v55 }
0x6b1f   : > { %v12481_v56 = vmul.f32 %v12480_v28, %v12480_v28 }
0x6b21   : > { %v12482_v41 = vsel %vm209_vm1, %v12481_v56, 0.0 }
0x6b22   : > { %12483 = vadd.xlane.f32.xlu1 %v12482_v41 }
0x6baf   : > { %v12484_v52 = vpop.xlane.xlu1 %12483 }
0x6bb0   : > { %v12485_v57 = vmul.f32 0.03125, %v12484_v52 }
0x6bb2   : > { %v12486_v58 = vadd.f32 1e-05, %v12485_v57 }
0x6bb4   : > { %15483 = vrsqrt.f32 %v12486_v58 }
0x6bbe   : > { %v15484_v42 = vpop.eup %15483 }
0x6bbf   : > { %v12488_v61 = vmul.f32 %v15484_v42, %v12480_v28 }
0x6bc1   : > { %v12489_v46 = vmul.f32 %v16661_v54, %v12488_v61 }
0x6bc3   : > { %v12490_v5 = vadd.f32 %v16664_v60, %v12489_v46 }
0x6bc5   : > { %14802 = vmatmul.mubr.msk.f32.vlgmr.msra.gmra.mrb[158].mxu0 %vm209_vm1, %v12490_v5 }
0x6c98   : > { %v12569_v14 = vpop.f32.mrb[158].mxu0 }
0x6c99   : > { %v12570_v62 = vadd.f32 %v12950_v0, %v12569_v14  ;;  %v14803_v59 = vpop.f32.mrb[159].mxu0 }
0x6c9b   : > { %12573 = vst [vmem:[%s189_s6] sm:$0xff] %v12570_v62 }
0x6c9c   : > { %15527 = shalt.err (!%p15524_p7)
}
0x6c9d   : > { %s15528_s24 = scalar_lea.hbm %s16691_s10, 128  ;;  %s15532_s27 = scalar_lea.hbm %s16736_s3, 256 }
0x6c9e   : > { %p15529_p8 = scmp.ne.s32.totalorder %s16691_s10, %s15528_s24  ;;  %p15533_p1 = scmp.lt.u32.totalorder %s16691_s10, %s16736_s3 }
0x6c9f   : > { %p15534_p0 = scmp.lt.u32.totalorder %s15532_s27, %s15528_s24  ;;  %p15536_p6 = scmp.lt.u32.totalorder %s15528_s24, %s16691_s10 }
0x6ca0   : > { %p15530_p11 = pnand %p15529_p8, %p16747_p9 }
0x6ca1   : > { %p15535_p5 = por %p15534_p0, %p15533_p1 }
0x6ca2   : > { %p15531_p13 = pneg %p15530_p11 }
0x6ca3   : > { %p15537_p10 = por %p15536_p6, %p15535_p5 }
0x6ca5   : > { %p15538_p12 = pnand %p15537_p10, %p15531_p13 }
0x6ca7   : > { %15541 = shalt.err (!%p15538_p12)
}
0x6ca8   : > { %15318 = dma.vmem_to_hbm [thread:$0]  (%p16747_p9), %s16693_s7, 128, %s16691_s10, %s12575_s11  }
0x6ca9 PF: > { %p15330_p2 = scmp.ge.s32.totalorder %s15580_s15, 2  ;;  %s12600_s30 = sand.u32 1, %s15568_s12  }
0x6caa   : > { %p16748_p3 = scmp.ne.s32.totalorder %s16741_s23, 0  ;;  %s12601_s4 = scalar_lea.sflag [#allocation4], %s12600_s30 }
0x6cac   : > { %p15325_p4 = pnand %p15330_p2, %p16748_p3 }
0x6cae   : > { %15563 = dma.done.wait (!%p15325_p4), %s12601_s4, 128  }
0x6caf   : > { %15565 = vsyncadd (!%p15325_p4), %s12601_s4, 4294967168  ;;  %p14_p7 = scmp.ge.s32.totalorder %s15634_s18, 4   ;;  %s16749_s12 = smov %s15572_s13 }
0x6cb0   : > { %s16750_s13 = smov %s15576_s14  ;;  %s16751_s14 = smov %s15645_s21 }
0x6cb1   : > { %s16752_s15 = smov %s15634_s18  ;;  %16 = sbr.rel (!%p14_p7) target bundleno = 4 (0x4), region = 75 }
0x6cb8   :  { %12606 = vsyncpa [#allocation3], 1 }
0x6cb9   :  { %12608 = vsyncpa [#allocation3 + $0x1], 1 }
0x6cba   :  { %12609 = vsyncpa [#allocation4], 1 }
0x6cbb   :  { %12611 = vsyncpa [#allocation4 + $0x1], 1 }

</bundles_post_ra>
